<compile_context>
chip_gen: v5e
topology: v5e:2x2
jax: 0.10.0
libtpu: 0.0.40
codegen_flags: <defaults>
</compile_context>

<pallas_src>
import math

import numpy as np

import jax
import jax.numpy as jnp
from jax.experimental import pallas as pl
from jax.experimental.pallas import tpu as pltpu


MATMUL_DTYPE = jnp.bfloat16   # MXU input dtype; accumulation is always f32
_GN_EPS = 1e-5


def _mish(x):
    return x * jnp.tanh(jax.nn.softplus(x))


def _mm(a, w):
    """MXU matmul: bf16 inputs, f32 accumulation."""
    return jnp.dot(a.astype(MATMUL_DTYPE), w, preferred_element_type=jnp.float32)


# ----------------------------------------------------------------------------
# in-kernel building blocks (pure value-level, no scratch refs)
# ----------------------------------------------------------------------------
def _im2col(h, K):
    """[L, C] -> [L, K*C] shifted-view columns for a pad=K//2, stride=1 conv."""
    L, c = h.shape
    P = (K - 1) // 2
    zp = jnp.zeros((P, c), jnp.float32)
    hp = jnp.concatenate([zp, h, zp], axis=0)                          # [L+2P, C]
    return jnp.concatenate([hp[k:k + L, :] for k in range(K)], axis=1)


def _conv_gn_mish(h, wf, bias, gamma, beta, gavg):
    """Conv1d(k, pad=k//2) -> GroupNorm -> Mish on a [L, Cin] slab.

    wf: im2col-flattened weight [K*Cin, Cout]. gavg: [Cout, Cout] group
    membership matrix with the 1/(L*group_size) factor folded in, so each
    group statistic is a single matmul (no lane-splitting reshapes)."""
    cin = h.shape[1]
    K = wf.shape[0] // cin
    y = _mm(_im2col(h, K), wf) + bias                                  # [L, Cout] f32

    # GroupNorm, two-pass E[(x-mean)^2] form, f32 statistics
    mean_c = jnp.dot(jnp.sum(y, axis=0, keepdims=True), gavg,
                     preferred_element_type=jnp.float32)               # [1, Cout]
    d = y - mean_c
    var_c = jnp.dot(jnp.sum(d * d, axis=0, keepdims=True), gavg,
                    preferred_element_type=jnp.float32)
    yn = d * jax.lax.rsqrt(var_c + _GN_EPS) * gamma + beta
    return _mish(yn)


def _downsample(h, wf, bias, sel):
    """Conv1d(k=3, stride=2, pad=1): stride-1 im2col conv, then stride-2 pick
    via a tiny 0/1 selection matmul (avoids sublane-strided value slicing)."""
    c = h.shape[1]
    K = wf.shape[0] // c
    y = _mm(_im2col(h, K), wf) + bias                                  # [L, C]
    return jnp.dot(sel, y, preferred_element_type=jnp.float32)         # [ceil(L/2), C]


# ----------------------------------------------------------------------------
# fused kernel builder (unpacking order must match _flatten_inputs)
# ----------------------------------------------------------------------------
def _build_fused_kernel(structure, n_inputs):
    """structure: list per level of [has_res_conv, ...] flags (one per resnet)."""

    def kernel(*refs):
        assert len(refs) == n_inputs + 1
        out_ref = refs[n_inputs]
        it = iter(refs[:n_inputs])
        nxt = lambda: next(it)

        time_ref, freqs_ref, x_ref = nxt(), nxt(), nxt()
        t_w1, t_b1, t_w2, t_b2 = nxt(), nxt(), nxt(), nxt()

        # ---- time MLP: sinusoidal embedding -> Linear -> Mish -> Linear ----
        args = time_ref[0] * freqs_ref[...]                            # [1, dim//2]
        emb = jnp.concatenate([jnp.sin(args), jnp.cos(args)], axis=-1)  # [1, dim]
        t = _mm(_mish(_mm(emb, t_w1[...]) + t_b1[...]), t_w2[...]) + t_b2[...]
        mt = _mish(t)          # hoisted: mish(t) reused by every residual block

        h = x_ref[0].astype(jnp.float32)                               # [L, Cin]

        for flags in structure:
            gavg = nxt()[...]                                          # [Cout, Cout]
            for has_res in flags:
                w1f, w2f, wt = nxt(), nxt(), nxt()
                wr = nxt() if has_res else None
                vec = nxt()[...]                                       # packed [8, Cout]
                b1, g1, be1 = vec[0:1], vec[1:2], vec[2:3]
                b2, g2, be2 = vec[3:4], vec[4:5], vec[5:6]
                bt, br = vec[6:7], vec[7:8]

                y = _conv_gn_mish(h, w1f[...], b1, g1, be1, gavg)
                y = y + (_mm(mt, wt[...]) + bt)                        # time bias
                y = _conv_gn_mish(y, w2f[...], b2, g2, be2, gavg)
                # residual: 1x1 conv only when channel count changes
                h = y + ((_mm(h, wr[...]) + br) if has_res else h)

            wd, bd, sel = nxt(), nxt(), nxt()
            h = _downsample(h, wd[...], bd[...], sel[...])

        f_w1, f_b1, f_w2, f_b2 = nxt(), nxt(), nxt(), nxt()
        assert sum(1 for _ in it) == 0   # all inputs consumed (trace-time check)

        Lf, Cf = h.shape
        # PyTorch flattens [B, C, L] channel-major
        flat = h.reshape(1, Lf * Cf) if Lf == 1 else jnp.transpose(h).reshape(1, Lf * Cf)
        z = jnp.concatenate([flat, t], axis=-1)
        z = _mish(_mm(z, f_w1[...]) + f_b1[...])
        out = _mm(z, f_w2[...]) + f_b2[...]
        out_ref[...] = out.reshape(out_ref.shape).astype(out_ref.dtype)

    return kernel


# ----------------------------------------------------------------------------
# wrapper: flatten params into positional inputs + BlockSpecs, call the kernel
# ----------------------------------------------------------------------------
def _flatten_inputs(params, x, time):
    dim = params['dim']
    groups = params['n_groups']
    half = dim // 2
    B, L, _ = x.shape

    exponent = -math.log(10000.0) * jnp.arange(half, dtype=jnp.float32) / (half - 1)
    freqs = jnp.exp(exponent).reshape(1, half)
    time3 = jnp.asarray(time, jnp.float32).reshape(B, 1, 1)
    x3 = x.astype(jnp.float32)

    inputs = [time3, freqs, x3]
    specs = [
        pl.BlockSpec((1, 1, 1), lambda b: (b, 0, 0)),              # per-sample time
        pl.BlockSpec(freqs.shape, lambda b: (0, 0)),               # shared constant
        pl.BlockSpec((1,) + x3.shape[1:], lambda b: (b, 0, 0)),    # per-sample x
    ]

    def add(a):  # whole-array parameter, resident across grid steps (block idx const)
        assert a.ndim == 2
        inputs.append(a)
        specs.append(pl.BlockSpec(a.shape, lambda b: (0, 0)))

    for nm in ('t_w1', 't_b1', 't_w2', 't_b2'):
        add(params[nm])

    structure = []
    for blk in params['blocks']:
        cout = blk['cout']
        gs = cout // groups
        # group-membership matrix with the 1/(L*gs) normalization folded in
        gmem = (np.arange(cout)[:, None] // gs) == (np.arange(cout)[None, :] // gs)
        add(jnp.asarray(gmem.astype(np.float32) / float(L * gs)))

        flags = []
        for rp in blk['res']:
            add(rp['w1'].reshape(-1, cout))          # im2col-flattened [K*Cin, Cout]
            add(rp['w2'].reshape(-1, cout))
            add(rp['wt'])
            has_res = 'wr' in rp
            if has_res:
                add(rp['wr'])
            br = rp['br'] if has_res else jnp.zeros((1, cout), jnp.float32)
            add(jnp.concatenate([rp['b1'], rp['g1'], rp['be1'],
                                 rp['b2'], rp['g2'], rp['be2'],
                                 rp['bt'], br], axis=0))              # packed [8, Cout]
            flags.append(has_res)

        add(blk['down']['w'].reshape(-1, cout))
        add(blk['down']['b'])
        lout = (L - 1) // 2 + 1
        sel = (np.arange(L)[None, :] == 2 * np.arange(lout)[:, None]).astype(np.float32)
        add(jnp.asarray(sel))                                          # stride-2 pick matrix
        L = lout
        structure.append(flags)

    for nm in ('f_w1', 'f_b1', 'f_w2', 'f_b2'):
        add(params[nm])

    return inputs, specs, structure


def temporal_value_forward(params, x, cond, time):
    """x: [B, horizon, transition] (channels-last [B, L, C]); cond is unused."""
    del cond
    B = x.shape[0]
    out_dim = params['f_w2'].shape[1]

    inputs, in_specs, structure = _flatten_inputs(params, x, time)
    kernel = _build_fused_kernel(structure, n_inputs=len(inputs))

    out = pl.pallas_call(
        kernel,
        out_shape=jax.ShapeDtypeStruct((B, 1, out_dim), jnp.float32),
        grid=(B,),                     # one sample per grid step (parallel on v7x's 2 TCs)
        in_specs=in_specs,
        out_specs=pl.BlockSpec((1, 1, out_dim), lambda b: (b, 0, 0)),
        compiler_params=pltpu.CompilerParams(
            dimension_semantics=("parallel",)),
    )(*inputs)
    return out.reshape(B, out_dim)


# ----------------------------------------------------------------------------
# sinusoidal timestep embedding (parameter-free glue, also used by reference)
# ----------------------------------------------------------------------------
def get_timestep_embedding(timesteps, dim, max_period=10000.0):
    half = dim // 2
    exponent = -math.log(max_period) * jnp.arange(half, dtype=jnp.float32) / (half - 1)
    freqs = jnp.exp(exponent)
    args = timesteps.astype(jnp.float32)[:, None] * freqs[None, :]
    return jnp.concatenate([jnp.sin(args), jnp.cos(args)], axis=-1)


# ----------------------------------------------------------------------------
# parameter construction (PyTorch-default-style uniform init; matmul weights
# stored bfloat16 so kernel and reference use identical rounded values)
# ----------------------------------------------------------------------------
class _KeyGen:
    def __init__(self, key):
        self._key = key

    def __call__(self):
        self._key, sub = jax.random.split(self._key)
        return sub


def _uniform(key, shape, scale):
    return jax.random.uniform(key, shape, jnp.float32, -scale, scale)


def init_linear(kg, din, dout):
    s = 1.0 / math.sqrt(din)
    return (_uniform(kg(), (din, dout), s).astype(MATMUL_DTYPE),
            _uniform(kg(), (1, dout), s))


def init_conv(kg, cin, cout, k):
    # stored as [K, Cin, Cout] (== PyTorch weight[:, :, k].T for each tap k)
    s = 1.0 / math.sqrt(cin * k)
    return (_uniform(kg(), (k, cin, cout), s).astype(MATMUL_DTYPE),
            _uniform(kg(), (1, cout), s))


def init_temporal_value(key, horizon, transition_dim, cond_dim, dim=8,
                        time_dim=None, out_dim=1, dim_mults=(1, 2, 4, 8), n_groups=8):
    del cond_dim  # unused by the reference forward as well
    kg = _KeyGen(key)
    time_dim = time_dim or dim
    dims = [transition_dim] + [dim * m for m in dim_mults]
    in_out = list(zip(dims[:-1], dims[1:]))

    params = {'dim': dim, 'n_groups': n_groups}
    params['t_w1'], params['t_b1'] = init_linear(kg, dim, dim * 4)
    params['t_w2'], params['t_b2'] = init_linear(kg, dim * 4, dim)

    blocks = []
    h = horizon
    for (cin, cout) in in_out:
        resnets = []
        for ci in (cin, cout):
            w1, b1 = init_conv(kg, ci, cout, 5)
            w2, b2 = init_conv(kg, cout, cout, 5)
            wt, bt = init_linear(kg, time_dim, cout)
            rp = dict(w1=w1, b1=b1,
                      g1=jnp.ones((1, cout), jnp.float32),
                      be1=jnp.zeros((1, cout), jnp.float32),
                      w2=w2, b2=b2,
                      g2=jnp.ones((1, cout), jnp.float32),
                      be2=jnp.zeros((1, cout), jnp.float32),
                      wt=wt, bt=bt)
            if ci != cout:
                wr, br = init_conv(kg, ci, cout, 1)
                rp['wr'] = wr[0]            # [Cin, Cout]
                rp['br'] = br
            resnets.append(rp)
        wd, bd = init_conv(kg, cout, cout, 3)
        blocks.append(dict(cin=cin, cout=cout, res=resnets,
                           down=dict(w=wd, b=bd)))
        h = h // 2
    params['blocks'] = blocks

    fc_dim = dims[-1] * max(h, 1)
    params['f_w1'], params['f_b1'] = init_linear(kg, fc_dim + dim, fc_dim // 2)
    params['f_w2'], params['f_b2'] = init_linear(kg, fc_dim // 2, out_dim)
    return params


# ----------------------------------------------------------------------------
# pure-JAX reference (independent code path, f32 math on the same bf16 weights)
# ----------------------------------------------------------------------------
def _ref_conv1d(x, w, b, stride=1):
    K = w.shape[0]
    P = (K - 1) // 2
    L = x.shape[1]
    xp = jnp.pad(x, ((0, 0), (P, P), (0, 0)))
    lout = (L + 2 * P - K) // stride + 1
    cols = [jnp.einsum('bkc,kcd->bd', xp[:, j * stride:j * stride + K, :], w)
            for j in range(lout)]
    return jnp.stack(cols, axis=1) + b[None, :, :]


def _ref_groupnorm(x, gamma, beta, groups=8, eps=_GN_EPS):
    B, L, C = x.shape
    xg = x.reshape(B, L, groups, C // groups)
    mean = xg.mean(axis=(1, 3), keepdims=True)
    var = ((xg - mean) ** 2).mean(axis=(1, 3), keepdims=True)
    xn = ((xg - mean) / jnp.sqrt(var + eps)).reshape(B, L, C)
    return xn * gamma[None, :, :] + beta[None, :, :]


def _ref_forward(params, x, cond, time):
    del cond
    f32 = lambda a: a.astype(jnp.float32)
    B = x.shape[0]
    dim = params['dim']
    groups = params['n_groups']

    emb = get_timestep_embedding(time, dim)
    t = _mish(emb @ f32(params['t_w1']) + params['t_b1'])
    t = t @ f32(params['t_w2']) + params['t_b2']

    h = x.astype(jnp.float32)
    for blk in params['blocks']:
        for rp in blk['res']:
            tb = _mish(t) @ f32(rp['wt']) + rp['bt']
            b0 = _mish(_ref_groupnorm(_ref_conv1d(h, f32(rp['w1']), rp['b1']),
                                      rp['g1'], rp['be1'], groups))
            b0 = b0 + tb[:, None, :]
            b1 = _mish(_ref_groupnorm(_ref_conv1d(b0, f32(rp['w2']), rp['b2']),
                                      rp['g2'], rp['be2'], groups))
            res = (h @ f32(rp['wr']) + rp['br'][None, :, :]) if 'wr' in rp else h
            h = b1 + res
        h = _ref_conv1d(h, f32(blk['down']['w']), blk['down']['b'], stride=2)

    h_flat = jnp.transpose(h, (0, 2, 1)).reshape(B, -1)
    z = jnp.concatenate([h_flat, t], axis=-1)
    z = _mish(z @ f32(params['f_w1']) + params['f_b1'])
    return z @ f32(params['f_w2']) + params['f_b2']


# ----------------------------------------------------------------------------
if __name__ == "__main__":
    B, horizon, transition_dim, cond_dim, dim = 2, 16, 4, 4, 8

    key = jax.random.PRNGKey(0)
    k_param, k_x = jax.random.split(key)
    params = init_temporal_value(k_param, horizon, transition_dim, cond_dim, dim=dim)

    x = jax.random.normal(k_x, (B, horizon, transition_dim), jnp.float32)
    cond = jnp.zeros((B, cond_dim), jnp.float32)   # unused by forward (matches module)
    time = jnp.array([3.0, 125.0], jnp.float32)

    out = jax.block_until_ready(temporal_value_forward(params, x, cond, time))
    ref = jax.block_until_ready(_ref_forward(params, x, cond, time))

    assert out.shape == (B, 1)
    assert bool(jnp.all(jnp.isfinite(out)))
    # Kernel uses bf16 MXU inputs with f32 accumulation; reference does f32 math
    # on the same bf16-stored weights, so residual difference is only in-kernel
    # activation rounding (GroupNorm keeps magnitudes O(1), so it stays small).
    np.testing.assert_allclose(np.asarray(out), np.asarray(ref), rtol=5e-2, atol=5e-2)

    print("KERNEL_OK")
</pallas_src>

<mosaic_0001>
module attributes {stable_mosaic.version = 11 : i64} {
  func.func @kernel(%arg0: i32, %arg1: memref<1x1x1xf32, #tpu.memory_space<vmem>>, %arg2: memref<1x4xf32, #tpu.memory_space<vmem>>, %arg3: memref<1x16x4xf32, #tpu.memory_space<vmem>>, %arg4: memref<8x32xbf16, #tpu.memory_space<vmem>>, %arg5: memref<1x32xf32, #tpu.memory_space<vmem>>, %arg6: memref<32x8xbf16, #tpu.memory_space<vmem>>, %arg7: memref<1x8xf32, #tpu.memory_space<vmem>>, %arg8: memref<8x8xf32, #tpu.memory_space<vmem>>, %arg9: memref<20x8xbf16, #tpu.memory_space<vmem>>, %arg10: memref<40x8xbf16, #tpu.memory_space<vmem>>, %arg11: memref<8x8xbf16, #tpu.memory_space<vmem>>, %arg12: memref<4x8xbf16, #tpu.memory_space<vmem>>, %arg13: memref<8x8xf32, #tpu.memory_space<vmem>>, %arg14: memref<40x8xbf16, #tpu.memory_space<vmem>>, %arg15: memref<40x8xbf16, #tpu.memory_space<vmem>>, %arg16: memref<8x8xbf16, #tpu.memory_space<vmem>>, %arg17: memref<8x8xf32, #tpu.memory_space<vmem>>, %arg18: memref<24x8xbf16, #tpu.memory_space<vmem>>, %arg19: memref<1x8xf32, #tpu.memory_space<vmem>>, %arg20: memref<8x16xf32, #tpu.memory_space<vmem>>, %arg21: memref<16x16xf32, #tpu.memory_space<vmem>>, %arg22: memref<40x16xbf16, #tpu.memory_space<vmem>>, %arg23: memref<80x16xbf16, #tpu.memory_space<vmem>>, %arg24: memref<8x16xbf16, #tpu.memory_space<vmem>>, %arg25: memref<8x16xbf16, #tpu.memory_space<vmem>>, %arg26: memref<8x16xf32, #tpu.memory_space<vmem>>, %arg27: memref<80x16xbf16, #tpu.memory_space<vmem>>, %arg28: memref<80x16xbf16, #tpu.memory_space<vmem>>, %arg29: memref<8x16xbf16, #tpu.memory_space<vmem>>, %arg30: memref<8x16xf32, #tpu.memory_space<vmem>>, %arg31: memref<48x16xbf16, #tpu.memory_space<vmem>>, %arg32: memref<1x16xf32, #tpu.memory_space<vmem>>, %arg33: memref<4x8xf32, #tpu.memory_space<vmem>>, %arg34: memref<32x32xf32, #tpu.memory_space<vmem>>, %arg35: memref<80x32xbf16, #tpu.memory_space<vmem>>, %arg36: memref<160x32xbf16, #tpu.memory_space<vmem>>, %arg37: memref<8x32xbf16, #tpu.memory_space<vmem>>, %arg38: memref<16x32xbf16, #tpu.memory_space<vmem>>, %arg39: memref<8x32xf32, #tpu.memory_space<vmem>>, %arg40: memref<160x32xbf16, #tpu.memory_space<vmem>>, %arg41: memref<160x32xbf16, #tpu.memory_space<vmem>>, %arg42: memref<8x32xbf16, #tpu.memory_space<vmem>>, %arg43: memref<8x32xf32, #tpu.memory_space<vmem>>, %arg44: memref<96x32xbf16, #tpu.memory_space<vmem>>, %arg45: memref<1x32xf32, #tpu.memory_space<vmem>>, %arg46: memref<2x4xf32, #tpu.memory_space<vmem>>, %arg47: memref<64x64xf32, #tpu.memory_space<vmem>>, %arg48: memref<160x64xbf16, #tpu.memory_space<vmem>>, %arg49: memref<320x64xbf16, #tpu.memory_space<vmem>>, %arg50: memref<8x64xbf16, #tpu.memory_space<vmem>>, %arg51: memref<32x64xbf16, #tpu.memory_space<vmem>>, %arg52: memref<8x64xf32, #tpu.memory_space<vmem>>, %arg53: memref<320x64xbf16, #tpu.memory_space<vmem>>, %arg54: memref<320x64xbf16, #tpu.memory_space<vmem>>, %arg55: memref<8x64xbf16, #tpu.memory_space<vmem>>, %arg56: memref<8x64xf32, #tpu.memory_space<vmem>>, %arg57: memref<192x64xbf16, #tpu.memory_space<vmem>>, %arg58: memref<1x64xf32, #tpu.memory_space<vmem>>, %arg59: memref<1x2xf32, #tpu.memory_space<vmem>>, %arg60: memref<72x32xbf16, #tpu.memory_space<vmem>>, %arg61: memref<1x32xf32, #tpu.memory_space<vmem>>, %arg62: memref<32x1xbf16, #tpu.memory_space<vmem>>, %arg63: memref<1x1xf32, #tpu.memory_space<vmem>>, %arg64: memref<1x1x1xf32, #tpu.memory_space<vmem>>) attributes {dimension_semantics = [#tpu.dimension_semantics<parallel>], iteration_bounds = array<i64: 2>, scalar_prefetch = 0 : i64, scratch_operands = 0 : i64, tpu.core_type = #tpu.core_type<tc>, window_params = [{transform_indices = @transform_0, window_bounds = array<i64: 1, 1, 1>}, {pipeline_mode = #tpu.pipeline_mode<synchronous>, transform_indices = @transform_1, window_bounds = array<i64: 1, 4>}, {transform_indices = @transform_2, window_bounds = array<i64: 1, 16, 4>}, {pipeline_mode = #tpu.pipeline_mode<synchronous>, transform_indices = @transform_3, window_bounds = array<i64: 8, 32>}, {pipeline_mode = #tpu.pipeline_mode<synchronous>, transform_indices = @transform_4, window_bounds = array<i64: 1, 32>}, {pipeline_mode = #tpu.pipeline_mode<synchronous>, transform_indices = @transform_5, window_bounds = array<i64: 32, 8>}, {pipeline_mode = #tpu.pipeline_mode<synchronous>, transform_indices = @transform_6, window_bounds = array<i64: 1, 8>}, {pipeline_mode = #tpu.pipeline_mode<synchronous>, transform_indices = @transform_7, window_bounds = array<i64: 8, 8>}, {pipeline_mode = #tpu.pipeline_mode<synchronous>, transform_indices = @transform_8, window_bounds = array<i64: 20, 8>}, {pipeline_mode = #tpu.pipeline_mode<synchronous>, transform_indices = @transform_9, window_bounds = array<i64: 40, 8>}, {pipeline_mode = #tpu.pipeline_mode<synchronous>, transform_indices = @transform_10, window_bounds = array<i64: 8, 8>}, {pipeline_mode = #tpu.pipeline_mode<synchronous>, transform_indices = @transform_11, window_bounds = array<i64: 4, 8>}, {pipeline_mode = #tpu.pipeline_mode<synchronous>, transform_indices = @transform_12, window_bounds = array<i64: 8, 8>}, {pipeline_mode = #tpu.pipeline_mode<synchronous>, transform_indices = @transform_13, window_bounds = array<i64: 40, 8>}, {pipeline_mode = #tpu.pipeline_mode<synchronous>, transform_indices = @transform_14, window_bounds = array<i64: 40, 8>}, {pipeline_mode = #tpu.pipeline_mode<synchronous>, transform_indices = @transform_15, window_bounds = array<i64: 8, 8>}, {pipeline_mode = #tpu.pipeline_mode<synchronous>, transform_indices = @transform_16, window_bounds = array<i64: 8, 8>}, {pipeline_mode = #tpu.pipeline_mode<synchronous>, transform_indices = @transform_17, window_bounds = array<i64: 24, 8>}, {pipeline_mode = #tpu.pipeline_mode<synchronous>, transform_indices = @transform_18, window_bounds = array<i64: 1, 8>}, {pipeline_mode = #tpu.pipeline_mode<synchronous>, transform_indices = @transform_19, window_bounds = array<i64: 8, 16>}, {pipeline_mode = #tpu.pipeline_mode<synchronous>, transform_indices = @transform_20, window_bounds = array<i64: 16, 16>}, {pipeline_mode = #tpu.pipeline_mode<synchronous>, transform_indices = @transform_21, window_bounds = array<i64: 40, 16>}, {pipeline_mode = #tpu.pipeline_mode<synchronous>, transform_indices = @transform_22, window_bounds = array<i64: 80, 16>}, {pipeline_mode = #tpu.pipeline_mode<synchronous>, transform_indices = @transform_23, window_bounds = array<i64: 8, 16>}, {pipeline_mode = #tpu.pipeline_mode<synchronous>, transform_indices = @transform_24, window_bounds = array<i64: 8, 16>}, {pipeline_mode = #tpu.pipeline_mode<synchronous>, transform_indices = @transform_25, window_bounds = array<i64: 8, 16>}, {pipeline_mode = #tpu.pipeline_mode<synchronous>, transform_indices = @transform_26, window_bounds = array<i64: 80, 16>}, {pipeline_mode = #tpu.pipeline_mode<synchronous>, transform_indices = @transform_27, window_bounds = array<i64: 80, 16>}, {pipeline_mode = #tpu.pipeline_mode<synchronous>, transform_indices = @transform_28, window_bounds = array<i64: 8, 16>}, {pipeline_mode = #tpu.pipeline_mode<synchronous>, transform_indices = @transform_29, window_bounds = array<i64: 8, 16>}, {pipeline_mode = #tpu.pipeline_mode<synchronous>, transform_indices = @transform_30, window_bounds = array<i64: 48, 16>}, {pipeline_mode = #tpu.pipeline_mode<synchronous>, transform_indices = @transform_31, window_bounds = array<i64: 1, 16>}, {pipeline_mode = #tpu.pipeline_mode<synchronous>, transform_indices = @transform_32, window_bounds = array<i64: 4, 8>}, {pipeline_mode = #tpu.pipeline_mode<synchronous>, transform_indices = @transform_33, window_bounds = array<i64: 32, 32>}, {pipeline_mode = #tpu.pipeline_mode<synchronous>, transform_indices = @transform_34, window_bounds = array<i64: 80, 32>}, {pipeline_mode = #tpu.pipeline_mode<synchronous>, transform_indices = @transform_35, window_bounds = array<i64: 160, 32>}, {pipeline_mode = #tpu.pipeline_mode<synchronous>, transform_indices = @transform_36, window_bounds = array<i64: 8, 32>}, {pipeline_mode = #tpu.pipeline_mode<synchronous>, transform_indices = @transform_37, window_bounds = array<i64: 16, 32>}, {pipeline_mode = #tpu.pipeline_mode<synchronous>, transform_indices = @transform_38, window_bounds = array<i64: 8, 32>}, {pipeline_mode = #tpu.pipeline_mode<synchronous>, transform_indices = @transform_39, window_bounds = array<i64: 160, 32>}, {pipeline_mode = #tpu.pipeline_mode<synchronous>, transform_indices = @transform_40, window_bounds = array<i64: 160, 32>}, {pipeline_mode = #tpu.pipeline_mode<synchronous>, transform_indices = @transform_41, window_bounds = array<i64: 8, 32>}, {pipeline_mode = #tpu.pipeline_mode<synchronous>, transform_indices = @transform_42, window_bounds = array<i64: 8, 32>}, {pipeline_mode = #tpu.pipeline_mode<synchronous>, transform_indices = @transform_43, window_bounds = array<i64: 96, 32>}, {pipeline_mode = #tpu.pipeline_mode<synchronous>, transform_indices = @transform_44, window_bounds = array<i64: 1, 32>}, {pipeline_mode = #tpu.pipeline_mode<synchronous>, transform_indices = @transform_45, window_bounds = array<i64: 2, 4>}, {pipeline_mode = #tpu.pipeline_mode<synchronous>, transform_indices = @transform_46, window_bounds = array<i64: 64, 64>}, {pipeline_mode = #tpu.pipeline_mode<synchronous>, transform_indices = @transform_47, window_bounds = array<i64: 160, 64>}, {pipeline_mode = #tpu.pipeline_mode<synchronous>, transform_indices = @transform_48, window_bounds = array<i64: 320, 64>}, {pipeline_mode = #tpu.pipeline_mode<synchronous>, transform_indices = @transform_49, window_bounds = array<i64: 8, 64>}, {pipeline_mode = #tpu.pipeline_mode<synchronous>, transform_indices = @transform_50, window_bounds = array<i64: 32, 64>}, {pipeline_mode = #tpu.pipeline_mode<synchronous>, transform_indices = @transform_51, window_bounds = array<i64: 8, 64>}, {pipeline_mode = #tpu.pipeline_mode<synchronous>, transform_indices = @transform_52, window_bounds = array<i64: 320, 64>}, {pipeline_mode = #tpu.pipeline_mode<synchronous>, transform_indices = @transform_53, window_bounds = array<i64: 320, 64>}, {pipeline_mode = #tpu.pipeline_mode<synchronous>, transform_indices = @transform_54, window_bounds = array<i64: 8, 64>}, {pipeline_mode = #tpu.pipeline_mode<synchronous>, transform_indices = @transform_55, window_bounds = array<i64: 8, 64>}, {pipeline_mode = #tpu.pipeline_mode<synchronous>, transform_indices = @transform_56, window_bounds = array<i64: 192, 64>}, {pipeline_mode = #tpu.pipeline_mode<synchronous>, transform_indices = @transform_57, window_bounds = array<i64: 1, 64>}, {pipeline_mode = #tpu.pipeline_mode<synchronous>, transform_indices = @transform_58, window_bounds = array<i64: 1, 2>}, {pipeline_mode = #tpu.pipeline_mode<synchronous>, transform_indices = @transform_59, window_bounds = array<i64: 72, 32>}, {pipeline_mode = #tpu.pipeline_mode<synchronous>, transform_indices = @transform_60, window_bounds = array<i64: 1, 32>}, {pipeline_mode = #tpu.pipeline_mode<synchronous>, transform_indices = @transform_61, window_bounds = array<i64: 32, 1>}, {pipeline_mode = #tpu.pipeline_mode<synchronous>, transform_indices = @transform_62, window_bounds = array<i64: 1, 1>}, {transform_indices = @transform_63, window_bounds = array<i64: 1, 1, 1>}]} {
    %c0 = arith.constant 0 : index
    %c0_0 = arith.constant 0 : index
    %c0_1 = arith.constant 0 : index
    %0 = vector.load %arg1[%c0, %c0_0, %c0_1] : memref<1x1x1xf32, #tpu.memory_space<vmem>>, vector<1x1x1xf32>
    %1 = vector.shape_cast %0 : vector<1x1x1xf32> to vector<1x1xf32>
    %c0_2 = arith.constant 0 : index
    %c0_3 = arith.constant 0 : index
    %2 = vector.load %arg2[%c0_2, %c0_3] : memref<1x4xf32, #tpu.memory_space<vmem>>, vector<1x4xf32>
    %3 = vector.broadcast %1 : vector<1x1xf32> to vector<1x4xf32>
    %4 = arith.mulf %3, %2 : vector<1x4xf32>
    %5 = math.sin %4 : vector<1x4xf32>
    %6 = math.cos %4 : vector<1x4xf32>
    %7 = tpu.concatenate %5, %6 in 1 : vector<1x4xf32>, vector<1x4xf32> -> vector<1x8xf32>
    %c0_4 = arith.constant 0 : index
    %c0_5 = arith.constant 0 : index
    %8 = vector.load %arg4[%c0_4, %c0_5] : memref<8x32xbf16, #tpu.memory_space<vmem>>, vector<8x32xbf16>
    %9 = arith.truncf %7 : vector<1x8xf32> to vector<1x8xbf16>
    %cst = arith.constant dense<0.000000e+00> : vector<1x32xf32>
    %10 = tpu.matmul %9, %8, %cst {dimension_numbers = #tpu.dot_dimension_numbers<[1], [0], [0], [1], [0, 0, 1, 1], [], []>} : vector<1x8xbf16>, vector<8x32xbf16>, vector<1x32xf32> -> vector<1x32xf32>
    %c0_6 = arith.constant 0 : index
    %c0_7 = arith.constant 0 : index
    %11 = vector.load %arg5[%c0_6, %c0_7] : memref<1x32xf32, #tpu.memory_space<vmem>>, vector<1x32xf32>
    %12 = arith.addf %10, %11 : vector<1x32xf32>
    %cst_8 = arith.constant 0.000000e+00 : f32
    %13 = vector.broadcast %cst_8 : f32 to vector<1x32xf32>
    %14 = arith.maximumf %12, %13 : vector<1x32xf32>
    %15 = vector.broadcast %cst_8 : f32 to vector<1x32xf32>
    %16 = arith.subf %12, %15 : vector<1x32xf32>
    %17 = arith.cmpf one, %16, %16 : vector<1x32xf32>
    %18 = vector.broadcast %cst_8 : f32 to vector<1x32xf32>
    %19 = arith.addf %12, %18 : vector<1x32xf32>
    %20 = math.absf %16 : vector<1x32xf32>
    %cst_9 = arith.constant 0.000000e+00 : f32
    %21 = vector.broadcast %cst_9 : f32 to vector<1x32xf32>
    %22 = arith.subf %21, %20 : vector<1x32xf32>
    %23 = math.exp %22 : vector<1x32xf32>
    %24 = math.log1p %23 : vector<1x32xf32>
    %25 = arith.addf %14, %24 : vector<1x32xf32>
    %26 = arith.select %17, %19, %25 : vector<1x32xi1>, vector<1x32xf32>
    %27 = math.tanh %26 : vector<1x32xf32>
    %28 = arith.mulf %12, %27 : vector<1x32xf32>
    %c0_10 = arith.constant 0 : index
    %c0_11 = arith.constant 0 : index
    %29 = vector.load %arg6[%c0_10, %c0_11] : memref<32x8xbf16, #tpu.memory_space<vmem>>, vector<32x8xbf16>
    %30 = arith.truncf %28 : vector<1x32xf32> to vector<1x32xbf16>
    %cst_12 = arith.constant dense<0.000000e+00> : vector<1x8xf32>
    %31 = tpu.matmul %30, %29, %cst_12 {dimension_numbers = #tpu.dot_dimension_numbers<[1], [0], [0], [1], [0, 0, 1, 1], [], []>} : vector<1x32xbf16>, vector<32x8xbf16>, vector<1x8xf32> -> vector<1x8xf32>
    %c0_13 = arith.constant 0 : index
    %c0_14 = arith.constant 0 : index
    %32 = vector.load %arg7[%c0_13, %c0_14] : memref<1x8xf32, #tpu.memory_space<vmem>>, vector<1x8xf32>
    %33 = arith.addf %31, %32 : vector<1x8xf32>
    %cst_15 = arith.constant 0.000000e+00 : f32
    %34 = vector.broadcast %cst_15 : f32 to vector<1x8xf32>
    %35 = arith.maximumf %33, %34 : vector<1x8xf32>
    %36 = vector.broadcast %cst_15 : f32 to vector<1x8xf32>
    %37 = arith.subf %33, %36 : vector<1x8xf32>
    %38 = arith.cmpf one, %37, %37 : vector<1x8xf32>
    %39 = vector.broadcast %cst_15 : f32 to vector<1x8xf32>
    %40 = arith.addf %33, %39 : vector<1x8xf32>
    %41 = math.absf %37 : vector<1x8xf32>
    %cst_16 = arith.constant 0.000000e+00 : f32
    %42 = vector.broadcast %cst_16 : f32 to vector<1x8xf32>
    %43 = arith.subf %42, %41 : vector<1x8xf32>
    %44 = math.exp %43 : vector<1x8xf32>
    %45 = math.log1p %44 : vector<1x8xf32>
    %46 = arith.addf %35, %45 : vector<1x8xf32>
    %47 = arith.select %38, %40, %46 : vector<1x8xi1>, vector<1x8xf32>
    %48 = math.tanh %47 : vector<1x8xf32>
    %49 = arith.mulf %33, %48 : vector<1x8xf32>
    %c0_17 = arith.constant 0 : index
    %c0_18 = arith.constant 0 : index
    %c0_19 = arith.constant 0 : index
    %50 = vector.load %arg3[%c0_17, %c0_18, %c0_19] : memref<1x16x4xf32, #tpu.memory_space<vmem>>, vector<1x16x4xf32>
    %51 = vector.shape_cast %50 : vector<1x16x4xf32> to vector<16x4xf32>
    %c0_20 = arith.constant 0 : index
    %c0_21 = arith.constant 0 : index
    %52 = vector.load %arg8[%c0_20, %c0_21] : memref<8x8xf32, #tpu.memory_space<vmem>>, vector<8x8xf32>
    %c0_22 = arith.constant 0 : index
    %c0_23 = arith.constant 0 : index
    %53 = vector.load %arg13[%c0_22, %c0_23] : memref<8x8xf32, #tpu.memory_space<vmem>>, vector<8x8xf32>
    %54 = vector.extract_strided_slice %53 {offsets = [0, 0], sizes = [1, 8], strides = [1, 1]} : vector<8x8xf32> to vector<1x8xf32>
    %55 = vector.extract_strided_slice %53 {offsets = [1, 0], sizes = [1, 8], strides = [1, 1]} : vector<8x8xf32> to vector<1x8xf32>
    %56 = vector.extract_strided_slice %53 {offsets = [2, 0], sizes = [1, 8], strides = [1, 1]} : vector<8x8xf32> to vector<1x8xf32>
    %57 = vector.extract_strided_slice %53 {offsets = [3, 0], sizes = [1, 8], strides = [1, 1]} : vector<8x8xf32> to vector<1x8xf32>
    %58 = vector.extract_strided_slice %53 {offsets = [4, 0], sizes = [1, 8], strides = [1, 1]} : vector<8x8xf32> to vector<1x8xf32>
    %59 = vector.extract_strided_slice %53 {offsets = [5, 0], sizes = [1, 8], strides = [1, 1]} : vector<8x8xf32> to vector<1x8xf32>
    %60 = vector.extract_strided_slice %53 {offsets = [6, 0], sizes = [1, 8], strides = [1, 1]} : vector<8x8xf32> to vector<1x8xf32>
    %61 = vector.extract_strided_slice %53 {offsets = [7, 0], sizes = [1, 8], strides = [1, 1]} : vector<8x8xf32> to vector<1x8xf32>
    %c0_24 = arith.constant 0 : index
    %c0_25 = arith.constant 0 : index
    %62 = vector.load %arg9[%c0_24, %c0_25] : memref<20x8xbf16, #tpu.memory_space<vmem>>, vector<20x8xbf16>
    %cst_26 = arith.constant 0.000000e+00 : f32
    %63 = vector.broadcast %cst_26 : f32 to vector<2x4xf32>
    %64 = tpu.concatenate %63, %51, %63 in 0 : vector<2x4xf32>, vector<16x4xf32>, vector<2x4xf32> -> vector<20x4xf32>
    %65 = vector.extract_strided_slice %64 {offsets = [0, 0], sizes = [16, 4], strides = [1, 1]} : vector<20x4xf32> to vector<16x4xf32>
    %66 = vector.extract_strided_slice %64 {offsets = [1, 0], sizes = [16, 4], strides = [1, 1]} : vector<20x4xf32> to vector<16x4xf32>
    %67 = vector.extract_strided_slice %64 {offsets = [2, 0], sizes = [16, 4], strides = [1, 1]} : vector<20x4xf32> to vector<16x4xf32>
    %68 = vector.extract_strided_slice %64 {offsets = [3, 0], sizes = [16, 4], strides = [1, 1]} : vector<20x4xf32> to vector<16x4xf32>
    %69 = vector.extract_strided_slice %64 {offsets = [4, 0], sizes = [16, 4], strides = [1, 1]} : vector<20x4xf32> to vector<16x4xf32>
    %70 = tpu.concatenate %65, %66, %67, %68, %69 in 1 : vector<16x4xf32>, vector<16x4xf32>, vector<16x4xf32>, vector<16x4xf32>, vector<16x4xf32> -> vector<16x20xf32>
    %71 = arith.truncf %70 : vector<16x20xf32> to vector<16x20xbf16>
    %cst_27 = arith.constant dense<0.000000e+00> : vector<16x8xf32>
    %72 = tpu.matmul %71, %62, %cst_27 {dimension_numbers = #tpu.dot_dimension_numbers<[1], [0], [0], [1], [0, 0, 1, 1], [], []>} : vector<16x20xbf16>, vector<20x8xbf16>, vector<16x8xf32> -> vector<16x8xf32>
    %73 = vector.broadcast %54 : vector<1x8xf32> to vector<16x8xf32>
    %74 = arith.addf %72, %73 : vector<16x8xf32>
    %cst_28 = arith.constant dense<0.000000e+00> : vector<8xf32>
    %75 = vector.multi_reduction <add>, %74, %cst_28 [0] : vector<16x8xf32> to vector<8xf32>
    %76 = vector.shape_cast %75 : vector<8xf32> to vector<1x8xf32>
    %cst_29 = arith.constant dense<0.000000e+00> : vector<1x8xf32>
    %77 = tpu.matmul %76, %52, %cst_29 {dimension_numbers = #tpu.dot_dimension_numbers<[1], [0], [0], [1], [0, 0, 1, 1], [], []>} : vector<1x8xf32>, vector<8x8xf32>, vector<1x8xf32> -> vector<1x8xf32>
    %78 = vector.broadcast %77 : vector<1x8xf32> to vector<16x8xf32>
    %79 = arith.subf %74, %78 : vector<16x8xf32>
    %80 = arith.mulf %79, %79 : vector<16x8xf32>
    %cst_30 = arith.constant dense<0.000000e+00> : vector<8xf32>
    %81 = vector.multi_reduction <add>, %80, %cst_30 [0] : vector<16x8xf32> to vector<8xf32>
    %82 = vector.shape_cast %81 : vector<8xf32> to vector<1x8xf32>
    %cst_31 = arith.constant dense<0.000000e+00> : vector<1x8xf32>
    %83 = tpu.matmul %82, %52, %cst_31 {dimension_numbers = #tpu.dot_dimension_numbers<[1], [0], [0], [1], [0, 0, 1, 1], [], []>} : vector<1x8xf32>, vector<8x8xf32>, vector<1x8xf32> -> vector<1x8xf32>
    %cst_32 = arith.constant 9.99999974E-6 : f32
    %84 = vector.broadcast %cst_32 : f32 to vector<1x8xf32>
    %85 = arith.addf %83, %84 : vector<1x8xf32>
    %86 = math.rsqrt %85 : vector<1x8xf32>
    %87 = vector.broadcast %86 : vector<1x8xf32> to vector<16x8xf32>
    %88 = arith.mulf %79, %87 : vector<16x8xf32>
    %89 = vector.broadcast %55 : vector<1x8xf32> to vector<16x8xf32>
    %90 = arith.mulf %88, %89 : vector<16x8xf32>
    %91 = vector.broadcast %56 : vector<1x8xf32> to vector<16x8xf32>
    %92 = arith.addf %90, %91 : vector<16x8xf32>
    %cst_33 = arith.constant 0.000000e+00 : f32
    %93 = vector.broadcast %cst_33 : f32 to vector<16x8xf32>
    %94 = arith.maximumf %92, %93 : vector<16x8xf32>
    %95 = vector.broadcast %cst_33 : f32 to vector<16x8xf32>
    %96 = arith.subf %92, %95 : vector<16x8xf32>
    %97 = arith.cmpf one, %96, %96 : vector<16x8xf32>
    %98 = vector.broadcast %cst_33 : f32 to vector<16x8xf32>
    %99 = arith.addf %92, %98 : vector<16x8xf32>
    %100 = math.absf %96 : vector<16x8xf32>
    %cst_34 = arith.constant 0.000000e+00 : f32
    %101 = vector.broadcast %cst_34 : f32 to vector<16x8xf32>
    %102 = arith.subf %101, %100 : vector<16x8xf32>
    %103 = math.exp %102 : vector<16x8xf32>
    %104 = math.log1p %103 : vector<16x8xf32>
    %105 = arith.addf %94, %104 : vector<16x8xf32>
    %106 = arith.select %97, %99, %105 : vector<16x8xi1>, vector<16x8xf32>
    %107 = math.tanh %106 : vector<16x8xf32>
    %108 = arith.mulf %92, %107 : vector<16x8xf32>
    %c0_35 = arith.constant 0 : index
    %c0_36 = arith.constant 0 : index
    %109 = vector.load %arg11[%c0_35, %c0_36] : memref<8x8xbf16, #tpu.memory_space<vmem>>, vector<8x8xbf16>
    %110 = arith.truncf %49 : vector<1x8xf32> to vector<1x8xbf16>
    %cst_37 = arith.constant dense<0.000000e+00> : vector<1x8xf32>
    %111 = tpu.matmul %110, %109, %cst_37 {dimension_numbers = #tpu.dot_dimension_numbers<[1], [0], [0], [1], [0, 0, 1, 1], [], []>} : vector<1x8xbf16>, vector<8x8xbf16>, vector<1x8xf32> -> vector<1x8xf32>
    %112 = arith.addf %111, %60 : vector<1x8xf32>
    %113 = vector.broadcast %112 : vector<1x8xf32> to vector<16x8xf32>
    %114 = arith.addf %108, %113 : vector<16x8xf32>
    %c0_38 = arith.constant 0 : index
    %c0_39 = arith.constant 0 : index
    %115 = vector.load %arg10[%c0_38, %c0_39] : memref<40x8xbf16, #tpu.memory_space<vmem>>, vector<40x8xbf16>
    %cst_40 = arith.constant 0.000000e+00 : f32
    %116 = vector.broadcast %cst_40 : f32 to vector<2x8xf32>
    %117 = tpu.concatenate %116, %114, %116 in 0 : vector<2x8xf32>, vector<16x8xf32>, vector<2x8xf32> -> vector<20x8xf32>
    %118 = vector.extract_strided_slice %117 {offsets = [0, 0], sizes = [16, 8], strides = [1, 1]} : vector<20x8xf32> to vector<16x8xf32>
    %119 = vector.extract_strided_slice %117 {offsets = [1, 0], sizes = [16, 8], strides = [1, 1]} : vector<20x8xf32> to vector<16x8xf32>
    %120 = vector.extract_strided_slice %117 {offsets = [2, 0], sizes = [16, 8], strides = [1, 1]} : vector<20x8xf32> to vector<16x8xf32>
    %121 = vector.extract_strided_slice %117 {offsets = [3, 0], sizes = [16, 8], strides = [1, 1]} : vector<20x8xf32> to vector<16x8xf32>
    %122 = vector.extract_strided_slice %117 {offsets = [4, 0], sizes = [16, 8], strides = [1, 1]} : vector<20x8xf32> to vector<16x8xf32>
    %123 = tpu.concatenate %118, %119, %120, %121, %122 in 1 : vector<16x8xf32>, vector<16x8xf32>, vector<16x8xf32>, vector<16x8xf32>, vector<16x8xf32> -> vector<16x40xf32>
    %124 = arith.truncf %123 : vector<16x40xf32> to vector<16x40xbf16>
    %cst_41 = arith.constant dense<0.000000e+00> : vector<16x8xf32>
    %125 = tpu.matmul %124, %115, %cst_41 {dimension_numbers = #tpu.dot_dimension_numbers<[1], [0], [0], [1], [0, 0, 1, 1], [], []>} : vector<16x40xbf16>, vector<40x8xbf16>, vector<16x8xf32> -> vector<16x8xf32>
    %126 = vector.broadcast %57 : vector<1x8xf32> to vector<16x8xf32>
    %127 = arith.addf %125, %126 : vector<16x8xf32>
    %cst_42 = arith.constant dense<0.000000e+00> : vector<8xf32>
    %128 = vector.multi_reduction <add>, %127, %cst_42 [0] : vector<16x8xf32> to vector<8xf32>
    %129 = vector.shape_cast %128 : vector<8xf32> to vector<1x8xf32>
    %cst_43 = arith.constant dense<0.000000e+00> : vector<1x8xf32>
    %130 = tpu.matmul %129, %52, %cst_43 {dimension_numbers = #tpu.dot_dimension_numbers<[1], [0], [0], [1], [0, 0, 1, 1], [], []>} : vector<1x8xf32>, vector<8x8xf32>, vector<1x8xf32> -> vector<1x8xf32>
    %131 = vector.broadcast %130 : vector<1x8xf32> to vector<16x8xf32>
    %132 = arith.subf %127, %131 : vector<16x8xf32>
    %133 = arith.mulf %132, %132 : vector<16x8xf32>
    %cst_44 = arith.constant dense<0.000000e+00> : vector<8xf32>
    %134 = vector.multi_reduction <add>, %133, %cst_44 [0] : vector<16x8xf32> to vector<8xf32>
    %135 = vector.shape_cast %134 : vector<8xf32> to vector<1x8xf32>
    %cst_45 = arith.constant dense<0.000000e+00> : vector<1x8xf32>
    %136 = tpu.matmul %135, %52, %cst_45 {dimension_numbers = #tpu.dot_dimension_numbers<[1], [0], [0], [1], [0, 0, 1, 1], [], []>} : vector<1x8xf32>, vector<8x8xf32>, vector<1x8xf32> -> vector<1x8xf32>
    %cst_46 = arith.constant 9.99999974E-6 : f32
    %137 = vector.broadcast %cst_46 : f32 to vector<1x8xf32>
    %138 = arith.addf %136, %137 : vector<1x8xf32>
    %139 = math.rsqrt %138 : vector<1x8xf32>
    %140 = vector.broadcast %139 : vector<1x8xf32> to vector<16x8xf32>
    %141 = arith.mulf %132, %140 : vector<16x8xf32>
    %142 = vector.broadcast %58 : vector<1x8xf32> to vector<16x8xf32>
    %143 = arith.mulf %141, %142 : vector<16x8xf32>
    %144 = vector.broadcast %59 : vector<1x8xf32> to vector<16x8xf32>
    %145 = arith.addf %143, %144 : vector<16x8xf32>
    %cst_47 = arith.constant 0.000000e+00 : f32
    %146 = vector.broadcast %cst_47 : f32 to vector<16x8xf32>
    %147 = arith.maximumf %145, %146 : vector<16x8xf32>
    %148 = vector.broadcast %cst_47 : f32 to vector<16x8xf32>
    %149 = arith.subf %145, %148 : vector<16x8xf32>
    %150 = arith.cmpf one, %149, %149 : vector<16x8xf32>
    %151 = vector.broadcast %cst_47 : f32 to vector<16x8xf32>
    %152 = arith.addf %145, %151 : vector<16x8xf32>
    %153 = math.absf %149 : vector<16x8xf32>
    %cst_48 = arith.constant 0.000000e+00 : f32
    %154 = vector.broadcast %cst_48 : f32 to vector<16x8xf32>
    %155 = arith.subf %154, %153 : vector<16x8xf32>
    %156 = math.exp %155 : vector<16x8xf32>
    %157 = math.log1p %156 : vector<16x8xf32>
    %158 = arith.addf %147, %157 : vector<16x8xf32>
    %159 = arith.select %150, %152, %158 : vector<16x8xi1>, vector<16x8xf32>
    %160 = math.tanh %159 : vector<16x8xf32>
    %161 = arith.mulf %145, %160 : vector<16x8xf32>
    %c0_49 = arith.constant 0 : index
    %c0_50 = arith.constant 0 : index
    %162 = vector.load %arg12[%c0_49, %c0_50] : memref<4x8xbf16, #tpu.memory_space<vmem>>, vector<4x8xbf16>
    %163 = arith.truncf %51 : vector<16x4xf32> to vector<16x4xbf16>
    %cst_51 = arith.constant dense<0.000000e+00> : vector<16x8xf32>
    %164 = tpu.matmul %163, %162, %cst_51 {dimension_numbers = #tpu.dot_dimension_numbers<[1], [0], [0], [1], [0, 0, 1, 1], [], []>} : vector<16x4xbf16>, vector<4x8xbf16>, vector<16x8xf32> -> vector<16x8xf32>
    %165 = vector.broadcast %61 : vector<1x8xf32> to vector<16x8xf32>
    %166 = arith.addf %164, %165 : vector<16x8xf32>
    %167 = arith.addf %161, %166 : vector<16x8xf32>
    %c0_52 = arith.constant 0 : index
    %c0_53 = arith.constant 0 : index
    %168 = vector.load %arg17[%c0_52, %c0_53] : memref<8x8xf32, #tpu.memory_space<vmem>>, vector<8x8xf32>
    %169 = vector.extract_strided_slice %168 {offsets = [0, 0], sizes = [1, 8], strides = [1, 1]} : vector<8x8xf32> to vector<1x8xf32>
    %170 = vector.extract_strided_slice %168 {offsets = [1, 0], sizes = [1, 8], strides = [1, 1]} : vector<8x8xf32> to vector<1x8xf32>
    %171 = vector.extract_strided_slice %168 {offsets = [2, 0], sizes = [1, 8], strides = [1, 1]} : vector<8x8xf32> to vector<1x8xf32>
    %172 = vector.extract_strided_slice %168 {offsets = [3, 0], sizes = [1, 8], strides = [1, 1]} : vector<8x8xf32> to vector<1x8xf32>
    %173 = vector.extract_strided_slice %168 {offsets = [4, 0], sizes = [1, 8], strides = [1, 1]} : vector<8x8xf32> to vector<1x8xf32>
    %174 = vector.extract_strided_slice %168 {offsets = [5, 0], sizes = [1, 8], strides = [1, 1]} : vector<8x8xf32> to vector<1x8xf32>
    %175 = vector.extract_strided_slice %168 {offsets = [6, 0], sizes = [1, 8], strides = [1, 1]} : vector<8x8xf32> to vector<1x8xf32>
    %c0_54 = arith.constant 0 : index
    %c0_55 = arith.constant 0 : index
    %176 = vector.load %arg14[%c0_54, %c0_55] : memref<40x8xbf16, #tpu.memory_space<vmem>>, vector<40x8xbf16>
    %cst_56 = arith.constant 0.000000e+00 : f32
    %177 = vector.broadcast %cst_56 : f32 to vector<2x8xf32>
    %178 = tpu.concatenate %177, %167, %177 in 0 : vector<2x8xf32>, vector<16x8xf32>, vector<2x8xf32> -> vector<20x8xf32>
    %179 = vector.extract_strided_slice %178 {offsets = [0, 0], sizes = [16, 8], strides = [1, 1]} : vector<20x8xf32> to vector<16x8xf32>
    %180 = vector.extract_strided_slice %178 {offsets = [1, 0], sizes = [16, 8], strides = [1, 1]} : vector<20x8xf32> to vector<16x8xf32>
    %181 = vector.extract_strided_slice %178 {offsets = [2, 0], sizes = [16, 8], strides = [1, 1]} : vector<20x8xf32> to vector<16x8xf32>
    %182 = vector.extract_strided_slice %178 {offsets = [3, 0], sizes = [16, 8], strides = [1, 1]} : vector<20x8xf32> to vector<16x8xf32>
    %183 = vector.extract_strided_slice %178 {offsets = [4, 0], sizes = [16, 8], strides = [1, 1]} : vector<20x8xf32> to vector<16x8xf32>
    %184 = tpu.concatenate %179, %180, %181, %182, %183 in 1 : vector<16x8xf32>, vector<16x8xf32>, vector<16x8xf32>, vector<16x8xf32>, vector<16x8xf32> -> vector<16x40xf32>
    %185 = arith.truncf %184 : vector<16x40xf32> to vector<16x40xbf16>
    %cst_57 = arith.constant dense<0.000000e+00> : vector<16x8xf32>
    %186 = tpu.matmul %185, %176, %cst_57 {dimension_numbers = #tpu.dot_dimension_numbers<[1], [0], [0], [1], [0, 0, 1, 1], [], []>} : vector<16x40xbf16>, vector<40x8xbf16>, vector<16x8xf32> -> vector<16x8xf32>
    %187 = vector.broadcast %169 : vector<1x8xf32> to vector<16x8xf32>
    %188 = arith.addf %186, %187 : vector<16x8xf32>
    %cst_58 = arith.constant dense<0.000000e+00> : vector<8xf32>
    %189 = vector.multi_reduction <add>, %188, %cst_58 [0] : vector<16x8xf32> to vector<8xf32>
    %190 = vector.shape_cast %189 : vector<8xf32> to vector<1x8xf32>
    %cst_59 = arith.constant dense<0.000000e+00> : vector<1x8xf32>
    %191 = tpu.matmul %190, %52, %cst_59 {dimension_numbers = #tpu.dot_dimension_numbers<[1], [0], [0], [1], [0, 0, 1, 1], [], []>} : vector<1x8xf32>, vector<8x8xf32>, vector<1x8xf32> -> vector<1x8xf32>
    %192 = vector.broadcast %191 : vector<1x8xf32> to vector<16x8xf32>
    %193 = arith.subf %188, %192 : vector<16x8xf32>
    %194 = arith.mulf %193, %193 : vector<16x8xf32>
    %cst_60 = arith.constant dense<0.000000e+00> : vector<8xf32>
    %195 = vector.multi_reduction <add>, %194, %cst_60 [0] : vector<16x8xf32> to vector<8xf32>
    %196 = vector.shape_cast %195 : vector<8xf32> to vector<1x8xf32>
    %cst_61 = arith.constant dense<0.000000e+00> : vector<1x8xf32>
    %197 = tpu.matmul %196, %52, %cst_61 {dimension_numbers = #tpu.dot_dimension_numbers<[1], [0], [0], [1], [0, 0, 1, 1], [], []>} : vector<1x8xf32>, vector<8x8xf32>, vector<1x8xf32> -> vector<1x8xf32>
    %cst_62 = arith.constant 9.99999974E-6 : f32
    %198 = vector.broadcast %cst_62 : f32 to vector<1x8xf32>
    %199 = arith.addf %197, %198 : vector<1x8xf32>
    %200 = math.rsqrt %199 : vector<1x8xf32>
    %201 = vector.broadcast %200 : vector<1x8xf32> to vector<16x8xf32>
    %202 = arith.mulf %193, %201 : vector<16x8xf32>
    %203 = vector.broadcast %170 : vector<1x8xf32> to vector<16x8xf32>
    %204 = arith.mulf %202, %203 : vector<16x8xf32>
    %205 = vector.broadcast %171 : vector<1x8xf32> to vector<16x8xf32>
    %206 = arith.addf %204, %205 : vector<16x8xf32>
    %cst_63 = arith.constant 0.000000e+00 : f32
    %207 = vector.broadcast %cst_63 : f32 to vector<16x8xf32>
    %208 = arith.maximumf %206, %207 : vector<16x8xf32>
    %209 = vector.broadcast %cst_63 : f32 to vector<16x8xf32>
    %210 = arith.subf %206, %209 : vector<16x8xf32>
    %211 = arith.cmpf one, %210, %210 : vector<16x8xf32>
    %212 = vector.broadcast %cst_63 : f32 to vector<16x8xf32>
    %213 = arith.addf %206, %212 : vector<16x8xf32>
    %214 = math.absf %210 : vector<16x8xf32>
    %cst_64 = arith.constant 0.000000e+00 : f32
    %215 = vector.broadcast %cst_64 : f32 to vector<16x8xf32>
    %216 = arith.subf %215, %214 : vector<16x8xf32>
    %217 = math.exp %216 : vector<16x8xf32>
    %218 = math.log1p %217 : vector<16x8xf32>
    %219 = arith.addf %208, %218 : vector<16x8xf32>
    %220 = arith.select %211, %213, %219 : vector<16x8xi1>, vector<16x8xf32>
    %221 = math.tanh %220 : vector<16x8xf32>
    %222 = arith.mulf %206, %221 : vector<16x8xf32>
    %c0_65 = arith.constant 0 : index
    %c0_66 = arith.constant 0 : index
    %223 = vector.load %arg16[%c0_65, %c0_66] : memref<8x8xbf16, #tpu.memory_space<vmem>>, vector<8x8xbf16>
    %224 = arith.truncf %49 : vector<1x8xf32> to vector<1x8xbf16>
    %cst_67 = arith.constant dense<0.000000e+00> : vector<1x8xf32>
    %225 = tpu.matmul %224, %223, %cst_67 {dimension_numbers = #tpu.dot_dimension_numbers<[1], [0], [0], [1], [0, 0, 1, 1], [], []>} : vector<1x8xbf16>, vector<8x8xbf16>, vector<1x8xf32> -> vector<1x8xf32>
    %226 = arith.addf %225, %175 : vector<1x8xf32>
    %227 = vector.broadcast %226 : vector<1x8xf32> to vector<16x8xf32>
    %228 = arith.addf %222, %227 : vector<16x8xf32>
    %c0_68 = arith.constant 0 : index
    %c0_69 = arith.constant 0 : index
    %229 = vector.load %arg15[%c0_68, %c0_69] : memref<40x8xbf16, #tpu.memory_space<vmem>>, vector<40x8xbf16>
    %cst_70 = arith.constant 0.000000e+00 : f32
    %230 = vector.broadcast %cst_70 : f32 to vector<2x8xf32>
    %231 = tpu.concatenate %230, %228, %230 in 0 : vector<2x8xf32>, vector<16x8xf32>, vector<2x8xf32> -> vector<20x8xf32>
    %232 = vector.extract_strided_slice %231 {offsets = [0, 0], sizes = [16, 8], strides = [1, 1]} : vector<20x8xf32> to vector<16x8xf32>
    %233 = vector.extract_strided_slice %231 {offsets = [1, 0], sizes = [16, 8], strides = [1, 1]} : vector<20x8xf32> to vector<16x8xf32>
    %234 = vector.extract_strided_slice %231 {offsets = [2, 0], sizes = [16, 8], strides = [1, 1]} : vector<20x8xf32> to vector<16x8xf32>
    %235 = vector.extract_strided_slice %231 {offsets = [3, 0], sizes = [16, 8], strides = [1, 1]} : vector<20x8xf32> to vector<16x8xf32>
    %236 = vector.extract_strided_slice %231 {offsets = [4, 0], sizes = [16, 8], strides = [1, 1]} : vector<20x8xf32> to vector<16x8xf32>
    %237 = tpu.concatenate %232, %233, %234, %235, %236 in 1 : vector<16x8xf32>, vector<16x8xf32>, vector<16x8xf32>, vector<16x8xf32>, vector<16x8xf32> -> vector<16x40xf32>
    %238 = arith.truncf %237 : vector<16x40xf32> to vector<16x40xbf16>
    %cst_71 = arith.constant dense<0.000000e+00> : vector<16x8xf32>
    %239 = tpu.matmul %238, %229, %cst_71 {dimension_numbers = #tpu.dot_dimension_numbers<[1], [0], [0], [1], [0, 0, 1, 1], [], []>} : vector<16x40xbf16>, vector<40x8xbf16>, vector<16x8xf32> -> vector<16x8xf32>
    %240 = vector.broadcast %172 : vector<1x8xf32> to vector<16x8xf32>
    %241 = arith.addf %239, %240 : vector<16x8xf32>
    %cst_72 = arith.constant dense<0.000000e+00> : vector<8xf32>
    %242 = vector.multi_reduction <add>, %241, %cst_72 [0] : vector<16x8xf32> to vector<8xf32>
    %243 = vector.shape_cast %242 : vector<8xf32> to vector<1x8xf32>
    %cst_73 = arith.constant dense<0.000000e+00> : vector<1x8xf32>
    %244 = tpu.matmul %243, %52, %cst_73 {dimension_numbers = #tpu.dot_dimension_numbers<[1], [0], [0], [1], [0, 0, 1, 1], [], []>} : vector<1x8xf32>, vector<8x8xf32>, vector<1x8xf32> -> vector<1x8xf32>
    %245 = vector.broadcast %244 : vector<1x8xf32> to vector<16x8xf32>
    %246 = arith.subf %241, %245 : vector<16x8xf32>
    %247 = arith.mulf %246, %246 : vector<16x8xf32>
    %cst_74 = arith.constant dense<0.000000e+00> : vector<8xf32>
    %248 = vector.multi_reduction <add>, %247, %cst_74 [0] : vector<16x8xf32> to vector<8xf32>
    %249 = vector.shape_cast %248 : vector<8xf32> to vector<1x8xf32>
    %cst_75 = arith.constant dense<0.000000e+00> : vector<1x8xf32>
    %250 = tpu.matmul %249, %52, %cst_75 {dimension_numbers = #tpu.dot_dimension_numbers<[1], [0], [0], [1], [0, 0, 1, 1], [], []>} : vector<1x8xf32>, vector<8x8xf32>, vector<1x8xf32> -> vector<1x8xf32>
    %cst_76 = arith.constant 9.99999974E-6 : f32
    %251 = vector.broadcast %cst_76 : f32 to vector<1x8xf32>
    %252 = arith.addf %250, %251 : vector<1x8xf32>
    %253 = math.rsqrt %252 : vector<1x8xf32>
    %254 = vector.broadcast %253 : vector<1x8xf32> to vector<16x8xf32>
    %255 = arith.mulf %246, %254 : vector<16x8xf32>
    %256 = vector.broadcast %173 : vector<1x8xf32> to vector<16x8xf32>
    %257 = arith.mulf %255, %256 : vector<16x8xf32>
    %258 = vector.broadcast %174 : vector<1x8xf32> to vector<16x8xf32>
    %259 = arith.addf %257, %258 : vector<16x8xf32>
    %cst_77 = arith.constant 0.000000e+00 : f32
    %260 = vector.broadcast %cst_77 : f32 to vector<16x8xf32>
    %261 = arith.maximumf %259, %260 : vector<16x8xf32>
    %262 = vector.broadcast %cst_77 : f32 to vector<16x8xf32>
    %263 = arith.subf %259, %262 : vector<16x8xf32>
    %264 = arith.cmpf one, %263, %263 : vector<16x8xf32>
    %265 = vector.broadcast %cst_77 : f32 to vector<16x8xf32>
    %266 = arith.addf %259, %265 : vector<16x8xf32>
    %267 = math.absf %263 : vector<16x8xf32>
    %cst_78 = arith.constant 0.000000e+00 : f32
    %268 = vector.broadcast %cst_78 : f32 to vector<16x8xf32>
    %269 = arith.subf %268, %267 : vector<16x8xf32>
    %270 = math.exp %269 : vector<16x8xf32>
    %271 = math.log1p %270 : vector<16x8xf32>
    %272 = arith.addf %261, %271 : vector<16x8xf32>
    %273 = arith.select %264, %266, %272 : vector<16x8xi1>, vector<16x8xf32>
    %274 = math.tanh %273 : vector<16x8xf32>
    %275 = arith.mulf %259, %274 : vector<16x8xf32>
    %276 = arith.addf %275, %167 : vector<16x8xf32>
    %c0_79 = arith.constant 0 : index
    %c0_80 = arith.constant 0 : index
    %277 = vector.load %arg18[%c0_79, %c0_80] : memref<24x8xbf16, #tpu.memory_space<vmem>>, vector<24x8xbf16>
    %c0_81 = arith.constant 0 : index
    %c0_82 = arith.constant 0 : index
    %278 = vector.load %arg19[%c0_81, %c0_82] : memref<1x8xf32, #tpu.memory_space<vmem>>, vector<1x8xf32>
    %c0_83 = arith.constant 0 : index
    %c0_84 = arith.constant 0 : index
    %279 = vector.load %arg20[%c0_83, %c0_84] : memref<8x16xf32, #tpu.memory_space<vmem>>, vector<8x16xf32>
    %cst_85 = arith.constant 0.000000e+00 : f32
    %280 = vector.broadcast %cst_85 : f32 to vector<1x8xf32>
    %281 = tpu.concatenate %280, %276, %280 in 0 : vector<1x8xf32>, vector<16x8xf32>, vector<1x8xf32> -> vector<18x8xf32>
    %282 = vector.extract_strided_slice %281 {offsets = [0, 0], sizes = [16, 8], strides = [1, 1]} : vector<18x8xf32> to vector<16x8xf32>
    %283 = vector.extract_strided_slice %281 {offsets = [1, 0], sizes = [16, 8], strides = [1, 1]} : vector<18x8xf32> to vector<16x8xf32>
    %284 = vector.extract_strided_slice %281 {offsets = [2, 0], sizes = [16, 8], strides = [1, 1]} : vector<18x8xf32> to vector<16x8xf32>
    %285 = tpu.concatenate %282, %283, %284 in 1 : vector<16x8xf32>, vector<16x8xf32>, vector<16x8xf32> -> vector<16x24xf32>
    %286 = arith.truncf %285 : vector<16x24xf32> to vector<16x24xbf16>
    %cst_86 = arith.constant dense<0.000000e+00> : vector<16x8xf32>
    %287 = tpu.matmul %286, %277, %cst_86 {dimension_numbers = #tpu.dot_dimension_numbers<[1], [0], [0], [1], [0, 0, 1, 1], [], []>} : vector<16x24xbf16>, vector<24x8xbf16>, vector<16x8xf32> -> vector<16x8xf32>
    %288 = vector.broadcast %278 : vector<1x8xf32> to vector<16x8xf32>
    %289 = arith.addf %287, %288 : vector<16x8xf32>
    %cst_87 = arith.constant dense<0.000000e+00> : vector<8x8xf32>
    %290 = tpu.matmul %279, %289, %cst_87 {dimension_numbers = #tpu.dot_dimension_numbers<[1], [0], [0], [1], [0, 0, 1, 1], [], []>} : vector<8x16xf32>, vector<16x8xf32>, vector<8x8xf32> -> vector<8x8xf32>
    %c0_88 = arith.constant 0 : index
    %c0_89 = arith.constant 0 : index
    %291 = vector.load %arg21[%c0_88, %c0_89] : memref<16x16xf32, #tpu.memory_space<vmem>>, vector<16x16xf32>
    %c0_90 = arith.constant 0 : index
    %c0_91 = arith.constant 0 : index
    %292 = vector.load %arg26[%c0_90, %c0_91] : memref<8x16xf32, #tpu.memory_space<vmem>>, vector<8x16xf32>
    %293 = vector.extract_strided_slice %292 {offsets = [0, 0], sizes = [1, 16], strides = [1, 1]} : vector<8x16xf32> to vector<1x16xf32>
    %294 = vector.extract_strided_slice %292 {offsets = [1, 0], sizes = [1, 16], strides = [1, 1]} : vector<8x16xf32> to vector<1x16xf32>
    %295 = vector.extract_strided_slice %292 {offsets = [2, 0], sizes = [1, 16], strides = [1, 1]} : vector<8x16xf32> to vector<1x16xf32>
    %296 = vector.extract_strided_slice %292 {offsets = [3, 0], sizes = [1, 16], strides = [1, 1]} : vector<8x16xf32> to vector<1x16xf32>
    %297 = vector.extract_strided_slice %292 {offsets = [4, 0], sizes = [1, 16], strides = [1, 1]} : vector<8x16xf32> to vector<1x16xf32>
    %298 = vector.extract_strided_slice %292 {offsets = [5, 0], sizes = [1, 16], strides = [1, 1]} : vector<8x16xf32> to vector<1x16xf32>
    %299 = vector.extract_strided_slice %292 {offsets = [6, 0], sizes = [1, 16], strides = [1, 1]} : vector<8x16xf32> to vector<1x16xf32>
    %300 = vector.extract_strided_slice %292 {offsets = [7, 0], sizes = [1, 16], strides = [1, 1]} : vector<8x16xf32> to vector<1x16xf32>
    %c0_92 = arith.constant 0 : index
    %c0_93 = arith.constant 0 : index
    %301 = vector.load %arg22[%c0_92, %c0_93] : memref<40x16xbf16, #tpu.memory_space<vmem>>, vector<40x16xbf16>
    %cst_94 = arith.constant 0.000000e+00 : f32
    %302 = vector.broadcast %cst_94 : f32 to vector<2x8xf32>
    %303 = tpu.concatenate %302, %290, %302 in 0 : vector<2x8xf32>, vector<8x8xf32>, vector<2x8xf32> -> vector<12x8xf32>
    %304 = vector.extract_strided_slice %303 {offsets = [0, 0], sizes = [8, 8], strides = [1, 1]} : vector<12x8xf32> to vector<8x8xf32>
    %305 = vector.extract_strided_slice %303 {offsets = [1, 0], sizes = [8, 8], strides = [1, 1]} : vector<12x8xf32> to vector<8x8xf32>
    %306 = vector.extract_strided_slice %303 {offsets = [2, 0], sizes = [8, 8], strides = [1, 1]} : vector<12x8xf32> to vector<8x8xf32>
    %307 = vector.extract_strided_slice %303 {offsets = [3, 0], sizes = [8, 8], strides = [1, 1]} : vector<12x8xf32> to vector<8x8xf32>
    %308 = vector.extract_strided_slice %303 {offsets = [4, 0], sizes = [8, 8], strides = [1, 1]} : vector<12x8xf32> to vector<8x8xf32>
    %309 = tpu.concatenate %304, %305, %306, %307, %308 in 1 : vector<8x8xf32>, vector<8x8xf32>, vector<8x8xf32>, vector<8x8xf32>, vector<8x8xf32> -> vector<8x40xf32>
    %310 = arith.truncf %309 : vector<8x40xf32> to vector<8x40xbf16>
    %cst_95 = arith.constant dense<0.000000e+00> : vector<8x16xf32>
    %311 = tpu.matmul %310, %301, %cst_95 {dimension_numbers = #tpu.dot_dimension_numbers<[1], [0], [0], [1], [0, 0, 1, 1], [], []>} : vector<8x40xbf16>, vector<40x16xbf16>, vector<8x16xf32> -> vector<8x16xf32>
    %312 = vector.broadcast %293 : vector<1x16xf32> to vector<8x16xf32>
    %313 = arith.addf %311, %312 : vector<8x16xf32>
    %cst_96 = arith.constant dense<0.000000e+00> : vector<16xf32>
    %314 = vector.multi_reduction <add>, %313, %cst_96 [0] : vector<8x16xf32> to vector<16xf32>
    %315 = vector.shape_cast %314 : vector<16xf32> to vector<1x16xf32>
    %cst_97 = arith.constant dense<0.000000e+00> : vector<1x16xf32>
    %316 = tpu.matmul %315, %291, %cst_97 {dimension_numbers = #tpu.dot_dimension_numbers<[1], [0], [0], [1], [0, 0, 1, 1], [], []>} : vector<1x16xf32>, vector<16x16xf32>, vector<1x16xf32> -> vector<1x16xf32>
    %317 = vector.broadcast %316 : vector<1x16xf32> to vector<8x16xf32>
    %318 = arith.subf %313, %317 : vector<8x16xf32>
    %319 = arith.mulf %318, %318 : vector<8x16xf32>
    %cst_98 = arith.constant dense<0.000000e+00> : vector<16xf32>
    %320 = vector.multi_reduction <add>, %319, %cst_98 [0] : vector<8x16xf32> to vector<16xf32>
    %321 = vector.shape_cast %320 : vector<16xf32> to vector<1x16xf32>
    %cst_99 = arith.constant dense<0.000000e+00> : vector<1x16xf32>
    %322 = tpu.matmul %321, %291, %cst_99 {dimension_numbers = #tpu.dot_dimension_numbers<[1], [0], [0], [1], [0, 0, 1, 1], [], []>} : vector<1x16xf32>, vector<16x16xf32>, vector<1x16xf32> -> vector<1x16xf32>
    %cst_100 = arith.constant 9.99999974E-6 : f32
    %323 = vector.broadcast %cst_100 : f32 to vector<1x16xf32>
    %324 = arith.addf %322, %323 : vector<1x16xf32>
    %325 = math.rsqrt %324 : vector<1x16xf32>
    %326 = vector.broadcast %325 : vector<1x16xf32> to vector<8x16xf32>
    %327 = arith.mulf %318, %326 : vector<8x16xf32>
    %328 = vector.broadcast %294 : vector<1x16xf32> to vector<8x16xf32>
    %329 = arith.mulf %327, %328 : vector<8x16xf32>
    %330 = vector.broadcast %295 : vector<1x16xf32> to vector<8x16xf32>
    %331 = arith.addf %329, %330 : vector<8x16xf32>
    %cst_101 = arith.constant 0.000000e+00 : f32
    %332 = vector.broadcast %cst_101 : f32 to vector<8x16xf32>
    %333 = arith.maximumf %331, %332 : vector<8x16xf32>
    %334 = vector.broadcast %cst_101 : f32 to vector<8x16xf32>
    %335 = arith.subf %331, %334 : vector<8x16xf32>
    %336 = arith.cmpf one, %335, %335 : vector<8x16xf32>
    %337 = vector.broadcast %cst_101 : f32 to vector<8x16xf32>
    %338 = arith.addf %331, %337 : vector<8x16xf32>
    %339 = math.absf %335 : vector<8x16xf32>
    %cst_102 = arith.constant 0.000000e+00 : f32
    %340 = vector.broadcast %cst_102 : f32 to vector<8x16xf32>
    %341 = arith.subf %340, %339 : vector<8x16xf32>
    %342 = math.exp %341 : vector<8x16xf32>
    %343 = math.log1p %342 : vector<8x16xf32>
    %344 = arith.addf %333, %343 : vector<8x16xf32>
    %345 = arith.select %336, %338, %344 : vector<8x16xi1>, vector<8x16xf32>
    %346 = math.tanh %345 : vector<8x16xf32>
    %347 = arith.mulf %331, %346 : vector<8x16xf32>
    %c0_103 = arith.constant 0 : index
    %c0_104 = arith.constant 0 : index
    %348 = vector.load %arg24[%c0_103, %c0_104] : memref<8x16xbf16, #tpu.memory_space<vmem>>, vector<8x16xbf16>
    %349 = arith.truncf %49 : vector<1x8xf32> to vector<1x8xbf16>
    %cst_105 = arith.constant dense<0.000000e+00> : vector<1x16xf32>
    %350 = tpu.matmul %349, %348, %cst_105 {dimension_numbers = #tpu.dot_dimension_numbers<[1], [0], [0], [1], [0, 0, 1, 1], [], []>} : vector<1x8xbf16>, vector<8x16xbf16>, vector<1x16xf32> -> vector<1x16xf32>
    %351 = arith.addf %350, %299 : vector<1x16xf32>
    %352 = vector.broadcast %351 : vector<1x16xf32> to vector<8x16xf32>
    %353 = arith.addf %347, %352 : vector<8x16xf32>
    %c0_106 = arith.constant 0 : index
    %c0_107 = arith.constant 0 : index
    %354 = vector.load %arg23[%c0_106, %c0_107] : memref<80x16xbf16, #tpu.memory_space<vmem>>, vector<80x16xbf16>
    %cst_108 = arith.constant 0.000000e+00 : f32
    %355 = vector.broadcast %cst_108 : f32 to vector<2x16xf32>
    %356 = tpu.concatenate %355, %353, %355 in 0 : vector<2x16xf32>, vector<8x16xf32>, vector<2x16xf32> -> vector<12x16xf32>
    %357 = vector.extract_strided_slice %356 {offsets = [0, 0], sizes = [8, 16], strides = [1, 1]} : vector<12x16xf32> to vector<8x16xf32>
    %358 = vector.extract_strided_slice %356 {offsets = [1, 0], sizes = [8, 16], strides = [1, 1]} : vector<12x16xf32> to vector<8x16xf32>
    %359 = vector.extract_strided_slice %356 {offsets = [2, 0], sizes = [8, 16], strides = [1, 1]} : vector<12x16xf32> to vector<8x16xf32>
    %360 = vector.extract_strided_slice %356 {offsets = [3, 0], sizes = [8, 16], strides = [1, 1]} : vector<12x16xf32> to vector<8x16xf32>
    %361 = vector.extract_strided_slice %356 {offsets = [4, 0], sizes = [8, 16], strides = [1, 1]} : vector<12x16xf32> to vector<8x16xf32>
    %362 = tpu.concatenate %357, %358, %359, %360, %361 in 1 : vector<8x16xf32>, vector<8x16xf32>, vector<8x16xf32>, vector<8x16xf32>, vector<8x16xf32> -> vector<8x80xf32>
    %363 = arith.truncf %362 : vector<8x80xf32> to vector<8x80xbf16>
    %cst_109 = arith.constant dense<0.000000e+00> : vector<8x16xf32>
    %364 = tpu.matmul %363, %354, %cst_109 {dimension_numbers = #tpu.dot_dimension_numbers<[1], [0], [0], [1], [0, 0, 1, 1], [], []>} : vector<8x80xbf16>, vector<80x16xbf16>, vector<8x16xf32> -> vector<8x16xf32>
    %365 = vector.broadcast %296 : vector<1x16xf32> to vector<8x16xf32>
    %366 = arith.addf %364, %365 : vector<8x16xf32>
    %cst_110 = arith.constant dense<0.000000e+00> : vector<16xf32>
    %367 = vector.multi_reduction <add>, %366, %cst_110 [0] : vector<8x16xf32> to vector<16xf32>
    %368 = vector.shape_cast %367 : vector<16xf32> to vector<1x16xf32>
    %cst_111 = arith.constant dense<0.000000e+00> : vector<1x16xf32>
    %369 = tpu.matmul %368, %291, %cst_111 {dimension_numbers = #tpu.dot_dimension_numbers<[1], [0], [0], [1], [0, 0, 1, 1], [], []>} : vector<1x16xf32>, vector<16x16xf32>, vector<1x16xf32> -> vector<1x16xf32>
    %370 = vector.broadcast %369 : vector<1x16xf32> to vector<8x16xf32>
    %371 = arith.subf %366, %370 : vector<8x16xf32>
    %372 = arith.mulf %371, %371 : vector<8x16xf32>
    %cst_112 = arith.constant dense<0.000000e+00> : vector<16xf32>
    %373 = vector.multi_reduction <add>, %372, %cst_112 [0] : vector<8x16xf32> to vector<16xf32>
    %374 = vector.shape_cast %373 : vector<16xf32> to vector<1x16xf32>
    %cst_113 = arith.constant dense<0.000000e+00> : vector<1x16xf32>
    %375 = tpu.matmul %374, %291, %cst_113 {dimension_numbers = #tpu.dot_dimension_numbers<[1], [0], [0], [1], [0, 0, 1, 1], [], []>} : vector<1x16xf32>, vector<16x16xf32>, vector<1x16xf32> -> vector<1x16xf32>
    %cst_114 = arith.constant 9.99999974E-6 : f32
    %376 = vector.broadcast %cst_114 : f32 to vector<1x16xf32>
    %377 = arith.addf %375, %376 : vector<1x16xf32>
    %378 = math.rsqrt %377 : vector<1x16xf32>
    %379 = vector.broadcast %378 : vector<1x16xf32> to vector<8x16xf32>
    %380 = arith.mulf %371, %379 : vector<8x16xf32>
    %381 = vector.broadcast %297 : vector<1x16xf32> to vector<8x16xf32>
    %382 = arith.mulf %380, %381 : vector<8x16xf32>
    %383 = vector.broadcast %298 : vector<1x16xf32> to vector<8x16xf32>
    %384 = arith.addf %382, %383 : vector<8x16xf32>
    %cst_115 = arith.constant 0.000000e+00 : f32
    %385 = vector.broadcast %cst_115 : f32 to vector<8x16xf32>
    %386 = arith.maximumf %384, %385 : vector<8x16xf32>
    %387 = vector.broadcast %cst_115 : f32 to vector<8x16xf32>
    %388 = arith.subf %384, %387 : vector<8x16xf32>
    %389 = arith.cmpf one, %388, %388 : vector<8x16xf32>
    %390 = vector.broadcast %cst_115 : f32 to vector<8x16xf32>
    %391 = arith.addf %384, %390 : vector<8x16xf32>
    %392 = math.absf %388 : vector<8x16xf32>
    %cst_116 = arith.constant 0.000000e+00 : f32
    %393 = vector.broadcast %cst_116 : f32 to vector<8x16xf32>
    %394 = arith.subf %393, %392 : vector<8x16xf32>
    %395 = math.exp %394 : vector<8x16xf32>
    %396 = math.log1p %395 : vector<8x16xf32>
    %397 = arith.addf %386, %396 : vector<8x16xf32>
    %398 = arith.select %389, %391, %397 : vector<8x16xi1>, vector<8x16xf32>
    %399 = math.tanh %398 : vector<8x16xf32>
    %400 = arith.mulf %384, %399 : vector<8x16xf32>
    %c0_117 = arith.constant 0 : index
    %c0_118 = arith.constant 0 : index
    %401 = vector.load %arg25[%c0_117, %c0_118] : memref<8x16xbf16, #tpu.memory_space<vmem>>, vector<8x16xbf16>
    %402 = arith.truncf %290 : vector<8x8xf32> to vector<8x8xbf16>
    %cst_119 = arith.constant dense<0.000000e+00> : vector<8x16xf32>
    %403 = tpu.matmul %402, %401, %cst_119 {dimension_numbers = #tpu.dot_dimension_numbers<[1], [0], [0], [1], [0, 0, 1, 1], [], []>} : vector<8x8xbf16>, vector<8x16xbf16>, vector<8x16xf32> -> vector<8x16xf32>
    %404 = vector.broadcast %300 : vector<1x16xf32> to vector<8x16xf32>
    %405 = arith.addf %403, %404 : vector<8x16xf32>
    %406 = arith.addf %400, %405 : vector<8x16xf32>
    %c0_120 = arith.constant 0 : index
    %c0_121 = arith.constant 0 : index
    %407 = vector.load %arg30[%c0_120, %c0_121] : memref<8x16xf32, #tpu.memory_space<vmem>>, vector<8x16xf32>
    %408 = vector.extract_strided_slice %407 {offsets = [0, 0], sizes = [1, 16], strides = [1, 1]} : vector<8x16xf32> to vector<1x16xf32>
    %409 = vector.extract_strided_slice %407 {offsets = [1, 0], sizes = [1, 16], strides = [1, 1]} : vector<8x16xf32> to vector<1x16xf32>
    %410 = vector.extract_strided_slice %407 {offsets = [2, 0], sizes = [1, 16], strides = [1, 1]} : vector<8x16xf32> to vector<1x16xf32>
    %411 = vector.extract_strided_slice %407 {offsets = [3, 0], sizes = [1, 16], strides = [1, 1]} : vector<8x16xf32> to vector<1x16xf32>
    %412 = vector.extract_strided_slice %407 {offsets = [4, 0], sizes = [1, 16], strides = [1, 1]} : vector<8x16xf32> to vector<1x16xf32>
    %413 = vector.extract_strided_slice %407 {offsets = [5, 0], sizes = [1, 16], strides = [1, 1]} : vector<8x16xf32> to vector<1x16xf32>
    %414 = vector.extract_strided_slice %407 {offsets = [6, 0], sizes = [1, 16], strides = [1, 1]} : vector<8x16xf32> to vector<1x16xf32>
    %c0_122 = arith.constant 0 : index
    %c0_123 = arith.constant 0 : index
    %415 = vector.load %arg27[%c0_122, %c0_123] : memref<80x16xbf16, #tpu.memory_space<vmem>>, vector<80x16xbf16>
    %cst_124 = arith.constant 0.000000e+00 : f32
    %416 = vector.broadcast %cst_124 : f32 to vector<2x16xf32>
    %417 = tpu.concatenate %416, %406, %416 in 0 : vector<2x16xf32>, vector<8x16xf32>, vector<2x16xf32> -> vector<12x16xf32>
    %418 = vector.extract_strided_slice %417 {offsets = [0, 0], sizes = [8, 16], strides = [1, 1]} : vector<12x16xf32> to vector<8x16xf32>
    %419 = vector.extract_strided_slice %417 {offsets = [1, 0], sizes = [8, 16], strides = [1, 1]} : vector<12x16xf32> to vector<8x16xf32>
    %420 = vector.extract_strided_slice %417 {offsets = [2, 0], sizes = [8, 16], strides = [1, 1]} : vector<12x16xf32> to vector<8x16xf32>
    %421 = vector.extract_strided_slice %417 {offsets = [3, 0], sizes = [8, 16], strides = [1, 1]} : vector<12x16xf32> to vector<8x16xf32>
    %422 = vector.extract_strided_slice %417 {offsets = [4, 0], sizes = [8, 16], strides = [1, 1]} : vector<12x16xf32> to vector<8x16xf32>
    %423 = tpu.concatenate %418, %419, %420, %421, %422 in 1 : vector<8x16xf32>, vector<8x16xf32>, vector<8x16xf32>, vector<8x16xf32>, vector<8x16xf32> -> vector<8x80xf32>
    %424 = arith.truncf %423 : vector<8x80xf32> to vector<8x80xbf16>
    %cst_125 = arith.constant dense<0.000000e+00> : vector<8x16xf32>
    %425 = tpu.matmul %424, %415, %cst_125 {dimension_numbers = #tpu.dot_dimension_numbers<[1], [0], [0], [1], [0, 0, 1, 1], [], []>} : vector<8x80xbf16>, vector<80x16xbf16>, vector<8x16xf32> -> vector<8x16xf32>
    %426 = vector.broadcast %408 : vector<1x16xf32> to vector<8x16xf32>
    %427 = arith.addf %425, %426 : vector<8x16xf32>
    %cst_126 = arith.constant dense<0.000000e+00> : vector<16xf32>
    %428 = vector.multi_reduction <add>, %427, %cst_126 [0] : vector<8x16xf32> to vector<16xf32>
    %429 = vector.shape_cast %428 : vector<16xf32> to vector<1x16xf32>
    %cst_127 = arith.constant dense<0.000000e+00> : vector<1x16xf32>
    %430 = tpu.matmul %429, %291, %cst_127 {dimension_numbers = #tpu.dot_dimension_numbers<[1], [0], [0], [1], [0, 0, 1, 1], [], []>} : vector<1x16xf32>, vector<16x16xf32>, vector<1x16xf32> -> vector<1x16xf32>
    %431 = vector.broadcast %430 : vector<1x16xf32> to vector<8x16xf32>
    %432 = arith.subf %427, %431 : vector<8x16xf32>
    %433 = arith.mulf %432, %432 : vector<8x16xf32>
    %cst_128 = arith.constant dense<0.000000e+00> : vector<16xf32>
    %434 = vector.multi_reduction <add>, %433, %cst_128 [0] : vector<8x16xf32> to vector<16xf32>
    %435 = vector.shape_cast %434 : vector<16xf32> to vector<1x16xf32>
    %cst_129 = arith.constant dense<0.000000e+00> : vector<1x16xf32>
    %436 = tpu.matmul %435, %291, %cst_129 {dimension_numbers = #tpu.dot_dimension_numbers<[1], [0], [0], [1], [0, 0, 1, 1], [], []>} : vector<1x16xf32>, vector<16x16xf32>, vector<1x16xf32> -> vector<1x16xf32>
    %cst_130 = arith.constant 9.99999974E-6 : f32
    %437 = vector.broadcast %cst_130 : f32 to vector<1x16xf32>
    %438 = arith.addf %436, %437 : vector<1x16xf32>
    %439 = math.rsqrt %438 : vector<1x16xf32>
    %440 = vector.broadcast %439 : vector<1x16xf32> to vector<8x16xf32>
    %441 = arith.mulf %432, %440 : vector<8x16xf32>
    %442 = vector.broadcast %409 : vector<1x16xf32> to vector<8x16xf32>
    %443 = arith.mulf %441, %442 : vector<8x16xf32>
    %444 = vector.broadcast %410 : vector<1x16xf32> to vector<8x16xf32>
    %445 = arith.addf %443, %444 : vector<8x16xf32>
    %cst_131 = arith.constant 0.000000e+00 : f32
    %446 = vector.broadcast %cst_131 : f32 to vector<8x16xf32>
    %447 = arith.maximumf %445, %446 : vector<8x16xf32>
    %448 = vector.broadcast %cst_131 : f32 to vector<8x16xf32>
    %449 = arith.subf %445, %448 : vector<8x16xf32>
    %450 = arith.cmpf one, %449, %449 : vector<8x16xf32>
    %451 = vector.broadcast %cst_131 : f32 to vector<8x16xf32>
    %452 = arith.addf %445, %451 : vector<8x16xf32>
    %453 = math.absf %449 : vector<8x16xf32>
    %cst_132 = arith.constant 0.000000e+00 : f32
    %454 = vector.broadcast %cst_132 : f32 to vector<8x16xf32>
    %455 = arith.subf %454, %453 : vector<8x16xf32>
    %456 = math.exp %455 : vector<8x16xf32>
    %457 = math.log1p %456 : vector<8x16xf32>
    %458 = arith.addf %447, %457 : vector<8x16xf32>
    %459 = arith.select %450, %452, %458 : vector<8x16xi1>, vector<8x16xf32>
    %460 = math.tanh %459 : vector<8x16xf32>
    %461 = arith.mulf %445, %460 : vector<8x16xf32>
    %c0_133 = arith.constant 0 : index
    %c0_134 = arith.constant 0 : index
    %462 = vector.load %arg29[%c0_133, %c0_134] : memref<8x16xbf16, #tpu.memory_space<vmem>>, vector<8x16xbf16>
    %463 = arith.truncf %49 : vector<1x8xf32> to vector<1x8xbf16>
    %cst_135 = arith.constant dense<0.000000e+00> : vector<1x16xf32>
    %464 = tpu.matmul %463, %462, %cst_135 {dimension_numbers = #tpu.dot_dimension_numbers<[1], [0], [0], [1], [0, 0, 1, 1], [], []>} : vector<1x8xbf16>, vector<8x16xbf16>, vector<1x16xf32> -> vector<1x16xf32>
    %465 = arith.addf %464, %414 : vector<1x16xf32>
    %466 = vector.broadcast %465 : vector<1x16xf32> to vector<8x16xf32>
    %467 = arith.addf %461, %466 : vector<8x16xf32>
    %c0_136 = arith.constant 0 : index
    %c0_137 = arith.constant 0 : index
    %468 = vector.load %arg28[%c0_136, %c0_137] : memref<80x16xbf16, #tpu.memory_space<vmem>>, vector<80x16xbf16>
    %cst_138 = arith.constant 0.000000e+00 : f32
    %469 = vector.broadcast %cst_138 : f32 to vector<2x16xf32>
    %470 = tpu.concatenate %469, %467, %469 in 0 : vector<2x16xf32>, vector<8x16xf32>, vector<2x16xf32> -> vector<12x16xf32>
    %471 = vector.extract_strided_slice %470 {offsets = [0, 0], sizes = [8, 16], strides = [1, 1]} : vector<12x16xf32> to vector<8x16xf32>
    %472 = vector.extract_strided_slice %470 {offsets = [1, 0], sizes = [8, 16], strides = [1, 1]} : vector<12x16xf32> to vector<8x16xf32>
    %473 = vector.extract_strided_slice %470 {offsets = [2, 0], sizes = [8, 16], strides = [1, 1]} : vector<12x16xf32> to vector<8x16xf32>
    %474 = vector.extract_strided_slice %470 {offsets = [3, 0], sizes = [8, 16], strides = [1, 1]} : vector<12x16xf32> to vector<8x16xf32>
    %475 = vector.extract_strided_slice %470 {offsets = [4, 0], sizes = [8, 16], strides = [1, 1]} : vector<12x16xf32> to vector<8x16xf32>
    %476 = tpu.concatenate %471, %472, %473, %474, %475 in 1 : vector<8x16xf32>, vector<8x16xf32>, vector<8x16xf32>, vector<8x16xf32>, vector<8x16xf32> -> vector<8x80xf32>
    %477 = arith.truncf %476 : vector<8x80xf32> to vector<8x80xbf16>
    %cst_139 = arith.constant dense<0.000000e+00> : vector<8x16xf32>
    %478 = tpu.matmul %477, %468, %cst_139 {dimension_numbers = #tpu.dot_dimension_numbers<[1], [0], [0], [1], [0, 0, 1, 1], [], []>} : vector<8x80xbf16>, vector<80x16xbf16>, vector<8x16xf32> -> vector<8x16xf32>
    %479 = vector.broadcast %411 : vector<1x16xf32> to vector<8x16xf32>
    %480 = arith.addf %478, %479 : vector<8x16xf32>
    %cst_140 = arith.constant dense<0.000000e+00> : vector<16xf32>
    %481 = vector.multi_reduction <add>, %480, %cst_140 [0] : vector<8x16xf32> to vector<16xf32>
    %482 = vector.shape_cast %481 : vector<16xf32> to vector<1x16xf32>
    %cst_141 = arith.constant dense<0.000000e+00> : vector<1x16xf32>
    %483 = tpu.matmul %482, %291, %cst_141 {dimension_numbers = #tpu.dot_dimension_numbers<[1], [0], [0], [1], [0, 0, 1, 1], [], []>} : vector<1x16xf32>, vector<16x16xf32>, vector<1x16xf32> -> vector<1x16xf32>
    %484 = vector.broadcast %483 : vector<1x16xf32> to vector<8x16xf32>
    %485 = arith.subf %480, %484 : vector<8x16xf32>
    %486 = arith.mulf %485, %485 : vector<8x16xf32>
    %cst_142 = arith.constant dense<0.000000e+00> : vector<16xf32>
    %487 = vector.multi_reduction <add>, %486, %cst_142 [0] : vector<8x16xf32> to vector<16xf32>
    %488 = vector.shape_cast %487 : vector<16xf32> to vector<1x16xf32>
    %cst_143 = arith.constant dense<0.000000e+00> : vector<1x16xf32>
    %489 = tpu.matmul %488, %291, %cst_143 {dimension_numbers = #tpu.dot_dimension_numbers<[1], [0], [0], [1], [0, 0, 1, 1], [], []>} : vector<1x16xf32>, vector<16x16xf32>, vector<1x16xf32> -> vector<1x16xf32>
    %cst_144 = arith.constant 9.99999974E-6 : f32
    %490 = vector.broadcast %cst_144 : f32 to vector<1x16xf32>
    %491 = arith.addf %489, %490 : vector<1x16xf32>
    %492 = math.rsqrt %491 : vector<1x16xf32>
    %493 = vector.broadcast %492 : vector<1x16xf32> to vector<8x16xf32>
    %494 = arith.mulf %485, %493 : vector<8x16xf32>
    %495 = vector.broadcast %412 : vector<1x16xf32> to vector<8x16xf32>
    %496 = arith.mulf %494, %495 : vector<8x16xf32>
    %497 = vector.broadcast %413 : vector<1x16xf32> to vector<8x16xf32>
    %498 = arith.addf %496, %497 : vector<8x16xf32>
    %cst_145 = arith.constant 0.000000e+00 : f32
    %499 = vector.broadcast %cst_145 : f32 to vector<8x16xf32>
    %500 = arith.maximumf %498, %499 : vector<8x16xf32>
    %501 = vector.broadcast %cst_145 : f32 to vector<8x16xf32>
    %502 = arith.subf %498, %501 : vector<8x16xf32>
    %503 = arith.cmpf one, %502, %502 : vector<8x16xf32>
    %504 = vector.broadcast %cst_145 : f32 to vector<8x16xf32>
    %505 = arith.addf %498, %504 : vector<8x16xf32>
    %506 = math.absf %502 : vector<8x16xf32>
    %cst_146 = arith.constant 0.000000e+00 : f32
    %507 = vector.broadcast %cst_146 : f32 to vector<8x16xf32>
    %508 = arith.subf %507, %506 : vector<8x16xf32>
    %509 = math.exp %508 : vector<8x16xf32>
    %510 = math.log1p %509 : vector<8x16xf32>
    %511 = arith.addf %500, %510 : vector<8x16xf32>
    %512 = arith.select %503, %505, %511 : vector<8x16xi1>, vector<8x16xf32>
    %513 = math.tanh %512 : vector<8x16xf32>
    %514 = arith.mulf %498, %513 : vector<8x16xf32>
    %515 = arith.addf %514, %406 : vector<8x16xf32>
    %c0_147 = arith.constant 0 : index
    %c0_148 = arith.constant 0 : index
    %516 = vector.load %arg31[%c0_147, %c0_148] : memref<48x16xbf16, #tpu.memory_space<vmem>>, vector<48x16xbf16>
    %c0_149 = arith.constant 0 : index
    %c0_150 = arith.constant 0 : index
    %517 = vector.load %arg32[%c0_149, %c0_150] : memref<1x16xf32, #tpu.memory_space<vmem>>, vector<1x16xf32>
    %c0_151 = arith.constant 0 : index
    %c0_152 = arith.constant 0 : index
    %518 = vector.load %arg33[%c0_151, %c0_152] : memref<4x8xf32, #tpu.memory_space<vmem>>, vector<4x8xf32>
    %cst_153 = arith.constant 0.000000e+00 : f32
    %519 = vector.broadcast %cst_153 : f32 to vector<1x16xf32>
    %520 = tpu.concatenate %519, %515, %519 in 0 : vector<1x16xf32>, vector<8x16xf32>, vector<1x16xf32> -> vector<10x16xf32>
    %521 = vector.extract_strided_slice %520 {offsets = [0, 0], sizes = [8, 16], strides = [1, 1]} : vector<10x16xf32> to vector<8x16xf32>
    %522 = vector.extract_strided_slice %520 {offsets = [1, 0], sizes = [8, 16], strides = [1, 1]} : vector<10x16xf32> to vector<8x16xf32>
    %523 = vector.extract_strided_slice %520 {offsets = [2, 0], sizes = [8, 16], strides = [1, 1]} : vector<10x16xf32> to vector<8x16xf32>
    %524 = tpu.concatenate %521, %522, %523 in 1 : vector<8x16xf32>, vector<8x16xf32>, vector<8x16xf32> -> vector<8x48xf32>
    %525 = arith.truncf %524 : vector<8x48xf32> to vector<8x48xbf16>
    %cst_154 = arith.constant dense<0.000000e+00> : vector<8x16xf32>
    %526 = tpu.matmul %525, %516, %cst_154 {dimension_numbers = #tpu.dot_dimension_numbers<[1], [0], [0], [1], [0, 0, 1, 1], [], []>} : vector<8x48xbf16>, vector<48x16xbf16>, vector<8x16xf32> -> vector<8x16xf32>
    %527 = vector.broadcast %517 : vector<1x16xf32> to vector<8x16xf32>
    %528 = arith.addf %526, %527 : vector<8x16xf32>
    %cst_155 = arith.constant dense<0.000000e+00> : vector<4x16xf32>
    %529 = tpu.matmul %518, %528, %cst_155 {dimension_numbers = #tpu.dot_dimension_numbers<[1], [0], [0], [1], [0, 0, 1, 1], [], []>} : vector<4x8xf32>, vector<8x16xf32>, vector<4x16xf32> -> vector<4x16xf32>
    %c0_156 = arith.constant 0 : index
    %c0_157 = arith.constant 0 : index
    %530 = vector.load %arg34[%c0_156, %c0_157] : memref<32x32xf32, #tpu.memory_space<vmem>>, vector<32x32xf32>
    %c0_158 = arith.constant 0 : index
    %c0_159 = arith.constant 0 : index
    %531 = vector.load %arg39[%c0_158, %c0_159] : memref<8x32xf32, #tpu.memory_space<vmem>>, vector<8x32xf32>
    %532 = vector.extract_strided_slice %531 {offsets = [0, 0], sizes = [1, 32], strides = [1, 1]} : vector<8x32xf32> to vector<1x32xf32>
    %533 = vector.extract_strided_slice %531 {offsets = [1, 0], sizes = [1, 32], strides = [1, 1]} : vector<8x32xf32> to vector<1x32xf32>
    %534 = vector.extract_strided_slice %531 {offsets = [2, 0], sizes = [1, 32], strides = [1, 1]} : vector<8x32xf32> to vector<1x32xf32>
    %535 = vector.extract_strided_slice %531 {offsets = [3, 0], sizes = [1, 32], strides = [1, 1]} : vector<8x32xf32> to vector<1x32xf32>
    %536 = vector.extract_strided_slice %531 {offsets = [4, 0], sizes = [1, 32], strides = [1, 1]} : vector<8x32xf32> to vector<1x32xf32>
    %537 = vector.extract_strided_slice %531 {offsets = [5, 0], sizes = [1, 32], strides = [1, 1]} : vector<8x32xf32> to vector<1x32xf32>
    %538 = vector.extract_strided_slice %531 {offsets = [6, 0], sizes = [1, 32], strides = [1, 1]} : vector<8x32xf32> to vector<1x32xf32>
    %539 = vector.extract_strided_slice %531 {offsets = [7, 0], sizes = [1, 32], strides = [1, 1]} : vector<8x32xf32> to vector<1x32xf32>
    %c0_160 = arith.constant 0 : index
    %c0_161 = arith.constant 0 : index
    %540 = vector.load %arg35[%c0_160, %c0_161] : memref<80x32xbf16, #tpu.memory_space<vmem>>, vector<80x32xbf16>
    %cst_162 = arith.constant 0.000000e+00 : f32
    %541 = vector.broadcast %cst_162 : f32 to vector<2x16xf32>
    %542 = tpu.concatenate %541, %529, %541 in 0 : vector<2x16xf32>, vector<4x16xf32>, vector<2x16xf32> -> vector<8x16xf32>
    %543 = vector.extract_strided_slice %542 {offsets = [0, 0], sizes = [4, 16], strides = [1, 1]} : vector<8x16xf32> to vector<4x16xf32>
    %544 = vector.extract_strided_slice %542 {offsets = [1, 0], sizes = [4, 16], strides = [1, 1]} : vector<8x16xf32> to vector<4x16xf32>
    %545 = vector.extract_strided_slice %542 {offsets = [2, 0], sizes = [4, 16], strides = [1, 1]} : vector<8x16xf32> to vector<4x16xf32>
    %546 = vector.extract_strided_slice %542 {offsets = [3, 0], sizes = [4, 16], strides = [1, 1]} : vector<8x16xf32> to vector<4x16xf32>
    %547 = vector.extract_strided_slice %542 {offsets = [4, 0], sizes = [4, 16], strides = [1, 1]} : vector<8x16xf32> to vector<4x16xf32>
    %548 = tpu.concatenate %543, %544, %545, %546, %547 in 1 : vector<4x16xf32>, vector<4x16xf32>, vector<4x16xf32>, vector<4x16xf32>, vector<4x16xf32> -> vector<4x80xf32>
    %549 = arith.truncf %548 : vector<4x80xf32> to vector<4x80xbf16>
    %cst_163 = arith.constant dense<0.000000e+00> : vector<4x32xf32>
    %550 = tpu.matmul %549, %540, %cst_163 {dimension_numbers = #tpu.dot_dimension_numbers<[1], [0], [0], [1], [0, 0, 1, 1], [], []>} : vector<4x80xbf16>, vector<80x32xbf16>, vector<4x32xf32> -> vector<4x32xf32>
    %551 = vector.broadcast %532 : vector<1x32xf32> to vector<4x32xf32>
    %552 = arith.addf %550, %551 : vector<4x32xf32>
    %cst_164 = arith.constant dense<0.000000e+00> : vector<32xf32>
    %553 = vector.multi_reduction <add>, %552, %cst_164 [0] : vector<4x32xf32> to vector<32xf32>
    %554 = vector.shape_cast %553 : vector<32xf32> to vector<1x32xf32>
    %cst_165 = arith.constant dense<0.000000e+00> : vector<1x32xf32>
    %555 = tpu.matmul %554, %530, %cst_165 {dimension_numbers = #tpu.dot_dimension_numbers<[1], [0], [0], [1], [0, 0, 1, 1], [], []>} : vector<1x32xf32>, vector<32x32xf32>, vector<1x32xf32> -> vector<1x32xf32>
    %556 = vector.broadcast %555 : vector<1x32xf32> to vector<4x32xf32>
    %557 = arith.subf %552, %556 : vector<4x32xf32>
    %558 = arith.mulf %557, %557 : vector<4x32xf32>
    %cst_166 = arith.constant dense<0.000000e+00> : vector<32xf32>
    %559 = vector.multi_reduction <add>, %558, %cst_166 [0] : vector<4x32xf32> to vector<32xf32>
    %560 = vector.shape_cast %559 : vector<32xf32> to vector<1x32xf32>
    %cst_167 = arith.constant dense<0.000000e+00> : vector<1x32xf32>
    %561 = tpu.matmul %560, %530, %cst_167 {dimension_numbers = #tpu.dot_dimension_numbers<[1], [0], [0], [1], [0, 0, 1, 1], [], []>} : vector<1x32xf32>, vector<32x32xf32>, vector<1x32xf32> -> vector<1x32xf32>
    %cst_168 = arith.constant 9.99999974E-6 : f32
    %562 = vector.broadcast %cst_168 : f32 to vector<1x32xf32>
    %563 = arith.addf %561, %562 : vector<1x32xf32>
    %564 = math.rsqrt %563 : vector<1x32xf32>
    %565 = vector.broadcast %564 : vector<1x32xf32> to vector<4x32xf32>
    %566 = arith.mulf %557, %565 : vector<4x32xf32>
    %567 = vector.broadcast %533 : vector<1x32xf32> to vector<4x32xf32>
    %568 = arith.mulf %566, %567 : vector<4x32xf32>
    %569 = vector.broadcast %534 : vector<1x32xf32> to vector<4x32xf32>
    %570 = arith.addf %568, %569 : vector<4x32xf32>
    %cst_169 = arith.constant 0.000000e+00 : f32
    %571 = vector.broadcast %cst_169 : f32 to vector<4x32xf32>
    %572 = arith.maximumf %570, %571 : vector<4x32xf32>
    %573 = vector.broadcast %cst_169 : f32 to vector<4x32xf32>
    %574 = arith.subf %570, %573 : vector<4x32xf32>
    %575 = arith.cmpf one, %574, %574 : vector<4x32xf32>
    %576 = vector.broadcast %cst_169 : f32 to vector<4x32xf32>
    %577 = arith.addf %570, %576 : vector<4x32xf32>
    %578 = math.absf %574 : vector<4x32xf32>
    %cst_170 = arith.constant 0.000000e+00 : f32
    %579 = vector.broadcast %cst_170 : f32 to vector<4x32xf32>
    %580 = arith.subf %579, %578 : vector<4x32xf32>
    %581 = math.exp %580 : vector<4x32xf32>
    %582 = math.log1p %581 : vector<4x32xf32>
    %583 = arith.addf %572, %582 : vector<4x32xf32>
    %584 = arith.select %575, %577, %583 : vector<4x32xi1>, vector<4x32xf32>
    %585 = math.tanh %584 : vector<4x32xf32>
    %586 = arith.mulf %570, %585 : vector<4x32xf32>
    %c0_171 = arith.constant 0 : index
    %c0_172 = arith.constant 0 : index
    %587 = vector.load %arg37[%c0_171, %c0_172] : memref<8x32xbf16, #tpu.memory_space<vmem>>, vector<8x32xbf16>
    %588 = arith.truncf %49 : vector<1x8xf32> to vector<1x8xbf16>
    %cst_173 = arith.constant dense<0.000000e+00> : vector<1x32xf32>
    %589 = tpu.matmul %588, %587, %cst_173 {dimension_numbers = #tpu.dot_dimension_numbers<[1], [0], [0], [1], [0, 0, 1, 1], [], []>} : vector<1x8xbf16>, vector<8x32xbf16>, vector<1x32xf32> -> vector<1x32xf32>
    %590 = arith.addf %589, %538 : vector<1x32xf32>
    %591 = vector.broadcast %590 : vector<1x32xf32> to vector<4x32xf32>
    %592 = arith.addf %586, %591 : vector<4x32xf32>
    %c0_174 = arith.constant 0 : index
    %c0_175 = arith.constant 0 : index
    %593 = vector.load %arg36[%c0_174, %c0_175] : memref<160x32xbf16, #tpu.memory_space<vmem>>, vector<160x32xbf16>
    %cst_176 = arith.constant 0.000000e+00 : f32
    %594 = vector.broadcast %cst_176 : f32 to vector<2x32xf32>
    %595 = tpu.concatenate %594, %592, %594 in 0 : vector<2x32xf32>, vector<4x32xf32>, vector<2x32xf32> -> vector<8x32xf32>
    %596 = vector.extract_strided_slice %595 {offsets = [0, 0], sizes = [4, 32], strides = [1, 1]} : vector<8x32xf32> to vector<4x32xf32>
    %597 = vector.extract_strided_slice %595 {offsets = [1, 0], sizes = [4, 32], strides = [1, 1]} : vector<8x32xf32> to vector<4x32xf32>
    %598 = vector.extract_strided_slice %595 {offsets = [2, 0], sizes = [4, 32], strides = [1, 1]} : vector<8x32xf32> to vector<4x32xf32>
    %599 = vector.extract_strided_slice %595 {offsets = [3, 0], sizes = [4, 32], strides = [1, 1]} : vector<8x32xf32> to vector<4x32xf32>
    %600 = vector.extract_strided_slice %595 {offsets = [4, 0], sizes = [4, 32], strides = [1, 1]} : vector<8x32xf32> to vector<4x32xf32>
    %601 = tpu.concatenate %596, %597, %598, %599, %600 in 1 : vector<4x32xf32>, vector<4x32xf32>, vector<4x32xf32>, vector<4x32xf32>, vector<4x32xf32> -> vector<4x160xf32>
    %602 = arith.truncf %601 : vector<4x160xf32> to vector<4x160xbf16>
    %cst_177 = arith.constant dense<0.000000e+00> : vector<4x32xf32>
    %603 = tpu.matmul %602, %593, %cst_177 {dimension_numbers = #tpu.dot_dimension_numbers<[1], [0], [0], [1], [0, 0, 1, 1], [], []>} : vector<4x160xbf16>, vector<160x32xbf16>, vector<4x32xf32> -> vector<4x32xf32>
    %604 = vector.broadcast %535 : vector<1x32xf32> to vector<4x32xf32>
    %605 = arith.addf %603, %604 : vector<4x32xf32>
    %cst_178 = arith.constant dense<0.000000e+00> : vector<32xf32>
    %606 = vector.multi_reduction <add>, %605, %cst_178 [0] : vector<4x32xf32> to vector<32xf32>
    %607 = vector.shape_cast %606 : vector<32xf32> to vector<1x32xf32>
    %cst_179 = arith.constant dense<0.000000e+00> : vector<1x32xf32>
    %608 = tpu.matmul %607, %530, %cst_179 {dimension_numbers = #tpu.dot_dimension_numbers<[1], [0], [0], [1], [0, 0, 1, 1], [], []>} : vector<1x32xf32>, vector<32x32xf32>, vector<1x32xf32> -> vector<1x32xf32>
    %609 = vector.broadcast %608 : vector<1x32xf32> to vector<4x32xf32>
    %610 = arith.subf %605, %609 : vector<4x32xf32>
    %611 = arith.mulf %610, %610 : vector<4x32xf32>
    %cst_180 = arith.constant dense<0.000000e+00> : vector<32xf32>
    %612 = vector.multi_reduction <add>, %611, %cst_180 [0] : vector<4x32xf32> to vector<32xf32>
    %613 = vector.shape_cast %612 : vector<32xf32> to vector<1x32xf32>
    %cst_181 = arith.constant dense<0.000000e+00> : vector<1x32xf32>
    %614 = tpu.matmul %613, %530, %cst_181 {dimension_numbers = #tpu.dot_dimension_numbers<[1], [0], [0], [1], [0, 0, 1, 1], [], []>} : vector<1x32xf32>, vector<32x32xf32>, vector<1x32xf32> -> vector<1x32xf32>
    %cst_182 = arith.constant 9.99999974E-6 : f32
    %615 = vector.broadcast %cst_182 : f32 to vector<1x32xf32>
    %616 = arith.addf %614, %615 : vector<1x32xf32>
    %617 = math.rsqrt %616 : vector<1x32xf32>
    %618 = vector.broadcast %617 : vector<1x32xf32> to vector<4x32xf32>
    %619 = arith.mulf %610, %618 : vector<4x32xf32>
    %620 = vector.broadcast %536 : vector<1x32xf32> to vector<4x32xf32>
    %621 = arith.mulf %619, %620 : vector<4x32xf32>
    %622 = vector.broadcast %537 : vector<1x32xf32> to vector<4x32xf32>
    %623 = arith.addf %621, %622 : vector<4x32xf32>
    %cst_183 = arith.constant 0.000000e+00 : f32
    %624 = vector.broadcast %cst_183 : f32 to vector<4x32xf32>
    %625 = arith.maximumf %623, %624 : vector<4x32xf32>
    %626 = vector.broadcast %cst_183 : f32 to vector<4x32xf32>
    %627 = arith.subf %623, %626 : vector<4x32xf32>
    %628 = arith.cmpf one, %627, %627 : vector<4x32xf32>
    %629 = vector.broadcast %cst_183 : f32 to vector<4x32xf32>
    %630 = arith.addf %623, %629 : vector<4x32xf32>
    %631 = math.absf %627 : vector<4x32xf32>
    %cst_184 = arith.constant 0.000000e+00 : f32
    %632 = vector.broadcast %cst_184 : f32 to vector<4x32xf32>
    %633 = arith.subf %632, %631 : vector<4x32xf32>
    %634 = math.exp %633 : vector<4x32xf32>
    %635 = math.log1p %634 : vector<4x32xf32>
    %636 = arith.addf %625, %635 : vector<4x32xf32>
    %637 = arith.select %628, %630, %636 : vector<4x32xi1>, vector<4x32xf32>
    %638 = math.tanh %637 : vector<4x32xf32>
    %639 = arith.mulf %623, %638 : vector<4x32xf32>
    %c0_185 = arith.constant 0 : index
    %c0_186 = arith.constant 0 : index
    %640 = vector.load %arg38[%c0_185, %c0_186] : memref<16x32xbf16, #tpu.memory_space<vmem>>, vector<16x32xbf16>
    %641 = arith.truncf %529 : vector<4x16xf32> to vector<4x16xbf16>
    %cst_187 = arith.constant dense<0.000000e+00> : vector<4x32xf32>
    %642 = tpu.matmul %641, %640, %cst_187 {dimension_numbers = #tpu.dot_dimension_numbers<[1], [0], [0], [1], [0, 0, 1, 1], [], []>} : vector<4x16xbf16>, vector<16x32xbf16>, vector<4x32xf32> -> vector<4x32xf32>
    %643 = vector.broadcast %539 : vector<1x32xf32> to vector<4x32xf32>
    %644 = arith.addf %642, %643 : vector<4x32xf32>
    %645 = arith.addf %639, %644 : vector<4x32xf32>
    %c0_188 = arith.constant 0 : index
    %c0_189 = arith.constant 0 : index
    %646 = vector.load %arg43[%c0_188, %c0_189] : memref<8x32xf32, #tpu.memory_space<vmem>>, vector<8x32xf32>
    %647 = vector.extract_strided_slice %646 {offsets = [0, 0], sizes = [1, 32], strides = [1, 1]} : vector<8x32xf32> to vector<1x32xf32>
    %648 = vector.extract_strided_slice %646 {offsets = [1, 0], sizes = [1, 32], strides = [1, 1]} : vector<8x32xf32> to vector<1x32xf32>
    %649 = vector.extract_strided_slice %646 {offsets = [2, 0], sizes = [1, 32], strides = [1, 1]} : vector<8x32xf32> to vector<1x32xf32>
    %650 = vector.extract_strided_slice %646 {offsets = [3, 0], sizes = [1, 32], strides = [1, 1]} : vector<8x32xf32> to vector<1x32xf32>
    %651 = vector.extract_strided_slice %646 {offsets = [4, 0], sizes = [1, 32], strides = [1, 1]} : vector<8x32xf32> to vector<1x32xf32>
    %652 = vector.extract_strided_slice %646 {offsets = [5, 0], sizes = [1, 32], strides = [1, 1]} : vector<8x32xf32> to vector<1x32xf32>
    %653 = vector.extract_strided_slice %646 {offsets = [6, 0], sizes = [1, 32], strides = [1, 1]} : vector<8x32xf32> to vector<1x32xf32>
    %c0_190 = arith.constant 0 : index
    %c0_191 = arith.constant 0 : index
    %654 = vector.load %arg40[%c0_190, %c0_191] : memref<160x32xbf16, #tpu.memory_space<vmem>>, vector<160x32xbf16>
    %cst_192 = arith.constant 0.000000e+00 : f32
    %655 = vector.broadcast %cst_192 : f32 to vector<2x32xf32>
    %656 = tpu.concatenate %655, %645, %655 in 0 : vector<2x32xf32>, vector<4x32xf32>, vector<2x32xf32> -> vector<8x32xf32>
    %657 = vector.extract_strided_slice %656 {offsets = [0, 0], sizes = [4, 32], strides = [1, 1]} : vector<8x32xf32> to vector<4x32xf32>
    %658 = vector.extract_strided_slice %656 {offsets = [1, 0], sizes = [4, 32], strides = [1, 1]} : vector<8x32xf32> to vector<4x32xf32>
    %659 = vector.extract_strided_slice %656 {offsets = [2, 0], sizes = [4, 32], strides = [1, 1]} : vector<8x32xf32> to vector<4x32xf32>
    %660 = vector.extract_strided_slice %656 {offsets = [3, 0], sizes = [4, 32], strides = [1, 1]} : vector<8x32xf32> to vector<4x32xf32>
    %661 = vector.extract_strided_slice %656 {offsets = [4, 0], sizes = [4, 32], strides = [1, 1]} : vector<8x32xf32> to vector<4x32xf32>
    %662 = tpu.concatenate %657, %658, %659, %660, %661 in 1 : vector<4x32xf32>, vector<4x32xf32>, vector<4x32xf32>, vector<4x32xf32>, vector<4x32xf32> -> vector<4x160xf32>
    %663 = arith.truncf %662 : vector<4x160xf32> to vector<4x160xbf16>
    %cst_193 = arith.constant dense<0.000000e+00> : vector<4x32xf32>
    %664 = tpu.matmul %663, %654, %cst_193 {dimension_numbers = #tpu.dot_dimension_numbers<[1], [0], [0], [1], [0, 0, 1, 1], [], []>} : vector<4x160xbf16>, vector<160x32xbf16>, vector<4x32xf32> -> vector<4x32xf32>
    %665 = vector.broadcast %647 : vector<1x32xf32> to vector<4x32xf32>
    %666 = arith.addf %664, %665 : vector<4x32xf32>
    %cst_194 = arith.constant dense<0.000000e+00> : vector<32xf32>
    %667 = vector.multi_reduction <add>, %666, %cst_194 [0] : vector<4x32xf32> to vector<32xf32>
    %668 = vector.shape_cast %667 : vector<32xf32> to vector<1x32xf32>
    %cst_195 = arith.constant dense<0.000000e+00> : vector<1x32xf32>
    %669 = tpu.matmul %668, %530, %cst_195 {dimension_numbers = #tpu.dot_dimension_numbers<[1], [0], [0], [1], [0, 0, 1, 1], [], []>} : vector<1x32xf32>, vector<32x32xf32>, vector<1x32xf32> -> vector<1x32xf32>
    %670 = vector.broadcast %669 : vector<1x32xf32> to vector<4x32xf32>
    %671 = arith.subf %666, %670 : vector<4x32xf32>
    %672 = arith.mulf %671, %671 : vector<4x32xf32>
    %cst_196 = arith.constant dense<0.000000e+00> : vector<32xf32>
    %673 = vector.multi_reduction <add>, %672, %cst_196 [0] : vector<4x32xf32> to vector<32xf32>
    %674 = vector.shape_cast %673 : vector<32xf32> to vector<1x32xf32>
    %cst_197 = arith.constant dense<0.000000e+00> : vector<1x32xf32>
    %675 = tpu.matmul %674, %530, %cst_197 {dimension_numbers = #tpu.dot_dimension_numbers<[1], [0], [0], [1], [0, 0, 1, 1], [], []>} : vector<1x32xf32>, vector<32x32xf32>, vector<1x32xf32> -> vector<1x32xf32>
    %cst_198 = arith.constant 9.99999974E-6 : f32
    %676 = vector.broadcast %cst_198 : f32 to vector<1x32xf32>
    %677 = arith.addf %675, %676 : vector<1x32xf32>
    %678 = math.rsqrt %677 : vector<1x32xf32>
    %679 = vector.broadcast %678 : vector<1x32xf32> to vector<4x32xf32>
    %680 = arith.mulf %671, %679 : vector<4x32xf32>
    %681 = vector.broadcast %648 : vector<1x32xf32> to vector<4x32xf32>
    %682 = arith.mulf %680, %681 : vector<4x32xf32>
    %683 = vector.broadcast %649 : vector<1x32xf32> to vector<4x32xf32>
    %684 = arith.addf %682, %683 : vector<4x32xf32>
    %cst_199 = arith.constant 0.000000e+00 : f32
    %685 = vector.broadcast %cst_199 : f32 to vector<4x32xf32>
    %686 = arith.maximumf %684, %685 : vector<4x32xf32>
    %687 = vector.broadcast %cst_199 : f32 to vector<4x32xf32>
    %688 = arith.subf %684, %687 : vector<4x32xf32>
    %689 = arith.cmpf one, %688, %688 : vector<4x32xf32>
    %690 = vector.broadcast %cst_199 : f32 to vector<4x32xf32>
    %691 = arith.addf %684, %690 : vector<4x32xf32>
    %692 = math.absf %688 : vector<4x32xf32>
    %cst_200 = arith.constant 0.000000e+00 : f32
    %693 = vector.broadcast %cst_200 : f32 to vector<4x32xf32>
    %694 = arith.subf %693, %692 : vector<4x32xf32>
    %695 = math.exp %694 : vector<4x32xf32>
    %696 = math.log1p %695 : vector<4x32xf32>
    %697 = arith.addf %686, %696 : vector<4x32xf32>
    %698 = arith.select %689, %691, %697 : vector<4x32xi1>, vector<4x32xf32>
    %699 = math.tanh %698 : vector<4x32xf32>
    %700 = arith.mulf %684, %699 : vector<4x32xf32>
    %c0_201 = arith.constant 0 : index
    %c0_202 = arith.constant 0 : index
    %701 = vector.load %arg42[%c0_201, %c0_202] : memref<8x32xbf16, #tpu.memory_space<vmem>>, vector<8x32xbf16>
    %702 = arith.truncf %49 : vector<1x8xf32> to vector<1x8xbf16>
    %cst_203 = arith.constant dense<0.000000e+00> : vector<1x32xf32>
    %703 = tpu.matmul %702, %701, %cst_203 {dimension_numbers = #tpu.dot_dimension_numbers<[1], [0], [0], [1], [0, 0, 1, 1], [], []>} : vector<1x8xbf16>, vector<8x32xbf16>, vector<1x32xf32> -> vector<1x32xf32>
    %704 = arith.addf %703, %653 : vector<1x32xf32>
    %705 = vector.broadcast %704 : vector<1x32xf32> to vector<4x32xf32>
    %706 = arith.addf %700, %705 : vector<4x32xf32>
    %c0_204 = arith.constant 0 : index
    %c0_205 = arith.constant 0 : index
    %707 = vector.load %arg41[%c0_204, %c0_205] : memref<160x32xbf16, #tpu.memory_space<vmem>>, vector<160x32xbf16>
    %cst_206 = arith.constant 0.000000e+00 : f32
    %708 = vector.broadcast %cst_206 : f32 to vector<2x32xf32>
    %709 = tpu.concatenate %708, %706, %708 in 0 : vector<2x32xf32>, vector<4x32xf32>, vector<2x32xf32> -> vector<8x32xf32>
    %710 = vector.extract_strided_slice %709 {offsets = [0, 0], sizes = [4, 32], strides = [1, 1]} : vector<8x32xf32> to vector<4x32xf32>
    %711 = vector.extract_strided_slice %709 {offsets = [1, 0], sizes = [4, 32], strides = [1, 1]} : vector<8x32xf32> to vector<4x32xf32>
    %712 = vector.extract_strided_slice %709 {offsets = [2, 0], sizes = [4, 32], strides = [1, 1]} : vector<8x32xf32> to vector<4x32xf32>
    %713 = vector.extract_strided_slice %709 {offsets = [3, 0], sizes = [4, 32], strides = [1, 1]} : vector<8x32xf32> to vector<4x32xf32>
    %714 = vector.extract_strided_slice %709 {offsets = [4, 0], sizes = [4, 32], strides = [1, 1]} : vector<8x32xf32> to vector<4x32xf32>
    %715 = tpu.concatenate %710, %711, %712, %713, %714 in 1 : vector<4x32xf32>, vector<4x32xf32>, vector<4x32xf32>, vector<4x32xf32>, vector<4x32xf32> -> vector<4x160xf32>
    %716 = arith.truncf %715 : vector<4x160xf32> to vector<4x160xbf16>
    %cst_207 = arith.constant dense<0.000000e+00> : vector<4x32xf32>
    %717 = tpu.matmul %716, %707, %cst_207 {dimension_numbers = #tpu.dot_dimension_numbers<[1], [0], [0], [1], [0, 0, 1, 1], [], []>} : vector<4x160xbf16>, vector<160x32xbf16>, vector<4x32xf32> -> vector<4x32xf32>
    %718 = vector.broadcast %650 : vector<1x32xf32> to vector<4x32xf32>
    %719 = arith.addf %717, %718 : vector<4x32xf32>
    %cst_208 = arith.constant dense<0.000000e+00> : vector<32xf32>
    %720 = vector.multi_reduction <add>, %719, %cst_208 [0] : vector<4x32xf32> to vector<32xf32>
    %721 = vector.shape_cast %720 : vector<32xf32> to vector<1x32xf32>
    %cst_209 = arith.constant dense<0.000000e+00> : vector<1x32xf32>
    %722 = tpu.matmul %721, %530, %cst_209 {dimension_numbers = #tpu.dot_dimension_numbers<[1], [0], [0], [1], [0, 0, 1, 1], [], []>} : vector<1x32xf32>, vector<32x32xf32>, vector<1x32xf32> -> vector<1x32xf32>
    %723 = vector.broadcast %722 : vector<1x32xf32> to vector<4x32xf32>
    %724 = arith.subf %719, %723 : vector<4x32xf32>
    %725 = arith.mulf %724, %724 : vector<4x32xf32>
    %cst_210 = arith.constant dense<0.000000e+00> : vector<32xf32>
    %726 = vector.multi_reduction <add>, %725, %cst_210 [0] : vector<4x32xf32> to vector<32xf32>
    %727 = vector.shape_cast %726 : vector<32xf32> to vector<1x32xf32>
    %cst_211 = arith.constant dense<0.000000e+00> : vector<1x32xf32>
    %728 = tpu.matmul %727, %530, %cst_211 {dimension_numbers = #tpu.dot_dimension_numbers<[1], [0], [0], [1], [0, 0, 1, 1], [], []>} : vector<1x32xf32>, vector<32x32xf32>, vector<1x32xf32> -> vector<1x32xf32>
    %cst_212 = arith.constant 9.99999974E-6 : f32
    %729 = vector.broadcast %cst_212 : f32 to vector<1x32xf32>
    %730 = arith.addf %728, %729 : vector<1x32xf32>
    %731 = math.rsqrt %730 : vector<1x32xf32>
    %732 = vector.broadcast %731 : vector<1x32xf32> to vector<4x32xf32>
    %733 = arith.mulf %724, %732 : vector<4x32xf32>
    %734 = vector.broadcast %651 : vector<1x32xf32> to vector<4x32xf32>
    %735 = arith.mulf %733, %734 : vector<4x32xf32>
    %736 = vector.broadcast %652 : vector<1x32xf32> to vector<4x32xf32>
    %737 = arith.addf %735, %736 : vector<4x32xf32>
    %cst_213 = arith.constant 0.000000e+00 : f32
    %738 = vector.broadcast %cst_213 : f32 to vector<4x32xf32>
    %739 = arith.maximumf %737, %738 : vector<4x32xf32>
    %740 = vector.broadcast %cst_213 : f32 to vector<4x32xf32>
    %741 = arith.subf %737, %740 : vector<4x32xf32>
    %742 = arith.cmpf one, %741, %741 : vector<4x32xf32>
    %743 = vector.broadcast %cst_213 : f32 to vector<4x32xf32>
    %744 = arith.addf %737, %743 : vector<4x32xf32>
    %745 = math.absf %741 : vector<4x32xf32>
    %cst_214 = arith.constant 0.000000e+00 : f32
    %746 = vector.broadcast %cst_214 : f32 to vector<4x32xf32>
    %747 = arith.subf %746, %745 : vector<4x32xf32>
    %748 = math.exp %747 : vector<4x32xf32>
    %749 = math.log1p %748 : vector<4x32xf32>
    %750 = arith.addf %739, %749 : vector<4x32xf32>
    %751 = arith.select %742, %744, %750 : vector<4x32xi1>, vector<4x32xf32>
    %752 = math.tanh %751 : vector<4x32xf32>
    %753 = arith.mulf %737, %752 : vector<4x32xf32>
    %754 = arith.addf %753, %645 : vector<4x32xf32>
    %c0_215 = arith.constant 0 : index
    %c0_216 = arith.constant 0 : index
    %755 = vector.load %arg44[%c0_215, %c0_216] : memref<96x32xbf16, #tpu.memory_space<vmem>>, vector<96x32xbf16>
    %c0_217 = arith.constant 0 : index
    %c0_218 = arith.constant 0 : index
    %756 = vector.load %arg45[%c0_217, %c0_218] : memref<1x32xf32, #tpu.memory_space<vmem>>, vector<1x32xf32>
    %c0_219 = arith.constant 0 : index
    %c0_220 = arith.constant 0 : index
    %757 = vector.load %arg46[%c0_219, %c0_220] : memref<2x4xf32, #tpu.memory_space<vmem>>, vector<2x4xf32>
    %cst_221 = arith.constant 0.000000e+00 : f32
    %758 = vector.broadcast %cst_221 : f32 to vector<1x32xf32>
    %759 = tpu.concatenate %758, %754, %758 in 0 : vector<1x32xf32>, vector<4x32xf32>, vector<1x32xf32> -> vector<6x32xf32>
    %760 = vector.extract_strided_slice %759 {offsets = [0, 0], sizes = [4, 32], strides = [1, 1]} : vector<6x32xf32> to vector<4x32xf32>
    %761 = vector.extract_strided_slice %759 {offsets = [1, 0], sizes = [4, 32], strides = [1, 1]} : vector<6x32xf32> to vector<4x32xf32>
    %762 = vector.extract_strided_slice %759 {offsets = [2, 0], sizes = [4, 32], strides = [1, 1]} : vector<6x32xf32> to vector<4x32xf32>
    %763 = tpu.concatenate %760, %761, %762 in 1 : vector<4x32xf32>, vector<4x32xf32>, vector<4x32xf32> -> vector<4x96xf32>
    %764 = arith.truncf %763 : vector<4x96xf32> to vector<4x96xbf16>
    %cst_222 = arith.constant dense<0.000000e+00> : vector<4x32xf32>
    %765 = tpu.matmul %764, %755, %cst_222 {dimension_numbers = #tpu.dot_dimension_numbers<[1], [0], [0], [1], [0, 0, 1, 1], [], []>} : vector<4x96xbf16>, vector<96x32xbf16>, vector<4x32xf32> -> vector<4x32xf32>
    %766 = vector.broadcast %756 : vector<1x32xf32> to vector<4x32xf32>
    %767 = arith.addf %765, %766 : vector<4x32xf32>
    %cst_223 = arith.constant dense<0.000000e+00> : vector<2x32xf32>
    %768 = tpu.matmul %757, %767, %cst_223 {dimension_numbers = #tpu.dot_dimension_numbers<[1], [0], [0], [1], [0, 0, 1, 1], [], []>} : vector<2x4xf32>, vector<4x32xf32>, vector<2x32xf32> -> vector<2x32xf32>
    %c0_224 = arith.constant 0 : index
    %c0_225 = arith.constant 0 : index
    %769 = vector.load %arg47[%c0_224, %c0_225] : memref<64x64xf32, #tpu.memory_space<vmem>>, vector<64x64xf32>
    %c0_226 = arith.constant 0 : index
    %c0_227 = arith.constant 0 : index
    %770 = vector.load %arg52[%c0_226, %c0_227] : memref<8x64xf32, #tpu.memory_space<vmem>>, vector<8x64xf32>
    %771 = vector.extract_strided_slice %770 {offsets = [0, 0], sizes = [1, 64], strides = [1, 1]} : vector<8x64xf32> to vector<1x64xf32>
    %772 = vector.extract_strided_slice %770 {offsets = [1, 0], sizes = [1, 64], strides = [1, 1]} : vector<8x64xf32> to vector<1x64xf32>
    %773 = vector.extract_strided_slice %770 {offsets = [2, 0], sizes = [1, 64], strides = [1, 1]} : vector<8x64xf32> to vector<1x64xf32>
    %774 = vector.extract_strided_slice %770 {offsets = [3, 0], sizes = [1, 64], strides = [1, 1]} : vector<8x64xf32> to vector<1x64xf32>
    %775 = vector.extract_strided_slice %770 {offsets = [4, 0], sizes = [1, 64], strides = [1, 1]} : vector<8x64xf32> to vector<1x64xf32>
    %776 = vector.extract_strided_slice %770 {offsets = [5, 0], sizes = [1, 64], strides = [1, 1]} : vector<8x64xf32> to vector<1x64xf32>
    %777 = vector.extract_strided_slice %770 {offsets = [6, 0], sizes = [1, 64], strides = [1, 1]} : vector<8x64xf32> to vector<1x64xf32>
    %778 = vector.extract_strided_slice %770 {offsets = [7, 0], sizes = [1, 64], strides = [1, 1]} : vector<8x64xf32> to vector<1x64xf32>
    %c0_228 = arith.constant 0 : index
    %c0_229 = arith.constant 0 : index
    %779 = vector.load %arg48[%c0_228, %c0_229] : memref<160x64xbf16, #tpu.memory_space<vmem>>, vector<160x64xbf16>
    %cst_230 = arith.constant 0.000000e+00 : f32
    %780 = vector.broadcast %cst_230 : f32 to vector<2x32xf32>
    %781 = tpu.concatenate %780, %768, %780 in 0 : vector<2x32xf32>, vector<2x32xf32>, vector<2x32xf32> -> vector<6x32xf32>
    %782 = vector.extract_strided_slice %781 {offsets = [0, 0], sizes = [2, 32], strides = [1, 1]} : vector<6x32xf32> to vector<2x32xf32>
    %783 = vector.extract_strided_slice %781 {offsets = [1, 0], sizes = [2, 32], strides = [1, 1]} : vector<6x32xf32> to vector<2x32xf32>
    %784 = vector.extract_strided_slice %781 {offsets = [2, 0], sizes = [2, 32], strides = [1, 1]} : vector<6x32xf32> to vector<2x32xf32>
    %785 = vector.extract_strided_slice %781 {offsets = [3, 0], sizes = [2, 32], strides = [1, 1]} : vector<6x32xf32> to vector<2x32xf32>
    %786 = vector.extract_strided_slice %781 {offsets = [4, 0], sizes = [2, 32], strides = [1, 1]} : vector<6x32xf32> to vector<2x32xf32>
    %787 = tpu.concatenate %782, %783, %784, %785, %786 in 1 : vector<2x32xf32>, vector<2x32xf32>, vector<2x32xf32>, vector<2x32xf32>, vector<2x32xf32> -> vector<2x160xf32>
    %788 = arith.truncf %787 : vector<2x160xf32> to vector<2x160xbf16>
    %cst_231 = arith.constant dense<0.000000e+00> : vector<2x64xf32>
    %789 = tpu.matmul %788, %779, %cst_231 {dimension_numbers = #tpu.dot_dimension_numbers<[1], [0], [0], [1], [0, 0, 1, 1], [], []>} : vector<2x160xbf16>, vector<160x64xbf16>, vector<2x64xf32> -> vector<2x64xf32>
    %790 = vector.broadcast %771 : vector<1x64xf32> to vector<2x64xf32>
    %791 = arith.addf %789, %790 : vector<2x64xf32>
    %cst_232 = arith.constant dense<0.000000e+00> : vector<64xf32>
    %792 = vector.multi_reduction <add>, %791, %cst_232 [0] : vector<2x64xf32> to vector<64xf32>
    %793 = vector.shape_cast %792 : vector<64xf32> to vector<1x64xf32>
    %cst_233 = arith.constant dense<0.000000e+00> : vector<1x64xf32>
    %794 = tpu.matmul %793, %769, %cst_233 {dimension_numbers = #tpu.dot_dimension_numbers<[1], [0], [0], [1], [0, 0, 1, 1], [], []>} : vector<1x64xf32>, vector<64x64xf32>, vector<1x64xf32> -> vector<1x64xf32>
    %795 = vector.broadcast %794 : vector<1x64xf32> to vector<2x64xf32>
    %796 = arith.subf %791, %795 : vector<2x64xf32>
    %797 = arith.mulf %796, %796 : vector<2x64xf32>
    %cst_234 = arith.constant dense<0.000000e+00> : vector<64xf32>
    %798 = vector.multi_reduction <add>, %797, %cst_234 [0] : vector<2x64xf32> to vector<64xf32>
    %799 = vector.shape_cast %798 : vector<64xf32> to vector<1x64xf32>
    %cst_235 = arith.constant dense<0.000000e+00> : vector<1x64xf32>
    %800 = tpu.matmul %799, %769, %cst_235 {dimension_numbers = #tpu.dot_dimension_numbers<[1], [0], [0], [1], [0, 0, 1, 1], [], []>} : vector<1x64xf32>, vector<64x64xf32>, vector<1x64xf32> -> vector<1x64xf32>
    %cst_236 = arith.constant 9.99999974E-6 : f32
    %801 = vector.broadcast %cst_236 : f32 to vector<1x64xf32>
    %802 = arith.addf %800, %801 : vector<1x64xf32>
    %803 = math.rsqrt %802 : vector<1x64xf32>
    %804 = vector.broadcast %803 : vector<1x64xf32> to vector<2x64xf32>
    %805 = arith.mulf %796, %804 : vector<2x64xf32>
    %806 = vector.broadcast %772 : vector<1x64xf32> to vector<2x64xf32>
    %807 = arith.mulf %805, %806 : vector<2x64xf32>
    %808 = vector.broadcast %773 : vector<1x64xf32> to vector<2x64xf32>
    %809 = arith.addf %807, %808 : vector<2x64xf32>
    %cst_237 = arith.constant 0.000000e+00 : f32
    %810 = vector.broadcast %cst_237 : f32 to vector<2x64xf32>
    %811 = arith.maximumf %809, %810 : vector<2x64xf32>
    %812 = vector.broadcast %cst_237 : f32 to vector<2x64xf32>
    %813 = arith.subf %809, %812 : vector<2x64xf32>
    %814 = arith.cmpf one, %813, %813 : vector<2x64xf32>
    %815 = vector.broadcast %cst_237 : f32 to vector<2x64xf32>
    %816 = arith.addf %809, %815 : vector<2x64xf32>
    %817 = math.absf %813 : vector<2x64xf32>
    %cst_238 = arith.constant 0.000000e+00 : f32
    %818 = vector.broadcast %cst_238 : f32 to vector<2x64xf32>
    %819 = arith.subf %818, %817 : vector<2x64xf32>
    %820 = math.exp %819 : vector<2x64xf32>
    %821 = math.log1p %820 : vector<2x64xf32>
    %822 = arith.addf %811, %821 : vector<2x64xf32>
    %823 = arith.select %814, %816, %822 : vector<2x64xi1>, vector<2x64xf32>
    %824 = math.tanh %823 : vector<2x64xf32>
    %825 = arith.mulf %809, %824 : vector<2x64xf32>
    %c0_239 = arith.constant 0 : index
    %c0_240 = arith.constant 0 : index
    %826 = vector.load %arg50[%c0_239, %c0_240] : memref<8x64xbf16, #tpu.memory_space<vmem>>, vector<8x64xbf16>
    %827 = arith.truncf %49 : vector<1x8xf32> to vector<1x8xbf16>
    %cst_241 = arith.constant dense<0.000000e+00> : vector<1x64xf32>
    %828 = tpu.matmul %827, %826, %cst_241 {dimension_numbers = #tpu.dot_dimension_numbers<[1], [0], [0], [1], [0, 0, 1, 1], [], []>} : vector<1x8xbf16>, vector<8x64xbf16>, vector<1x64xf32> -> vector<1x64xf32>
    %829 = arith.addf %828, %777 : vector<1x64xf32>
    %830 = vector.broadcast %829 : vector<1x64xf32> to vector<2x64xf32>
    %831 = arith.addf %825, %830 : vector<2x64xf32>
    %c0_242 = arith.constant 0 : index
    %c0_243 = arith.constant 0 : index
    %832 = vector.load %arg49[%c0_242, %c0_243] : memref<320x64xbf16, #tpu.memory_space<vmem>>, vector<320x64xbf16>
    %cst_244 = arith.constant 0.000000e+00 : f32
    %833 = vector.broadcast %cst_244 : f32 to vector<2x64xf32>
    %834 = tpu.concatenate %833, %831, %833 in 0 : vector<2x64xf32>, vector<2x64xf32>, vector<2x64xf32> -> vector<6x64xf32>
    %835 = vector.extract_strided_slice %834 {offsets = [0, 0], sizes = [2, 64], strides = [1, 1]} : vector<6x64xf32> to vector<2x64xf32>
    %836 = vector.extract_strided_slice %834 {offsets = [1, 0], sizes = [2, 64], strides = [1, 1]} : vector<6x64xf32> to vector<2x64xf32>
    %837 = vector.extract_strided_slice %834 {offsets = [2, 0], sizes = [2, 64], strides = [1, 1]} : vector<6x64xf32> to vector<2x64xf32>
    %838 = vector.extract_strided_slice %834 {offsets = [3, 0], sizes = [2, 64], strides = [1, 1]} : vector<6x64xf32> to vector<2x64xf32>
    %839 = vector.extract_strided_slice %834 {offsets = [4, 0], sizes = [2, 64], strides = [1, 1]} : vector<6x64xf32> to vector<2x64xf32>
    %840 = tpu.concatenate %835, %836, %837, %838, %839 in 1 : vector<2x64xf32>, vector<2x64xf32>, vector<2x64xf32>, vector<2x64xf32>, vector<2x64xf32> -> vector<2x320xf32>
    %841 = arith.truncf %840 : vector<2x320xf32> to vector<2x320xbf16>
    %cst_245 = arith.constant dense<0.000000e+00> : vector<2x64xf32>
    %842 = tpu.matmul %841, %832, %cst_245 {dimension_numbers = #tpu.dot_dimension_numbers<[1], [0], [0], [1], [0, 0, 1, 1], [], []>} : vector<2x320xbf16>, vector<320x64xbf16>, vector<2x64xf32> -> vector<2x64xf32>
    %843 = vector.broadcast %774 : vector<1x64xf32> to vector<2x64xf32>
    %844 = arith.addf %842, %843 : vector<2x64xf32>
    %cst_246 = arith.constant dense<0.000000e+00> : vector<64xf32>
    %845 = vector.multi_reduction <add>, %844, %cst_246 [0] : vector<2x64xf32> to vector<64xf32>
    %846 = vector.shape_cast %845 : vector<64xf32> to vector<1x64xf32>
    %cst_247 = arith.constant dense<0.000000e+00> : vector<1x64xf32>
    %847 = tpu.matmul %846, %769, %cst_247 {dimension_numbers = #tpu.dot_dimension_numbers<[1], [0], [0], [1], [0, 0, 1, 1], [], []>} : vector<1x64xf32>, vector<64x64xf32>, vector<1x64xf32> -> vector<1x64xf32>
    %848 = vector.broadcast %847 : vector<1x64xf32> to vector<2x64xf32>
    %849 = arith.subf %844, %848 : vector<2x64xf32>
    %850 = arith.mulf %849, %849 : vector<2x64xf32>
    %cst_248 = arith.constant dense<0.000000e+00> : vector<64xf32>
    %851 = vector.multi_reduction <add>, %850, %cst_248 [0] : vector<2x64xf32> to vector<64xf32>
    %852 = vector.shape_cast %851 : vector<64xf32> to vector<1x64xf32>
    %cst_249 = arith.constant dense<0.000000e+00> : vector<1x64xf32>
    %853 = tpu.matmul %852, %769, %cst_249 {dimension_numbers = #tpu.dot_dimension_numbers<[1], [0], [0], [1], [0, 0, 1, 1], [], []>} : vector<1x64xf32>, vector<64x64xf32>, vector<1x64xf32> -> vector<1x64xf32>
    %cst_250 = arith.constant 9.99999974E-6 : f32
    %854 = vector.broadcast %cst_250 : f32 to vector<1x64xf32>
    %855 = arith.addf %853, %854 : vector<1x64xf32>
    %856 = math.rsqrt %855 : vector<1x64xf32>
    %857 = vector.broadcast %856 : vector<1x64xf32> to vector<2x64xf32>
    %858 = arith.mulf %849, %857 : vector<2x64xf32>
    %859 = vector.broadcast %775 : vector<1x64xf32> to vector<2x64xf32>
    %860 = arith.mulf %858, %859 : vector<2x64xf32>
    %861 = vector.broadcast %776 : vector<1x64xf32> to vector<2x64xf32>
    %862 = arith.addf %860, %861 : vector<2x64xf32>
    %cst_251 = arith.constant 0.000000e+00 : f32
    %863 = vector.broadcast %cst_251 : f32 to vector<2x64xf32>
    %864 = arith.maximumf %862, %863 : vector<2x64xf32>
    %865 = vector.broadcast %cst_251 : f32 to vector<2x64xf32>
    %866 = arith.subf %862, %865 : vector<2x64xf32>
    %867 = arith.cmpf one, %866, %866 : vector<2x64xf32>
    %868 = vector.broadcast %cst_251 : f32 to vector<2x64xf32>
    %869 = arith.addf %862, %868 : vector<2x64xf32>
    %870 = math.absf %866 : vector<2x64xf32>
    %cst_252 = arith.constant 0.000000e+00 : f32
    %871 = vector.broadcast %cst_252 : f32 to vector<2x64xf32>
    %872 = arith.subf %871, %870 : vector<2x64xf32>
    %873 = math.exp %872 : vector<2x64xf32>
    %874 = math.log1p %873 : vector<2x64xf32>
    %875 = arith.addf %864, %874 : vector<2x64xf32>
    %876 = arith.select %867, %869, %875 : vector<2x64xi1>, vector<2x64xf32>
    %877 = math.tanh %876 : vector<2x64xf32>
    %878 = arith.mulf %862, %877 : vector<2x64xf32>
    %c0_253 = arith.constant 0 : index
    %c0_254 = arith.constant 0 : index
    %879 = vector.load %arg51[%c0_253, %c0_254] : memref<32x64xbf16, #tpu.memory_space<vmem>>, vector<32x64xbf16>
    %880 = arith.truncf %768 : vector<2x32xf32> to vector<2x32xbf16>
    %cst_255 = arith.constant dense<0.000000e+00> : vector<2x64xf32>
    %881 = tpu.matmul %880, %879, %cst_255 {dimension_numbers = #tpu.dot_dimension_numbers<[1], [0], [0], [1], [0, 0, 1, 1], [], []>} : vector<2x32xbf16>, vector<32x64xbf16>, vector<2x64xf32> -> vector<2x64xf32>
    %882 = vector.broadcast %778 : vector<1x64xf32> to vector<2x64xf32>
    %883 = arith.addf %881, %882 : vector<2x64xf32>
    %884 = arith.addf %878, %883 : vector<2x64xf32>
    %c0_256 = arith.constant 0 : index
    %c0_257 = arith.constant 0 : index
    %885 = vector.load %arg56[%c0_256, %c0_257] : memref<8x64xf32, #tpu.memory_space<vmem>>, vector<8x64xf32>
    %886 = vector.extract_strided_slice %885 {offsets = [0, 0], sizes = [1, 64], strides = [1, 1]} : vector<8x64xf32> to vector<1x64xf32>
    %887 = vector.extract_strided_slice %885 {offsets = [1, 0], sizes = [1, 64], strides = [1, 1]} : vector<8x64xf32> to vector<1x64xf32>
    %888 = vector.extract_strided_slice %885 {offsets = [2, 0], sizes = [1, 64], strides = [1, 1]} : vector<8x64xf32> to vector<1x64xf32>
    %889 = vector.extract_strided_slice %885 {offsets = [3, 0], sizes = [1, 64], strides = [1, 1]} : vector<8x64xf32> to vector<1x64xf32>
    %890 = vector.extract_strided_slice %885 {offsets = [4, 0], sizes = [1, 64], strides = [1, 1]} : vector<8x64xf32> to vector<1x64xf32>
    %891 = vector.extract_strided_slice %885 {offsets = [5, 0], sizes = [1, 64], strides = [1, 1]} : vector<8x64xf32> to vector<1x64xf32>
    %892 = vector.extract_strided_slice %885 {offsets = [6, 0], sizes = [1, 64], strides = [1, 1]} : vector<8x64xf32> to vector<1x64xf32>
    %c0_258 = arith.constant 0 : index
    %c0_259 = arith.constant 0 : index
    %893 = vector.load %arg53[%c0_258, %c0_259] : memref<320x64xbf16, #tpu.memory_space<vmem>>, vector<320x64xbf16>
    %cst_260 = arith.constant 0.000000e+00 : f32
    %894 = vector.broadcast %cst_260 : f32 to vector<2x64xf32>
    %895 = tpu.concatenate %894, %884, %894 in 0 : vector<2x64xf32>, vector<2x64xf32>, vector<2x64xf32> -> vector<6x64xf32>
    %896 = vector.extract_strided_slice %895 {offsets = [0, 0], sizes = [2, 64], strides = [1, 1]} : vector<6x64xf32> to vector<2x64xf32>
    %897 = vector.extract_strided_slice %895 {offsets = [1, 0], sizes = [2, 64], strides = [1, 1]} : vector<6x64xf32> to vector<2x64xf32>
    %898 = vector.extract_strided_slice %895 {offsets = [2, 0], sizes = [2, 64], strides = [1, 1]} : vector<6x64xf32> to vector<2x64xf32>
    %899 = vector.extract_strided_slice %895 {offsets = [3, 0], sizes = [2, 64], strides = [1, 1]} : vector<6x64xf32> to vector<2x64xf32>
    %900 = vector.extract_strided_slice %895 {offsets = [4, 0], sizes = [2, 64], strides = [1, 1]} : vector<6x64xf32> to vector<2x64xf32>
    %901 = tpu.concatenate %896, %897, %898, %899, %900 in 1 : vector<2x64xf32>, vector<2x64xf32>, vector<2x64xf32>, vector<2x64xf32>, vector<2x64xf32> -> vector<2x320xf32>
    %902 = arith.truncf %901 : vector<2x320xf32> to vector<2x320xbf16>
    %cst_261 = arith.constant dense<0.000000e+00> : vector<2x64xf32>
    %903 = tpu.matmul %902, %893, %cst_261 {dimension_numbers = #tpu.dot_dimension_numbers<[1], [0], [0], [1], [0, 0, 1, 1], [], []>} : vector<2x320xbf16>, vector<320x64xbf16>, vector<2x64xf32> -> vector<2x64xf32>
    %904 = vector.broadcast %886 : vector<1x64xf32> to vector<2x64xf32>
    %905 = arith.addf %903, %904 : vector<2x64xf32>
    %cst_262 = arith.constant dense<0.000000e+00> : vector<64xf32>
    %906 = vector.multi_reduction <add>, %905, %cst_262 [0] : vector<2x64xf32> to vector<64xf32>
    %907 = vector.shape_cast %906 : vector<64xf32> to vector<1x64xf32>
    %cst_263 = arith.constant dense<0.000000e+00> : vector<1x64xf32>
    %908 = tpu.matmul %907, %769, %cst_263 {dimension_numbers = #tpu.dot_dimension_numbers<[1], [0], [0], [1], [0, 0, 1, 1], [], []>} : vector<1x64xf32>, vector<64x64xf32>, vector<1x64xf32> -> vector<1x64xf32>
    %909 = vector.broadcast %908 : vector<1x64xf32> to vector<2x64xf32>
    %910 = arith.subf %905, %909 : vector<2x64xf32>
    %911 = arith.mulf %910, %910 : vector<2x64xf32>
    %cst_264 = arith.constant dense<0.000000e+00> : vector<64xf32>
    %912 = vector.multi_reduction <add>, %911, %cst_264 [0] : vector<2x64xf32> to vector<64xf32>
    %913 = vector.shape_cast %912 : vector<64xf32> to vector<1x64xf32>
    %cst_265 = arith.constant dense<0.000000e+00> : vector<1x64xf32>
    %914 = tpu.matmul %913, %769, %cst_265 {dimension_numbers = #tpu.dot_dimension_numbers<[1], [0], [0], [1], [0, 0, 1, 1], [], []>} : vector<1x64xf32>, vector<64x64xf32>, vector<1x64xf32> -> vector<1x64xf32>
    %cst_266 = arith.constant 9.99999974E-6 : f32
    %915 = vector.broadcast %cst_266 : f32 to vector<1x64xf32>
    %916 = arith.addf %914, %915 : vector<1x64xf32>
    %917 = math.rsqrt %916 : vector<1x64xf32>
    %918 = vector.broadcast %917 : vector<1x64xf32> to vector<2x64xf32>
    %919 = arith.mulf %910, %918 : vector<2x64xf32>
    %920 = vector.broadcast %887 : vector<1x64xf32> to vector<2x64xf32>
    %921 = arith.mulf %919, %920 : vector<2x64xf32>
    %922 = vector.broadcast %888 : vector<1x64xf32> to vector<2x64xf32>
    %923 = arith.addf %921, %922 : vector<2x64xf32>
    %cst_267 = arith.constant 0.000000e+00 : f32
    %924 = vector.broadcast %cst_267 : f32 to vector<2x64xf32>
    %925 = arith.maximumf %923, %924 : vector<2x64xf32>
    %926 = vector.broadcast %cst_267 : f32 to vector<2x64xf32>
    %927 = arith.subf %923, %926 : vector<2x64xf32>
    %928 = arith.cmpf one, %927, %927 : vector<2x64xf32>
    %929 = vector.broadcast %cst_267 : f32 to vector<2x64xf32>
    %930 = arith.addf %923, %929 : vector<2x64xf32>
    %931 = math.absf %927 : vector<2x64xf32>
    %cst_268 = arith.constant 0.000000e+00 : f32
    %932 = vector.broadcast %cst_268 : f32 to vector<2x64xf32>
    %933 = arith.subf %932, %931 : vector<2x64xf32>
    %934 = math.exp %933 : vector<2x64xf32>
    %935 = math.log1p %934 : vector<2x64xf32>
    %936 = arith.addf %925, %935 : vector<2x64xf32>
    %937 = arith.select %928, %930, %936 : vector<2x64xi1>, vector<2x64xf32>
    %938 = math.tanh %937 : vector<2x64xf32>
    %939 = arith.mulf %923, %938 : vector<2x64xf32>
    %c0_269 = arith.constant 0 : index
    %c0_270 = arith.constant 0 : index
    %940 = vector.load %arg55[%c0_269, %c0_270] : memref<8x64xbf16, #tpu.memory_space<vmem>>, vector<8x64xbf16>
    %941 = arith.truncf %49 : vector<1x8xf32> to vector<1x8xbf16>
    %cst_271 = arith.constant dense<0.000000e+00> : vector<1x64xf32>
    %942 = tpu.matmul %941, %940, %cst_271 {dimension_numbers = #tpu.dot_dimension_numbers<[1], [0], [0], [1], [0, 0, 1, 1], [], []>} : vector<1x8xbf16>, vector<8x64xbf16>, vector<1x64xf32> -> vector<1x64xf32>
    %943 = arith.addf %942, %892 : vector<1x64xf32>
    %944 = vector.broadcast %943 : vector<1x64xf32> to vector<2x64xf32>
    %945 = arith.addf %939, %944 : vector<2x64xf32>
    %c0_272 = arith.constant 0 : index
    %c0_273 = arith.constant 0 : index
    %946 = vector.load %arg54[%c0_272, %c0_273] : memref<320x64xbf16, #tpu.memory_space<vmem>>, vector<320x64xbf16>
    %cst_274 = arith.constant 0.000000e+00 : f32
    %947 = vector.broadcast %cst_274 : f32 to vector<2x64xf32>
    %948 = tpu.concatenate %947, %945, %947 in 0 : vector<2x64xf32>, vector<2x64xf32>, vector<2x64xf32> -> vector<6x64xf32>
    %949 = vector.extract_strided_slice %948 {offsets = [0, 0], sizes = [2, 64], strides = [1, 1]} : vector<6x64xf32> to vector<2x64xf32>
    %950 = vector.extract_strided_slice %948 {offsets = [1, 0], sizes = [2, 64], strides = [1, 1]} : vector<6x64xf32> to vector<2x64xf32>
    %951 = vector.extract_strided_slice %948 {offsets = [2, 0], sizes = [2, 64], strides = [1, 1]} : vector<6x64xf32> to vector<2x64xf32>
    %952 = vector.extract_strided_slice %948 {offsets = [3, 0], sizes = [2, 64], strides = [1, 1]} : vector<6x64xf32> to vector<2x64xf32>
    %953 = vector.extract_strided_slice %948 {offsets = [4, 0], sizes = [2, 64], strides = [1, 1]} : vector<6x64xf32> to vector<2x64xf32>
    %954 = tpu.concatenate %949, %950, %951, %952, %953 in 1 : vector<2x64xf32>, vector<2x64xf32>, vector<2x64xf32>, vector<2x64xf32>, vector<2x64xf32> -> vector<2x320xf32>
    %955 = arith.truncf %954 : vector<2x320xf32> to vector<2x320xbf16>
    %cst_275 = arith.constant dense<0.000000e+00> : vector<2x64xf32>
    %956 = tpu.matmul %955, %946, %cst_275 {dimension_numbers = #tpu.dot_dimension_numbers<[1], [0], [0], [1], [0, 0, 1, 1], [], []>} : vector<2x320xbf16>, vector<320x64xbf16>, vector<2x64xf32> -> vector<2x64xf32>
    %957 = vector.broadcast %889 : vector<1x64xf32> to vector<2x64xf32>
    %958 = arith.addf %956, %957 : vector<2x64xf32>
    %cst_276 = arith.constant dense<0.000000e+00> : vector<64xf32>
    %959 = vector.multi_reduction <add>, %958, %cst_276 [0] : vector<2x64xf32> to vector<64xf32>
    %960 = vector.shape_cast %959 : vector<64xf32> to vector<1x64xf32>
    %cst_277 = arith.constant dense<0.000000e+00> : vector<1x64xf32>
    %961 = tpu.matmul %960, %769, %cst_277 {dimension_numbers = #tpu.dot_dimension_numbers<[1], [0], [0], [1], [0, 0, 1, 1], [], []>} : vector<1x64xf32>, vector<64x64xf32>, vector<1x64xf32> -> vector<1x64xf32>
    %962 = vector.broadcast %961 : vector<1x64xf32> to vector<2x64xf32>
    %963 = arith.subf %958, %962 : vector<2x64xf32>
    %964 = arith.mulf %963, %963 : vector<2x64xf32>
    %cst_278 = arith.constant dense<0.000000e+00> : vector<64xf32>
    %965 = vector.multi_reduction <add>, %964, %cst_278 [0] : vector<2x64xf32> to vector<64xf32>
    %966 = vector.shape_cast %965 : vector<64xf32> to vector<1x64xf32>
    %cst_279 = arith.constant dense<0.000000e+00> : vector<1x64xf32>
    %967 = tpu.matmul %966, %769, %cst_279 {dimension_numbers = #tpu.dot_dimension_numbers<[1], [0], [0], [1], [0, 0, 1, 1], [], []>} : vector<1x64xf32>, vector<64x64xf32>, vector<1x64xf32> -> vector<1x64xf32>
    %cst_280 = arith.constant 9.99999974E-6 : f32
    %968 = vector.broadcast %cst_280 : f32 to vector<1x64xf32>
    %969 = arith.addf %967, %968 : vector<1x64xf32>
    %970 = math.rsqrt %969 : vector<1x64xf32>
    %971 = vector.broadcast %970 : vector<1x64xf32> to vector<2x64xf32>
    %972 = arith.mulf %963, %971 : vector<2x64xf32>
    %973 = vector.broadcast %890 : vector<1x64xf32> to vector<2x64xf32>
    %974 = arith.mulf %972, %973 : vector<2x64xf32>
    %975 = vector.broadcast %891 : vector<1x64xf32> to vector<2x64xf32>
    %976 = arith.addf %974, %975 : vector<2x64xf32>
    %cst_281 = arith.constant 0.000000e+00 : f32
    %977 = vector.broadcast %cst_281 : f32 to vector<2x64xf32>
    %978 = arith.maximumf %976, %977 : vector<2x64xf32>
    %979 = vector.broadcast %cst_281 : f32 to vector<2x64xf32>
    %980 = arith.subf %976, %979 : vector<2x64xf32>
    %981 = arith.cmpf one, %980, %980 : vector<2x64xf32>
    %982 = vector.broadcast %cst_281 : f32 to vector<2x64xf32>
    %983 = arith.addf %976, %982 : vector<2x64xf32>
    %984 = math.absf %980 : vector<2x64xf32>
    %cst_282 = arith.constant 0.000000e+00 : f32
    %985 = vector.broadcast %cst_282 : f32 to vector<2x64xf32>
    %986 = arith.subf %985, %984 : vector<2x64xf32>
    %987 = math.exp %986 : vector<2x64xf32>
    %988 = math.log1p %987 : vector<2x64xf32>
    %989 = arith.addf %978, %988 : vector<2x64xf32>
    %990 = arith.select %981, %983, %989 : vector<2x64xi1>, vector<2x64xf32>
    %991 = math.tanh %990 : vector<2x64xf32>
    %992 = arith.mulf %976, %991 : vector<2x64xf32>
    %993 = arith.addf %992, %884 : vector<2x64xf32>
    %c0_283 = arith.constant 0 : index
    %c0_284 = arith.constant 0 : index
    %994 = vector.load %arg57[%c0_283, %c0_284] : memref<192x64xbf16, #tpu.memory_space<vmem>>, vector<192x64xbf16>
    %c0_285 = arith.constant 0 : index
    %c0_286 = arith.constant 0 : index
    %995 = vector.load %arg58[%c0_285, %c0_286] : memref<1x64xf32, #tpu.memory_space<vmem>>, vector<1x64xf32>
    %c0_287 = arith.constant 0 : index
    %c0_288 = arith.constant 0 : index
    %996 = vector.load %arg59[%c0_287, %c0_288] : memref<1x2xf32, #tpu.memory_space<vmem>>, vector<1x2xf32>
    %cst_289 = arith.constant 0.000000e+00 : f32
    %997 = vector.broadcast %cst_289 : f32 to vector<1x64xf32>
    %998 = tpu.concatenate %997, %993, %997 in 0 : vector<1x64xf32>, vector<2x64xf32>, vector<1x64xf32> -> vector<4x64xf32>
    %999 = vector.extract_strided_slice %998 {offsets = [0, 0], sizes = [2, 64], strides = [1, 1]} : vector<4x64xf32> to vector<2x64xf32>
    %1000 = vector.extract_strided_slice %998 {offsets = [1, 0], sizes = [2, 64], strides = [1, 1]} : vector<4x64xf32> to vector<2x64xf32>
    %1001 = vector.extract_strided_slice %998 {offsets = [2, 0], sizes = [2, 64], strides = [1, 1]} : vector<4x64xf32> to vector<2x64xf32>
    %1002 = tpu.concatenate %999, %1000, %1001 in 1 : vector<2x64xf32>, vector<2x64xf32>, vector<2x64xf32> -> vector<2x192xf32>
    %1003 = arith.truncf %1002 : vector<2x192xf32> to vector<2x192xbf16>
    %cst_290 = arith.constant dense<0.000000e+00> : vector<2x64xf32>
    %1004 = tpu.matmul %1003, %994, %cst_290 {dimension_numbers = #tpu.dot_dimension_numbers<[1], [0], [0], [1], [0, 0, 1, 1], [], []>} : vector<2x192xbf16>, vector<192x64xbf16>, vector<2x64xf32> -> vector<2x64xf32>
    %1005 = vector.broadcast %995 : vector<1x64xf32> to vector<2x64xf32>
    %1006 = arith.addf %1004, %1005 : vector<2x64xf32>
    %cst_291 = arith.constant dense<0.000000e+00> : vector<1x64xf32>
    %1007 = tpu.matmul %996, %1006, %cst_291 {dimension_numbers = #tpu.dot_dimension_numbers<[1], [0], [0], [1], [0, 0, 1, 1], [], []>} : vector<1x2xf32>, vector<2x64xf32>, vector<1x64xf32> -> vector<1x64xf32>
    %1008 = tpu.concatenate %1007, %33 in 1 : vector<1x64xf32>, vector<1x8xf32> -> vector<1x72xf32>
    %c0_292 = arith.constant 0 : index
    %c0_293 = arith.constant 0 : index
    %1009 = vector.load %arg60[%c0_292, %c0_293] : memref<72x32xbf16, #tpu.memory_space<vmem>>, vector<72x32xbf16>
    %1010 = arith.truncf %1008 : vector<1x72xf32> to vector<1x72xbf16>
    %cst_294 = arith.constant dense<0.000000e+00> : vector<1x32xf32>
    %1011 = tpu.matmul %1010, %1009, %cst_294 {dimension_numbers = #tpu.dot_dimension_numbers<[1], [0], [0], [1], [0, 0, 1, 1], [], []>} : vector<1x72xbf16>, vector<72x32xbf16>, vector<1x32xf32> -> vector<1x32xf32>
    %c0_295 = arith.constant 0 : index
    %c0_296 = arith.constant 0 : index
    %1012 = vector.load %arg61[%c0_295, %c0_296] : memref<1x32xf32, #tpu.memory_space<vmem>>, vector<1x32xf32>
    %1013 = arith.addf %1011, %1012 : vector<1x32xf32>
    %cst_297 = arith.constant 0.000000e+00 : f32
    %1014 = vector.broadcast %cst_297 : f32 to vector<1x32xf32>
    %1015 = arith.maximumf %1013, %1014 : vector<1x32xf32>
    %1016 = vector.broadcast %cst_297 : f32 to vector<1x32xf32>
    %1017 = arith.subf %1013, %1016 : vector<1x32xf32>
    %1018 = arith.cmpf one, %1017, %1017 : vector<1x32xf32>
    %1019 = vector.broadcast %cst_297 : f32 to vector<1x32xf32>
    %1020 = arith.addf %1013, %1019 : vector<1x32xf32>
    %1021 = math.absf %1017 : vector<1x32xf32>
    %cst_298 = arith.constant 0.000000e+00 : f32
    %1022 = vector.broadcast %cst_298 : f32 to vector<1x32xf32>
    %1023 = arith.subf %1022, %1021 : vector<1x32xf32>
    %1024 = math.exp %1023 : vector<1x32xf32>
    %1025 = math.log1p %1024 : vector<1x32xf32>
    %1026 = arith.addf %1015, %1025 : vector<1x32xf32>
    %1027 = arith.select %1018, %1020, %1026 : vector<1x32xi1>, vector<1x32xf32>
    %1028 = math.tanh %1027 : vector<1x32xf32>
    %1029 = arith.mulf %1013, %1028 : vector<1x32xf32>
    %c0_299 = arith.constant 0 : index
    %c0_300 = arith.constant 0 : index
    %1030 = vector.load %arg62[%c0_299, %c0_300] : memref<32x1xbf16, #tpu.memory_space<vmem>>, vector<32x1xbf16>
    %1031 = arith.truncf %1029 : vector<1x32xf32> to vector<1x32xbf16>
    %cst_301 = arith.constant dense<0.000000e+00> : vector<1x1xf32>
    %1032 = tpu.matmul %1031, %1030, %cst_301 {dimension_numbers = #tpu.dot_dimension_numbers<[1], [0], [0], [1], [0, 0, 1, 1], [], []>} : vector<1x32xbf16>, vector<32x1xbf16>, vector<1x1xf32> -> vector<1x1xf32>
    %c0_302 = arith.constant 0 : index
    %c0_303 = arith.constant 0 : index
    %1033 = vector.load %arg63[%c0_302, %c0_303] : memref<1x1xf32, #tpu.memory_space<vmem>>, vector<1x1xf32>
    %1034 = arith.addf %1032, %1033 : vector<1x1xf32>
    %1035 = vector.shape_cast %1034 : vector<1x1xf32> to vector<1x1x1xf32>
    %c0_304 = arith.constant 0 : index
    %c0_305 = arith.constant 0 : index
    %c0_306 = arith.constant 0 : index
    %1036 = vector.load %arg64[%c0_304, %c0_305, %c0_306] : memref<1x1x1xf32, #tpu.memory_space<vmem>>, vector<1x1x1xf32>
    tpu.vector_store %arg64[%c0_304, %c0_305, %c0_306], %1035 {strides = array<i32>} : memref<1x1x1xf32, #tpu.memory_space<vmem>>, vector<1x1x1xf32>,
    return
  }
  func.func @transform_0(%arg0: i32) -> (i32, i32, i32) {
    %c0_i32 = arith.constant 0 : i32
    %c0_i32_0 = arith.constant 0 : i32
    %c0_i32_1 = arith.constant 0 : i32
    return %arg0, %c0_i32, %c0_i32_0 : i32, i32, i32
  }
  func.func @transform_1(%arg0: i32) -> (i32, i32) {
    %c0_i32 = arith.constant 0 : i32
    %c0_i32_0 = arith.constant 0 : i32
    %c0_i32_1 = arith.constant 0 : i32
    return %c0_i32, %c0_i32_0 : i32, i32
  }
  func.func @transform_2(%arg0: i32) -> (i32, i32, i32) {
    %c0_i32 = arith.constant 0 : i32
    %c0_i32_0 = arith.constant 0 : i32
    %c0_i32_1 = arith.constant 0 : i32
    return %arg0, %c0_i32, %c0_i32_0 : i32, i32, i32
  }
  func.func @transform_3(%arg0: i32) -> (i32, i32) {
    %c0_i32 = arith.constant 0 : i32
    %c0_i32_0 = arith.constant 0 : i32
    %c0_i32_1 = arith.constant 0 : i32
    return %c0_i32, %c0_i32_0 : i32, i32
  }
  func.func @transform_4(%arg0: i32) -> (i32, i32) {
    %c0_i32 = arith.constant 0 : i32
    %c0_i32_0 = arith.constant 0 : i32
    %c0_i32_1 = arith.constant 0 : i32
    return %c0_i32, %c0_i32_0 : i32, i32
  }
  func.func @transform_5(%arg0: i32) -> (i32, i32) {
    %c0_i32 = arith.constant 0 : i32
    %c0_i32_0 = arith.constant 0 : i32
    %c0_i32_1 = arith.constant 0 : i32
    return %c0_i32, %c0_i32_0 : i32, i32
  }
  func.func @transform_6(%arg0: i32) -> (i32, i32) {
    %c0_i32 = arith.constant 0 : i32
    %c0_i32_0 = arith.constant 0 : i32
    %c0_i32_1 = arith.constant 0 : i32
    return %c0_i32, %c0_i32_0 : i32, i32
  }
  func.func @transform_7(%arg0: i32) -> (i32, i32) {
    %c0_i32 = arith.constant 0 : i32
    %c0_i32_0 = arith.constant 0 : i32
    %c0_i32_1 = arith.constant 0 : i32
    return %c0_i32, %c0_i32_0 : i32, i32
  }
  func.func @transform_8(%arg0: i32) -> (i32, i32) {
    %c0_i32 = arith.constant 0 : i32
    %c0_i32_0 = arith.constant 0 : i32
    %c0_i32_1 = arith.constant 0 : i32
    return %c0_i32, %c0_i32_0 : i32, i32
  }
  func.func @transform_9(%arg0: i32) -> (i32, i32) {
    %c0_i32 = arith.constant 0 : i32
    %c0_i32_0 = arith.constant 0 : i32
    %c0_i32_1 = arith.constant 0 : i32
    return %c0_i32, %c0_i32_0 : i32, i32
  }
  func.func @transform_10(%arg0: i32) -> (i32, i32) {
    %c0_i32 = arith.constant 0 : i32
    %c0_i32_0 = arith.constant 0 : i32
    %c0_i32_1 = arith.constant 0 : i32
    return %c0_i32, %c0_i32_0 : i32, i32
  }
  func.func @transform_11(%arg0: i32) -> (i32, i32) {
    %c0_i32 = arith.constant 0 : i32
    %c0_i32_0 = arith.constant 0 : i32
    %c0_i32_1 = arith.constant 0 : i32
    return %c0_i32, %c0_i32_0 : i32, i32
  }
  func.func @transform_12(%arg0: i32) -> (i32, i32) {
    %c0_i32 = arith.constant 0 : i32
    %c0_i32_0 = arith.constant 0 : i32
    %c0_i32_1 = arith.constant 0 : i32
    return %c0_i32, %c0_i32_0 : i32, i32
  }
  func.func @transform_13(%arg0: i32) -> (i32, i32) {
    %c0_i32 = arith.constant 0 : i32
    %c0_i32_0 = arith.constant 0 : i32
    %c0_i32_1 = arith.constant 0 : i32
    return %c0_i32, %c0_i32_0 : i32, i32
  }
  func.func @transform_14(%arg0: i32) -> (i32, i32) {
    %c0_i32 = arith.constant 0 : i32
    %c0_i32_0 = arith.constant 0 : i32
    %c0_i32_1 = arith.constant 0 : i32
    return %c0_i32, %c0_i32_0 : i32, i32
  }
  func.func @transform_15(%arg0: i32) -> (i32, i32) {
    %c0_i32 = arith.constant 0 : i32
    %c0_i32_0 = arith.constant 0 : i32
    %c0_i32_1 = arith.constant 0 : i32
    return %c0_i32, %c0_i32_0 : i32, i32
  }
  func.func @transform_16(%arg0: i32) -> (i32, i32) {
    %c0_i32 = arith.constant 0 : i32
    %c0_i32_0 = arith.constant 0 : i32
    %c0_i32_1 = arith.constant 0 : i32
    return %c0_i32, %c0_i32_0 : i32, i32
  }
  func.func @transform_17(%arg0: i32) -> (i32, i32) {
    %c0_i32 = arith.constant 0 : i32
    %c0_i32_0 = arith.constant 0 : i32
    %c0_i32_1 = arith.constant 0 : i32
    return %c0_i32, %c0_i32_0 : i32, i32
  }
  func.func @transform_18(%arg0: i32) -> (i32, i32) {
    %c0_i32 = arith.constant 0 : i32
    %c0_i32_0 = arith.constant 0 : i32
    %c0_i32_1 = arith.constant 0 : i32
    return %c0_i32, %c0_i32_0 : i32, i32
  }
  func.func @transform_19(%arg0: i32) -> (i32, i32) {
    %c0_i32 = arith.constant 0 : i32
    %c0_i32_0 = arith.constant 0 : i32
    %c0_i32_1 = arith.constant 0 : i32
    return %c0_i32, %c0_i32_0 : i32, i32
  }
  func.func @transform_20(%arg0: i32) -> (i32, i32) {
    %c0_i32 = arith.constant 0 : i32
    %c0_i32_0 = arith.constant 0 : i32
    %c0_i32_1 = arith.constant 0 : i32
    return %c0_i32, %c0_i32_0 : i32, i32
  }
  func.func @transform_21(%arg0: i32) -> (i32, i32) {
    %c0_i32 = arith.constant 0 : i32
    %c0_i32_0 = arith.constant 0 : i32
    %c0_i32_1 = arith.constant 0 : i32
    return %c0_i32, %c0_i32_0 : i32, i32
  }
  func.func @transform_22(%arg0: i32) -> (i32, i32) {
    %c0_i32 = arith.constant 0 : i32
    %c0_i32_0 = arith.constant 0 : i32
    %c0_i32_1 = arith.constant 0 : i32
    return %c0_i32, %c0_i32_0 : i32, i32
  }
  func.func @transform_23(%arg0: i32) -> (i32, i32) {
    %c0_i32 = arith.constant 0 : i32
    %c0_i32_0 = arith.constant 0 : i32
    %c0_i32_1 = arith.constant 0 : i32
    return %c0_i32, %c0_i32_0 : i32, i32
  }
  func.func @transform_24(%arg0: i32) -> (i32, i32) {
    %c0_i32 = arith.constant 0 : i32
    %c0_i32_0 = arith.constant 0 : i32
    %c0_i32_1 = arith.constant 0 : i32
    return %c0_i32, %c0_i32_0 : i32, i32
  }
  func.func @transform_25(%arg0: i32) -> (i32, i32) {
    %c0_i32 = arith.constant 0 : i32
    %c0_i32_0 = arith.constant 0 : i32
    %c0_i32_1 = arith.constant 0 : i32
    return %c0_i32, %c0_i32_0 : i32, i32
  }
  func.func @transform_26(%arg0: i32) -> (i32, i32) {
    %c0_i32 = arith.constant 0 : i32
    %c0_i32_0 = arith.constant 0 : i32
    %c0_i32_1 = arith.constant 0 : i32
    return %c0_i32, %c0_i32_0 : i32, i32
  }
  func.func @transform_27(%arg0: i32) -> (i32, i32) {
    %c0_i32 = arith.constant 0 : i32
    %c0_i32_0 = arith.constant 0 : i32
    %c0_i32_1 = arith.constant 0 : i32
    return %c0_i32, %c0_i32_0 : i32, i32
  }
  func.func @transform_28(%arg0: i32) -> (i32, i32) {
    %c0_i32 = arith.constant 0 : i32
    %c0_i32_0 = arith.constant 0 : i32
    %c0_i32_1 = arith.constant 0 : i32
    return %c0_i32, %c0_i32_0 : i32, i32
  }
  func.func @transform_29(%arg0: i32) -> (i32, i32) {
    %c0_i32 = arith.constant 0 : i32
    %c0_i32_0 = arith.constant 0 : i32
    %c0_i32_1 = arith.constant 0 : i32
    return %c0_i32, %c0_i32_0 : i32, i32
  }
  func.func @transform_30(%arg0: i32) -> (i32, i32) {
    %c0_i32 = arith.constant 0 : i32
    %c0_i32_0 = arith.constant 0 : i32
    %c0_i32_1 = arith.constant 0 : i32
    return %c0_i32, %c0_i32_0 : i32, i32
  }
  func.func @transform_31(%arg0: i32) -> (i32, i32) {
    %c0_i32 = arith.constant 0 : i32
    %c0_i32_0 = arith.constant 0 : i32
    %c0_i32_1 = arith.constant 0 : i32
    return %c0_i32, %c0_i32_0 : i32, i32
  }
  func.func @transform_32(%arg0: i32) -> (i32, i32) {
    %c0_i32 = arith.constant 0 : i32
    %c0_i32_0 = arith.constant 0 : i32
    %c0_i32_1 = arith.constant 0 : i32
    return %c0_i32, %c0_i32_0 : i32, i32
  }
  func.func @transform_33(%arg0: i32) -> (i32, i32) {
    %c0_i32 = arith.constant 0 : i32
    %c0_i32_0 = arith.constant 0 : i32
    %c0_i32_1 = arith.constant 0 : i32
    return %c0_i32, %c0_i32_0 : i32, i32
  }
  func.func @transform_34(%arg0: i32) -> (i32, i32) {
    %c0_i32 = arith.constant 0 : i32
    %c0_i32_0 = arith.constant 0 : i32
    %c0_i32_1 = arith.constant 0 : i32
    return %c0_i32, %c0_i32_0 : i32, i32
  }
  func.func @transform_35(%arg0: i32) -> (i32, i32) {
    %c0_i32 = arith.constant 0 : i32
    %c0_i32_0 = arith.constant 0 : i32
    %c0_i32_1 = arith.constant 0 : i32
    return %c0_i32, %c0_i32_0 : i32, i32
  }
  func.func @transform_36(%arg0: i32) -> (i32, i32) {
    %c0_i32 = arith.constant 0 : i32
    %c0_i32_0 = arith.constant 0 : i32
    %c0_i32_1 = arith.constant 0 : i32
    return %c0_i32, %c0_i32_0 : i32, i32
  }
  func.func @transform_37(%arg0: i32) -> (i32, i32) {
    %c0_i32 = arith.constant 0 : i32
    %c0_i32_0 = arith.constant 0 : i32
    %c0_i32_1 = arith.constant 0 : i32
    return %c0_i32, %c0_i32_0 : i32, i32
  }
  func.func @transform_38(%arg0: i32) -> (i32, i32) {
    %c0_i32 = arith.constant 0 : i32
    %c0_i32_0 = arith.constant 0 : i32
    %c0_i32_1 = arith.constant 0 : i32
    return %c0_i32, %c0_i32_0 : i32, i32
  }
  func.func @transform_39(%arg0: i32) -> (i32, i32) {
    %c0_i32 = arith.constant 0 : i32
    %c0_i32_0 = arith.constant 0 : i32
    %c0_i32_1 = arith.constant 0 : i32
    return %c0_i32, %c0_i32_0 : i32, i32
  }
  func.func @transform_40(%arg0: i32) -> (i32, i32) {
    %c0_i32 = arith.constant 0 : i32
    %c0_i32_0 = arith.constant 0 : i32
    %c0_i32_1 = arith.constant 0 : i32
    return %c0_i32, %c0_i32_0 : i32, i32
  }
  func.func @transform_41(%arg0: i32) -> (i32, i32) {
    %c0_i32 = arith.constant 0 : i32
    %c0_i32_0 = arith.constant 0 : i32
    %c0_i32_1 = arith.constant 0 : i32
    return %c0_i32, %c0_i32_0 : i32, i32
  }
  func.func @transform_42(%arg0: i32) -> (i32, i32) {
    %c0_i32 = arith.constant 0 : i32
    %c0_i32_0 = arith.constant 0 : i32
    %c0_i32_1 = arith.constant 0 : i32
    return %c0_i32, %c0_i32_0 : i32, i32
  }
  func.func @transform_43(%arg0: i32) -> (i32, i32) {
    %c0_i32 = arith.constant 0 : i32
    %c0_i32_0 = arith.constant 0 : i32
    %c0_i32_1 = arith.constant 0 : i32
    return %c0_i32, %c0_i32_0 : i32, i32
  }
  func.func @transform_44(%arg0: i32) -> (i32, i32) {
    %c0_i32 = arith.constant 0 : i32
    %c0_i32_0 = arith.constant 0 : i32
    %c0_i32_1 = arith.constant 0 : i32
    return %c0_i32, %c0_i32_0 : i32, i32
  }
  func.func @transform_45(%arg0: i32) -> (i32, i32) {
    %c0_i32 = arith.constant 0 : i32
    %c0_i32_0 = arith.constant 0 : i32
    %c0_i32_1 = arith.constant 0 : i32
    return %c0_i32, %c0_i32_0 : i32, i32
  }
  func.func @transform_46(%arg0: i32) -> (i32, i32) {
    %c0_i32 = arith.constant 0 : i32
    %c0_i32_0 = arith.constant 0 : i32
    %c0_i32_1 = arith.constant 0 : i32
    return %c0_i32, %c0_i32_0 : i32, i32
  }
  func.func @transform_47(%arg0: i32) -> (i32, i32) {
    %c0_i32 = arith.constant 0 : i32
    %c0_i32_0 = arith.constant 0 : i32
    %c0_i32_1 = arith.constant 0 : i32
    return %c0_i32, %c0_i32_0 : i32, i32
  }
  func.func @transform_48(%arg0: i32) -> (i32, i32) {
    %c0_i32 = arith.constant 0 : i32
    %c0_i32_0 = arith.constant 0 : i32
    %c0_i32_1 = arith.constant 0 : i32
    return %c0_i32, %c0_i32_0 : i32, i32
  }
  func.func @transform_49(%arg0: i32) -> (i32, i32) {
    %c0_i32 = arith.constant 0 : i32
    %c0_i32_0 = arith.constant 0 : i32
    %c0_i32_1 = arith.constant 0 : i32
    return %c0_i32, %c0_i32_0 : i32, i32
  }
  func.func @transform_50(%arg0: i32) -> (i32, i32) {
    %c0_i32 = arith.constant 0 : i32
    %c0_i32_0 = arith.constant 0 : i32
    %c0_i32_1 = arith.constant 0 : i32
    return %c0_i32, %c0_i32_0 : i32, i32
  }
  func.func @transform_51(%arg0: i32) -> (i32, i32) {
    %c0_i32 = arith.constant 0 : i32
    %c0_i32_0 = arith.constant 0 : i32
    %c0_i32_1 = arith.constant 0 : i32
    return %c0_i32, %c0_i32_0 : i32, i32
  }
  func.func @transform_52(%arg0: i32) -> (i32, i32) {
    %c0_i32 = arith.constant 0 : i32
    %c0_i32_0 = arith.constant 0 : i32
    %c0_i32_1 = arith.constant 0 : i32
    return %c0_i32, %c0_i32_0 : i32, i32
  }
  func.func @transform_53(%arg0: i32) -> (i32, i32) {
    %c0_i32 = arith.constant 0 : i32
    %c0_i32_0 = arith.constant 0 : i32
    %c0_i32_1 = arith.constant 0 : i32
    return %c0_i32, %c0_i32_0 : i32, i32
  }
  func.func @transform_54(%arg0: i32) -> (i32, i32) {
    %c0_i32 = arith.constant 0 : i32
    %c0_i32_0 = arith.constant 0 : i32
    %c0_i32_1 = arith.constant 0 : i32
    return %c0_i32, %c0_i32_0 : i32, i32
  }
  func.func @transform_55(%arg0: i32) -> (i32, i32) {
    %c0_i32 = arith.constant 0 : i32
    %c0_i32_0 = arith.constant 0 : i32
    %c0_i32_1 = arith.constant 0 : i32
    return %c0_i32, %c0_i32_0 : i32, i32
  }
  func.func @transform_56(%arg0: i32) -> (i32, i32) {
    %c0_i32 = arith.constant 0 : i32
    %c0_i32_0 = arith.constant 0 : i32
    %c0_i32_1 = arith.constant 0 : i32
    return %c0_i32, %c0_i32_0 : i32, i32
  }
  func.func @transform_57(%arg0: i32) -> (i32, i32) {
    %c0_i32 = arith.constant 0 : i32
    %c0_i32_0 = arith.constant 0 : i32
    %c0_i32_1 = arith.constant 0 : i32
    return %c0_i32, %c0_i32_0 : i32, i32
  }
  func.func @transform_58(%arg0: i32) -> (i32, i32) {
    %c0_i32 = arith.constant 0 : i32
    %c0_i32_0 = arith.constant 0 : i32
    %c0_i32_1 = arith.constant 0 : i32
    return %c0_i32, %c0_i32_0 : i32, i32
  }
  func.func @transform_59(%arg0: i32) -> (i32, i32) {
    %c0_i32 = arith.constant 0 : i32
    %c0_i32_0 = arith.constant 0 : i32
    %c0_i32_1 = arith.constant 0 : i32
    return %c0_i32, %c0_i32_0 : i32, i32
  }
  func.func @transform_60(%arg0: i32) -> (i32, i32) {
    %c0_i32 = arith.constant 0 : i32
    %c0_i32_0 = arith.constant 0 : i32
    %c0_i32_1 = arith.constant 0 : i32
    return %c0_i32, %c0_i32_0 : i32, i32
  }
  func.func @transform_61(%arg0: i32) -> (i32, i32) {
    %c0_i32 = arith.constant 0 : i32
    %c0_i32_0 = arith.constant 0 : i32
    %c0_i32_1 = arith.constant 0 : i32
    return %c0_i32, %c0_i32_0 : i32, i32
  }
  func.func @transform_62(%arg0: i32) -> (i32, i32) {
    %c0_i32 = arith.constant 0 : i32
    %c0_i32_0 = arith.constant 0 : i32
    %c0_i32_1 = arith.constant 0 : i32
    return %c0_i32, %c0_i32_0 : i32, i32
  }
  func.func @transform_63(%arg0: i32) -> (i32, i32, i32) {
    %c0_i32 = arith.constant 0 : i32
    %c0_i32_0 = arith.constant 0 : i32
    %c0_i32_1 = arith.constant 0 : i32
    return %arg0, %c0_i32, %c0_i32_0 : i32, i32, i32
  }
}

</mosaic_0001>

<bundles_post_ra>
// kernel: tpu_custom_call.1
= control target key start
LH: loop header
LB: loop body
LE: loop exit
PB: predicated region body
PF: predicated region fallthrough
CT: control target
= control target key end

     0   :  { %s8382_s6 = smov 1   ;;  %s8383_s10 = smov 2   ;;  %s9797_s0 = inlined_call_operand.smem [shape: u32[64], index: -1, kind: input, shape index: {}] }
   0x1   :  { %s8469_s5 = sld [smem:[%s9797_s0]]   ;;  %s8384_s14 = smov 3  }
   0x2   :  { %s8474_s9 = sld [smem:[%s9797_s0 + %s8382_s6]]   ;;  %s8385_s18 = smov 4  }
   0x3   :  { %s8479_s13 = sld [smem:[%s9797_s0 + %s8383_s10]]   ;;  %s8386_s22 = smov 5  }
   0x4   :  { %s8484_s17 = sld [smem:[%s9797_s0 + %s8384_s14]]   ;;  %s8387_s26 = smov 6  }
   0x5   :  { %s8489_s21 = sld [smem:[%s9797_s0 + %s8385_s18]]   ;;  %s8388_s30 = smov 7  }
   0x6   :  { %s8494_s25 = sld [smem:[%s9797_s0 + %s8386_s22]]   ;;  %s8389_s4 = smov 8  }
   0x7   :  { %9838 = sst [smem:[#allocation3_spill]] %s8469_s5  ;;  %s8390_s10 = smov 9  }
   0x8   :  { %s8499_s29 = sld [smem:[%s9797_s0 + %s8387_s26]]   ;;  %s8391_s15 = smov 10  }
   0x9   :  { %s8504_s3 = sld [smem:[%s9797_s0 + %s8388_s30]]   ;;  %s8392_s20 = smov 11  }
   0xa   :  { %s8509_s8 = sld [smem:[%s9797_s0 + %s8389_s4]]   ;;  %s8393_s26 = smov 12  }
   0xb   :  { %s8514_s14 = sld [smem:[%s9797_s0 + %s8390_s10]]   ;;  %s8394_s1 = smov 13  }
   0xc   :  { %s8519_s19 = sld [smem:[%s9797_s0 + %s8391_s15]]   ;;  %s8395_s7 = smov 14  }
   0xd   :  { %s8524_s24 = sld [smem:[%s9797_s0 + %s8392_s20]]   ;;  %s8396_s15 = smov 15  }
   0xe   :  { %s8529_s30 = sld [smem:[%s9797_s0 + %s8393_s26]]   ;;  %s8397_s22 = smov 16  }
   0xf   :  { %9839 = sst [smem:[#allocation4_spill]] %s8504_s3  ;;  %s8398_s28 = smov 17  }
  0x10   :  { %s8534_s6 = sld [smem:[%s9797_s0 + %s8394_s1]]   ;;  %s8444_s16 = smov 63  }
  0x11   :  { %s8539_s12 = sld [smem:[%s9797_s0 + %s8395_s7]]   ;;  %s8399_s7 = smov 18  }
  0x12   :  { %s8544_s20 = sld [smem:[%s9797_s0 + %s8396_s15]]   ;;  %s8400_s15 = smov 19  }
  0x13   :  { %s8549_s27 = sld [smem:[%s9797_s0 + %s8397_s22]]   ;;  %s8401_s22 = smov 20  }
  0x14   :  { %s8554_s4 = sld [smem:[%s9797_s0 + %s8398_s28]]   ;;  %s8402_s28 = smov 21  }
  0x16   :  { %9840 = sst [smem:[#allocation5_spill]] %s8534_s6 }
  0x17   :  { %9841 = sst [smem:[#allocation6_spill]] %s8539_s12 }
  0x18   :  { %9842 = sst [smem:[#allocation7_spill]] %s8544_s20 }
  0x19   :  { %9843 = sst [smem:[#allocation8_spill]] %s8549_s27 }
  0x1a   :  { %9844 = sst [smem:[#allocation9_spill]] %s8554_s4 }
  0x1b   :  { %s8559_s12 = sld [smem:[%s9797_s0 + %s8399_s7]]   ;;  %s8403_s7 = smov 22  }
  0x1c   :  { %s8564_s20 = sld [smem:[%s9797_s0 + %s8400_s15]]   ;;  %s8404_s15 = smov 23  }
  0x1d   :  { %s8569_s27 = sld [smem:[%s9797_s0 + %s8401_s22]]   ;;  %s8405_s22 = smov 24  }
  0x1e   :  { %s8574_s4 = sld [smem:[%s9797_s0 + %s8402_s28]]   ;;  %s8406_s28 = smov 25  }
  0x21   :  { %9845 = sst [smem:[#allocation10_spill]] %s8559_s12 }
  0x22   :  { %9846 = sst [smem:[#allocation11_spill]] %s8564_s20 }
  0x23   :  { %9847 = sst [smem:[#allocation12_spill]] %s8569_s27 }
  0x24   :  { %9848 = sst [smem:[#allocation13_spill]] %s8574_s4 }
  0x25   :  { %s8579_s12 = sld [smem:[%s9797_s0 + %s8403_s7]]   ;;  %s8407_s7 = smov 26  }
  0x26   :  { %s8584_s20 = sld [smem:[%s9797_s0 + %s8404_s15]]   ;;  %s8408_s15 = smov 27  }
  0x27   :  { %s8589_s27 = sld [smem:[%s9797_s0 + %s8405_s22]]   ;;  %s8409_s22 = smov 28  }
  0x28   :  { %s8594_s4 = sld [smem:[%s9797_s0 + %s8406_s28]]   ;;  %s8410_s28 = smov 29  }
  0x2b   :  { %9849 = sst [smem:[#allocation14_spill]] %s8579_s12 }
  0x2c   :  { %9850 = sst [smem:[#allocation15_spill]] %s8584_s20 }
  0x2d   :  { %9851 = sst [smem:[#allocation16_spill]] %s8589_s27 }
  0x2e   :  { %9852 = sst [smem:[#allocation17_spill]] %s8594_s4 }
  0x2f   :  { %s8599_s12 = sld [smem:[%s9797_s0 + %s8407_s7]]   ;;  %s8411_s7 = smov 30  }
  0x30   :  { %s8604_s20 = sld [smem:[%s9797_s0 + %s8408_s15]]   ;;  %s8412_s15 = smov 31  }
  0x31   :  { %s8609_s27 = sld [smem:[%s9797_s0 + %s8409_s22]]   ;;  %s8413_s22 = smov 32  }
  0x32   :  { %s8614_s4 = sld [smem:[%s9797_s0 + %s8410_s28]]   ;;  %s8414_s28 = smov 33  }
  0x35   :  { %9853 = sst [smem:[#allocation18_spill]] %s8599_s12 }
  0x36   :  { %9854 = sst [smem:[#allocation19_spill]] %s8604_s20 }
  0x37   :  { %9855 = sst [smem:[#allocation20_spill]] %s8609_s27 }
  0x38   :  { %9856 = sst [smem:[#allocation21_spill]] %s8614_s4 }
  0x39   :  { %s8619_s12 = sld [smem:[%s9797_s0 + %s8411_s7]]   ;;  %s8415_s7 = smov 34  }
  0x3a   :  { %s8624_s20 = sld [smem:[%s9797_s0 + %s8412_s15]]   ;;  %s8416_s15 = smov 35  }
  0x3b   :  { %s8629_s27 = sld [smem:[%s9797_s0 + %s8413_s22]]   ;;  %s8417_s22 = smov 36  }
  0x3c   :  { %s8634_s4 = sld [smem:[%s9797_s0 + %s8414_s28]]   ;;  %s8418_s28 = smov 37  }
  0x3f   :  { %9857 = sst [smem:[#allocation22_spill]] %s8619_s12 }
  0x40   :  { %9858 = sst [smem:[#allocation23_spill]] %s8624_s20 }
  0x41   :  { %9859 = sst [smem:[#allocation24_spill]] %s8629_s27 }
  0x42   :  { %9860 = sst [smem:[#allocation25_spill]] %s8634_s4 }
  0x43   :  { %s8639_s12 = sld [smem:[%s9797_s0 + %s8415_s7]]   ;;  %s8419_s7 = smov 38  }
  0x44   :  { %s8644_s20 = sld [smem:[%s9797_s0 + %s8416_s15]]   ;;  %s8420_s15 = smov 39  }
  0x45   :  { %s8649_s27 = sld [smem:[%s9797_s0 + %s8417_s22]]   ;;  %s8421_s22 = smov 40  }
  0x46   :  { %s8654_s4 = sld [smem:[%s9797_s0 + %s8418_s28]]   ;;  %s8422_s28 = smov 41  }
  0x49   :  { %9861 = sst [smem:[#allocation26_spill]] %s8639_s12 }
  0x4a   :  { %9862 = sst [smem:[#allocation27_spill]] %s8644_s20 }
  0x4b   :  { %9863 = sst [smem:[#allocation28_spill]] %s8649_s27 }
  0x4c   :  { %9864 = sst [smem:[#allocation29_spill]] %s8654_s4 }
  0x4d   :  { %s8659_s12 = sld [smem:[%s9797_s0 + %s8419_s7]]   ;;  %s8423_s7 = smov 42  }
  0x4e   :  { %s8664_s20 = sld [smem:[%s9797_s0 + %s8420_s15]]   ;;  %s8424_s15 = smov 43  }
  0x4f   :  { %s8669_s27 = sld [smem:[%s9797_s0 + %s8421_s22]]   ;;  %s8425_s22 = smov 44  }
  0x50   :  { %s8674_s4 = sld [smem:[%s9797_s0 + %s8422_s28]]   ;;  %s8426_s28 = smov 45  }
  0x53   :  { %9865 = sst [smem:[#allocation30_spill]] %s8659_s12 }
  0x54   :  { %9866 = sst [smem:[#allocation31_spill]] %s8664_s20 }
  0x55   :  { %9867 = sst [smem:[#allocation32_spill]] %s8669_s27 }
  0x56   :  { %9868 = sst [smem:[#allocation33_spill]] %s8674_s4 }
  0x57   :  { %s8679_s12 = sld [smem:[%s9797_s0 + %s8423_s7]]   ;;  %s8427_s7 = smov 46  }
  0x58   :  { %s8684_s20 = sld [smem:[%s9797_s0 + %s8424_s15]]   ;;  %s8428_s15 = smov 47  }
  0x59   :  { %s8689_s27 = sld [smem:[%s9797_s0 + %s8425_s22]]   ;;  %s8429_s22 = smov 48  }
  0x5a   :  { %s8694_s4 = sld [smem:[%s9797_s0 + %s8426_s28]]   ;;  %s8430_s28 = smov 49  }
  0x5d   :  { %9869 = sst [smem:[#allocation34_spill]] %s8679_s12 }
  0x5e   :  { %9870 = sst [smem:[#allocation35_spill]] %s8684_s20 }
  0x5f   :  { %9871 = sst [smem:[#allocation36_spill]] %s8689_s27 }
  0x60   :  { %9872 = sst [smem:[#allocation37_spill]] %s8694_s4 }
  0x61   :  { %s8699_s12 = sld [smem:[%s9797_s0 + %s8427_s7]]   ;;  %s8431_s7 = smov 50  }
  0x62   :  { %s8704_s20 = sld [smem:[%s9797_s0 + %s8428_s15]]   ;;  %s8432_s15 = smov 51  }
  0x63   :  { %s8709_s27 = sld [smem:[%s9797_s0 + %s8429_s22]]   ;;  %s8433_s22 = smov 52  }
  0x64   :  { %s8714_s4 = sld [smem:[%s9797_s0 + %s8430_s28]]   ;;  %s8434_s28 = smov 53  }
  0x67   :  { %9873 = sst [smem:[#allocation38_spill]] %s8699_s12 }
  0x68   :  { %9874 = sst [smem:[#allocation39_spill]] %s8704_s20 }
  0x69   :  { %9875 = sst [smem:[#allocation40_spill]] %s8709_s27 }
  0x6a   :  { %9876 = sst [smem:[#allocation41_spill]] %s8714_s4 }
  0x6b   :  { %s8719_s12 = sld [smem:[%s9797_s0 + %s8431_s7]]   ;;  %s8435_s7 = smov 54  }
  0x6c   :  { %s8724_s20 = sld [smem:[%s9797_s0 + %s8432_s15]]   ;;  %s8436_s15 = smov 55  }
  0x6d   :  { %s8729_s27 = sld [smem:[%s9797_s0 + %s8433_s22]]   ;;  %s8437_s22 = smov 56  }
  0x6e   :  { %s8734_s4 = sld [smem:[%s9797_s0 + %s8434_s28]]   ;;  %s8438_s28 = smov 57  }
  0x71   :  { %9877 = sst [smem:[#allocation42_spill]] %s8719_s12 }
  0x72   :  { %9878 = sst [smem:[#allocation43_spill]] %s8724_s20 }
  0x73   :  { %9879 = sst [smem:[#allocation44_spill]] %s8729_s27 }
  0x74   :  { %9880 = sst [smem:[#allocation45_spill]] %s8734_s4 }
  0x75   :  { %s8739_s12 = sld [smem:[%s9797_s0 + %s8435_s7]]   ;;  %s8439_s7 = smov 58  }
  0x76   :  { %s8744_s20 = sld [smem:[%s9797_s0 + %s8436_s15]]   ;;  %s8440_s15 = smov 59  }
  0x77   :  { %s8749_s27 = sld [smem:[%s9797_s0 + %s8437_s22]]   ;;  %s8441_s22 = smov 60  }
  0x78   :  { %s8754_s4 = sld [smem:[%s9797_s0 + %s8438_s28]]   ;;  %s8442_s28 = smov 61  }
  0x7b   :  { %9881 = sst [smem:[#allocation46_spill]] %s8739_s12 }
  0x7c   :  { %9882 = sst [smem:[#allocation47_spill]] %s8744_s20 }
  0x7d   :  { %9883 = sst [smem:[#allocation48_spill]] %s8749_s27 }
  0x7e   :  { %9884 = sst [smem:[#allocation49_spill]] %s8754_s4 }
  0x7f   :  { %s8759_s12 = sld [smem:[%s9797_s0 + %s8439_s7]]   ;;  %s8443_s7 = smov 62  }
  0x80   :  { %s8764_s20 = sld [smem:[%s9797_s0 + %s8440_s15]]  }
  0x81   :  { %s8769_s27 = sld [smem:[%s9797_s0 + %s8441_s22]]   ;;  %s8784_s22 = smov 0  }
  0x82   :  { %s8774_s4 = sld [smem:[%s9797_s0 + %s8442_s28]]  }
  0x85   :  { %9885 = sst [smem:[#allocation50_spill]] %s8759_s12 }
  0x86   :  { %9886 = sst [smem:[#allocation51_spill]] %s8764_s20 }
  0x87   :  { %s7113_s12 = sld [smem:[%s9797_s0 + %s8443_s7]]  }
  0x88   :  { %s8782_s20 = sld [smem:[%s9797_s0 + %s8444_s16]]  }
  0x8d   :  { %v132_v0 = vstv %s7113_s12 }
  0x8e   :  { %133 = vst [vmem:[#allocation2] sm:$0x1] %v132_v0 }
  0x8f LB: > { %s9887_s6 = sld [smem:[#allocation5_spill]]  ;;  %s7115_s23 = sadd.s32 4294967295, %s8380_s22   ;;  %s8380_s22 = sphi %s8784_s22, %s139_s22  }
  0x90   : > { %p7119_p0 = scmp.ge.s32.totalorder %s8380_s22, 1  ;;  %p1711_p1 = scmp.lt.s32.totalorder %s8380_s22, 3 }
  0x92   : > { %p1712_p2 = pnand %p7119_p0, %p1711_p1 }
  0x93   : > { %p1856_p3 = scmp.lt.s32.totalorder (!%p1712_p2), %s7115_s23, 1  ;;  %s9888_s5 = sld [smem:[#allocation3_spill]] (!%p1712_p2) }
  0x94   : > { %1715 = sbr.rel (%p1712_p2) target bundleno = 12125 (0x2f5d), region = 272  ;;  %s8446_s28 = smov (!%p1712_p2), 8  }
  0x95   : > { %s8447_s1 = smov (!%p1712_p2), 4   ;;  %s8448_s2 = smov (!%p1712_p2), 16  }
  0x96   : > { %s8449_s7 = smov (!%p1712_p2), 12   ;;  %s9889_s3 = sld [smem:[#allocation4_spill]] (!%p1712_p2) }
  0x97   : > { %s8456_s10 = smov (!%p1712_p2), 24   ;;  %s9825_s11 = smov (!%p1712_p2), 32  }
  0x98   : > { %s9890_s16 = sld [smem:[#allocation7_spill]] (!%p1712_p2) }
  0x99   : > { %v8445_v1 = vmov 0   ;;  %s9941_s23 = smov (!%p1856_p3, %s7115_s23), 1  ;;  %vm2301_vm0 = vcmask 1041408   ;;  %vm2324_vm1 = vcmask 1045504   ;;  %vm2312_vm2 = vcmask 1046528   ;;  %v7855_v38 = vld [vmem:[%s8509_s8] sm:$0xff] }
  0x9a   : > { %8102 = vset.pattern.permute.xlu0 %v8445_v1  ;;  %s1858_s0 = scalar_lea.vmem %s9888_s5, %s9941_s23  ;;  %s7852_s12 = sshll.u32 %s9941_s23, 4  ;;  %vm2336_vm3 = vcmask 1044480   ;;  %vm2200_vm4 = vcmask 1043456   ;;  %v2298_v34 = vld [vmem:[%s8509_s8 + $0x8] sm:$0x3]  ;;  %vm2191_vm5 = vcmask 31744  }
  0x9b   : > { %s8799_s26 = scalar_lea.vmem %s8479_s13, %s7852_s12  ;;  %v1868_v2 = vld [vmem:[%s1858_s0] sm:$0x1]  ;;  %v2376_v35 = vunpack.c.l.b16 %v2298_v34  ;;  %vm2196_vm7 = vcmask 64512   ;;  %vm2363_vm8 = vcmask 97280   ;;  %vm2366_vm11 = vcmask 130048   ;;  %s9891_s15 = sld [smem:[#allocation8_spill]] }
  0x9c   : > { %v2292_v3 = vld [vmem:[%s8799_s26] sm:$0xff]  ;;  %v2293_v4 = vld [vmem:[%s8799_s26 + $0x8] sm:$0xff]  ;;  %1872 = vperm.xlu0 %8102, %v1868_v2   ;;  %vm2380_vm14 = vcmask 162816   ;;  %s9892_s18 = sld [smem:[#allocation6_spill]] }
  0x9d   : > { %v2302_v5 = vrot.slane %v2292_v3, 6  ;;  %v2303_v6 = vrot.slane %v2293_v4, 6  ;;  %v2378_v36 = vpack.c.b16 %v2376_v35, %v2376_v35  ;;  %v1869_v39 = vld [vmem:[%s8474_s9] sm:$0x1]  ;;  %v8450_v4 = vmov 683565275  }
  0x9e   : > { %s9893_s0 = sld [smem:[#allocation9_spill]] }
  0x9f   : > { %v8804_v7 = vsel %vm2301_vm0, %v2302_v5, %v2303_v6  ;;  %v8807_v8 = vsel %vm2301_vm0, 0.0, %v2302_v5  ;;  %v2309_v9 = vsel %vm2301_vm0, %v2303_v6, 0.0  ;;  %v2385_v37 = vsel %vm2301_vm0, %v2378_v36, 0  ;;  %s9894_s12 = sld [smem:[#allocation10_spill]] }
  0xa0   : > { %v2325_v10 = vrot.slane %v8807_v8, 2  ;;  %v2326_v11 = vrot.slane %v8804_v7, 2  ;;  %v2328_v12 = vrot.slane %v2309_v9, 2  ;;  %v2313_v13 = vrot.slane %v8807_v8, 1  ;;  %2393 = vmatpush.bf16.msra.mxu2 %v2385_v37  ;;  %s9926_s5 = sld [smem:[#allocation39_spill]] }
  0xa1   : > { %v2314_v14 = vrot.slane %v8804_v7, 1  ;;  %v2316_v15 = vrot.slane %v2309_v9, 1  ;;  %v2337_v16 = vrot.slane %v8807_v8, 3  ;;  %v2338_v17 = vrot.slane %v8804_v7, 3 }
  0xa2   : > { %v2327_v18 = vsel %vm2324_vm1, %v2325_v10, %v2326_v11  ;;  %v2329_v19 = vsel %vm2324_vm1, %v2326_v11, %v2328_v12  ;;  %v2340_v20 = vrot.slane %v2309_v9, 3  ;;  %v2348_v21 = vrot.slane %v8807_v8, 4 }
  0xa3   : > { %v8108_v22 = vpack.i.bf16 %v2329_v19, %v2327_v18  ;;  %v2315_v23 = vsel %vm2312_vm2, %v2313_v13, %v2314_v14  ;;  %v2317_v24 = vsel %vm2312_vm2, %v2314_v14, %v2316_v15  ;;  %v2349_v26 = vrot.slane %v8804_v7, 4 }
  0xa4   : > { %v8103_v25 = vpack.i.bf16 %v2317_v24, %v2315_v23  ;;  %v2351_v27 = vrot.slane %v2309_v9, 4  ;;  %v2339_v28 = vsel %vm2336_vm3, %v2337_v16, %v2338_v17  ;;  %v2341_v29 = vsel %vm2336_vm3, %v2338_v17, %v2340_v20  ;;  %2394 = vmatpush.bf16.msra.mxu2 %v7855_v38 }
  0xa5   : > { %8109 = vrot.lane.b32.xlu1 %v8108_v22, %s8446_s28  ;;  %v2350_v30 = vsel %vm2200_vm4, %v2348_v21, %v2349_v26  ;;  %v8113_v33 = vpack.i.bf16 %v2341_v29, %v2339_v28  ;;  %v8451_v6 = vmov 2475754826   ;;  %v8452_v11 = vmov 2131351028  }
  0xa6   : > { %8104 = vrot.lane.b32.xlu0 %v8103_v25, %s8447_s1  ;;  %v2352_v31 = vsel %vm2200_vm4, %v2349_v26, %v2351_v27  ;;  %v8453_v14 = vmov 2102212464   ;;  %v8454_v17 = vmov 920167782   ;;  %v8455_v20 = vmov 1326507024  }
  0xa7   : > { %v8118_v32 = vpack.i.bf16 %v2352_v31, %v2350_v30 }
  0xa9   : > { %8119 = vrot.lane.b32.xlu2 %v8118_v32, %s8448_s2 }
  0xad   : > { %8114 = vrot.lane.b32.xlu1 %v8113_v33, %s8449_s7  ;;  %s9897_s7 = sld [smem:[#allocation12_spill]] }
 0x103   : > { %v8839_v55 = vpop.permute.xlu2 %8119 }
 0x104   : > { %v8122_v61 = vunpack.i.h.bf16 %v8839_v55  ;;  %v8121_v2 = vunpack.i.l.bf16 %v8839_v55 }
 0x10e   : > { %v1873_v40 = vpop.permute.xlu0 %1872 }
 0x10f   : > { %v1875_v41 = vperm.slane %v1873_v40, 0 }
 0x111   : > { %v8833_v42 = vmul.f32 %v1875_v41, %v1869_v39 }
 0x113   : > { %v1877_v43 = vand.u32 2147483647, %v8833_v42  ;;  %v1880_v44 = vand.u32 2139095040, %v8833_v42 }
 0x115   : > { %v1881_v45 = vshrl.u32 %v1880_v44, 23  ;;  %v1884_v47 = vand.u32 8388607, %v1877_v43 }
 0x117   : > { %v7122_v46 = vadd.s32 4294967169, %v1881_v45  ;;  %v8110_v48 = vpop.permute.xlu1 %8109  ;;  %v1885_v53 = vor.u32 8388608, %v1884_v47 }
 0x118   : > { %v8105_v49 = vpop.permute.xlu0 %8104  ;;  %v8112_v54 = vunpack.i.h.bf16 %v8110_v48  ;;  %v8111_v57 = vunpack.i.l.bf16 %v8110_v48 }
 0x119   : > { %v1887_v50 = vadd.s32 1, %v7122_v46  ;;  %v8107_v51 = vunpack.i.h.bf16 %v8105_v49  ;;  %v8106_v52 = vunpack.i.l.bf16 %v8105_v49  ;;  %v8848_v63 = vshll.u32 %v1885_v53, 8 }
 0x11b   : > { %vm1888_vm6 = vcmp.gt.s32.totalorder %v1887_v50, 0  ;;  %v2360_v58 = vsel %vm2191_vm5, %v8804_v7, %v8107_v51  ;;  %v2359_v60 = vsel %vm2191_vm5, %v8807_v8, %v8106_v52  ;;  %v1926_v39 = vand.u32 65535, %v8848_v63 }
 0x11c   : > { %v1889_v56 = vsel %vm1888_vm6, %v1887_v50, 0  ;;  %v2362_v0 = vsel %vm2196_vm7, %v2360_v58, %v8112_v54  ;;  %v2361_v8 = vsel %vm2196_vm7, %v2359_v60, %v8111_v57  ;;  %v1927_v47 = vshrl.u32 %v8848_v63, 16 }
 0x11d   : > { %v1891_v59 = vand.u32 31, %v1889_v56  ;;  %v8852_v3 = vshrl.u32 %v1889_v56, 5 }
 0x11f   : > { %v8846_v62 = vsub.s32 32, %v1891_v59  ;;  %v1894_v5 = vshll.u32 %v8450_v4, %v1891_v59  ;;  %v1897_v7 = vshll.u32 %v8451_v6, %v1891_v59  ;;  %v8115_v9 = vpop.permute.xlu1 %8114  ;;  %v1900_v13 = vshll.u32 %v8452_v11, %v1891_v59 }
 0x120   : > { %v1903_v16 = vshll.u32 %v8453_v14, %v1891_v59  ;;  %v1906_v19 = vshll.u32 %v8454_v17, %v1891_v59  ;;  %v8117_v25 = vunpack.i.h.bf16 %v8115_v9  ;;  %vm1909_vm9 = vcmp.lt.s32.totalorder %v8852_v3, 1 }
 0x121   : > { %v1895_v10 = vshrl.u32 %v8451_v6, %v8846_v62  ;;  %v1898_v12 = vshrl.u32 %v8452_v11, %v8846_v62  ;;  %v1901_v15 = vshrl.u32 %v8453_v14, %v8846_v62  ;;  %v1904_v18 = vshrl.u32 %v8454_v17, %v8846_v62 }
 0x122   : > { %v1907_v21 = vshrl.u32 %v8455_v20, %v8846_v62  ;;  %v8116_v28 = vunpack.i.l.bf16 %v8115_v9  ;;  %vm1912_vm10 = vcmp.lt.s32.totalorder %v8852_v3, 4  ;;  %vm1911_vm12 = vcmp.lt.s32.totalorder %v8852_v3, 3 }
 0x123   : > { %v8861_v22 = vor.u32 %v1895_v10, %v1894_v5  ;;  %v8863_v23 = vor.u32 %v1898_v12, %v1897_v7  ;;  %v1902_v24 = vor.u32 %v1901_v15, %v1900_v13  ;;  %v1905_v26 = vor.u32 %v1904_v18, %v1903_v16 }
 0x124   : > { %v1908_v27 = vor.u32 %v1907_v21, %v1906_v19  ;;  %v2364_v33 = vsel %vm2363_vm8, %v2361_v8, %v8116_v28  ;;  %vm1910_vm13 = vcmp.lt.s32.totalorder %v8852_v3, 2  ;;  %v2365_v36 = vsel %vm2363_vm8, %v2362_v0, %v8117_v25 }
 0x125   : > { %v1917_v29 = vsel %vm1909_vm9, %v8861_v22, %v8863_v23  ;;  %v1921_v30 = vsel %vm1909_vm9, %v8863_v23, %v1902_v24  ;;  %v1918_v31 = vsel %vm1912_vm10, %v1905_v26, 920167782  ;;  %v2367_v40 = vsel %vm2366_vm11, %v2364_v33, %v8121_v2 }
 0x126   : > { %v1922_v32 = vsel %vm1912_vm10, %v1908_v27, 1326507024  ;;  %v1919_v34 = vsel %vm1911_vm12, %v1902_v24, %v1918_v31  ;;  %v2368_v48 = vsel %vm2366_vm11, %v2365_v36, %v8122_v61  ;;  %v1914_v9 = vsel %vm1912_vm10, %v1902_v24, 2102212464 }
 0x127   : > { %v1923_v35 = vsel %vm1911_vm12, %v1905_v26, %v1922_v32  ;;  %v1920_v37 = vsel %vm1910_vm13, %v1917_v29, %v1919_v34  ;;  %v2369_v51 = vpack.c.bf16 %v2368_v48, %v2367_v40  ;;  %v1893_v11 = vshrl.u32 %v8450_v4, %v8846_v62 }
 0x128   : > { %v1924_v38 = vsel %vm1910_vm13, %v1921_v30, %v1923_v35  ;;  %v1950_v45 = vand.u32 65535, %v1920_v37  ;;  %v1951_v46 = vshrl.u32 %v1920_v37, 16  ;;  %v1915_v18 = vsel %vm1911_vm12, %v8863_v23, %v1914_v9 }
 0x129   : > { %v1928_v41 = vand.u32 65535, %v1924_v38  ;;  %v1929_v44 = vshrl.u32 %v1924_v38, 16  ;;  %7142 = vmatmul.msk.bf16.vlgmr.msra.gmra.mxu2 %vm2380_vm14, %v2369_v51  ;;  %v1913_v17 = vsel %vm1909_vm9, %v1893_v11, %v8861_v22 }
 0x12a   : > { %v1953_v50 = vmul.u32 %v1951_v46, %v1926_v39  ;;  %v1954_v55 = vmul.u32 %v1950_v45, %v1927_v47  ;;  %v1952_v58 = vmul.u32 %v1950_v45, %v1926_v39  ;;  %v1955_v60 = vmul.u32 %v1951_v46, %v1927_v47 }
 0x12b   : > { %v1931_v49 = vmul.u32 %v1929_v44, %v1926_v39  ;;  %v1932_v52 = vmul.u32 %v1928_v41, %v1927_v47  ;;  %v1930_v53 = vmul.u32 %v1928_v41, %v1926_v39  ;;  %v1933_v57 = vmul.u32 %v1929_v44, %v1927_v47 }
 0x12c   : > { %v1956_v56 = vshll.u32 %v1953_v50, 16  ;;  %v1958_v5 = vshll.u32 %v1954_v55, 16  ;;  %v1957_v15 = vshrl.u32 %v1953_v50, 16  ;;  %v1959_v21 = vshrl.u32 %v1954_v55, 16 }
 0x12d   : > { %v1934_v54 = vshll.u32 %v1931_v49, 16  ;;  %v1936_v0 = vshll.u32 %v1932_v52, 16  ;;  %v1935_v12 = vshrl.u32 %v1931_v49, 16  ;;  %v1937_v19 = vshrl.u32 %v1932_v52, 16 }
 0x12e   : > { %vm1960_vm6 = vc.u32 %v1952_v58, %v1956_v56  ;;  %v1962_v61 = vadd.s32 %v1956_v56, %v1952_v58  ;;  %v1916_v4 = vsel %vm1910_vm13, %v1913_v17, %v1915_v18  ;;  %vm1879_vm13 = vcmp.lt.s32.totalorder %v8833_v42, 0 }
 0x12f   : > { %vm1938_vm15 = vc.u32 %v1930_v53, %v1934_v54  ;;  %v1940_v59 = vadd.s32 %v1934_v54, %v1930_v53  ;;  %v1961_v7 = vsel %vm1960_vm6, 1, %v8445_v1  ;;  %v1970_v27 = vmul.u32 %v8848_v63, %v1916_v4 }
 0x130   : > { %v1939_v2 = vsel %vm1938_vm15, 1, %v8445_v1  ;;  %v1963_v10 = vadd.s32 %v1961_v7, %v1955_v60  ;;  %vm1964_vm14 = vc.u32 %v1962_v61, %v1958_v5  ;;  %v1966_v62 = vadd.s32 %v1962_v61, %v1958_v5 }
 0x131   : > { %v1941_v6 = vadd.s32 %v1939_v2, %v1933_v57  ;;  %vm1942_vm8 = vc.u32 %v1940_v59, %v1936_v0  ;;  %v1965_v14 = vsel %vm1964_vm14, 1, %v8445_v1  ;;  %vm1878_vm15 = vcmp.le.f32.partialorder %v1877_v43, 0.7853982 }
 0x132   : > { %v1943_v8 = vsel %vm1942_vm8, 1, %v8445_v1  ;;  %v1967_v16 = vadd.s32 %v1965_v14, %v1963_v10 }
 0x133   : > { %v1945_v13 = vadd.s32 %v1943_v8, %v1941_v6 }
 0x134   : > { %v1968_v24 = vadd.s32 %v1967_v16, %v1957_v15 }
 0x135   : > { %v1946_v20 = vadd.s32 %v1945_v13, %v1935_v12 }
 0x136   : > { %v1969_v1 = vadd.s32 %v1968_v24, %v1959_v21 }
 0x137   : > { %v1947_v25 = vadd.s32 %v1946_v20, %v1937_v19 }
 0x138   : > { %v1973_v26 = vadd.s32 1, %v1969_v1 }
 0x139   : > { %vm1972_vm10 = vc.u32 %v1947_v25, %v1966_v62  ;;  %v1971_v3 = vadd.s32 %v1966_v62, %v1947_v25  ;;  %v8918_v25 = vld [vmem:[%s9889_s3] sm:$0xff]  ;;  %s9925_s3 = sld [smem:[#allocation37_spill]] }
 0x13a   : > { %v1974_v28 = vsel %vm1972_vm10, %v1973_v26, %v1969_v1  ;;  %2428 = vmatpush.msra.mxu3 %v8918_v25  ;;  %2728 = vmatpush.msrb.mxu2 %v8918_v25  ;;  %v8925_v62 = vld [vmem:[%s8529_s30] sm:$0xff] }
 0x13b   : > { %v1975_v22 = vadd.s32 %v1974_v28, %v1970_v27  ;;  %v2370_v4 = vperm.slane %v8925_v62, 0  ;;  %v2193_v1 = vld [vmem:[%s8484_s17] sm:$0xf] }
 0x13c   : > { %2465 = vmatpush.msrb.mxu3 %v8918_v25  ;;  %2951 = vmatpush.msra.mxu2 %v8918_v25  ;;  %v2202_v26 = vsel %vm2200_vm4, %v2193_v1, 0 }
 0x13d   : > { %v1976_v29 = vadd.s32 536870912, %v1975_v22  ;;  %2211 = vmatpush.bf16.msra.mxu0 %v2202_v26  ;;  %v2529_v26 = vld [vmem:[%s8519_s19] sm:$0xf] }
 0x13f   : > { %v1977_v30 = vshrl.u32 %v1976_v29, 30 }
 0x141   : > { %v1978_v31 = vshll.u32 %v1977_v30, 30  ;;  %v2001_v50 = vsub.s32 4, %v1977_v30 }
 0x143   : > { %v1979_v23 = vsub.s32 %v1975_v22, %v1978_v31  ;;  %v2002_v54 = vsel %vm1879_vm13, %v2001_v50, %v1977_v30 }
 0x144   : > { %v2004_v57 = vsel %vm1878_vm15, 0, %v2002_v54 }
 0x145   : > { %vm1980_vm9 = vcmp.lt.s32.totalorder %v1979_v23, 0  ;;  %v1981_v32 = vsub.s32 0, %v1979_v23  ;;  %v2021_v2 = vadd.s32 3, %v2004_v57  ;;  %v2176_v10 = vand.u32 3, %v2004_v57 }
 0x147   : > { %v1982_v33 = vsel %vm1980_vm9, %v1981_v32, %v1979_v23  ;;  %v2022_v9 = vand.u32 3, %v2021_v2  ;;  %vm2177_vm8 = vcmp.lt.s32.totalorder %v2176_v10, 2  ;;  %vm2178_vm14 = vcmp.eq.s32.totalorder %v2176_v10, 0 }
 0x148   : > { %v1983_v34 = vclz %v1982_v33  ;;  %vm2181_vm10 = vcmp.eq.s32.totalorder %v2176_v10, 2 }
 0x149   : > { %vm2027_vm6 = vcmp.eq.s32.totalorder %v2022_v9, 2  ;;  %vm2024_vm9 = vcmp.eq.s32.totalorder %v2022_v9, 0 }
 0x14a   : > { %v7123_v35 = vadd.s32 4294967294, %v1983_v34 }
 0x14c   : > { %vm7124_vm12 = vcmp.lt.s32.totalorder %v7123_v35, 0 }
 0x14d   : > { %v1986_v36 = vsel %vm7124_vm12, 0, %v7123_v35  ;;  %vm2023_vm12 = vcmp.lt.s32.totalorder %v2022_v9, 2 }
 0x14e   : > { %v1987_v37 = vsub.s32 32, %v1986_v36  ;;  %v1991_v38 = vsub.s32 4294967266, %v1986_v36  ;;  %v1988_v39 = vshll.u32 %v1979_v23, %v1986_v36 }
 0x150   : > { %v1989_v40 = vshrl.u32 %v1971_v3, %v1987_v37  ;;  %v1992_v41 = vadd.s32 127, %v1991_v38 }
 0x152   : > { %v1990_v63 = vor.u32 %v1989_v40, %v1988_v39  ;;  %v1993_v44 = vshll.u32 %v1992_v41, 23  ;;  %v7854_v39 = vld [vmem:[%s8494_s25 + $0x8] sm:$0xff]  ;;  %v7853_v40 = vld [vmem:[%s8494_s25] sm:$0xff] }
 0x153   : > { %2265 = vmatpush.bf16.msra.mxu1 %v7854_v39 }
 0x154   : > { %v1994_v45 = vor.u32 4788187, %v1993_v44  ;;  %v1997_v47 = vcvt.s32.f32 %v1990_v63  ;;  %v2195_v44 = vld [vmem:[%s8489_s21] sm:$0x1] }
 0x156   : > { %v1995_v46 = vand.u32 2147483647, %v1994_v45 }
 0x157   : > { %2266 = vmatpush.bf16.msra.mxu1 %v7853_v40 }
 0x158   : > { %v1998_v48 = vmul.f32 %v1997_v47, %v1995_v46 }
 0x15a   : > { %v1999_v49 = vxor.u32 2147483648, %v1998_v48 }
 0x15b   : > { %2691 = vmatpush.msrb.mxu1 %v8918_v25 }
 0x15c   : > { %v2000_v51 = vsel %vm1879_vm13, %v1999_v49, %v1998_v48  ;;  %vm2020_vm13 = vweird.f32 %v8833_v42 }
 0x15d   : > { %v2003_v52 = vsel %vm1878_vm15, %v8833_v42, %v2000_v51 }
 0x15e   : > { %v2005_v53 = vmul.f32 %v2003_v52, %v2003_v52 }
 0x160   : > { %v2006_v55 = vmul.f32 -0.001358992, %v2005_v53  ;;  %v2013_v56 = vmul.f32 -0.00019511016, %v2005_v53 }
 0x162   : > { %v2007_v58 = vadd.f32 0.041655596, %v2006_v55  ;;  %v2014_v59 = vadd.f32 0.008332121, %v2013_v56 }
 0x164   : > { %v2008_v60 = vmul.f32 %v2007_v58, %v2005_v53  ;;  %v2015_v0 = vmul.f32 %v2014_v59, %v2005_v53 }
 0x166   : > { %v2009_v5 = vadd.f32 -0.4999988, %v2008_v60  ;;  %v2016_v61 = vadd.f32 -0.16666654, %v2015_v0 }
 0x168   : > { %v2010_v6 = vmul.f32 %v2009_v5, %v2005_v53  ;;  %v2017_v7 = vmul.f32 %v2016_v61, %v2005_v53 }
 0x16a   : > { %v2011_v8 = vadd.f32 1.0, %v2010_v6  ;;  %v2018_v43 = vadd.f32 1.0, %v2017_v7 }
 0x16c   : > { %v2019_v11 = vmul.f32 %v2018_v43, %v2003_v52  ;;  %v2028_v12 = vxor.u32 2147483648, %v2011_v8 }
 0x16e   : > { %v2025_v13 = vxor.u32 2147483648, %v2019_v11  ;;  %v2029_v14 = vsel %vm2027_vm6, %v2028_v12, %v2019_v11  ;;  %v2183_v16 = vsel %vm2181_vm10, %v2028_v12, %v2019_v11 }
 0x170   : > { %v2180_v15 = vsel %vm2178_vm14, %v2011_v8, %v2025_v13  ;;  %v2026_v17 = vsel %vm2024_vm9, %v2011_v8, %v2025_v13 }
 0x171   : > { %v2184_v18 = vsel %vm2177_vm8, %v2180_v15, %v2183_v16  ;;  %v2030_v19 = vsel %vm2023_vm12, %v2026_v17, %v2029_v14  ;;  %vm2255_vm8 = vcmask 261120  }
 0x172   : > { %v2185_v20 = vsel %vm2020_vm13, nan, %v2184_v18  ;;  %v2031_v21 = vsel %vm2020_vm13, nan, %v2030_v19  ;;  %v2242_v19 = vld [vmem:[%s8499_s29] sm:$0x1] }
 0x173   : > { %v2187_v24 = vperm.slane %v2185_v20, 0 }
 0x175   : > { %2188 = vrot.lane.b32.xlu2 %v2187_v24, %s8447_s1  ;;  %s9896_s1 = sld [smem:[#allocation13_spill]] }
 0x1ac   : > { %v2396_v42 = vpop.f32.mrf.mxu2 }
 0x1ad   : > { %v2397_v27 = vadd.f32 %v2396_v42, %v2370_v4 }
 0x1af   : > { %v2401_v22 = vsel %vm2196_vm7, %v2397_v27, 0.0 }
 0x1b4   : > { %v2398_v28 = vpop.f32.mrf.mxu2 }
 0x1b5   : > { %v2399_v29 = vadd.f32 %v2398_v28, %v2370_v4 }
 0x1b7   : > { %v2402_v30 = vsel %vm2196_vm7, %v2399_v29, 0.0 }
 0x1b8   : > { %v2403_v31 = vadd.f32 %v2402_v30, %v2401_v22 }
 0x1ba   : > { %v2404_v23 = vrot.slane %v2403_v31, 4 }
 0x1bc   : > { %v2405_v32 = vadd.f32 %v2404_v23, %v2403_v31 }
 0x1be   : > { %v2406_v33 = vrot.slane %v2405_v32, 2 }
 0x1c0   : > { %v2407_v34 = vadd.f32 %v2406_v33, %v2405_v32 }
 0x1c2   : > { %v2408_v35 = vrot.slane %v2407_v34, 1 }
 0x1c4   : > { %v2409_v36 = vadd.f32 %v2408_v35, %v2407_v34 }
 0x1c6   : > { %7143 = vmatmul.msk.f32.vlgmr.msra.gmra.mxu3 %vm2196_vm7, %v2409_v36 }
 0x1cf   : > { %v2189_v3 = vpop.permute.xlu2 %2188 }
 0x1d0   : > { %v2192_v37 = vsel %vm2191_vm5, %v2031_v21, %v2189_v3 }
 0x1d1   : > { %v2194_v38 = vpack.c.bf16 %v2192_v37, %v2192_v37 }
 0x1d3   : > { %7128 = vmatmul.msk.bf16.vlgmr.msra.gmra.mxu0 %vm2196_vm7, %v2194_v38 }
 0x249   : > { %v2430_v41 = vpop.f32.mrf.mxu3 }
 0x24a   : > { %v2433_v63 = vperm.slane %v2430_v41, 0 }
 0x24c   : > { %v8939_v45 = vsub.f32 %v2397_v27, %v2433_v63  ;;  %v8941_v46 = vsub.f32 %v2399_v29, %v2433_v63  ;;  %v2538_v27 = vsel %vm2200_vm4, %v2529_v26, 0 }
 0x24d   : > { %2547 = vmatpush.bf16.msra.mxu3 %v2538_v27 }
 0x24e   : > { %v2436_v48 = vmul.f32 %v8939_v45, %v8939_v45  ;;  %v2437_v49 = vmul.f32 %v8941_v46, %v8941_v46 }
 0x250   : > { %v2213_v47 = vpop.f32.mrf.mxu0  ;;  %v2438_v51 = vsel %vm2196_vm7, %v2436_v48, 0.0  ;;  %v2439_v52 = vsel %vm2196_vm7, %v2437_v49, 0.0 }
 0x251   : > { %v2214_v50 = vadd.f32 %v2213_v47, %v2195_v44  ;;  %v2440_v54 = vadd.f32 %v2439_v52, %v2438_v51 }
 0x253   : > { %v2220_v53 = vand.u32 2147483647, %v2214_v50  ;;  %v2441_v56 = vrot.slane %v2440_v54, 4  ;;  %v2217_v12 = vmax.f32 %v2214_v50, 0.0  ;;  %vm2218_vm6 = vcmp.ne.f32.partialorder %v2214_v50, %v2214_v50 }
 0x255   : > { %v2221_v55 = vsub.f32 0.0, %v2220_v53  ;;  %v2442_v58 = vadd.f32 %v2441_v56, %v2440_v54  ;;  %v2483_v54 = vperm.slane %v8925_v62, 1 }
 0x257   : > { %v2222_v57 = vmul.f32 1.442695, %v2221_v55  ;;  %v2443_v60 = vrot.slane %v2442_v58, 2 }
 0x258   : > { %v2215_v59 = vpop.f32.mrf.mxu0 }
 0x259   : > { %8202 = vpow2.f32 %v2222_v57  ;;  %v2444_v0 = vadd.f32 %v2443_v60, %v2442_v58  ;;  %v2486_v57 = vperm.slane %v8925_v62, 2 }
 0x25b   : > { %v2445_v2 = vrot.slane %v2444_v0, 1 }
 0x25d   : > { %v2446_v61 = vadd.f32 %v2445_v2, %v2444_v0 }
 0x25f   : > { %v8203_v5 = vpop.eup %8202  ;;  %7144 = vmatmul.msk.f32.vlgmr.msrb.gmra.mxu3 %vm2196_vm7, %v2446_v61 }
 0x260   : > { %v2224_v6 = vadd.f32 1.0, %v8203_v5  ;;  %v2227_v7 = vmul.f32 -0.5, %v8203_v5  ;;  %v2230_v8 = vand.u32 2147483647, %v8203_v5 }
 0x262   : > { %8204 = vlog2.f32 %v2224_v6  ;;  %v2228_v9 = vadd.f32 1.0, %v2227_v7  ;;  %vm2231_vm15 = vcmp.lt.f32.partialorder %v2230_v8, 0.0004427343 }
 0x264   : > { %v2229_v11 = vmul.f32 %v8203_v5, %v2228_v9 }
 0x268   : > { %v8205_v43 = vpop.eup %8204 }
 0x269   : > { %v2226_v10 = vmul.f32 0.6931472, %v8205_v43 }
 0x26b   : > { %v2232_v13 = vsel %vm2231_vm15, %v2229_v11, %v2226_v10 }
 0x26c   : > { %v2233_v14 = vadd.f32 %v2232_v13, %v2217_v12 }
 0x26e   : > { %v2234_v15 = vsel %vm2218_vm6, %v2214_v50, %v2233_v14 }
 0x26f   : > { %8206 = vtanh.f32 %v2234_v15 }
 0x275   : > { %v8207_v16 = vpop.eup %8206 }
 0x276   : > { %v2236_v17 = vmul.f32 %v8207_v16, %v2214_v50 }
 0x278   : > { %v2241_v18 = vpack.c.bf16 %v2236_v17, %v2236_v17 }
 0x27a   : > { %7137 = vmatmul.msk.bf16.vlgmr.msra.gmra.mxu1 %vm2255_vm8, %v2241_v18 }
 0x2e2   : > { %v2467_v40 = vpop.f32.mrf.mxu3 }
 0x2e3   : > { %v2468_v41 = vadd.f32 1e-05, %v2467_v40 }
 0x2e5   : > { %vm2476_vm12 = vweird.f32 %v2468_v41 }
 0x2f7   : > { %v2268_v20 = vpop.f32.mrf.mxu1 }
 0x2f8   : > { %v8952_v21 = vadd.f32 %v2268_v20, %v2242_v19 }
 0x2fa   : > { %v2275_v24 = vand.u32 2147483647, %v8952_v21  ;;  %v2272_v34 = vmax.f32 %v8952_v21, 0.0  ;;  %vm2273_vm10 = vcmp.ne.f32.partialorder %v8952_v21, %v8952_v21 }
 0x2fc   : > { %v2276_v42 = vsub.f32 0.0, %v2275_v24 }
 0x2fe   : > { %v2277_v4 = vmul.f32 1.442695, %v2276_v42 }
 0x2ff   : > { %v2270_v1 = vpop.f32.mrf.mxu1 }
 0x300   : > { %8208 = vpow2.f32 %v2277_v4 }
 0x306   : > { %v8209_v28 = vpop.eup %8208 }
 0x307   : > { %v2279_v22 = vadd.f32 1.0, %v8209_v28  ;;  %v2282_v29 = vmul.f32 -0.5, %v8209_v28  ;;  %v2285_v31 = vand.u32 2147483647, %v8209_v28 }
 0x309   : > { %8210 = vlog2.f32 %v2279_v22  ;;  %v2283_v30 = vadd.f32 1.0, %v2282_v29  ;;  %vm2286_vm14 = vcmp.lt.f32.partialorder %v2285_v31, 0.0004427343  ;;  %v2532_v29 = vrot.slane %v8925_v62, 6 }
 0x30b   : > { %v2284_v33 = vmul.f32 %v8209_v28, %v2283_v30 }
 0x30f   : > { %v8211_v23 = vpop.eup %8210 }
 0x310   : > { %v2281_v32 = vmul.f32 0.6931472, %v8211_v23 }
 0x312   : > { %v2287_v35 = vsel %vm2286_vm14, %v2284_v33, %v2281_v32 }
 0x313   : > { %v2288_v36 = vadd.f32 %v2287_v35, %v2272_v34 }
 0x315   : > { %v2289_v3 = vsel %vm2273_vm10, %v8952_v21, %v2288_v36 }
 0x316   : > { %8212 = vtanh.f32 %v2289_v3 }
 0x317   : > { %8214 = vrsqrt.f32 %v2468_v41 }
 0x31c   : > { %v8213_v37 = vpop.eup %8212 }
 0x31d   : > { %v2291_v38 = vmul.f32 %v8213_v37, %v8952_v21  ;;  %v8215_v63 = vpop.eup %8214 }
 0x31e   : > { %v2471_v44 = vmul.f32 %v8215_v63, %v2468_v41  ;;  %vm2477_vm9 = vweird.f32 %v8215_v63 }
 0x31f   : > { %v8962_v39 = vpack.c.bf16 %v2291_v38, %v2291_v38  ;;  %vm2478_vm13 = vmor %vm2476_vm12, %vm2477_vm9  ;;  %vm2621_vm9 = vcmask 195584   ;;  %vm2643_vm12 = vcmask 326656  }
 0x320   : > { %v2472_v47 = vmul.f32 %v8215_v63, %v2471_v44 }
 0x321   : > { %7145 = vmatmul.msk.bf16.vlgmr.msra.gmra.mxu3 %vm2196_vm7, %v8962_v39 }
 0x322   : > { %v2473_v48 = vmul.f32 0.5, %v2472_v47 }
 0x324   : > { %v2474_v49 = vsub.f32 1.5, %v2473_v48 }
 0x326   : > { %v2475_v50 = vmul.f32 %v8215_v63, %v2474_v49 }
 0x328   : > { %v2479_v51 = vsel %vm2478_vm13, %v8215_v63, %v2475_v50 }
 0x329   : > { %v2480_v52 = vperm.slane %v2479_v51, 0 }
 0x32b   : > { %v2481_v53 = vmul.f32 %v2480_v52, %v8939_v45  ;;  %v2482_v55 = vmul.f32 %v2480_v52, %v8941_v46 }
 0x32d   : > { %v2484_v56 = vmul.f32 %v2483_v54, %v2481_v53  ;;  %v2485_v58 = vmul.f32 %v2483_v54, %v2482_v55 }
 0x32f   : > { %v2487_v59 = vadd.f32 %v2486_v57, %v2484_v56  ;;  %v2488_v60 = vadd.f32 %v2486_v57, %v2485_v58 }
 0x331   : > { %v2495_v0 = vand.u32 2147483647, %v2487_v59  ;;  %v2496_v2 = vand.u32 2147483647, %v2488_v60  ;;  %v2489_v42 = vmax.f32 %v2487_v59, 0.0  ;;  %v2490_v1 = vmax.f32 %v2488_v60, 0.0 }
 0x332   : > { %vm2491_vm14 = vcmp.ne.f32.partialorder %v2487_v59, %v2487_v59  ;;  %vm2492_vm10 = vcmp.ne.f32.partialorder %v2488_v60, %v2488_v60 }
 0x333   : > { %v2497_v5 = vsub.f32 0.0, %v2495_v0  ;;  %v2498_v61 = vsub.f32 0.0, %v2496_v2 }
 0x335   : > { %v2499_v6 = vmul.f32 1.442695, %v2497_v5  ;;  %v2501_v7 = vmul.f32 1.442695, %v2498_v61 }
 0x337   : > { %8216 = vpow2.f32 %v2499_v6 }
 0x338   : > { %8218 = vpow2.f32 %v2501_v7 }
 0x33d   : > { %v8217_v9 = vpop.eup %8216 }
 0x33e   : > { %v8219_v45 = vpop.eup %8218  ;;  %v2503_v8 = vadd.f32 1.0, %v8217_v9  ;;  %v2506_v46 = vmul.f32 -0.5, %v8217_v9  ;;  %v2509_v14 = vand.u32 2147483647, %v8217_v9 }
 0x33f   : > { %v2512_v43 = vadd.f32 1.0, %v8219_v45  ;;  %v2515_v10 = vmul.f32 -0.5, %v8219_v45  ;;  %v2518_v17 = vand.u32 2147483647, %v8219_v45 }
 0x340   : > { %8220 = vlog2.f32 %v2503_v8  ;;  %v2507_v13 = vadd.f32 1.0, %v2506_v46  ;;  %vm2510_vm15 = vcmp.lt.f32.partialorder %v2509_v14, 0.0004427343  ;;  %v2560_v46 = vld [vmem:[%s8514_s14 + $0x10] sm:$0xf]  ;;  %v7856_v14 = vld [vmem:[%s8514_s14] sm:$0xff] }
 0x341   : > { %8222 = vlog2.f32 %v2512_v43  ;;  %v2516_v15 = vadd.f32 1.0, %v2515_v10  ;;  %vm2519_vm6 = vcmp.lt.f32.partialorder %v2518_v17, 0.0004427343  ;;  %v2637_v10 = vunpack.c.l.b16 %v2560_v46 }
 0x342   : > { %v2508_v19 = vmul.f32 %v8217_v9, %v2507_v13  ;;  %v7857_v13 = vld [vmem:[%s8514_s14 + $0x8] sm:$0xff] }
 0x343   : > { %v2517_v20 = vmul.f32 %v8219_v45, %v2516_v15 }
 0x346   : > { %v8221_v11 = vpop.eup %8220 }
 0x347   : > { %v8223_v12 = vpop.eup %8222  ;;  %v2505_v16 = vmul.f32 0.6931472, %v8221_v11  ;;  %v2640_v11 = vpack.c.b16 %v2637_v10, %v2637_v10 }
 0x348   : > { %v2514_v18 = vmul.f32 0.6931472, %v8223_v12 }
 0x349   : > { %v2511_v24 = vsel %vm2510_vm15, %v2508_v19, %v2505_v16  ;;  %v2648_v12 = vsel %vm2200_vm4, %v2640_v11, 0 }
 0x34a   : > { %v2520_v4 = vsel %vm2519_vm6, %v2517_v20, %v2514_v18  ;;  %v2521_v26 = vadd.f32 %v2511_v24, %v2489_v42  ;;  %2655 = vmatpush.bf16.msrb.mxu0 %v2648_v12 }
 0x34b   : > { %v2522_v27 = vadd.f32 %v2520_v4, %v2490_v1 }
 0x34c   : > { %v2523_v28 = vsel %vm2491_vm14, %v2487_v59, %v2521_v26 }
 0x34d   : > { %v2524_v22 = vsel %vm2492_vm10, %v2488_v60, %v2522_v27  ;;  %8224 = vtanh.f32 %v2523_v28 }
 0x34e   : > { %8226 = vtanh.f32 %v2524_v22  ;;  %2656 = vmatpush.bf16.msrb.mxu0 %v7857_v13 }
 0x352   : > { %2657 = vmatpush.bf16.msrb.mxu0 %v7856_v14 }
 0x353   : > { %v8225_v30 = vpop.eup %8224 }
 0x354   : > { %v8227_v31 = vpop.eup %8226  ;;  %v2527_v33 = vmul.f32 %v8225_v30, %v2487_v59 }
 0x355   : > { %v2528_v34 = vmul.f32 %v8227_v31, %v2488_v60 }
 0x356   : > { %2988 = vmatpush.msra.mxu0 %v8918_v25 }
 0x3a4   : > { %v2549_v23 = vpop.f32.mrf.mxu3 }
 0x3a5   : > { %v2550_v32 = vadd.f32 %v2549_v23, %v2532_v29 }
 0x3a7   : > { %v2553_v35 = vperm.slane %v2550_v32, 0 }
 0x3a9   : > { %v2554_v36 = vadd.f32 %v2553_v35, %v2527_v33  ;;  %v2555_v3 = vadd.f32 %v2553_v35, %v2528_v34 }
 0x3ab   : > { %v2563_v37 = vrot.slane %v2554_v36, 6  ;;  %v2564_v38 = vrot.slane %v2555_v3, 6  ;;  %v2627_v36 = vperm.slane %v8925_v62, 3 }
 0x3ac   : > { %v2551_v40 = vpop.f32.mrf.mxu3 }
 0x3ad   : > { %v2565_v41 = vsel %vm2301_vm0, %v2563_v37, %v2564_v38  ;;  %v2569_v63 = vsel %vm2301_vm0, 0.0, %v2563_v37  ;;  %v2570_v44 = vsel %vm2301_vm0, %v2564_v38, 0.0 }
 0x3ae   : > { %v2595_v47 = vrot.slane %v2569_v63, 3  ;;  %v2596_v48 = vrot.slane %v2565_v41, 3  ;;  %v2598_v49 = vrot.slane %v2570_v44, 3  ;;  %v2584_v50 = vrot.slane %v2569_v63, 2 }
 0x3af   : > { %v2585_v51 = vrot.slane %v2565_v41, 2  ;;  %v2587_v52 = vrot.slane %v2570_v44, 2  ;;  %v2573_v53 = vrot.slane %v2569_v63, 1  ;;  %v2574_v54 = vrot.slane %v2565_v41, 1 }
 0x3b0   : > { %v2597_v55 = vsel %vm2336_vm3, %v2595_v47, %v2596_v48  ;;  %v2599_v56 = vsel %vm2336_vm3, %v2596_v48, %v2598_v49  ;;  %v2576_v57 = vrot.slane %v2570_v44, 1  ;;  %v2606_v6 = vrot.slane %v2569_v63, 4 }
 0x3b1   : > { %v8133_v58 = vpack.i.bf16 %v2599_v56, %v2597_v55  ;;  %v2586_v59 = vsel %vm2324_vm1, %v2584_v50, %v2585_v51  ;;  %v2588_v60 = vsel %vm2324_vm1, %v2585_v51, %v2587_v52  ;;  %v2575_v0 = vsel %vm2312_vm2, %v2573_v53, %v2574_v54  ;;  %v2792_v52 = vld [vmem:[%s8524_s24] sm:$0x3]  ;;  %v8373_v55 = vld [vmem:[%s8799_s26 + $0x8] sm:$0xff] }
 0x3b2   : > { %v8128_v2 = vpack.i.bf16 %v2588_v60, %v2586_v59  ;;  %v2577_v5 = vsel %vm2312_vm2, %v2574_v54, %v2576_v57  ;;  %v2607_v7 = vrot.slane %v2565_v41, 4  ;;  %v2609_v9 = vrot.slane %v2570_v44, 4  ;;  %v8372_v54 = vld [vmem:[%s8799_s26] sm:$0xff]  ;;  %s9895_s26 = sld [smem:[#allocation11_spill]] }
 0x3b3   : > { %8134 = vrot.lane.b32.xlu2 %v8133_v58, %s8456_s10  ;;  %v8123_v61 = vpack.i.bf16 %v2577_v5, %v2575_v0  ;;  %v2799_v53 = vsel %vm2301_vm0, %v2792_v52, 0  ;;  %v2793_v56 = vpack.c.bf16 %v8373_v55, %v8372_v54 }
 0x3b4   : > { %8129 = vrot.lane.b32.xlu1 %v8128_v2, %s8448_s2  ;;  %v2608_v45 = vsel %vm2200_vm4, %v2606_v6, %v2607_v7  ;;  %v2610_v8 = vsel %vm2200_vm4, %v2607_v7, %v2609_v9  ;;  %2808 = vmatpush.bf16.msra.mxu1 %v2799_v53 }
 0x3b5   : > { %8124 = vrot.lane.b32.xlu0 %v8123_v61, %s8446_s28  ;;  %v8138_v43 = vpack.i.bf16 %v2610_v8, %v2608_v45 }
 0x3bd   : > { %8139 = vrot.lane.b32.xlu0 %v8138_v43, %s9825_s11 }
 0x40d   : > { %v8135_v4 = vpop.permute.xlu2 %8134 }
 0x40e   : > { %v8137_v27 = vunpack.i.h.bf16 %v8135_v4  ;;  %v8136_v28 = vunpack.i.l.bf16 %v8135_v4  ;;  %v2749_v4 = vperm.slane %v8925_v62, 5 }
 0x426   : > { %v8130_v15 = vpop.permute.xlu1 %8129 }
 0x427   : > { %v8125_v16 = vpop.permute.xlu0 %8124  ;;  %v8132_v19 = vunpack.i.h.bf16 %v8130_v15  ;;  %v8131_v20 = vunpack.i.l.bf16 %v8130_v15 }
 0x428   : > { %v8127_v17 = vunpack.i.h.bf16 %v8125_v16  ;;  %v8126_v18 = vunpack.i.l.bf16 %v8125_v16 }
 0x42a   : > { %v2618_v24 = vsel %vm2196_vm7, %v2565_v41, %v8127_v17  ;;  %v2617_v42 = vsel %vm2196_vm7, %v2569_v63, %v8126_v18 }
 0x42b   : > { %v2620_v1 = vsel %vm2366_vm11, %v2618_v24, %v8132_v19  ;;  %v2619_v26 = vsel %vm2366_vm11, %v2617_v42, %v8131_v20  ;;  %v2746_v20 = vperm.slane %v8925_v62, 4 }
 0x42c   : > { %v2622_v31 = vsel %vm2621_vm9, %v2619_v26, %v8136_v28  ;;  %v2623_v23 = vsel %vm2621_vm9, %v2620_v1, %v8137_v27 }
 0x42f   : > { %v8140_v22 = vpop.permute.xlu0 %8139 }
 0x430   : > { %v8142_v29 = vunpack.i.h.bf16 %v8140_v22  ;;  %v8141_v30 = vunpack.i.l.bf16 %v8140_v22 }
 0x432   : > { %v2624_v32 = vsel %vm2255_vm8, %v2622_v31, %v8141_v30  ;;  %v2625_v33 = vsel %vm2255_vm8, %v2623_v23, %v8142_v29 }
 0x433   : > { %v2626_v34 = vpack.c.bf16 %v2625_v33, %v2624_v32 }
 0x435   : > { %7154 = vmatmul.msk.bf16.vlgmr.msrb.gmra.mxu0 %vm2643_vm12, %v2626_v34 }
 0x4b2   : > { %v2659_v35 = vpop.f32.mrf.mxu0 }
 0x4b3   : > { %v2660_v3 = vadd.f32 %v2659_v35, %v2627_v36 }
 0x4b5   : > { %v2664_v40 = vsel %vm2196_vm7, %v2660_v3, 0.0 }
 0x4ba   : > { %v2661_v37 = vpop.f32.mrf.mxu0 }
 0x4bb   : > { %v2662_v38 = vadd.f32 %v2661_v37, %v2627_v36 }
 0x4bd   : > { %v2665_v41 = vsel %vm2196_vm7, %v2662_v38, 0.0 }
 0x4be   : > { %v2666_v63 = vadd.f32 %v2665_v41, %v2664_v40 }
 0x4c0   : > { %v2667_v44 = vrot.slane %v2666_v63, 4 }
 0x4c2   : > { %v2668_v47 = vadd.f32 %v2667_v44, %v2666_v63 }
 0x4c4   : > { %v2669_v48 = vrot.slane %v2668_v47, 2 }
 0x4c6   : > { %v2670_v49 = vadd.f32 %v2669_v48, %v2668_v47 }
 0x4c8   : > { %v2671_v50 = vrot.slane %v2670_v49, 1 }
 0x4ca   : > { %v2672_v51 = vadd.f32 %v2671_v50, %v2670_v49 }
 0x4cc   : > { %7155 = vmatmul.msk.f32.vlgmr.msrb.gmra.mxu1 %vm2196_vm7, %v2672_v51 }
 0x4cd   : > { %3208 = vmatpush.msrb.mxu1 %v8918_v25 }
 0x4d4   : > { %7157 = vmatmul.msk.bf16.vlgmr.msra.gmra.mxu1 %vm2191_vm5, %v2793_v56 }
 0x549   : > { %v2693_v57 = vpop.f32.mrf.mxu1 }
 0x54a   : > { %v2696_v58 = vperm.slane %v2693_v57, 0 }
 0x54c   : > { %v2697_v59 = vsub.f32 %v2660_v3, %v2696_v58  ;;  %v2698_v60 = vsub.f32 %v2662_v38, %v2696_v58 }
 0x54e   : > { %v2699_v0 = vmul.f32 %v2697_v59, %v2697_v59  ;;  %v2700_v2 = vmul.f32 %v2698_v60, %v2698_v60 }
 0x550   : > { %v2701_v5 = vsel %vm2196_vm7, %v2699_v0, 0.0  ;;  %v2702_v61 = vsel %vm2196_vm7, %v2700_v2, 0.0  ;;  %v2794_v0 = vperm.slane %v8925_v62, 7 }
 0x551   : > { %v2703_v6 = vadd.f32 %v2702_v61, %v2701_v5  ;;  %v2810_v51 = vpop.f32.mrf.mxu1 }
 0x553   : > { %v2704_v7 = vrot.slane %v2703_v6, 4 }
 0x555   : > { %v2705_v9 = vadd.f32 %v2704_v7, %v2703_v6  ;;  %v2811_v7 = vadd.f32 %v2810_v51, %v2794_v0 }
 0x557   : > { %v2706_v45 = vrot.slane %v2705_v9, 2 }
 0x559   : > { %v2707_v8 = vadd.f32 %v2706_v45, %v2705_v9  ;;  %v2812_v2 = vpop.f32.mrf.mxu1 }
 0x55a   : > { %v2813_v45 = vadd.f32 %v2812_v2, %v2794_v0 }
 0x55b   : > { %v2708_v43 = vrot.slane %v2707_v8, 1 }
 0x55d   : > { %v2709_v46 = vadd.f32 %v2708_v43, %v2707_v8 }
 0x55f   : > { %7156 = vmatmul.msk.f32.vlgmr.msrb.gmra.mxu2 %vm2196_vm7, %v2709_v46 }
 0x5e2   : > { %v2730_v10 = vpop.f32.mrf.mxu2 }
 0x5e3   : > { %v2731_v11 = vadd.f32 1e-05, %v2730_v10 }
 0x5e5   : > { %8228 = vrsqrt.f32 %v2731_v11  ;;  %vm2739_vm15 = vweird.f32 %v2731_v11 }
 0x5eb   : > { %v8229_v12 = vpop.eup %8228 }
 0x5ec   : > { %v2734_v13 = vmul.f32 %v8229_v12, %v2731_v11  ;;  %vm2740_vm13 = vweird.f32 %v8229_v12 }
 0x5ed   : > { %vm2741_vm6 = vmor %vm2739_vm15, %vm2740_vm13 }
 0x5ee   : > { %v2735_v14 = vmul.f32 %v8229_v12, %v2734_v13 }
 0x5f0   : > { %v2736_v15 = vmul.f32 0.5, %v2735_v14 }
 0x5f2   : > { %v2737_v16 = vsub.f32 1.5, %v2736_v15 }
 0x5f4   : > { %v2738_v17 = vmul.f32 %v8229_v12, %v2737_v16 }
 0x5f6   : > { %v2742_v18 = vsel %vm2741_vm6, %v8229_v12, %v2738_v17 }
 0x5f7   : > { %v2743_v19 = vperm.slane %v2742_v18, 0 }
 0x5f9   : > { %v2744_v24 = vmul.f32 %v2743_v19, %v2697_v59  ;;  %v2745_v42 = vmul.f32 %v2743_v19, %v2698_v60 }
 0x5fb   : > { %v2747_v1 = vmul.f32 %v2746_v20, %v2744_v24  ;;  %v2748_v26 = vmul.f32 %v2746_v20, %v2745_v42 }
 0x5fd   : > { %v2750_v27 = vadd.f32 %v2749_v4, %v2747_v1  ;;  %v2751_v28 = vadd.f32 %v2749_v4, %v2748_v26 }
 0x5ff   : > { %v2758_v22 = vand.u32 2147483647, %v2750_v27  ;;  %v2759_v29 = vand.u32 2147483647, %v2751_v28  ;;  %v2752_v50 = vmax.f32 %v2750_v27, 0.0  ;;  %v2753_v55 = vmax.f32 %v2751_v28, 0.0 }
 0x600   : > { %vm2754_vm13 = vcmp.ne.f32.partialorder %v2750_v27, %v2750_v27  ;;  %vm2755_vm15 = vcmp.ne.f32.partialorder %v2751_v28, %v2751_v28 }
 0x601   : > { %v2760_v30 = vsub.f32 0.0, %v2758_v22  ;;  %v2761_v31 = vsub.f32 0.0, %v2759_v29 }
 0x603   : > { %v2762_v23 = vmul.f32 1.442695, %v2760_v30  ;;  %v2764_v32 = vmul.f32 1.442695, %v2761_v31 }
 0x605   : > { %8230 = vpow2.f32 %v2762_v23 }
 0x606   : > { %8232 = vpow2.f32 %v2764_v32 }
 0x60b   : > { %v8231_v33 = vpop.eup %8230 }
 0x60c   : > { %v8233_v34 = vpop.eup %8232  ;;  %v2766_v35 = vadd.f32 1.0, %v8231_v33  ;;  %v2769_v36 = vmul.f32 -0.5, %v8231_v33  ;;  %v2772_v40 = vand.u32 2147483647, %v8231_v33 }
 0x60d   : > { %v2775_v3 = vadd.f32 1.0, %v8233_v34  ;;  %v2778_v37 = vmul.f32 -0.5, %v8233_v34  ;;  %v2781_v63 = vand.u32 2147483647, %v8233_v34 }
 0x60e   : > { %8234 = vlog2.f32 %v2766_v35  ;;  %v2770_v38 = vadd.f32 1.0, %v2769_v36  ;;  %vm2773_vm14 = vcmp.lt.f32.partialorder %v2772_v40, 0.0004427343  ;;  %v2822_v36 = vld [vmem:[%s9887_s6 + $0x10] sm:$0xf]  ;;  %v7859_v40 = vld [vmem:[%s9887_s6 + $0x8] sm:$0xff] }
 0x60f   : > { %8236 = vlog2.f32 %v2775_v3  ;;  %v2779_v41 = vadd.f32 1.0, %v2778_v37  ;;  %vm2782_vm10 = vcmp.lt.f32.partialorder %v2781_v63, 0.0004427343  ;;  %v2898_v3 = vunpack.c.l.b16 %v2822_v36 }
 0x610   : > { %v2771_v49 = vmul.f32 %v8231_v33, %v2770_v38 }
 0x611   : > { %v2780_v53 = vmul.f32 %v8233_v34, %v2779_v41  ;;  %v2901_v37 = vpack.c.b16 %v2898_v3, %v2898_v3  ;;  %v7858_v41 = vld [vmem:[%s9887_s6] sm:$0xff]  ;;  %s9927_s6 = sld [smem:[#allocation41_spill]] }
 0x613   : > { %v2908_v38 = vsel %vm2200_vm4, %v2901_v37, 0 }
 0x614   : > { %v8235_v44 = vpop.eup %8234  ;;  %2915 = vmatpush.bf16.msrb.mxu3 %v2908_v38 }
 0x615   : > { %v8237_v47 = vpop.eup %8236  ;;  %v2768_v48 = vmul.f32 0.6931472, %v8235_v44 }
 0x616   : > { %v2777_v52 = vmul.f32 0.6931472, %v8237_v47 }
 0x617   : > { %v2774_v54 = vsel %vm2773_vm14, %v2771_v49, %v2768_v48 }
 0x618   : > { %v2784_v56 = vadd.f32 %v2774_v54, %v2752_v50  ;;  %v2783_v57 = vsel %vm2782_vm10, %v2780_v53, %v2777_v52  ;;  %2916 = vmatpush.bf16.msrb.mxu3 %v7859_v40 }
 0x619   : > { %v2785_v58 = vadd.f32 %v2783_v57, %v2753_v55 }
 0x61a   : > { %v2786_v59 = vsel %vm2754_vm13, %v2750_v27, %v2784_v56 }
 0x61b   : > { %8238 = vtanh.f32 %v2786_v59  ;;  %v2787_v60 = vsel %vm2755_vm15, %v2751_v28, %v2785_v58 }
 0x61c   : > { %8240 = vtanh.f32 %v2787_v60  ;;  %2917 = vmatpush.bf16.msrb.mxu3 %v7858_v41 }
 0x620   : > { %3245 = vmatpush.msra.mxu3 %v8918_v25 }
 0x621   : > { %v8239_v5 = vpop.eup %8238 }
 0x622   : > { %v8241_v61 = vpop.eup %8240  ;;  %v2790_v6 = vmul.f32 %v8239_v5, %v2750_v27 }
 0x623   : > { %v2791_v9 = vmul.f32 %v8241_v61, %v2751_v28 }
 0x624   : > { %v9016_v8 = vadd.f32 %v2811_v7, %v2790_v6  ;;  %v3052_v6 = vld [vmem:[%s9890_s16] sm:$0xf]  ;;  %s9900_s16 = sld [smem:[#allocation14_spill]] }
 0x625   : > { %v9018_v43 = vadd.f32 %v2813_v45, %v2791_v9  ;;  %v3057_v7 = vsel %vm2200_vm4, %v3052_v6, 0  ;;  %v9054_v9 = vld [vmem:[%s9891_s15] sm:$0xff]  ;;  %s9822_s15 = smov 48  }
 0x626   : > { %v2825_v46 = vrot.slane %v9016_v8, 6  ;;  %3066 = vmatpush.bf16.msrb.mxu2 %v3057_v7 }
 0x627   : > { %v2826_v10 = vrot.slane %v9018_v43, 6 }
 0x628   : > { %v2831_v11 = vsel %vm2301_vm0, 0.0, %v2825_v46 }
 0x629   : > { %v2827_v12 = vsel %vm2301_vm0, %v2825_v46, %v2826_v10  ;;  %v2832_v62 = vsel %vm2301_vm0, %v2826_v10, 0.0  ;;  %v2857_v13 = vrot.slane %v2831_v11, 3  ;;  %v2846_v14 = vrot.slane %v2831_v11, 2 }
 0x62a   : > { %v2858_v15 = vrot.slane %v2827_v12, 3  ;;  %v2860_v16 = vrot.slane %v2832_v62, 3  ;;  %v2847_v17 = vrot.slane %v2827_v12, 2  ;;  %v2849_v18 = vrot.slane %v2832_v62, 2 }
 0x62b   : > { %v2835_v19 = vrot.slane %v2831_v11, 1  ;;  %v2836_v20 = vrot.slane %v2827_v12, 1  ;;  %v2838_v24 = vrot.slane %v2832_v62, 1  ;;  %v2868_v31 = vrot.slane %v2831_v11, 4 }
 0x62c   : > { %v2859_v42 = vsel %vm2336_vm3, %v2857_v13, %v2858_v15  ;;  %v2861_v4 = vsel %vm2336_vm3, %v2858_v15, %v2860_v16  ;;  %v2848_v1 = vsel %vm2324_vm1, %v2846_v14, %v2847_v17  ;;  %v2850_v26 = vsel %vm2324_vm1, %v2847_v17, %v2849_v18 }
 0x62d   : > { %v8153_v27 = vpack.i.bf16 %v2861_v4, %v2859_v42  ;;  %v8148_v28 = vpack.i.bf16 %v2850_v26, %v2848_v1  ;;  %v2837_v22 = vsel %vm2312_vm2, %v2835_v19, %v2836_v20  ;;  %v2839_v29 = vsel %vm2312_vm2, %v2836_v20, %v2838_v24 }
 0x62e   : > { %v8143_v30 = vpack.i.bf16 %v2839_v29, %v2837_v22  ;;  %v2869_v23 = vrot.slane %v2827_v12, 4  ;;  %v2871_v32 = vrot.slane %v2832_v62, 4  ;;  %v2888_v46 = vperm.slane %v9054_v9, 0 }
 0x62f   : > { %8154 = vrot.lane.b32.xlu0 %v8153_v27, %s8456_s10  ;;  %8149 = vrot.lane.b32.xlu2 %v8148_v28, %s8448_s2 }
 0x630   : > { %8144 = vrot.lane.b32.xlu1 %v8143_v30, %s8446_s28  ;;  %v2870_v33 = vsel %vm2200_vm4, %v2868_v31, %v2869_v23  ;;  %v2872_v34 = vsel %vm2200_vm4, %v2869_v23, %v2871_v32 }
 0x631   : > { %v8158_v35 = vpack.i.bf16 %v2872_v34, %v2870_v33 }
 0x638   : > { %8159 = vrot.lane.b32.xlu1 %v8158_v35, %s9825_s11 }
 0x689   : > { %v8150_v48 = vpop.permute.xlu2 %8149 }
 0x68a   : > { %v8152_v51 = vunpack.i.h.bf16 %v8150_v48  ;;  %v8151_v52 = vunpack.i.l.bf16 %v8150_v48 }
 0x6a1   : > { %v8155_v53 = vpop.permute.xlu0 %8154 }
 0x6a2   : > { %v8145_v63 = vpop.permute.xlu1 %8144  ;;  %v8157_v56 = vunpack.i.h.bf16 %v8155_v53  ;;  %v8156_v57 = vunpack.i.l.bf16 %v8155_v53  ;;  %v3009_v53 = vperm.slane %v9054_v9, 2 }
 0x6a3   : > { %v8147_v44 = vunpack.i.h.bf16 %v8145_v63  ;;  %v8146_v47 = vunpack.i.l.bf16 %v8145_v63 }
 0x6a5   : > { %v2880_v49 = vsel %vm2196_vm7, %v2827_v12, %v8147_v44  ;;  %v2879_v50 = vsel %vm2196_vm7, %v2831_v11, %v8146_v47 }
 0x6a6   : > { %v2882_v54 = vsel %vm2366_vm11, %v2880_v49, %v8152_v51  ;;  %v2881_v55 = vsel %vm2366_vm11, %v2879_v50, %v8151_v52  ;;  %v3006_v50 = vperm.slane %v9054_v9, 1 }
 0x6a7   : > { %v2883_v60 = vsel %vm2621_vm9, %v2881_v55, %v8156_v57  ;;  %v2884_v0 = vsel %vm2621_vm9, %v2882_v54, %v8157_v56 }
 0x6aa   : > { %v8160_v25 = vpop.permute.xlu1 %8159 }
 0x6ab   : > { %v8162_v58 = vunpack.i.h.bf16 %v8160_v25  ;;  %v8161_v59 = vunpack.i.l.bf16 %v8160_v25 }
 0x6ad   : > { %v2885_v2 = vsel %vm2255_vm8, %v2883_v60, %v8161_v59  ;;  %v2886_v5 = vsel %vm2255_vm8, %v2884_v0, %v8162_v58 }
 0x6ae   : > { %v2887_v61 = vpack.c.bf16 %v2886_v5, %v2885_v2 }
 0x6b0   : > { %7166 = vmatmul.msk.bf16.vlgmr.msrb.gmra.mxu3 %vm2643_vm12, %v2887_v61 }
 0x733   : > { %v2919_v45 = vpop.f32.mrf.mxu3 }
 0x734   : > { %v2920_v10 = vadd.f32 %v2919_v45, %v2888_v46 }
 0x736   : > { %v2924_v62 = vsel %vm2196_vm7, %v2920_v10, 0.0 }
 0x73b   : > { %v2921_v11 = vpop.f32.mrf.mxu3 }
 0x73c   : > { %v2922_v12 = vadd.f32 %v2921_v11, %v2888_v46 }
 0x73e   : > { %v2925_v13 = vsel %vm2196_vm7, %v2922_v12, 0.0 }
 0x73f   : > { %v2926_v14 = vadd.f32 %v2925_v13, %v2924_v62 }
 0x741   : > { %v2927_v15 = vrot.slane %v2926_v14, 4 }
 0x743   : > { %v2928_v16 = vadd.f32 %v2927_v15, %v2926_v14 }
 0x745   : > { %v2929_v17 = vrot.slane %v2928_v16, 2 }
 0x747   : > { %v2930_v18 = vadd.f32 %v2929_v17, %v2928_v16 }
 0x749   : > { %v2931_v19 = vrot.slane %v2930_v18, 1 }
 0x74b   : > { %v2932_v20 = vadd.f32 %v2931_v19, %v2930_v18 }
 0x74d   : > { %7167 = vmatmul.msk.f32.vlgmr.msra.gmra.mxu2 %vm2196_vm7, %v2932_v20 }
 0x755   : > { %7169 = vmatmul.msk.bf16.vlgmr.msrb.gmra.mxu2 %vm2196_vm7, %v8962_v39 }
 0x7d0   : > { %v2953_v24 = vpop.f32.mrf.mxu2 }
 0x7d1   : > { %v2956_v42 = vperm.slane %v2953_v24, 0 }
 0x7d3   : > { %v2957_v4 = vsub.f32 %v2920_v10, %v2956_v42  ;;  %v2958_v1 = vsub.f32 %v2922_v12, %v2956_v42 }
 0x7d5   : > { %v2959_v26 = vmul.f32 %v2957_v4, %v2957_v4  ;;  %v2960_v27 = vmul.f32 %v2958_v1, %v2958_v1 }
 0x7d7   : > { %v2961_v28 = vsel %vm2196_vm7, %v2959_v26, 0.0  ;;  %v2962_v22 = vsel %vm2196_vm7, %v2960_v27, 0.0  ;;  %v3054_v26 = vrot.slane %v9054_v9, 6 }
 0x7d8   : > { %v2963_v29 = vadd.f32 %v2962_v22, %v2961_v28  ;;  %v9064_v30 = vpop.f32.mrf.mxu2 }
 0x7d9   : > { %v3069_v22 = vadd.f32 %v9064_v30, %v3054_v26 }
 0x7da   : > { %v2964_v31 = vrot.slane %v2963_v29, 4 }
 0x7dc   : > { %v2965_v23 = vadd.f32 %v2964_v31, %v2963_v29 }
 0x7de   : > { %v2966_v32 = vrot.slane %v2965_v23, 2 }
 0x7e0   : > { %v2967_v33 = vadd.f32 %v2966_v32, %v2965_v23  ;;  %v3070_v34 = vpop.f32.mrf.mxu2  ;;  %v3072_v23 = vperm.slane %v3069_v22, 0 }
 0x7e2   : > { %v2968_v35 = vrot.slane %v2967_v33, 1 }
 0x7e4   : > { %v2969_v36 = vadd.f32 %v2968_v35, %v2967_v33 }
 0x7e6   : > { %7168 = vmatmul.msk.f32.vlgmr.msra.gmra.mxu0 %vm2196_vm7, %v2969_v36 }
 0x863   : > { %v2990_v3 = vpop.f32.mrf.mxu0 }
 0x864   : > { %v2991_v37 = vadd.f32 1e-05, %v2990_v3 }
 0x866   : > { %8242 = vrsqrt.f32 %v2991_v37  ;;  %vm2999_vm14 = vweird.f32 %v2991_v37 }
 0x86c   : > { %v8243_v38 = vpop.eup %8242 }
 0x86d   : > { %v2994_v40 = vmul.f32 %v8243_v38, %v2991_v37  ;;  %vm3000_vm6 = vweird.f32 %v8243_v38 }
 0x86e   : > { %vm3001_vm10 = vmor %vm2999_vm14, %vm3000_vm6 }
 0x86f   : > { %v2995_v41 = vmul.f32 %v8243_v38, %v2994_v40 }
 0x871   : > { %v2996_v63 = vmul.f32 0.5, %v2995_v41 }
 0x873   : > { %v2997_v44 = vsub.f32 1.5, %v2996_v63 }
 0x875   : > { %v2998_v47 = vmul.f32 %v8243_v38, %v2997_v44 }
 0x877   : > { %v3002_v48 = vsel %vm3001_vm10, %v8243_v38, %v2998_v47 }
 0x878   : > { %v3003_v49 = vperm.slane %v3002_v48, 0 }
 0x87a   : > { %v3004_v51 = vmul.f32 %v3003_v49, %v2957_v4  ;;  %v3005_v52 = vmul.f32 %v3003_v49, %v2958_v1 }
 0x87c   : > { %v3007_v54 = vmul.f32 %v3006_v50, %v3004_v51  ;;  %v3008_v55 = vmul.f32 %v3006_v50, %v3005_v52 }
 0x87e   : > { %v3010_v56 = vadd.f32 %v3009_v53, %v3007_v54  ;;  %v3011_v57 = vadd.f32 %v3009_v53, %v3008_v55 }
 0x880   : > { %v3018_v25 = vand.u32 2147483647, %v3010_v56  ;;  %v3019_v58 = vand.u32 2147483647, %v3011_v57  ;;  %v3012_v17 = vmax.f32 %v3010_v56, 0.0  ;;  %v3013_v20 = vmax.f32 %v3011_v57, 0.0 }
 0x881   : > { %vm3014_vm6 = vcmp.ne.f32.partialorder %v3010_v56, %v3010_v56  ;;  %vm3015_vm14 = vcmp.ne.f32.partialorder %v3011_v57, %v3011_v57 }
 0x882   : > { %v3020_v59 = vsub.f32 0.0, %v3018_v25  ;;  %v3021_v60 = vsub.f32 0.0, %v3019_v58 }
 0x884   : > { %v3022_v0 = vmul.f32 1.442695, %v3020_v59  ;;  %v3024_v2 = vmul.f32 1.442695, %v3021_v60 }
 0x886   : > { %8244 = vpow2.f32 %v3022_v0 }
 0x887   : > { %8246 = vpow2.f32 %v3024_v2 }
 0x88c   : > { %v8245_v5 = vpop.eup %8244 }
 0x88d   : > { %v8247_v61 = vpop.eup %8246  ;;  %v3026_v6 = vadd.f32 1.0, %v8245_v5  ;;  %v3029_v7 = vmul.f32 -0.5, %v8245_v5  ;;  %v3032_v11 = vand.u32 2147483647, %v8245_v5 }
 0x88e   : > { %v3035_v45 = vadd.f32 1.0, %v8247_v61  ;;  %v3038_v46 = vmul.f32 -0.5, %v8247_v61  ;;  %v3041_v62 = vand.u32 2147483647, %v8247_v61 }
 0x88f   : > { %8248 = vlog2.f32 %v3026_v6  ;;  %v3030_v10 = vadd.f32 1.0, %v3029_v7  ;;  %vm3033_vm13 = vcmp.lt.f32.partialorder %v3032_v11, 0.0004427343  ;;  %v3079_v7 = vld [vmem:[%s9892_s18 + $0x10] sm:$0xf]  ;;  %v7861_v11 = vld [vmem:[%s9892_s18 + $0x8] sm:$0xff] }
 0x890   : > { %8250 = vlog2.f32 %v3035_v45  ;;  %v3039_v12 = vadd.f32 1.0, %v3038_v46  ;;  %vm3042_vm15 = vcmp.lt.f32.partialorder %v3041_v62, 0.0004427343  ;;  %v3155_v45 = vunpack.c.l.b16 %v3079_v7 }
 0x891   : > { %v3031_v16 = vmul.f32 %v8245_v5, %v3030_v10 }
 0x892   : > { %v3040_v19 = vmul.f32 %v8247_v61, %v3039_v12  ;;  %v3158_v46 = vpack.c.b16 %v3155_v45, %v3155_v45  ;;  %v7860_v12 = vld [vmem:[%s9892_s18] sm:$0xff] }
 0x894   : > { %v3165_v10 = vsel %vm2200_vm4, %v3158_v46, 0 }
 0x895   : > { %v8249_v13 = vpop.eup %8248  ;;  %3172 = vmatpush.bf16.msrb.mxu0 %v3165_v10 }
 0x896   : > { %v8251_v14 = vpop.eup %8250  ;;  %v3028_v15 = vmul.f32 0.6931472, %v8249_v13 }
 0x897   : > { %v3037_v18 = vmul.f32 0.6931472, %v8251_v14 }
 0x898   : > { %v3034_v24 = vsel %vm3033_vm13, %v3031_v16, %v3028_v15 }
 0x899   : > { %v3044_v42 = vadd.f32 %v3034_v24, %v3012_v17  ;;  %v3043_v4 = vsel %vm3042_vm15, %v3040_v19, %v3037_v18  ;;  %3173 = vmatpush.bf16.msrb.mxu0 %v7861_v11 }
 0x89a   : > { %v3045_v1 = vadd.f32 %v3043_v4, %v3013_v20 }
 0x89b   : > { %v3046_v27 = vsel %vm3014_vm6, %v3010_v56, %v3044_v42 }
 0x89c   : > { %v3047_v28 = vsel %vm3015_vm14, %v3011_v57, %v3045_v1  ;;  %8252 = vtanh.f32 %v3046_v27 }
 0x89d   : > { %8254 = vtanh.f32 %v3047_v28  ;;  %3174 = vmatpush.bf16.msrb.mxu0 %v7860_v12 }
 0x8a2   : > { %v8253_v29 = vpop.eup %8252 }
 0x8a3   : > { %v8255_v31 = vpop.eup %8254  ;;  %v3050_v32 = vmul.f32 %v8253_v29, %v3010_v56 }
 0x8a4   : > { %v3051_v33 = vmul.f32 %v8255_v31, %v3011_v57 }
 0x8a5   : > { %v3073_v34 = vadd.f32 %v3072_v23, %v3050_v32 }
 0x8a6   : > { %v3074_v35 = vadd.f32 %v3072_v23, %v3051_v33 }
 0x8a7   : > { %v3082_v36 = vrot.slane %v3073_v34, 6  ;;  %v3145_v34 = vperm.slane %v9054_v9, 3 }
 0x8a8   : > { %v3083_v3 = vrot.slane %v3074_v35, 6 }
 0x8a9   : > { %v3088_v37 = vsel %vm2301_vm0, 0.0, %v3082_v36 }
 0x8aa   : > { %v3084_v38 = vsel %vm2301_vm0, %v3082_v36, %v3083_v3  ;;  %v3089_v40 = vsel %vm2301_vm0, %v3083_v3, 0.0  ;;  %v3114_v41 = vrot.slane %v3088_v37, 3  ;;  %v3103_v63 = vrot.slane %v3088_v37, 2 }
 0x8ab   : > { %v3115_v44 = vrot.slane %v3084_v38, 3  ;;  %v3117_v47 = vrot.slane %v3089_v40, 3  ;;  %v3104_v30 = vrot.slane %v3084_v38, 2  ;;  %v3106_v48 = vrot.slane %v3089_v40, 2 }
 0x8ac   : > { %v3092_v49 = vrot.slane %v3088_v37, 1  ;;  %v3093_v50 = vrot.slane %v3084_v38, 1  ;;  %v3095_v51 = vrot.slane %v3089_v40, 1  ;;  %v3125_v60 = vrot.slane %v3088_v37, 4 }
 0x8ad   : > { %v3116_v52 = vsel %vm2336_vm3, %v3114_v41, %v3115_v44  ;;  %v3118_v53 = vsel %vm2336_vm3, %v3115_v44, %v3117_v47  ;;  %v3105_v54 = vsel %vm2324_vm1, %v3103_v63, %v3104_v30  ;;  %v3107_v55 = vsel %vm2324_vm1, %v3104_v30, %v3106_v48 }
 0x8ae   : > { %v8173_v56 = vpack.i.bf16 %v3118_v53, %v3116_v52  ;;  %v8168_v57 = vpack.i.bf16 %v3107_v55, %v3105_v54  ;;  %v3094_v25 = vsel %vm2312_vm2, %v3092_v49, %v3093_v50  ;;  %v3096_v58 = vsel %vm2312_vm2, %v3093_v50, %v3095_v51 }
 0x8af   : > { %v8163_v59 = vpack.i.bf16 %v3096_v58, %v3094_v25  ;;  %v3126_v0 = vrot.slane %v3084_v38, 4  ;;  %v3128_v2 = vrot.slane %v3089_v40, 4 }
 0x8b0   : > { %8174 = vrot.lane.b32.xlu1 %v8173_v56, %s8456_s10  ;;  %8169 = vrot.lane.b32.xlu0 %v8168_v57, %s8448_s2 }
 0x8b1   : > { %8164 = vrot.lane.b32.xlu2 %v8163_v59, %s8446_s28  ;;  %v3127_v5 = vsel %vm2200_vm4, %v3125_v60, %v3126_v0  ;;  %v3129_v61 = vsel %vm2200_vm4, %v3126_v0, %v3128_v2 }
 0x8b2   : > { %v8178_v6 = vpack.i.bf16 %v3129_v61, %v3127_v5 }
 0x8b9   : > { %8179 = vrot.lane.b32.xlu2 %v8178_v6, %s9825_s11 }
 0x90b   : > { %v8165_v62 = vpop.permute.xlu2 %8164 }
 0x90c   : > { %v8167_v13 = vunpack.i.h.bf16 %v8165_v62  ;;  %v8166_v14 = vunpack.i.l.bf16 %v8165_v62 }
 0x90e   : > { %v3137_v42 = vsel %vm2196_vm7, %v3084_v38, %v8167_v13  ;;  %v3136_v4 = vsel %vm2196_vm7, %v3088_v37, %v8166_v14  ;;  %v3263_v13 = vperm.slane %v9054_v9, 4 }
 0x913   : > { %v8180_v15 = vpop.permute.xlu2 %8179 }
 0x914   : > { %v8182_v1 = vunpack.i.h.bf16 %v8180_v15  ;;  %v8181_v26 = vunpack.i.l.bf16 %v8180_v15 }
 0x922   : > { %v8175_v16 = vpop.permute.xlu1 %8174  ;;  %v8170_v17 = vpop.permute.xlu0 %8169 }
 0x923   : > { %v8177_v18 = vunpack.i.h.bf16 %v8175_v16  ;;  %v8176_v19 = vunpack.i.l.bf16 %v8175_v16  ;;  %v8172_v20 = vunpack.i.h.bf16 %v8170_v17  ;;  %v8171_v24 = vunpack.i.l.bf16 %v8170_v17 }
 0x924   : > { %v3266_v16 = vperm.slane %v9054_v9, 5 }
 0x925   : > { %v3138_v27 = vsel %vm2366_vm11, %v3136_v4, %v8171_v24  ;;  %v3139_v28 = vsel %vm2366_vm11, %v3137_v42, %v8172_v20 }
 0x926   : > { %v3140_v22 = vsel %vm2621_vm9, %v3138_v27, %v8176_v19  ;;  %v3141_v29 = vsel %vm2621_vm9, %v3139_v28, %v8177_v18 }
 0x927   : > { %v3142_v31 = vsel %vm2255_vm8, %v3140_v22, %v8181_v26  ;;  %v3143_v23 = vsel %vm2255_vm8, %v3141_v29, %v8182_v1 }
 0x928   : > { %v3144_v32 = vpack.c.bf16 %v3143_v23, %v3142_v31 }
 0x92a   : > { %7178 = vmatmul.msk.bf16.vlgmr.msrb.gmra.mxu0 %vm2643_vm12, %v3144_v32  ;;  %v3313_v32 = vld [vmem:[%s9893_s0 + $0x8] sm:$0xf] }
 0x9a7   : > { %v3176_v33 = vpop.f32.mrf.mxu0 }
 0x9a8   : > { %v3177_v35 = vadd.f32 %v3176_v33, %v3145_v34  ;;  %v3364_v33 = vunpack.c.l.b16 %v3313_v32  ;;  %v3315_v32 = vld [vmem:[%s9895_s26] sm:$0xff]  ;;  %s9901_s26 = sld [smem:[#allocation16_spill]] }
 0x9aa   : > { %v3181_v37 = vsel %vm2196_vm7, %v3177_v35, 0.0 }
 0x9af   : > { %v3178_v36 = vpop.f32.mrf.mxu0 }
 0x9b0   : > { %v3179_v3 = vadd.f32 %v3178_v36, %v3145_v34 }
 0x9b2   : > { %v3182_v38 = vsel %vm2196_vm7, %v3179_v3, 0.0 }
 0x9b3   : > { %v3183_v40 = vadd.f32 %v3182_v38, %v3181_v37 }
 0x9b5   : > { %v3184_v41 = vrot.slane %v3183_v40, 4 }
 0x9b7   : > { %v3185_v63 = vadd.f32 %v3184_v41, %v3183_v40 }
 0x9b9   : > { %v3186_v44 = vrot.slane %v3185_v63, 2 }
 0x9bb   : > { %v3187_v47 = vadd.f32 %v3186_v44, %v3185_v63 }
 0x9bd   : > { %v3188_v30 = vrot.slane %v3187_v47, 1 }
 0x9bf   : > { %v3189_v48 = vadd.f32 %v3188_v30, %v3187_v47 }
 0x9c1   : > { %7179 = vmatmul.msk.f32.vlgmr.msrb.gmra.mxu1 %vm2196_vm7, %v3189_v48 }
 0xa3e   : > { %v3210_v49 = vpop.f32.mrf.mxu1 }
 0xa3f   : > { %v3213_v50 = vperm.slane %v3210_v49, 0 }
 0xa41   : > { %v3214_v51 = vsub.f32 %v3177_v35, %v3213_v50  ;;  %v3215_v52 = vsub.f32 %v3179_v3, %v3213_v50  ;;  %v3366_v3 = vpack.c.b16 %v3364_v33, %v3364_v33 }
 0xa43   : > { %v3216_v53 = vmul.f32 %v3214_v51, %v3214_v51  ;;  %v3217_v54 = vmul.f32 %v3215_v52, %v3215_v52  ;;  %v3372_v40 = vsel %vm2200_vm4, %v3366_v3, 0 }
 0xa44   : > { %3380 = vmatpush.bf16.msra.mxu1 %v3372_v40 }
 0xa45   : > { %v3218_v55 = vsel %vm2196_vm7, %v3216_v53, 0.0  ;;  %v3219_v56 = vsel %vm2196_vm7, %v3217_v54, 0.0 }
 0xa46   : > { %v3220_v57 = vadd.f32 %v3219_v56, %v3218_v55 }
 0xa48   : > { %v3221_v25 = vrot.slane %v3220_v57, 4 }
 0xa4a   : > { %v3222_v58 = vadd.f32 %v3221_v25, %v3220_v57 }
 0xa4c   : > { %v3223_v59 = vrot.slane %v3222_v58, 2 }
 0xa4e   : > { %v3224_v60 = vadd.f32 %v3223_v59, %v3222_v58 }
 0xa50   : > { %v3225_v0 = vrot.slane %v3224_v60, 1 }
 0xa52   : > { %v3226_v2 = vadd.f32 %v3225_v0, %v3224_v60 }
 0xa54   : > { %7180 = vmatmul.msk.f32.vlgmr.msra.gmra.mxu3 %vm2196_vm7, %v3226_v2 }
 0xad7   : > { %v3247_v5 = vpop.f32.mrf.mxu3 }
 0xad8   : > { %v3248_v61 = vadd.f32 1e-05, %v3247_v5 }
 0xada   : > { %8256 = vrsqrt.f32 %v3248_v61  ;;  %vm3256_vm13 = vweird.f32 %v3248_v61 }
 0xae0   : > { %v8257_v6 = vpop.eup %8256 }
 0xae1   : > { %v3251_v7 = vmul.f32 %v8257_v6, %v3248_v61  ;;  %vm3257_vm10 = vweird.f32 %v8257_v6 }
 0xae2   : > { %vm3258_vm15 = vmor %vm3256_vm13, %vm3257_vm10 }
 0xae3   : > { %v3252_v45 = vmul.f32 %v8257_v6, %v3251_v7 }
 0xae5   : > { %v3253_v46 = vmul.f32 0.5, %v3252_v45 }
 0xae7   : > { %v3254_v10 = vsub.f32 1.5, %v3253_v46 }
 0xae9   : > { %v3255_v11 = vmul.f32 %v8257_v6, %v3254_v10 }
 0xaeb   : > { %v3259_v12 = vsel %vm3258_vm15, %v8257_v6, %v3255_v11  ;;  %vm3318_vm15 = vcmask 1040384  }
 0xaec   : > { %v3260_v62 = vperm.slane %v3259_v12, 0 }
 0xaee   : > { %v3261_v14 = vmul.f32 %v3260_v62, %v3214_v51  ;;  %v3262_v15 = vmul.f32 %v3260_v62, %v3215_v52 }
 0xaf0   : > { %v3264_v17 = vmul.f32 %v3263_v13, %v3261_v14  ;;  %v3265_v18 = vmul.f32 %v3263_v13, %v3262_v15 }
 0xaf2   : > { %v3267_v19 = vadd.f32 %v3266_v16, %v3264_v17  ;;  %v3268_v20 = vadd.f32 %v3266_v16, %v3265_v18  ;;  %v7862_v16 = vld [vmem:[%s9893_s0] sm:$0xff]  ;;  %s9909_s0 = sld [smem:[#allocation26_spill]] }
 0xaf3   : > { %3381 = vmatpush.bf16.msra.mxu1 %v7862_v16 }
 0xaf4   : > { %v3275_v24 = vand.u32 2147483647, %v3267_v19  ;;  %v3276_v42 = vand.u32 2147483647, %v3268_v20  ;;  %v3269_v47 = vmax.f32 %v3267_v19, 0.0  ;;  %v3270_v49 = vmax.f32 %v3268_v20, 0.0 }
 0xaf5   : > { %vm3271_vm10 = vcmp.ne.f32.partialorder %v3267_v19, %v3267_v19  ;;  %vm3272_vm13 = vcmp.ne.f32.partialorder %v3268_v20, %v3268_v20 }
 0xaf6   : > { %v3277_v4 = vsub.f32 0.0, %v3275_v24  ;;  %v3278_v1 = vsub.f32 0.0, %v3276_v42 }
 0xaf8   : > { %v3279_v26 = vmul.f32 1.442695, %v3277_v4  ;;  %v3281_v27 = vmul.f32 1.442695, %v3278_v1 }
 0xafa   : > { %8258 = vpow2.f32 %v3279_v26 }
 0xafb   : > { %8260 = vpow2.f32 %v3281_v27 }
 0xb00   : > { %v8259_v28 = vpop.eup %8258 }
 0xb01   : > { %v8261_v22 = vpop.eup %8260  ;;  %v3283_v29 = vadd.f32 1.0, %v8259_v28  ;;  %v3286_v31 = vmul.f32 -0.5, %v8259_v28  ;;  %v3289_v35 = vand.u32 2147483647, %v8259_v28 }
 0xb02   : > { %v3292_v23 = vadd.f32 1.0, %v8261_v22  ;;  %v3295_v9 = vmul.f32 -0.5, %v8261_v22  ;;  %v3298_v37 = vand.u32 2147483647, %v8261_v22 }
 0xb03   : > { %8262 = vlog2.f32 %v3283_v29  ;;  %v3287_v34 = vadd.f32 1.0, %v3286_v31  ;;  %vm3290_vm6 = vcmp.lt.f32.partialorder %v3289_v35, 0.0004427343  ;;  %v8198_v29 = vld [vmem:[%s9894_s12] ss:$0 sm:$0xff]  ;;  %s9820_s12 = smov 64  }
 0xb04   : > { %8264 = vlog2.f32 %v3292_v23  ;;  %v3296_v36 = vadd.f32 1.0, %v3295_v9  ;;  %vm3299_vm14 = vcmp.lt.f32.partialorder %v3298_v37, 0.0004427343 }
 0xb05   : > { %v3288_v44 = vmul.f32 %v8259_v28, %v3287_v34 }
 0xb06   : > { %v3297_v48 = vmul.f32 %v8261_v22, %v3296_v36 }
 0xb09   : > { %v8263_v38 = vpop.eup %8262 }
 0xb0a   : > { %v8265_v41 = vpop.eup %8264  ;;  %v3285_v63 = vmul.f32 0.6931472, %v8263_v38 }
 0xb0b   : > { %v3294_v30 = vmul.f32 0.6931472, %v8265_v41 }
 0xb0c   : > { %v3291_v50 = vsel %vm3290_vm6, %v3288_v44, %v3285_v63 }
 0xb0d   : > { %v3300_v51 = vsel %vm3299_vm14, %v3297_v48, %v3294_v30  ;;  %v3301_v52 = vadd.f32 %v3291_v50, %v3269_v47 }
 0xb0e   : > { %v3302_v53 = vadd.f32 %v3300_v51, %v3270_v49  ;;  %v3418_v51 = vld [vmem:[%s9896_s1 + $0x10] sm:$0xf] }
 0xb0f   : > { %v3303_v54 = vsel %vm3271_vm10, %v3267_v19, %v3301_v52  ;;  %v3465_v52 = vunpack.c.l.b16 %v3418_v51 }
 0xb10   : > { %v3304_v55 = vsel %vm3272_vm13, %v3268_v20, %v3302_v53  ;;  %8266 = vtanh.f32 %v3303_v54  ;;  %vm3654_vm13 = vcmask 392192  }
 0xb11   : > { %8268 = vtanh.f32 %v3304_v55  ;;  %v3468_v53 = vpack.c.b16 %v3465_v52, %v3465_v52  ;;  %v7864_v55 = vld [vmem:[%s9896_s1 + $0x8] sm:$0xff] }
 0xb13   : > { %v3475_v54 = vsel %vm2200_vm4, %v3468_v53, 0 }
 0xb14   : > { %3482 = vmatpush.bf16.msrb.mxu3 %v3475_v54 }
 0xb16   : > { %v8267_v56 = vpop.eup %8266 }
 0xb17   : > { %v8269_v57 = vpop.eup %8268  ;;  %v3307_v25 = vmul.f32 %v8267_v56, %v3267_v19  ;;  %v7863_v56 = vld [vmem:[%s9896_s1] sm:$0xff]  ;;  %s9912_s1 = sld [smem:[#allocation25_spill]] }
 0xb18   : > { %v3308_v58 = vmul.f32 %v8269_v57, %v3268_v20  ;;  %3483 = vmatpush.bf16.msrb.mxu3 %v7864_v55 }
 0xb19   : > { %v3309_v59 = vadd.f32 %v3307_v25, %v9016_v8 }
 0xb1a   : > { %v3310_v60 = vadd.f32 %v3308_v58, %v9018_v43 }
 0xb1b   : > { %v3319_v0 = vrot.slane %v3309_v59, 7 }
 0xb1c   : > { %v3320_v2 = vrot.slane %v3310_v60, 7  ;;  %3484 = vmatpush.bf16.msrb.mxu3 %v7863_v56 }
 0xb1d   : > { %v3325_v5 = vsel %vm3318_vm15, 0.0, %v3319_v0 }
 0xb1e   : > { %v3321_v61 = vsel %vm3318_vm15, %v3319_v0, %v3320_v2  ;;  %v3326_v6 = vsel %vm3318_vm15, %v3320_v2, 0.0  ;;  %v3340_v7 = vrot.slane %v3325_v5, 2  ;;  %v3329_v45 = vrot.slane %v3325_v5, 1 }
 0xb1f   : > { %v3341_v46 = vrot.slane %v3321_v61, 2  ;;  %v3343_v10 = vrot.slane %v3326_v6, 2  ;;  %v3330_v11 = vrot.slane %v3321_v61, 1  ;;  %v3332_v12 = vrot.slane %v3326_v6, 1  ;;  %v9153_v6 = vld [vmem:[%s9897_s7 + $0x8] sm:$0xff] }
 0xb20   : > { %3514 = vmatpush.msra.mxu0 %v9153_v6  ;;  %3764 = vmatpush.msra.mxu3 %v9153_v6 }
 0xb21   : > { %v3342_v8 = vsel %vm2324_vm1, %v3340_v7, %v3341_v46  ;;  %v3344_v43 = vsel %vm2324_vm1, %v3341_v46, %v3343_v10  ;;  %v3331_v62 = vsel %vm2312_vm2, %v3329_v45, %v3330_v11  ;;  %v3333_v13 = vsel %vm2312_vm2, %v3330_v11, %v3332_v12  ;;  %v9156_v7 = vld [vmem:[%s9897_s7] sm:$0xff] }
 0xb22   : > { %v8188_v14 = vpack.i.bf16 %v3344_v43, %v3342_v8  ;;  %v8183_v15 = vpack.i.bf16 %v3333_v13, %v3331_v62  ;;  %3515 = vmatpush.msra.mxu0 %v9156_v7  ;;  %3765 = vmatpush.msra.mxu3 %v9156_v7 }
 0xb24   : > { %8189 = vrot.lane.b32.xlu1 %v8188_v14, %s8448_s2  ;;  %8184 = vrot.lane.b32.xlu0 %v8183_v15, %s8446_s28 }
 0xb96   : > { %v8190_v17 = vpop.permute.xlu1 %8189  ;;  %v8185_v18 = vpop.permute.xlu0 %8184 }
 0xb97   : > { %v8192_v19 = vunpack.i.h.bf16 %v8190_v17  ;;  %v8191_v20 = vunpack.i.l.bf16 %v8190_v17  ;;  %v8187_v24 = vunpack.i.h.bf16 %v8185_v18  ;;  %v8186_v42 = vunpack.i.l.bf16 %v8185_v18 }
 0xb99   : > { %v3352_v4 = vsel %vm2196_vm7, %v3321_v61, %v8187_v24  ;;  %v3351_v1 = vsel %vm2196_vm7, %v3325_v5, %v8186_v42 }
 0xb9a   : > { %v3354_v26 = vsel %vm2366_vm11, %v3352_v4, %v8192_v19  ;;  %v3353_v27 = vsel %vm2366_vm11, %v3351_v1, %v8191_v20 }
 0xb9b   : > { %v3355_v28 = vpack.c.bf16 %v3354_v26, %v3353_v27 }
 0xb9d   : > { %7185 = vmatmul.msk.bf16.vlgmr.msra.gmra.mxu1 %vm2621_vm9, %v3355_v28 }
 0xc1a   : > { %v3383_v22 = vpop.f32.mrf.mxu1 }
 0xc1b   : > { %v3384_v9 = vadd.f32 %v8198_v29, %v3383_v22 }
 0xc22   : > { %v3385_v31 = vpop.f32.mrf.mxu1 }
 0xc23   : > { %v3386_v23 = vadd.f32 %v8198_v29, %v3385_v31 }
 0xc25   : > { %3405 = vmatpush.msra.mxu2 %v3386_v23 }
 0xc27   : > { %3406 = vmatpush.msra.mxu2 %v3384_v9 }
 0xc28   : > { %7186 = vmatmul.msk.f32.vlgmr.msra.gmra.mxu2 %vm2366_vm11, %v3315_v32 }
 0xc29   : > { %3547 = vmatpush.msrb.mxu2 %v9153_v6 }
 0xc2b   : > { %3548 = vmatpush.msrb.mxu2 %v9156_v7 }
 0xc2d   : > { %3731 = vmatpush.msra.mxu2 %v9153_v6 }
 0xc2f   : > { %3732 = vmatpush.msra.mxu2 %v9156_v7 }
 0xcab   : > { %v9130_v33 = vpop.f32.mrf.mxu2 }
 0xcac   : > { %v3420_v34 = vrot.slane %v9130_v33, 6 }
 0xcae   : > { %v3422_v35 = vsel %vm2301_vm0, 0.0, %v3420_v34  ;;  %v3423_v36 = vsel %vm2301_vm0, %v3420_v34, 0.0 }
 0xcaf   : > { %v3432_v3 = vrot.slane %v3422_v35, 2  ;;  %v3433_v37 = vrot.slane %v3423_v36, 2  ;;  %v3426_v38 = vrot.slane %v3422_v35, 1  ;;  %v3427_v40 = vrot.slane %v3423_v36, 1 }
 0xcb0   : > { %v3438_v41 = vrot.slane %v3422_v35, 3  ;;  %v3439_v63 = vrot.slane %v3423_v36, 3  ;;  %v3444_v48 = vrot.slane %v3422_v35, 4  ;;  %v3445_v49 = vrot.slane %v3423_v36, 4 }
 0xcb1   : > { %v3434_v44 = vsel %vm2324_vm1, %v3432_v3, %v3433_v37  ;;  %v3428_v47 = vsel %vm2312_vm2, %v3426_v38, %v3427_v40 }
 0xcb2   : > { %3435 = vrot.lane.b32.xlu0 %v3434_v44, %s8448_s2  ;;  %3429 = vrot.lane.b32.xlu2 %v3428_v47, %s8446_s28  ;;  %v3440_v30 = vsel %vm2336_vm3, %v3438_v41, %v3439_v63  ;;  %v3446_v50 = vsel %vm2200_vm4, %v3444_v48, %v3445_v49  ;;  %s9898_s28 = sld [smem:[#allocation15_spill]] }
 0xcb3   : > { %3441 = vrot.lane.b32.xlu1 %v3440_v30, %s8456_s10  ;;  %s9899_s10 = sld [smem:[#allocation17_spill]] }
 0xcb8   : > { %v3589_v45 = vld [vmem:[%s9898_s28] sm:$0xf]  ;;  %s9902_s28 = sld [smem:[#allocation18_spill]] }
 0xcb9   : > { %v3594_v46 = vsel %vm2200_vm4, %v3589_v45, 0  ;;  %v9171_v10 = vld [vmem:[%s9899_s10] sm:$0xff]  ;;  %s9903_s10 = sld [smem:[#allocation20_spill]] }
 0xcba   : > { %3447 = vrot.lane.b32.xlu2 %v3446_v50, %s9825_s11  ;;  %3603 = vmatpush.bf16.msrb.mxu0 %v3594_v46  ;;  %v3455_v11 = vperm.slane %v9171_v10, 0  ;;  %v3565_v63 = vperm.slane %v9171_v10, 1  ;;  %v3567_v47 = vperm.slane %v9171_v10, 2 }
 0xd0c   : > { %v3430_v57 = vpop.permute.xlu2 %3429 }
 0xd0d   : > { %v3450_v25 = vsel %vm2196_vm7, %v3422_v35, %v3430_v57 }
 0xd14   : > { %v3448_v0 = vpop.permute.xlu2 %3447 }
 0xd24   : > { %v3436_v58 = vpop.permute.xlu0 %3435 }
 0xd25   : > { %v3451_v59 = vsel %vm2366_vm11, %v3450_v25, %v3436_v58  ;;  %v3442_v60 = vpop.permute.xlu1 %3441 }
 0xd26   : > { %v3452_v2 = vsel %vm2621_vm9, %v3451_v59, %v3442_v60 }
 0xd27   : > { %v3453_v5 = vsel %vm2255_vm8, %v3452_v2, %v3448_v0  ;;  %v3591_v2 = vrot.slane %v9171_v10, 6 }
 0xd28   : > { %v3454_v61 = vpack.c.bf16 %v3453_v5, %v3453_v5 }
 0xd2a   : > { %7195 = vmatmul.msk.bf16.vlgmr.msrb.gmra.mxu3 %vm2643_vm12, %v3454_v61 }
 0xd2b   : > { %3947 = vmatpush.msrb.mxu3 %v9153_v6 }
 0xd2d   : > { %3948 = vmatpush.msrb.mxu3 %v9156_v7 }
 0xdad   : > { %v3486_v12 = vpop.f32.mrf.mxu3 }
 0xdae   : > { %v3487_v8 = vadd.f32 %v3486_v12, %v3455_v11 }
 0xdb0   : > { %v3490_v43 = vsel %vm2366_vm11, %v3487_v8, 0.0 }
 0xdb1   : > { %v3491_v62 = vrot.slane %v3490_v43, 4 }
 0xdb3   : > { %v3492_v13 = vadd.f32 %v3491_v62, %v3490_v43 }
 0xdb5   : > { %v3493_v14 = vrot.slane %v3492_v13, 2  ;;  %v3488_v15 = vpop.f32.mrf.mxu3 }
 0xdb7   : > { %v3494_v16 = vadd.f32 %v3493_v14, %v3492_v13 }
 0xdb9   : > { %v3495_v17 = vrot.slane %v3494_v16, 1 }
 0xdbb   : > { %v3496_v18 = vadd.f32 %v3495_v17, %v3494_v16 }
 0xdbd   : > { %7196 = vmatmul.msk.f32.vlgmr.msra.gmra.mxu0 %vm2366_vm11, %v3496_v18 }
 0xdc5   : > { %7198 = vmatmul.msk.bf16.vlgmr.msrb.gmra.mxu0 %vm2196_vm7, %v8962_v39 }
 0xe3a   : > { %v3517_v19 = vpop.f32.mrf.mxu0 }
 0xe3b   : > { %v3520_v20 = vperm.slane %v3517_v19, 0 }
 0xe3d   : > { %v3521_v24 = vsub.f32 %v3487_v8, %v3520_v20 }
 0xe3f   : > { %v3522_v42 = vmul.f32 %v3521_v24, %v3521_v24 }
 0xe41   : > { %v3523_v4 = vsel %vm2366_vm11, %v3522_v42, 0.0 }
 0xe42   : > { %v3524_v1 = vrot.slane %v3523_v4, 4  ;;  %v3605_v26 = vpop.f32.mrf.mxu0 }
 0xe43   : > { %v3606_v61 = vadd.f32 %v3605_v26, %v3591_v2  ;;  %v7869_v26 = vld [vmem:[%s9900_s16 + $0x20] sm:$0xff] }
 0xe44   : > { %v3525_v27 = vadd.f32 %v3524_v1, %v3523_v4  ;;  %3697 = vmatpush.bf16.msrb.mxu1 %v7869_v26 }
 0xe45   : > { %v3609_v46 = vperm.slane %v3606_v61, 0 }
 0xe46   : > { %v3526_v28 = vrot.slane %v3525_v27, 2 }
 0xe48   : > { %v3527_v22 = vadd.f32 %v3526_v28, %v3525_v27  ;;  %v7868_v27 = vld [vmem:[%s9900_s16 + $0x18] sm:$0xff]  ;;  %v7867_v28 = vld [vmem:[%s9900_s16 + $0x10] sm:$0xff] }
 0xe49   : > { %3698 = vmatpush.bf16.msrb.mxu1 %v7868_v27 }
 0xe4a   : > { %v3528_v29 = vrot.slane %v3527_v22, 1  ;;  %v3607_v31 = vpop.f32.mrf.mxu0 }
 0xe4c   : > { %v3529_v23 = vadd.f32 %v3528_v29, %v3527_v22  ;;  %v7866_v22 = vld [vmem:[%s9900_s16 + $0x8] sm:$0xff]  ;;  %v7865_v29 = vld [vmem:[%s9900_s16] sm:$0xff] }
 0xe4d   : > { %3699 = vmatpush.bf16.msrb.mxu1 %v7867_v28 }
 0xe4e   : > { %7197 = vmatmul.msk.f32.vlgmr.msrb.gmra.mxu2 %vm2366_vm11, %v3529_v23 }
 0xe51   : > { %3700 = vmatpush.bf16.msrb.mxu1 %v7866_v22 }
 0xe55   : > { %3701 = vmatpush.bf16.msrb.mxu1 %v7865_v29 }
 0xe59   : > { %3980 = vmatpush.msra.mxu1 %v9153_v6 }
 0xe5b   : > { %3981 = vmatpush.msra.mxu1 %v9156_v7 }
 0xed1   : > { %v3550_v9 = vpop.f32.mrf.mxu2 }
 0xed2   : > { %v3551_v32 = vadd.f32 1e-05, %v3550_v9 }
 0xed4   : > { %8270 = vrsqrt.f32 %v3551_v32  ;;  %vm3559_vm12 = vweird.f32 %v3551_v32 }
 0xeda   : > { %v8271_v34 = vpop.eup %8270 }
 0xedb   : > { %v3554_v35 = vmul.f32 %v8271_v34, %v3551_v32  ;;  %vm3560_vm9 = vweird.f32 %v8271_v34 }
 0xedc   : > { %vm3561_vm6 = vmor %vm3559_vm12, %vm3560_vm9  ;;  %vm3656_vm9 = vcmask 523264   ;;  %vm3690_vm12 = vcmask 654336  }
 0xedd   : > { %v3555_v36 = vmul.f32 %v8271_v34, %v3554_v35 }
 0xedf   : > { %v3556_v3 = vmul.f32 0.5, %v3555_v36 }
 0xee1   : > { %v3557_v37 = vsub.f32 1.5, %v3556_v3 }
 0xee3   : > { %v3558_v38 = vmul.f32 %v8271_v34, %v3557_v37 }
 0xee5   : > { %v3562_v40 = vsel %vm3561_vm6, %v8271_v34, %v3558_v38  ;;  %v3806_v38 = vld [vmem:[%s9901_s26] sm:$0xf]  ;;  %s9904_s26 = sld [smem:[#allocation21_spill]] }
 0xee6   : > { %v3563_v41 = vperm.slane %v3562_v40, 0  ;;  %v3813_v40 = vsel %vm2200_vm4, %v3806_v38, 0 }
 0xee7   : > { %3822 = vmatpush.bf16.msrb.mxu2 %v3813_v40 }
 0xee8   : > { %v3564_v44 = vmul.f32 %v3563_v41, %v3521_v24  ;;  %v3659_v41 = vperm.slane %v9171_v10, 3 }
 0xeea   : > { %v3566_v30 = vmul.f32 %v3565_v63, %v3564_v44 }
 0xeec   : > { %v3568_v48 = vadd.f32 %v3567_v47, %v3566_v30 }
 0xeee   : > { %v3572_v49 = vand.u32 2147483647, %v3568_v48  ;;  %v3569_v59 = vmax.f32 %v3568_v48, 0.0  ;;  %vm3570_vm10 = vcmp.ne.f32.partialorder %v3568_v48, %v3568_v48 }
 0xef0   : > { %v3573_v50 = vsub.f32 0.0, %v3572_v49 }
 0xef2   : > { %v3574_v51 = vmul.f32 1.442695, %v3573_v50 }
 0xef4   : > { %8272 = vpow2.f32 %v3574_v51 }
 0xefa   : > { %v8273_v52 = vpop.eup %8272 }
 0xefb   : > { %v3576_v53 = vadd.f32 1.0, %v8273_v52  ;;  %v3579_v54 = vmul.f32 -0.5, %v8273_v52  ;;  %v3582_v56 = vand.u32 2147483647, %v8273_v52 }
 0xefd   : > { %8274 = vlog2.f32 %v3576_v53  ;;  %v3580_v55 = vadd.f32 1.0, %v3579_v54  ;;  %vm3583_vm14 = vcmp.lt.f32.partialorder %v3582_v56, 0.0004427343  ;;  %v3807_v54 = vpack.c.bf16 %v9130_v33, %v9130_v33 }
 0xeff   : > { %v3581_v58 = vmul.f32 %v8273_v52, %v3580_v55 }
 0xf03   : > { %v8275_v57 = vpop.eup %8274 }
 0xf04   : > { %v3578_v25 = vmul.f32 0.6931472, %v8275_v57 }
 0xf06   : > { %v3584_v60 = vsel %vm3583_vm14, %v3581_v58, %v3578_v25 }
 0xf07   : > { %v3585_v0 = vadd.f32 %v3584_v60, %v3569_v59 }
 0xf09   : > { %v3586_v5 = vsel %vm3570_vm10, %v3568_v48, %v3585_v0 }
 0xf0a   : > { %8276 = vtanh.f32 %v3586_v5 }
 0xf10   : > { %v8277_v45 = vpop.eup %8276 }
 0xf11   : > { %v3588_v11 = vmul.f32 %v8277_v45, %v3568_v48 }
 0xf13   : > { %v3610_v12 = vadd.f32 %v3609_v46, %v3588_v11 }
 0xf15   : > { %v3622_v8 = vrot.slane %v3610_v12, 6 }
 0xf17   : > { %v3624_v43 = vsel %vm2301_vm0, 0.0, %v3622_v8  ;;  %v3625_v62 = vsel %vm2301_vm0, %v3622_v8, 0.0 }
 0xf18   : > { %v3640_v13 = vrot.slane %v3624_v43, 3  ;;  %v3641_v14 = vrot.slane %v3625_v62, 3  ;;  %v3634_v15 = vrot.slane %v3624_v43, 2  ;;  %v3635_v16 = vrot.slane %v3625_v62, 2 }
 0xf19   : > { %v3628_v17 = vrot.slane %v3624_v43, 1  ;;  %v3629_v18 = vrot.slane %v3625_v62, 1  ;;  %v3646_v42 = vrot.slane %v3624_v43, 4  ;;  %v3647_v4 = vrot.slane %v3625_v62, 4 }
 0xf1a   : > { %v3642_v19 = vsel %vm2336_vm3, %v3640_v13, %v3641_v14  ;;  %v3636_v20 = vsel %vm2324_vm1, %v3634_v15, %v3635_v16 }
 0xf1b   : > { %3643 = vrot.lane.b32.xlu2 %v3642_v19, %s9822_s15  ;;  %3637 = vrot.lane.b32.xlu1 %v3636_v20, %s9825_s11  ;;  %v3630_v24 = vsel %vm2312_vm2, %v3628_v17, %v3629_v18  ;;  %v3648_v1 = vsel %vm2200_vm4, %v3646_v42, %v3647_v4  ;;  %v3782_v17 = vperm.slane %v9171_v10, 4  ;;  %v3784_v19 = vperm.slane %v9171_v10, 5 }
 0xf1c   : > { %3631 = vrot.lane.b32.xlu0 %v3630_v24, %s8448_s2 }
 0xf24   : > { %3649 = vrot.lane.b32.xlu0 %v3648_v1, %s9820_s12 }
 0xf75   : > { %v3644_v34 = vpop.permute.xlu2 %3643 }
 0xf8d   : > { %v3638_v23 = vpop.permute.xlu1 %3637 }
 0xf8e   : > { %v3632_v31 = vpop.permute.xlu0 %3631 }
 0xf8f   : > { %v3652_v9 = vsel %vm2366_vm11, %v3624_v43, %v3632_v31 }
 0xf90   : > { %v3653_v32 = vsel %vm2255_vm8, %v3652_v9, %v3638_v23 }
 0xf91   : > { %v3655_v35 = vsel %vm3654_vm13, %v3653_v32, %v3644_v34 }
 0xf96   : > { %v3650_v36 = vpop.permute.xlu0 %3649 }
 0xf97   : > { %v3657_v3 = vsel %vm3656_vm9, %v3655_v35, %v3650_v36 }
 0xf98   : > { %v3658_v37 = vpack.c.bf16 %v3657_v3, %v3657_v3  ;;  %v3808_v3 = vperm.slane %v9171_v10, 7 }
 0xf9a   : > { %7219 = vmatmul.msk.bf16.vlgmr.msrb.gmra.mxu1 %vm3690_vm12, %v3658_v37 }
 0xf9b   : > { %4161 = vmatpush.msrb.mxu1 %v9153_v6 }
 0xf9d   : > { %4162 = vmatpush.msrb.mxu1 %v9156_v7 }
0x1017   : > { %v3703_v63 = vpop.f32.mrf.mxu1 }
0x1018   : > { %v3704_v44 = vadd.f32 %v3703_v63, %v3659_v41 }
0x101a   : > { %v3707_v47 = vsel %vm2366_vm11, %v3704_v44, 0.0 }
0x101b   : > { %v3708_v30 = vrot.slane %v3707_v47, 4 }
0x101d   : > { %v3709_v48 = vadd.f32 %v3708_v30, %v3707_v47 }
0x101f   : > { %v3710_v49 = vrot.slane %v3709_v48, 2  ;;  %v3705_v50 = vpop.f32.mrf.mxu1 }
0x1021   : > { %v3711_v51 = vadd.f32 %v3710_v49, %v3709_v48 }
0x1023   : > { %v3712_v52 = vrot.slane %v3711_v51, 1 }
0x1025   : > { %v3713_v53 = vadd.f32 %v3712_v52, %v3711_v51 }
0x1027   : > { %7220 = vmatmul.msk.f32.vlgmr.msra.gmra.mxu2 %vm2366_vm11, %v3713_v53 }
0x102f   : > { %7222 = vmatmul.msk.bf16.vlgmr.msrb.gmra.mxu2 %vm2196_vm7, %v3807_v54 }
0x10aa   : > { %v3734_v55 = vpop.f32.mrf.mxu2 }
0x10ab   : > { %v3737_v56 = vperm.slane %v3734_v55, 0 }
0x10ad   : > { %v3738_v57 = vsub.f32 %v3704_v44, %v3737_v56 }
0x10af   : > { %v3739_v25 = vmul.f32 %v3738_v57, %v3738_v57 }
0x10b1   : > { %v3740_v58 = vsel %vm2366_vm11, %v3739_v25, 0.0  ;;  %v7874_v25 = vld [vmem:[%s9902_s28 + $0x20] sm:$0xff] }
0x10b2   : > { %v3741_v59 = vrot.slane %v3740_v58, 4  ;;  %v3824_v60 = vpop.f32.mrf.mxu2  ;;  %3913 = vmatpush.bf16.msra.mxu0 %v7874_v25 }
0x10b3   : > { %v3825_v38 = vadd.f32 %v3824_v60, %v3808_v3  ;;  %v7871_v60 = vld [vmem:[%s9902_s28 + $0x8] sm:$0xff] }
0x10b4   : > { %v3742_v0 = vadd.f32 %v3741_v59, %v3740_v58  ;;  %v7873_v58 = vld [vmem:[%s9902_s28 + $0x18] sm:$0xff]  ;;  %v7872_v59 = vld [vmem:[%s9902_s28 + $0x10] sm:$0xff] }
0x10b6   : > { %v3743_v2 = vrot.slane %v3742_v0, 2  ;;  %3914 = vmatpush.bf16.msra.mxu0 %v7873_v58 }
0x10b8   : > { %v3744_v5 = vadd.f32 %v3743_v2, %v3742_v0  ;;  %v7870_v0 = vld [vmem:[%s9902_s28] sm:$0xff] }
0x10ba   : > { %v3745_v61 = vrot.slane %v3744_v5, 1  ;;  %v3826_v45 = vpop.f32.mrf.mxu2  ;;  %3915 = vmatpush.bf16.msra.mxu0 %v7872_v59 }
0x10bc   : > { %v3746_v46 = vadd.f32 %v3745_v61, %v3744_v5 }
0x10be   : > { %7221 = vmatmul.msk.f32.vlgmr.msra.gmra.mxu3 %vm2366_vm11, %v3746_v46  ;;  %3916 = vmatpush.bf16.msra.mxu0 %v7871_v60 }
0x10c2   : > { %3917 = vmatpush.bf16.msra.mxu0 %v7870_v0 }
0x10c6   : > { %4194 = vmatpush.msrb.mxu0 %v9153_v6 }
0x10c8   : > { %4195 = vmatpush.msrb.mxu0 %v9156_v7  ;;  %v9248_v7 = vld [vmem:[%s9904_s26] sm:$0xff]  ;;  %s9906_s26 = sld [smem:[#allocation22_spill]] }
0x1141   : > { %v3767_v11 = vpop.f32.mrf.mxu3 }
0x1142   : > { %v3768_v33 = vadd.f32 1e-05, %v3767_v11 }
0x1144   : > { %8278 = vrsqrt.f32 %v3768_v33  ;;  %vm3776_vm14 = vweird.f32 %v3768_v33 }
0x114a   : > { %v8279_v12 = vpop.eup %8278 }
0x114b   : > { %v3771_v8 = vmul.f32 %v8279_v12, %v3768_v33  ;;  %vm3777_vm6 = vweird.f32 %v8279_v12 }
0x114c   : > { %vm3778_vm10 = vmor %vm3776_vm14, %vm3777_vm6 }
0x114d   : > { %v3772_v43 = vmul.f32 %v8279_v12, %v3771_v8 }
0x114f   : > { %v3773_v62 = vmul.f32 0.5, %v3772_v43  ;;  %v4022_v43 = vld [vmem:[%s9903_s10] sm:$0xf]  ;;  %s9905_s10 = sld [smem:[#allocation19_spill]] }
0x1150   : > { %v4027_v6 = vsel %vm2200_vm4, %v4022_v43, 0 }
0x1151   : > { %v3774_v13 = vsub.f32 1.5, %v3773_v62  ;;  %4036 = vmatpush.bf16.msra.mxu3 %v4027_v6  ;;  %v3876_v62 = vperm.slane %v9248_v7, 0 }
0x1153   : > { %v3775_v14 = vmul.f32 %v8279_v12, %v3774_v13 }
0x1155   : > { %v3779_v15 = vsel %vm3778_vm10, %v8279_v12, %v3775_v14 }
0x1156   : > { %v3780_v16 = vperm.slane %v3779_v15, 0 }
0x1158   : > { %v3781_v18 = vmul.f32 %v3780_v16, %v3738_v57 }
0x115a   : > { %v3783_v20 = vmul.f32 %v3782_v17, %v3781_v18 }
0x115c   : > { %v3785_v24 = vadd.f32 %v3784_v19, %v3783_v20 }
0x115e   : > { %v3789_v42 = vand.u32 2147483647, %v3785_v24  ;;  %v3786_v32 = vmax.f32 %v3785_v24, 0.0  ;;  %vm3787_vm14 = vcmp.ne.f32.partialorder %v3785_v24, %v3785_v24 }
0x1160   : > { %v3790_v4 = vsub.f32 0.0, %v3789_v42 }
0x1162   : > { %v3791_v1 = vmul.f32 1.442695, %v3790_v4 }
0x1164   : > { %8280 = vpow2.f32 %v3791_v1 }
0x116a   : > { %v8281_v26 = vpop.eup %8280 }
0x116b   : > { %v3793_v27 = vadd.f32 1.0, %v8281_v26  ;;  %v3796_v28 = vmul.f32 -0.5, %v8281_v26  ;;  %v3799_v29 = vand.u32 2147483647, %v8281_v26 }
0x116d   : > { %8282 = vlog2.f32 %v3793_v27  ;;  %v3797_v22 = vadd.f32 1.0, %v3796_v28  ;;  %vm3800_vm6 = vcmp.lt.f32.partialorder %v3799_v29, 0.0004427343 }
0x116f   : > { %v3798_v9 = vmul.f32 %v8281_v26, %v3797_v22 }
0x1173   : > { %v8283_v31 = vpop.eup %8282 }
0x1174   : > { %v3795_v23 = vmul.f32 0.6931472, %v8283_v31 }
0x1176   : > { %v3801_v34 = vsel %vm3800_vm6, %v3798_v9, %v3795_v23 }
0x1177   : > { %v3802_v35 = vadd.f32 %v3801_v34, %v3786_v32 }
0x1179   : > { %v3803_v36 = vsel %vm3787_vm14, %v3785_v24, %v3802_v35 }
0x117a   : > { %8284 = vtanh.f32 %v3803_v36 }
0x1180   : > { %v8285_v37 = vpop.eup %8284 }
0x1181   : > { %v3805_v40 = vmul.f32 %v8285_v37, %v3785_v24 }
0x1183   : > { %v9220_v41 = vadd.f32 %v3825_v38, %v3805_v40 }
0x1185   : > { %v3841_v63 = vrot.slane %v9220_v41, 6 }
0x1187   : > { %v3843_v44 = vsel %vm2301_vm0, 0.0, %v3841_v63  ;;  %v3844_v47 = vsel %vm2301_vm0, %v3841_v63, 0.0 }
0x1188   : > { %v3859_v30 = vrot.slane %v3843_v44, 3  ;;  %v3860_v48 = vrot.slane %v3844_v47, 3  ;;  %v3853_v49 = vrot.slane %v3843_v44, 2  ;;  %v3854_v50 = vrot.slane %v3844_v47, 2 }
0x1189   : > { %v3847_v51 = vrot.slane %v3843_v44, 1  ;;  %v3848_v10 = vrot.slane %v3844_v47, 1  ;;  %v3865_v55 = vrot.slane %v3843_v44, 4  ;;  %v3866_v56 = vrot.slane %v3844_v47, 4 }
0x118a   : > { %v3861_v52 = vsel %vm2336_vm3, %v3859_v30, %v3860_v48  ;;  %v3855_v53 = vsel %vm2324_vm1, %v3853_v49, %v3854_v50  ;;  %v3998_v49 = vperm.slane %v9248_v7, 1 }
0x118b   : > { %3862 = vrot.lane.b32.xlu0 %v3861_v52, %s9822_s15  ;;  %3856 = vrot.lane.b32.xlu2 %v3855_v53, %s9825_s11  ;;  %v3849_v54 = vsel %vm2312_vm2, %v3847_v51, %v3848_v10  ;;  %v3867_v57 = vsel %vm2200_vm4, %v3865_v55, %v3866_v56  ;;  %v4000_v51 = vperm.slane %v9248_v7, 2 }
0x118c   : > { %3850 = vrot.lane.b32.xlu1 %v3849_v54, %s8448_s2 }
0x1194   : > { %3868 = vrot.lane.b32.xlu1 %v3867_v57, %s9820_s12 }
0x11e5   : > { %v3857_v61 = vpop.permute.xlu2 %3856 }
0x11fd   : > { %v3863_v46 = vpop.permute.xlu0 %3862 }
0x11fe   : > { %v3851_v2 = vpop.permute.xlu1 %3850 }
0x11ff   : > { %v3871_v5 = vsel %vm2366_vm11, %v3843_v44, %v3851_v2 }
0x1200   : > { %v3872_v45 = vsel %vm2255_vm8, %v3871_v5, %v3857_v61 }
0x1201   : > { %v3873_v11 = vsel %vm3654_vm13, %v3872_v45, %v3863_v46  ;;  %v4024_v46 = vrot.slane %v9248_v7, 6 }
0x1206   : > { %v3869_v33 = vpop.permute.xlu1 %3868 }
0x1207   : > { %v3874_v12 = vsel %vm3656_vm9, %v3873_v11, %v3869_v33 }
0x1208   : > { %v3875_v8 = vpack.c.bf16 %v3874_v12, %v3874_v12 }
0x120a   : > { %7243 = vmatmul.msk.bf16.vlgmr.msra.gmra.mxu0 %vm3690_vm12, %v3875_v8 }
0x1287   : > { %v3919_v13 = vpop.f32.mrf.mxu0 }
0x1288   : > { %v3920_v14 = vadd.f32 %v3919_v13, %v3876_v62 }
0x128a   : > { %v3923_v15 = vsel %vm2366_vm11, %v3920_v14, 0.0 }
0x128b   : > { %v3924_v16 = vrot.slane %v3923_v15, 4 }
0x128d   : > { %v3925_v17 = vadd.f32 %v3924_v16, %v3923_v15 }
0x128f   : > { %v3926_v18 = vrot.slane %v3925_v17, 2  ;;  %v3921_v19 = vpop.f32.mrf.mxu0 }
0x1291   : > { %v3927_v20 = vadd.f32 %v3926_v18, %v3925_v17 }
0x1293   : > { %v3928_v24 = vrot.slane %v3927_v20, 1 }
0x1295   : > { %v3929_v42 = vadd.f32 %v3928_v24, %v3927_v20 }
0x1297   : > { %7244 = vmatmul.msk.f32.vlgmr.msrb.gmra.mxu3 %vm2366_vm11, %v3929_v42 }
0x129f   : > { %7246 = vmatmul.msk.bf16.vlgmr.msra.gmra.mxu3 %vm2196_vm7, %v8962_v39 }
0x131a   : > { %v3950_v4 = vpop.f32.mrf.mxu3 }
0x131b   : > { %v3953_v1 = vperm.slane %v3950_v4, 0 }
0x131d   : > { %v3954_v26 = vsub.f32 %v3920_v14, %v3953_v1 }
0x131f   : > { %v3955_v27 = vmul.f32 %v3954_v26, %v3954_v26 }
0x1321   : > { %v3956_v28 = vsel %vm2366_vm11, %v3955_v27, 0.0 }
0x1322   : > { %v3957_v22 = vrot.slane %v3956_v28, 4  ;;  %v4038_v29 = vpop.f32.mrf.mxu3 }
0x1323   : > { %v4039_v33 = vadd.f32 %v4038_v29, %v4024_v46  ;;  %v7877_v29 = vld [vmem:[%s9905_s10 + $0x10] sm:$0xff] }
0x1324   : > { %v3958_v31 = vadd.f32 %v3957_v22, %v3956_v28  ;;  %v7879_v28 = vld [vmem:[%s9905_s10 + $0x20] sm:$0xff]  ;;  %v7878_v22 = vld [vmem:[%s9905_s10 + $0x18] sm:$0xff] }
0x1325   : > { %v4042_v8 = vperm.slane %v4039_v33, 0  ;;  %4127 = vmatpush.bf16.msra.mxu2 %v7879_v28 }
0x1326   : > { %v3959_v23 = vrot.slane %v3958_v31, 2 }
0x1328   : > { %v3960_v9 = vadd.f32 %v3959_v23, %v3958_v31  ;;  %v7876_v31 = vld [vmem:[%s9905_s10 + $0x8] sm:$0xff]  ;;  %v7875_v23 = vld [vmem:[%s9905_s10] sm:$0xff] }
0x1329   : > { %4128 = vmatpush.bf16.msra.mxu2 %v7878_v22 }
0x132a   : > { %v3961_v32 = vrot.slane %v3960_v9, 1  ;;  %v4040_v34 = vpop.f32.mrf.mxu3 }
0x132c   : > { %v3962_v35 = vadd.f32 %v3961_v32, %v3960_v9 }
0x132d   : > { %4129 = vmatpush.bf16.msra.mxu2 %v7877_v29 }
0x132e   : > { %7245 = vmatmul.msk.f32.vlgmr.msra.gmra.mxu1 %vm2366_vm11, %v3962_v35 }
0x1331   : > { %4130 = vmatpush.bf16.msra.mxu2 %v7876_v31 }
0x1335   : > { %4131 = vmatpush.bf16.msra.mxu2 %v7875_v23 }
0x13ab   : > { %v3983_v36 = vpop.f32.mrf.mxu1 }
0x13ac   : > { %v3984_v3 = vadd.f32 1e-05, %v3983_v36 }
0x13ae   : > { %8286 = vrsqrt.f32 %v3984_v3  ;;  %vm3992_vm6 = vweird.f32 %v3984_v3 }
0x13b4   : > { %v8287_v37 = vpop.eup %8286 }
0x13b5   : > { %v3987_v38 = vmul.f32 %v8287_v37, %v3984_v3  ;;  %vm3993_vm10 = vweird.f32 %v8287_v37 }
0x13b6   : > { %vm3994_vm14 = vmor %vm3992_vm6, %vm3993_vm10 }
0x13b7   : > { %v3988_v40 = vmul.f32 %v8287_v37, %v3987_v38 }
0x13b9   : > { %v3989_v63 = vmul.f32 0.5, %v3988_v40 }
0x13bb   : > { %v3990_v44 = vsub.f32 1.5, %v3989_v63  ;;  %v4090_v63 = vperm.slane %v9248_v7, 3 }
0x13bd   : > { %v3991_v47 = vmul.f32 %v8287_v37, %v3990_v44 }
0x13bf   : > { %v3995_v30 = vsel %vm3994_vm14, %v8287_v37, %v3991_v47 }
0x13c0   : > { %v3996_v48 = vperm.slane %v3995_v30, 0 }
0x13c2   : > { %v3997_v50 = vmul.f32 %v3996_v48, %v3954_v26 }
0x13c4   : > { %v3999_v10 = vmul.f32 %v3998_v49, %v3997_v50 }
0x13c6   : > { %v4001_v52 = vadd.f32 %v4000_v51, %v3999_v10 }
0x13c8   : > { %v4005_v53 = vand.u32 2147483647, %v4001_v52  ;;  %v4002_v5 = vmax.f32 %v4001_v52, 0.0  ;;  %vm4003_vm6 = vcmp.ne.f32.partialorder %v4001_v52, %v4001_v52 }
0x13ca   : > { %v4006_v54 = vsub.f32 0.0, %v4005_v53 }
0x13cc   : > { %v4007_v55 = vmul.f32 1.442695, %v4006_v54 }
0x13ce   : > { %8288 = vpow2.f32 %v4007_v55 }
0x13d4   : > { %v8289_v56 = vpop.eup %8288 }
0x13d5   : > { %v4009_v57 = vadd.f32 1.0, %v8289_v56  ;;  %v4012_v25 = vmul.f32 -0.5, %v8289_v56  ;;  %v4015_v59 = vand.u32 2147483647, %v8289_v56 }
0x13d7   : > { %8290 = vlog2.f32 %v4009_v57  ;;  %v4013_v58 = vadd.f32 1.0, %v4012_v25  ;;  %vm4016_vm10 = vcmp.lt.f32.partialorder %v4015_v59, 0.0004427343 }
0x13d9   : > { %v4014_v2 = vmul.f32 %v8289_v56, %v4013_v58 }
0x13dd   : > { %v8291_v60 = vpop.eup %8290 }
0x13de   : > { %v4011_v0 = vmul.f32 0.6931472, %v8291_v60 }
0x13e0   : > { %v4017_v61 = vsel %vm4016_vm10, %v4014_v2, %v4011_v0 }
0x13e1   : > { %v4018_v45 = vadd.f32 %v4017_v61, %v4002_v5 }
0x13e3   : > { %v4019_v11 = vsel %vm4003_vm6, %v4001_v52, %v4018_v45 }
0x13e4   : > { %8292 = vtanh.f32 %v4019_v11 }
0x13ea   : > { %v8293_v12 = vpop.eup %8292 }
0x13eb   : > { %v4021_v43 = vmul.f32 %v8293_v12, %v4001_v52 }
0x13ed   : > { %v4043_v6 = vadd.f32 %v4042_v8, %v4021_v43 }
0x13ef   : > { %v4055_v62 = vrot.slane %v4043_v6, 6 }
0x13f1   : > { %v4057_v13 = vsel %vm2301_vm0, 0.0, %v4055_v62  ;;  %v4058_v14 = vsel %vm2301_vm0, %v4055_v62, 0.0 }
0x13f2   : > { %v4073_v15 = vrot.slane %v4057_v13, 3  ;;  %v4074_v16 = vrot.slane %v4058_v14, 3  ;;  %v4067_v17 = vrot.slane %v4057_v13, 2  ;;  %v4068_v18 = vrot.slane %v4058_v14, 2 }
0x13f3   : > { %v4061_v19 = vrot.slane %v4057_v13, 1  ;;  %v4062_v20 = vrot.slane %v4058_v14, 1  ;;  %v4079_v1 = vrot.slane %v4057_v13, 4  ;;  %v4080_v26 = vrot.slane %v4058_v14, 4 }
0x13f4   : > { %v4075_v24 = vsel %vm2336_vm3, %v4073_v15, %v4074_v16  ;;  %v4069_v42 = vsel %vm2324_vm1, %v4067_v17, %v4068_v18  ;;  %v4214_v15 = vperm.slane %v9248_v7, 5 }
0x13f5   : > { %4076 = vrot.lane.b32.xlu1 %v4075_v24, %s9822_s15  ;;  %4070 = vrot.lane.b32.xlu0 %v4069_v42, %s9825_s11  ;;  %v4063_v4 = vsel %vm2312_vm2, %v4061_v19, %v4062_v20  ;;  %v4081_v27 = vsel %vm2200_vm4, %v4079_v1, %v4080_v26  ;;  %v7881_v26 = vld [vmem:[%s9906_s26 + $0x8] sm:$0xff]  ;;  %s9908_s15 = sld [smem:[#allocation24_spill]] }
0x13f6   : > { %4064 = vrot.lane.b32.xlu2 %v4063_v4, %s8448_s2  ;;  %v7882_v4 = vld [vmem:[%s9906_s26 + $0x10] sm:$0xff] }
0x13f7   : > { %4296 = vmatpush.bf16.msrb.mxu3 %v7882_v4 }
0x13fb   : > { %4297 = vmatpush.bf16.msrb.mxu3 %v7881_v26 }
0x13fe   : > { %4082 = vrot.lane.b32.xlu2 %v4081_v27, %s9820_s12  ;;  %s9907_s12 = sld [smem:[#allocation23_spill]] }
0x1450   : > { %v4065_v9 = vpop.permute.xlu2 %4064 }
0x1451   : > { %v4085_v32 = vsel %vm2366_vm11, %v4057_v13, %v4065_v9  ;;  %v4212_v13 = vperm.slane %v9248_v7, 4 }
0x1458   : > { %v4083_v3 = vpop.permute.xlu2 %4082 }
0x1467   : > { %v4077_v34 = vpop.permute.xlu1 %4076  ;;  %v4071_v35 = vpop.permute.xlu0 %4070 }
0x1468   : > { %v4086_v36 = vsel %vm2255_vm8, %v4085_v32, %v4071_v35 }
0x1469   : > { %v4087_v37 = vsel %vm3654_vm13, %v4086_v36, %v4077_v34 }
0x146a   : > { %v4088_v38 = vsel %vm3656_vm9, %v4087_v37, %v4083_v3 }
0x146b   : > { %v4089_v40 = vpack.c.bf16 %v4088_v38, %v4088_v38 }
0x146d   : > { %7267 = vmatmul.msk.bf16.vlgmr.msra.gmra.mxu2 %vm3690_vm12, %v4089_v40 }
0x14f0   : > { %v4133_v44 = vpop.f32.mrf.mxu2 }
0x14f1   : > { %v4134_v47 = vadd.f32 %v4133_v44, %v4090_v63 }
0x14f3   : > { %v4137_v30 = vsel %vm2366_vm11, %v4134_v47, 0.0 }
0x14f4   : > { %v4138_v48 = vrot.slane %v4137_v30, 4 }
0x14f6   : > { %v4139_v49 = vadd.f32 %v4138_v48, %v4137_v30 }
0x14f8   : > { %v4140_v50 = vrot.slane %v4139_v49, 2  ;;  %v4135_v51 = vpop.f32.mrf.mxu2 }
0x14fa   : > { %v4141_v10 = vadd.f32 %v4140_v50, %v4139_v49 }
0x14fc   : > { %v4142_v52 = vrot.slane %v4141_v10, 1 }
0x14fe   : > { %v4143_v53 = vadd.f32 %v4142_v52, %v4141_v10 }
0x1500   : > { %7268 = vmatmul.msk.f32.vlgmr.msrb.gmra.mxu1 %vm2366_vm11, %v4143_v53  ;;  %v8199_v53 = vld [vmem:[%s9907_s12] ss:$0 sm:$0xff]  ;;  %s9911_s12 = smov 64  }
0x157d   : > { %v4164_v54 = vpop.f32.mrf.mxu1 }
0x157e   : > { %v4167_v55 = vperm.slane %v4164_v54, 0 }
0x1580   : > { %v4168_v56 = vsub.f32 %v4134_v47, %v4167_v55 }
0x1582   : > { %v4169_v57 = vmul.f32 %v4168_v56, %v4168_v56 }
0x1584   : > { %v4170_v25 = vsel %vm2366_vm11, %v4169_v57, 0.0 }
0x1585   : > { %v4171_v58 = vrot.slane %v4170_v25, 4 }
0x1587   : > { %v4172_v59 = vadd.f32 %v4171_v58, %v4170_v25 }
0x1589   : > { %v4173_v60 = vrot.slane %v4172_v59, 2 }
0x158b   : > { %v4174_v0 = vadd.f32 %v4173_v60, %v4172_v59 }
0x158d   : > { %v4175_v2 = vrot.slane %v4174_v0, 1 }
0x158f   : > { %v4176_v5 = vadd.f32 %v4175_v2, %v4174_v0 }
0x1591   : > { %7269 = vmatmul.msk.f32.vlgmr.msrb.gmra.mxu0 %vm2366_vm11, %v4176_v5 }
0x160e   : > { %v4197_v61 = vpop.f32.mrf.mxu0 }
0x160f   : > { %v4198_v45 = vadd.f32 1e-05, %v4197_v61 }
0x1611   : > { %8294 = vrsqrt.f32 %v4198_v45  ;;  %vm4206_vm10 = vweird.f32 %v4198_v45 }
0x1617   : > { %v8295_v46 = vpop.eup %8294 }
0x1618   : > { %v4201_v11 = vmul.f32 %v8295_v46, %v4198_v45  ;;  %vm4207_vm14 = vweird.f32 %v8295_v46  ;;  %v7887_v45 = vld [vmem:[%s9909_s0 + $0x20] sm:$0xff] }
0x1619   : > { %vm4208_vm6 = vmor %vm4206_vm10, %vm4207_vm14  ;;  %4406 = vmatpush.bf16.msrb.mxu2 %v7887_v45 }
0x161a   : > { %v4202_v33 = vmul.f32 %v8295_v46, %v4201_v11  ;;  %v7885_v11 = vld [vmem:[%s9909_s0 + $0x10] sm:$0xff] }
0x161c   : > { %v4203_v12 = vmul.f32 0.5, %v4202_v33  ;;  %v7884_v33 = vld [vmem:[%s9909_s0 + $0x8] sm:$0xff] }
0x161e   : > { %v4204_v8 = vsub.f32 1.5, %v4203_v12  ;;  %v7883_v12 = vld [vmem:[%s9909_s0] sm:$0xff] }
0x1620   : > { %v4205_v43 = vmul.f32 %v8295_v46, %v4204_v8 }
0x1622   : > { %v4209_v6 = vsel %vm4208_vm6, %v8295_v46, %v4205_v43  ;;  %v7886_v46 = vld [vmem:[%s9909_s0 + $0x18] sm:$0xff]  ;;  %s9920_s0 = smov 32  }
0x1623   : > { %v4210_v62 = vperm.slane %v4209_v6, 0  ;;  %4407 = vmatpush.bf16.msrb.mxu2 %v7886_v46 }
0x1625   : > { %v4211_v14 = vmul.f32 %v4210_v62, %v4168_v56  ;;  %v4244_v56 = vld [vmem:[%s9908_s15] sm:$0xf]  ;;  %s9910_s15 = smov 48  }
0x1627   : > { %v4213_v16 = vmul.f32 %v4212_v13, %v4211_v14  ;;  %4408 = vmatpush.bf16.msrb.mxu2 %v7885_v11 }
0x1629   : > { %v4215_v17 = vadd.f32 %v4214_v15, %v4213_v16 }
0x162b   : > { %v4219_v18 = vand.u32 2147483647, %v4215_v17  ;;  %v4216_v7 = vmax.f32 %v4215_v17, 0.0  ;;  %vm4217_vm10 = vcmp.ne.f32.partialorder %v4215_v17, %v4215_v17  ;;  %4409 = vmatpush.bf16.msrb.mxu2 %v7884_v33 }
0x162d   : > { %v4220_v19 = vsub.f32 0.0, %v4219_v18  ;;  %v9323_v18 = vld [vmem:[%s9912_s1 + $0x18] sm:$0xff] }
0x162e   : > { %4439 = vmatpush.msra.mxu0 %v9323_v18 }
0x162f   : > { %v4221_v20 = vmul.f32 1.442695, %v4220_v19  ;;  %4410 = vmatpush.bf16.msrb.mxu2 %v7883_v12  ;;  %v9328_v19 = vld [vmem:[%s9912_s1 + $0x10] sm:$0xff] }
0x1630   : > { %4440 = vmatpush.msra.mxu0 %v9328_v19 }
0x1631   : > { %8296 = vpow2.f32 %v4221_v20  ;;  %v9334_v20 = vld [vmem:[%s9912_s1 + $0x8] sm:$0xff] }
0x1632   : > { %4441 = vmatpush.msra.mxu0 %v9334_v20 }
0x1633   : > { %4696 = vmatpush.msra.mxu2 %v9323_v18 }
0x1635   : > { %4697 = vmatpush.msra.mxu2 %v9328_v19 }
0x1637   : > { %v8297_v24 = vpop.eup %8296  ;;  %4698 = vmatpush.msra.mxu2 %v9334_v20 }
0x1638   : > { %v4223_v42 = vadd.f32 1.0, %v8297_v24  ;;  %v4226_v1 = vmul.f32 -0.5, %v8297_v24  ;;  %v4229_v28 = vand.u32 2147483647, %v8297_v24 }
0x163a   : > { %8298 = vlog2.f32 %v4223_v42  ;;  %v4227_v27 = vadd.f32 1.0, %v4226_v1  ;;  %vm4230_vm14 = vcmp.lt.f32.partialorder %v4229_v28, 0.0004427343 }
0x163c   : > { %v4228_v31 = vmul.f32 %v8297_v24, %v4227_v27  ;;  %v9339_v24 = vld [vmem:[%s9912_s1] sm:$0xff]  ;;  %s9921_s1 = sld [smem:[#allocation34_spill]] }
0x163d   : > { %4442 = vmatpush.msra.mxu0 %v9339_v24  ;;  %4699 = vmatpush.msra.mxu2 %v9339_v24 }
0x1640   : > { %v8299_v22 = vpop.eup %8298 }
0x1641   : > { %v4225_v29 = vmul.f32 0.6931472, %v8299_v22 }
0x1643   : > { %v4231_v23 = vsel %vm4230_vm14, %v4228_v31, %v4225_v29 }
0x1644   : > { %v4232_v9 = vadd.f32 %v4231_v23, %v4216_v7 }
0x1646   : > { %v4233_v32 = vsel %vm4217_vm10, %v4215_v17, %v4232_v9 }
0x1647   : > { %8300 = vtanh.f32 %v4233_v32 }
0x164d   : > { %v8301_v34 = vpop.eup %8300 }
0x164e   : > { %v4235_v35 = vmul.f32 %v8301_v34, %v4215_v17 }
0x1650   : > { %v4236_v36 = vadd.f32 %v4235_v35, %v9220_v41  ;;  %v7880_v41 = vld [vmem:[%s9906_s26] sm:$0xff] }
0x1651   : > { %4298 = vmatpush.bf16.msrb.mxu3 %v7880_v41 }
0x1652   : > { %v4246_v3 = vrot.slane %v4236_v36, 7 }
0x1654   : > { %v4248_v37 = vsel %vm3318_vm15, 0.0, %v4246_v3  ;;  %v4249_v38 = vsel %vm3318_vm15, %v4246_v3, 0.0 }
0x1655   : > { %v4258_v40 = vrot.slane %v4248_v37, 2  ;;  %v4259_v63 = vrot.slane %v4249_v38, 2  ;;  %v4252_v44 = vrot.slane %v4248_v37, 1  ;;  %v4253_v47 = vrot.slane %v4249_v38, 1 }
0x1657   : > { %v4260_v30 = vsel %vm2324_vm1, %v4258_v40, %v4259_v63  ;;  %v4254_v48 = vsel %vm2312_vm2, %v4252_v44, %v4253_v47  ;;  %vm4416_vm2 = vcmask 257024  }
0x1658   : > { %4261 = vrot.lane.b32.xlu1 %v4260_v30, %s9825_s11  ;;  %4255 = vrot.lane.b32.xlu0 %v4254_v48, %s8448_s2 }
0x16ca   : > { %v4262_v49 = vpop.permute.xlu1 %4261  ;;  %v4256_v50 = vpop.permute.xlu0 %4255 }
0x16cb   : > { %v4264_v51 = vsel %vm2366_vm11, %v4248_v37, %v4256_v50 }
0x16cc   : > { %v4265_v10 = vsel %vm2255_vm8, %v4264_v51, %v4262_v49 }
0x16cd   : > { %v4266_v52 = vpack.c.bf16 %v4265_v10, %v4265_v10 }
0x16cf   : > { %7282 = vmatmul.msk.bf16.vlgmr.msrb.gmra.mxu3 %vm3654_vm13, %v4266_v52 }
0x1752   : > { %v4300_v54 = vpop.f32.mrf.mxu3 }
0x1753   : > { %v4301_v55 = vadd.f32 %v8199_v53, %v4300_v54 }
0x1755   : > { %4322 = vmatpush.msra.mxu1 %v4301_v55 }
0x1756   : > { %7283 = vmatmul.msk.f32.vlgmr.msra.gmra.mxu1 %vm2196_vm7, %v4244_v56 }
0x1757   : > { %4472 = vmatpush.msrb.mxu1 %v9323_v18 }
0x1759   : > { %4473 = vmatpush.msrb.mxu1 %v9328_v19 }
0x175a   : > { %v4302_v57 = vpop.f32.mrf.mxu3 }
0x175b   : > { %4474 = vmatpush.msrb.mxu1 %v9334_v20 }
0x175d   : > { %4475 = vmatpush.msrb.mxu1 %v9339_v24 }
0x17d3   : > { %v9303_v25 = vpop.f32.mrf.mxu1 }
0x17d4   : > { %v4343_v58 = vrot.slane %v9303_v25, 6 }
0x17d6   : > { %v4345_v59 = vsel %vm2301_vm0, 0.0, %v4343_v58 }
0x17d7   : > { %v4346_v60 = vsel %vm2324_vm1, %v4345_v59, 0.0 }
0x17d8   : > { %v4352_v0 = vrot.slane %v4346_v60, 2  ;;  %v4348_v2 = vrot.slane %v4346_v60, 1  ;;  %v4356_v5 = vrot.slane %v4346_v60, 3  ;;  %v4360_v61 = vrot.slane %v4346_v60, 4 }
0x17da   : > { %4353 = vrot.lane.b32.xlu0 %v4352_v0, %s9825_s11  ;;  %4349 = vrot.lane.b32.xlu2 %v4348_v2, %s8448_s2  ;;  %s9913_s2 = sld [smem:[#allocation28_spill]] }
0x17db   : > { %4357 = vrot.lane.b32.xlu1 %v4356_v5, %s9910_s15  ;;  %s9914_s15 = sld [smem:[#allocation30_spill]] }
0x17e0   : > { %v4516_v42 = vld [vmem:[%s9913_s2] sm:$0xf]  ;;  %s9915_s2 = sld [smem:[#allocation27_spill]] }
0x17e1   : > { %v4521_v4 = vsel %vm2200_vm4, %v4516_v42, 0  ;;  %v9349_v1 = vld [vmem:[%s9914_s15] sm:$0xff]  ;;  %s9916_s15 = sld [smem:[#allocation29_spill]] }
0x17e2   : > { %4361 = vrot.lane.b32.xlu2 %v4360_v61, %s9911_s12  ;;  %4530 = vmatpush.bf16.msrb.mxu0 %v4521_v4  ;;  %v4369_v26 = vperm.slane %v9349_v1, 0  ;;  %v4492_v0 = vperm.slane %v9349_v1, 1  ;;  %v4494_v5 = vperm.slane %v9349_v1, 2 }
0x17e6   : > { %v7897_v10 = vld [vmem:[%s9915_s2 + $0x48] sm:$0xff]  ;;  %v7896_v52 = vld [vmem:[%s9915_s2 + $0x40] sm:$0xff] }
0x17e7   : > { %4667 = vmatpush.bf16.msra.mxu1 %v7897_v10 }
0x17eb   : > { %4668 = vmatpush.bf16.msra.mxu1 %v7896_v52 }
0x1834   : > { %v4350_v8 = vpop.permute.xlu2 %4349 }
0x1835   : > { %v4364_v43 = vsel %vm2366_vm11, %v4346_v60, %v4350_v8 }
0x183c   : > { %v4362_v14 = vpop.permute.xlu2 %4361 }
0x184c   : > { %v4354_v6 = vpop.permute.xlu0 %4353 }
0x184d   : > { %v4365_v62 = vsel %vm2255_vm8, %v4364_v43, %v4354_v6  ;;  %v4358_v13 = vpop.permute.xlu1 %4357  ;;  %v7898_v6 = vld [vmem:[%s9916_s15] sm:$0xff]  ;;  %s9827_s15 = smov 96  }
0x184e   : > { %v4366_v15 = vsel %vm3654_vm13, %v4365_v62, %v4358_v13 }
0x184f   : > { %v4367_v16 = vsel %vm3656_vm9, %v4366_v15, %v4362_v14 }
0x1850   : > { %v4368_v17 = vpack.c.bf16 %v4367_v16, %v4367_v16 }
0x1852   : > { %7304 = vmatmul.msk.bf16.vlgmr.msrb.gmra.mxu2 %vm3690_vm12, %v4368_v17 }
0x18d5   : > { %v4412_v27 = vpop.f32.mrf.mxu2 }
0x18d6   : > { %v4413_v28 = vadd.f32 %v4412_v27, %v4369_v26  ;;  %v4518_v26 = vrot.slane %v9349_v1, 6 }
0x18d8   : > { %v4417_v22 = vsel %vm4416_vm2, %v4413_v28, 0.0 }
0x18d9   : > { %v4418_v29 = vrot.slane %v4417_v22, 4 }
0x18db   : > { %v4419_v31 = vadd.f32 %v4418_v29, %v4417_v22  ;;  %v7895_v22 = vld [vmem:[%s9915_s2 + $0x38] sm:$0xff] }
0x18dc   : > { %4648 = vmatpush.bf16.msra.mxu3 %v7895_v22 }
0x18dd   : > { %v4420_v7 = vrot.slane %v4419_v31, 2  ;;  %v4414_v23 = vpop.f32.mrf.mxu2 }
0x18df   : > { %v4421_v9 = vadd.f32 %v4420_v7, %v4419_v31 }
0x18e1   : > { %v4422_v32 = vrot.slane %v4421_v9, 1 }
0x18e3   : > { %v4423_v34 = vadd.f32 %v4422_v32, %v4421_v9 }
0x18e5   : > { %7305 = vmatmul.msk.f32.vlgmr.msra.gmra.mxu0 %vm2255_vm8, %v4423_v34 }
0x18e6   : > { %4729 = vmatpush.msra.mxu0 %v9323_v18 }
0x18e8   : > { %4730 = vmatpush.msra.mxu0 %v9328_v19 }
0x18ea   : > { %4731 = vmatpush.msra.mxu0 %v9334_v20 }
0x18ec   : > { %4732 = vmatpush.msra.mxu0 %v9339_v24 }
0x18ed   : > { %7307 = vmatmul.msk.bf16.vlgmr.msrb.gmra.mxu0 %vm2196_vm7, %v8962_v39 }
0x1962   : > { %v4444_v35 = vpop.f32.mrf.mxu0 }
0x1963   : > { %v4447_v36 = vperm.slane %v4444_v35, 0 }
0x1965   : > { %v4448_v3 = vsub.f32 %v4413_v28, %v4447_v36 }
0x1967   : > { %v4449_v37 = vmul.f32 %v4448_v3, %v4448_v3 }
0x1969   : > { %v4450_v38 = vsel %vm4416_vm2, %v4449_v37, 0.0 }
0x196a   : > { %v4451_v40 = vrot.slane %v4450_v38, 4  ;;  %v4532_v63 = vpop.f32.mrf.mxu0 }
0x196b   : > { %v4533_v28 = vadd.f32 %v4532_v63, %v4518_v26  ;;  %v7894_v63 = vld [vmem:[%s9915_s2 + $0x30] sm:$0xff] }
0x196c   : > { %v4452_v44 = vadd.f32 %v4451_v40, %v4450_v38  ;;  %v4775_v40 = vpack.c.bf16 %v9303_v25, %v9303_v25  ;;  %4649 = vmatpush.bf16.msra.mxu3 %v7894_v63 }
0x196d   : > { %v4536_v31 = vperm.slane %v4533_v28, 0 }
0x196e   : > { %v4453_v47 = vrot.slane %v4452_v44, 2 }
0x1970   : > { %v4454_v30 = vadd.f32 %v4453_v47, %v4452_v44  ;;  %v7893_v44 = vld [vmem:[%s9915_s2 + $0x28] sm:$0xff]  ;;  %v7892_v47 = vld [vmem:[%s9915_s2 + $0x20] sm:$0xff] }
0x1971   : > { %4650 = vmatpush.bf16.msra.mxu3 %v7893_v44 }
0x1972   : > { %v4455_v48 = vrot.slane %v4454_v30, 1  ;;  %v4534_v41 = vpop.f32.mrf.mxu0 }
0x1973   : > { %v7889_v41 = vld [vmem:[%s9915_s2 + $0x8] sm:$0xff] }
0x1974   : > { %v4456_v49 = vadd.f32 %v4455_v48, %v4454_v30  ;;  %v7891_v30 = vld [vmem:[%s9915_s2 + $0x18] sm:$0xff]  ;;  %v7890_v48 = vld [vmem:[%s9915_s2 + $0x10] sm:$0xff] }
0x1975   : > { %4651 = vmatpush.bf16.msra.mxu3 %v7892_v47 }
0x1976   : > { %7306 = vmatmul.msk.f32.vlgmr.msrb.gmra.mxu1 %vm2255_vm8, %v4456_v49  ;;  %v7888_v49 = vld [vmem:[%s9915_s2] sm:$0xff]  ;;  %s9922_s2 = sld [smem:[#allocation32_spill]] }
0x1977   : > { %4793 = vmatpush.bf16.msrb.mxu1 %v7898_v6 }
0x1979   : > { %4652 = vmatpush.bf16.msra.mxu3 %v7891_v30 }
0x197d   : > { %4653 = vmatpush.bf16.msra.mxu3 %v7890_v48 }
0x1981   : > { %4654 = vmatpush.bf16.msra.mxu3 %v7889_v41 }
0x1985   : > { %4655 = vmatpush.bf16.msra.mxu3 %v7888_v49 }
0x1989   : > { %4991 = vmatpush.msrb.mxu3 %v9323_v18 }
0x198b   : > { %4992 = vmatpush.msrb.mxu3 %v9328_v19 }
0x198d   : > { %4993 = vmatpush.msrb.mxu3 %v9334_v20 }
0x198f   : > { %4994 = vmatpush.msrb.mxu3 %v9339_v24 }
0x19f3   : > { %v4477_v50 = vpop.f32.mrf.mxu1 }
0x19f4   : > { %v4478_v51 = vadd.f32 1e-05, %v4477_v50 }
0x19f6   : > { %8302 = vrsqrt.f32 %v4478_v51  ;;  %vm4486_vm12 = vweird.f32 %v4478_v51 }
0x19fc   : > { %v8303_v53 = vpop.eup %8302 }
0x19fd   : > { %v4481_v54 = vmul.f32 %v8303_v53, %v4478_v51  ;;  %vm4487_vm13 = vweird.f32 %v8303_v53 }
0x19fe   : > { %vm4488_vm6 = vmor %vm4486_vm12, %vm4487_vm13 }
0x19ff   : > { %v4482_v55 = vmul.f32 %v8303_v53, %v4481_v54 }
0x1a01   : > { %v4483_v56 = vmul.f32 0.5, %v4482_v55 }
0x1a03   : > { %v4484_v57 = vsub.f32 1.5, %v4483_v56 }
0x1a05   : > { %v4485_v58 = vmul.f32 %v8303_v53, %v4484_v57 }
0x1a07   : > { %v4489_v59 = vsel %vm4488_vm6, %v8303_v53, %v4485_v58 }
0x1a08   : > { %v4490_v60 = vperm.slane %v4489_v59, 0  ;;  %v4584_v59 = vperm.slane %v9349_v1, 3 }
0x1a0a   : > { %v4491_v2 = vmul.f32 %v4490_v60, %v4448_v3 }
0x1a0c   : > { %v4493_v61 = vmul.f32 %v4492_v0, %v4491_v2 }
0x1a0e   : > { %v4495_v45 = vadd.f32 %v4494_v5, %v4493_v61 }
0x1a10   : > { %v4499_v46 = vand.u32 2147483647, %v4495_v45  ;;  %v4496_v17 = vmax.f32 %v4495_v45, 0.0  ;;  %vm4497_vm10 = vcmp.ne.f32.partialorder %v4495_v45, %v4495_v45 }
0x1a12   : > { %v4500_v11 = vsub.f32 0.0, %v4499_v46 }
0x1a14   : > { %v4501_v33 = vmul.f32 1.442695, %v4500_v11 }
0x1a16   : > { %8304 = vpow2.f32 %v4501_v33 }
0x1a1c   : > { %v8305_v12 = vpop.eup %8304 }
0x1a1d   : > { %v4503_v8 = vadd.f32 1.0, %v8305_v12  ;;  %v4506_v43 = vmul.f32 -0.5, %v8305_v12  ;;  %v4509_v13 = vand.u32 2147483647, %v8305_v12 }
0x1a1f   : > { %8306 = vlog2.f32 %v4503_v8  ;;  %v4507_v62 = vadd.f32 1.0, %v4506_v43  ;;  %vm4510_vm14 = vcmp.lt.f32.partialorder %v4509_v13, 0.0004427343 }
0x1a21   : > { %v4508_v16 = vmul.f32 %v8305_v12, %v4507_v62 }
0x1a25   : > { %v8307_v14 = vpop.eup %8306 }
0x1a26   : > { %v4505_v15 = vmul.f32 0.6931472, %v8307_v14 }
0x1a28   : > { %v4511_v42 = vsel %vm4510_vm14, %v4508_v16, %v4505_v15 }
0x1a29   : > { %v4512_v4 = vadd.f32 %v4511_v42, %v4496_v17 }
0x1a2b   : > { %v4513_v27 = vsel %vm4497_vm10, %v4495_v45, %v4512_v4 }
0x1a2c   : > { %8308 = vtanh.f32 %v4513_v27 }
0x1a32   : > { %v8309_v29 = vpop.eup %8308 }
0x1a33   : > { %v4515_v7 = vmul.f32 %v8309_v29, %v4495_v45 }
0x1a35   : > { %v4537_v23 = vadd.f32 %v4536_v31, %v4515_v7 }
0x1a37   : > { %v4559_v9 = vrot.slane %v4537_v23, 6 }
0x1a39   : > { %v4561_v32 = vsel %vm2301_vm0, 0.0, %v4559_v9 }
0x1a3a   : > { %v4562_v34 = vsel %vm2324_vm1, %v4561_v32, 0.0 }
0x1a3b   : > { %v4572_v35 = vrot.slane %v4562_v34, 3  ;;  %v4568_v36 = vrot.slane %v4562_v34, 2  ;;  %v4564_v3 = vrot.slane %v4562_v34, 1  ;;  %v4576_v37 = vrot.slane %v4562_v34, 4 }
0x1a3d   : > { %4573 = vrot.lane.b32.xlu2 %v4572_v35, %s9827_s15  ;;  %4569 = vrot.lane.b32.xlu1 %v4568_v36, %s9911_s12  ;;  %v4583_v38 = vpack.c.bf16 %v4576_v37, %v4576_v37  ;;  %s9918_s15 = sld [smem:[#allocation33_spill]] }
0x1a3e   : > { %4565 = vrot.lane.b32.xlu0 %v4564_v3, %s9825_s11  ;;  %s9917_s11 = sld [smem:[#allocation31_spill]]  ;;  %v4749_v3 = vperm.slane %v9349_v1, 4 }
0x1a3f   : > { %7348 = vmatmul.msk.bf16.vlgmr.msra.gmra.mxu1 %vm2255_vm8, %v4583_v38  ;;  %v4751_v38 = vperm.slane %v9349_v1, 5 }
0x1a40   : > { %4958 = vmatpush.msra.mxu1 %v9323_v18 }
0x1a42   : > { %4959 = vmatpush.msra.mxu1 %v9328_v19 }
0x1a44   : > { %4960 = vmatpush.msra.mxu1 %v9334_v20  ;;  %v7908_v22 = vld [vmem:[%s9917_s11 + $0x48] sm:$0xff]  ;;  %v7907_v29 = vld [vmem:[%s9917_s11 + $0x40] sm:$0xff] }
0x1a45   : > { %4929 = vmatpush.bf16.msrb.mxu0 %v7908_v22 }
0x1a46   : > { %4961 = vmatpush.msra.mxu1 %v9339_v24 }
0x1a49   : > { %4930 = vmatpush.bf16.msrb.mxu0 %v7907_v29 }
0x1a4f   : > { %7355 = vmatmul.msk.bf16.vlgmr.msrb.gmra.mxu1 %vm2366_vm11, %v4775_v40  ;;  %vm4580_vm11 = vcmask 785408  }
0x1a97   : > { %v4574_v10 = vpop.permute.xlu2 %4573 }
0x1aaf   : > { %v4570_v25 = vpop.permute.xlu1 %4569 }
0x1ab0   : > { %v4566_v50 = vpop.permute.xlu0 %4565 }
0x1ab1   : > { %v4578_v51 = vsel %vm2255_vm8, %v4562_v34, %v4566_v50 }
0x1ab2   : > { %v4579_v52 = vsel %vm3656_vm9, %v4578_v51, %v4570_v25  ;;  %v5035_v25 = vld [vmem:[%s9918_s15] sm:$0xf]  ;;  %s9919_s15 = smov 96  }
0x1ab3   : > { %v4581_v53 = vsel %vm4580_vm11, %v4579_v52, %v4574_v10  ;;  %v5040_v50 = vsel %vm2200_vm4, %v5035_v25, 0 }
0x1ab4   : > { %v4582_v54 = vpack.c.bf16 %v4581_v53, %v4581_v53 }
0x1ab6   : > { %4656 = vmatmul.bf16.vlgmr.msra.gmra.mxu3 %v4582_v54 }
0x1abc   : > { %v4670_v55 = vpop.f32.mrf.mxu1 }
0x1ac4   : > { %v4672_v56 = vpop.f32.mrf.mxu1 }
0x1acc   : > { %v9396_v57 = vpop.f32.mrf.mxu1 }
0x1ad4   : > { %v4797_v58 = vpop.f32.mrf.mxu1 }
0x1b39   : > { %v4657_v60 = vpop.f32.mrf.mxu3 }
0x1b3a   : > { %v4658_v0 = vadd.f32 %v4657_v60, %v4584_v59  ;;  %v4776_v60 = vperm.slane %v9349_v1, 7 }
0x1b3c   : > { %v4671_v2 = vadd.f32 %v4670_v55, %v4658_v0  ;;  %v7906_v0 = vld [vmem:[%s9917_s11 + $0x38] sm:$0xff] }
0x1b3d   : > { %4910 = vmatpush.bf16.msrb.mxu2 %v7906_v0  ;;  %v7917_v0 = vld [vmem:[%s9922_s2 + $0x40] sm:$0xff] }
0x1b3e   : > { %v4674_v5 = vsel %vm4416_vm2, %v4671_v2, 0.0 }
0x1b3f   : > { %v4675_v61 = vrot.slane %v4674_v5, 4 }
0x1b41   : > { %v4676_v45 = vadd.f32 %v4675_v61, %v4674_v5  ;;  %v4659_v46 = vpop.f32.mrf.mxu3  ;;  %v4796_v5 = vadd.f32 %v9396_v57, %v4776_v60  ;;  %v7918_v60 = vld [vmem:[%s9922_s2 + $0x48] sm:$0xff] }
0x1b42   : > { %5185 = vmatpush.bf16.msra.mxu3 %v7918_v60 }
0x1b43   : > { %v4677_v11 = vrot.slane %v4676_v45, 2 }
0x1b45   : > { %v4678_v33 = vadd.f32 %v4677_v11, %v4676_v45 }
0x1b46   : > { %5186 = vmatpush.bf16.msra.mxu3 %v7917_v0 }
0x1b47   : > { %v4679_v12 = vrot.slane %v4678_v33, 1 }
0x1b49   : > { %v4680_v8 = vadd.f32 %v4679_v12, %v4678_v33 }
0x1b4b   : > { %7349 = vmatmul.msk.f32.vlgmr.msra.gmra.mxu2 %vm2255_vm8, %v4680_v8 }
0x1bce   : > { %v4701_v43 = vpop.f32.mrf.mxu2 }
0x1bcf   : > { %v4704_v6 = vperm.slane %v4701_v43, 0 }
0x1bd1   : > { %v4705_v62 = vsub.f32 %v4671_v2, %v4704_v6  ;;  %v7905_v6 = vld [vmem:[%s9917_s11 + $0x30] sm:$0xff] }
0x1bd2   : > { %4911 = vmatpush.bf16.msrb.mxu2 %v7905_v6 }
0x1bd3   : > { %v4706_v13 = vmul.f32 %v4705_v62, %v4705_v62 }
0x1bd5   : > { %v4707_v14 = vsel %vm4416_vm2, %v4706_v13, 0.0  ;;  %v7903_v13 = vld [vmem:[%s9917_s11 + $0x20] sm:$0xff] }
0x1bd6   : > { %v4708_v15 = vrot.slane %v4707_v14, 4 }
0x1bd8   : > { %v4709_v16 = vadd.f32 %v4708_v15, %v4707_v14  ;;  %v7902_v14 = vld [vmem:[%s9917_s11 + $0x18] sm:$0xff]  ;;  %v7901_v15 = vld [vmem:[%s9917_s11 + $0x10] sm:$0xff] }
0x1bda   : > { %v4710_v17 = vrot.slane %v4709_v16, 2 }
0x1bdc   : > { %v4711_v42 = vadd.f32 %v4710_v17, %v4709_v16  ;;  %v7900_v16 = vld [vmem:[%s9917_s11 + $0x8] sm:$0xff]  ;;  %v7899_v17 = vld [vmem:[%s9917_s11] sm:$0xff] }
0x1bde   : > { %v4712_v4 = vrot.slane %v4711_v42, 1 }
0x1be0   : > { %v4713_v26 = vadd.f32 %v4712_v4, %v4711_v42 }
0x1be2   : > { %7350 = vmatmul.msk.f32.vlgmr.msra.gmra.mxu0 %vm2255_vm8, %v4713_v26 }
0x1be3   : > { %5049 = vmatpush.bf16.msra.mxu0 %v5040_v50 }
0x1c5f   : > { %v4734_v27 = vpop.f32.mrf.mxu0 }
0x1c60   : > { %v4735_v28 = vadd.f32 1e-05, %v4734_v27 }
0x1c62   : > { %8310 = vrsqrt.f32 %v4735_v28  ;;  %vm4743_vm12 = vweird.f32 %v4735_v28 }
0x1c68   : > { %v8311_v31 = vpop.eup %8310 }
0x1c69   : > { %v4738_v7 = vmul.f32 %v8311_v31, %v4735_v28  ;;  %vm4744_vm13 = vweird.f32 %v8311_v31 }
0x1c6a   : > { %vm4745_vm6 = vmor %vm4743_vm12, %vm4744_vm13 }
0x1c6b   : > { %v4739_v23 = vmul.f32 %v8311_v31, %v4738_v7 }
0x1c6d   : > { %v4740_v9 = vmul.f32 0.5, %v4739_v23 }
0x1c6f   : > { %v4741_v32 = vsub.f32 1.5, %v4740_v9 }
0x1c71   : > { %v4742_v34 = vmul.f32 %v8311_v31, %v4741_v32  ;;  %v9440_v32 = vld [vmem:[%s9921_s1] sm:$0xff]  ;;  %s9923_s1 = sld [smem:[#allocation35_spill]] }
0x1c72   : > { %v5102_v0 = vperm.slane %v9440_v32, 3 }
0x1c73   : > { %v4746_v35 = vsel %vm4745_vm6, %v8311_v31, %v4742_v34  ;;  %v4846_v34 = vperm.slane %v9440_v32, 0 }
0x1c74   : > { %v4747_v36 = vperm.slane %v4746_v35, 0 }
0x1c76   : > { %v4748_v37 = vmul.f32 %v4747_v36, %v4705_v62  ;;  %v7904_v62 = vld [vmem:[%s9917_s11 + $0x28] sm:$0xff] }
0x1c77   : > { %4912 = vmatpush.bf16.msrb.mxu2 %v7904_v62 }
0x1c78   : > { %v4750_v40 = vmul.f32 %v4749_v3, %v4748_v37 }
0x1c7a   : > { %v4752_v63 = vadd.f32 %v4751_v38, %v4750_v40 }
0x1c7b   : > { %4913 = vmatpush.bf16.msrb.mxu2 %v7903_v13 }
0x1c7c   : > { %v4756_v44 = vand.u32 2147483647, %v4752_v63  ;;  %v4753_v55 = vmax.f32 %v4752_v63, 0.0  ;;  %vm4754_vm10 = vcmp.ne.f32.partialorder %v4752_v63, %v4752_v63 }
0x1c7e   : > { %v4757_v47 = vsub.f32 0.0, %v4756_v44 }
0x1c7f   : > { %4914 = vmatpush.bf16.msrb.mxu2 %v7902_v14 }
0x1c80   : > { %v4758_v30 = vmul.f32 1.442695, %v4757_v47 }
0x1c82   : > { %8312 = vpow2.f32 %v4758_v30 }
0x1c83   : > { %4915 = vmatpush.bf16.msrb.mxu2 %v7901_v15  ;;  %v7916_v15 = vld [vmem:[%s9922_s2 + $0x38] sm:$0xff] }
0x1c84   : > { %5166 = vmatpush.bf16.msrb.mxu1 %v7916_v15 }
0x1c87   : > { %4916 = vmatpush.bf16.msrb.mxu2 %v7900_v16 }
0x1c88   : > { %v8313_v48 = vpop.eup %8312 }
0x1c89   : > { %v4760_v41 = vadd.f32 1.0, %v8313_v48  ;;  %v4763_v49 = vmul.f32 -0.5, %v8313_v48  ;;  %v4766_v10 = vand.u32 2147483647, %v8313_v48 }
0x1c8b   : > { %8314 = vlog2.f32 %v4760_v41  ;;  %v4764_v51 = vadd.f32 1.0, %v4763_v49  ;;  %vm4767_vm14 = vcmp.lt.f32.partialorder %v4766_v10, 0.0004427343  ;;  %4917 = vmatpush.bf16.msrb.mxu2 %v7899_v17 }
0x1c8d   : > { %v4765_v54 = vmul.f32 %v8313_v48, %v4764_v51 }
0x1c91   : > { %v8315_v52 = vpop.eup %8314 }
0x1c92   : > { %v4762_v53 = vmul.f32 0.6931472, %v8315_v52 }
0x1c94   : > { %v4768_v56 = vsel %vm4767_vm14, %v4765_v54, %v4762_v53 }
0x1c95   : > { %v4769_v58 = vadd.f32 %v4768_v56, %v4753_v55 }
0x1c97   : > { %v4770_v59 = vsel %vm4754_vm10, %v4752_v63, %v4769_v58 }
0x1c98   : > { %8316 = vtanh.f32 %v4770_v59 }
0x1c9e   : > { %v8317_v2 = vpop.eup %8316 }
0x1c9f   : > { %v4772_v61 = vmul.f32 %v8317_v2, %v4752_v63 }
0x1ca1   : > { %v9412_v45 = vadd.f32 %v4796_v5, %v4772_v61 }
0x1ca3   : > { %v4822_v46 = vrot.slane %v9412_v45, 6 }
0x1ca5   : > { %v4824_v11 = vsel %vm2301_vm0, 0.0, %v4822_v46 }
0x1ca6   : > { %v4825_v33 = vsel %vm2324_vm1, %v4824_v11, 0.0 }
0x1ca7   : > { %v4835_v12 = vrot.slane %v4825_v33, 3  ;;  %v4831_v8 = vrot.slane %v4825_v33, 2  ;;  %v4827_v43 = vrot.slane %v4825_v33, 1  ;;  %v4839_v1 = vrot.slane %v4825_v33, 4 }
0x1ca9   : > { %4836 = vrot.lane.b32.xlu2 %v4835_v12, %s9919_s15  ;;  %4832 = vrot.lane.b32.xlu1 %v4831_v8, %s9911_s12  ;;  %v4845_v57 = vpack.c.bf16 %v4839_v1, %v4839_v1 }
0x1caa   : > { %4828 = vrot.lane.b32.xlu0 %v4827_v43, %s9920_s0  ;;  %v5011_v43 = vperm.slane %v9440_v32, 1 }
0x1cab   : > { %7396 = vmatmul.msk.bf16.vlgmr.msrb.gmra.mxu0 %vm2255_vm8, %v4845_v57 }
0x1cac   : > { %5214 = vmatpush.msrb.mxu0 %v9323_v18 }
0x1cae   : > { %5215 = vmatpush.msrb.mxu0 %v9328_v19 }
0x1cb0   : > { %5216 = vmatpush.msrb.mxu0 %v9334_v20 }
0x1cb2   : > { %5217 = vmatpush.msrb.mxu0 %v9339_v24 }
0x1cbb   : > { %7399 = vmatmul.msk.bf16.vlgmr.msra.gmra.mxu0 %vm2196_vm7, %v8962_v39 }
0x1d03   : > { %v4837_v27 = vpop.permute.xlu2 %4836 }
0x1d1b   : > { %v4833_v42 = vpop.permute.xlu1 %4832 }
0x1d1c   : > { %v4829_v4 = vpop.permute.xlu0 %4828 }
0x1d1d   : > { %v4841_v26 = vsel %vm2255_vm8, %v4825_v33, %v4829_v4 }
0x1d1e   : > { %v4842_v28 = vsel %vm3656_vm9, %v4841_v26, %v4833_v42 }
0x1d1f   : > { %v4843_v22 = vsel %vm4580_vm11, %v4842_v28, %v4837_v27 }
0x1d20   : > { %v4844_v29 = vpack.c.bf16 %v4843_v22, %v4843_v22 }
0x1d22   : > { %4918 = vmatmul.bf16.vlgmr.msrb.gmra.mxu2 %v4844_v29  ;;  %v5037_v29 = vrot.slane %v9440_v32, 6 }
0x1d28   : > { %v4932_v31 = vpop.f32.mrf.mxu0 }
0x1d30   : > { %v4934_v7 = vpop.f32.mrf.mxu0 }
0x1d38   : > { %v9437_v23 = vpop.f32.mrf.mxu0 }
0x1d39   : > { %v5052_v7 = vadd.f32 %v9437_v23, %v5037_v29 }
0x1d40   : > { %v5053_v9 = vpop.f32.mrf.mxu0 }
0x1da5   : > { %v4919_v35 = vpop.f32.mrf.mxu2 }
0x1da6   : > { %v4920_v36 = vadd.f32 %v4919_v35, %v4846_v34  ;;  %v5055_v34 = vperm.slane %v5052_v7, 0 }
0x1da8   : > { %v4933_v3 = vadd.f32 %v4932_v31, %v4920_v36 }
0x1daa   : > { %v4936_v37 = vsel %vm4416_vm2, %v4933_v3, 0.0 }
0x1dab   : > { %v4937_v38 = vrot.slane %v4936_v37, 4 }
0x1dad   : > { %v4938_v40 = vadd.f32 %v4937_v38, %v4936_v37  ;;  %v4921_v63 = vpop.f32.mrf.mxu2 }
0x1daf   : > { %v4939_v44 = vrot.slane %v4938_v40, 2 }
0x1db1   : > { %v4940_v47 = vadd.f32 %v4939_v44, %v4938_v40 }
0x1db3   : > { %v4941_v30 = vrot.slane %v4940_v47, 1 }
0x1db5   : > { %v4942_v48 = vadd.f32 %v4941_v30, %v4940_v47  ;;  %v7915_v30 = vld [vmem:[%s9922_s2 + $0x30] sm:$0xff] }
0x1db6   : > { %5167 = vmatpush.bf16.msrb.mxu1 %v7915_v30 }
0x1db7   : > { %7397 = vmatmul.msk.f32.vlgmr.msra.gmra.mxu1 %vm2255_vm8, %v4942_v48  ;;  %v7914_v48 = vld [vmem:[%s9922_s2 + $0x28] sm:$0xff] }
0x1dba   : > { %5168 = vmatpush.bf16.msrb.mxu1 %v7914_v48  ;;  %v7923_v48 = vld [vmem:[%s9923_s1 + $0x20] sm:$0xff] }
0x1e34   : > { %v4963_v41 = vpop.f32.mrf.mxu1 }
0x1e35   : > { %v4966_v49 = vperm.slane %v4963_v41, 0  ;;  %v7913_v41 = vld [vmem:[%s9922_s2 + $0x20] sm:$0xff] }
0x1e36   : > { %5169 = vmatpush.bf16.msrb.mxu1 %v7913_v41 }
0x1e37   : > { %v4967_v25 = vsub.f32 %v4933_v3, %v4966_v49  ;;  %v7912_v49 = vld [vmem:[%s9922_s2 + $0x18] sm:$0xff] }
0x1e39   : > { %v4968_v50 = vmul.f32 %v4967_v25, %v4967_v25 }
0x1e3a   : > { %5170 = vmatpush.bf16.msrb.mxu1 %v7912_v49 }
0x1e3b   : > { %v4969_v51 = vsel %vm4416_vm2, %v4968_v50, 0.0  ;;  %v7910_v50 = vld [vmem:[%s9922_s2 + $0x8] sm:$0xff] }
0x1e3c   : > { %v4970_v10 = vrot.slane %v4969_v51, 4 }
0x1e3e   : > { %v4971_v52 = vadd.f32 %v4970_v10, %v4969_v51  ;;  %v7909_v51 = vld [vmem:[%s9922_s2] sm:$0xff] }
0x1e40   : > { %v4972_v53 = vrot.slane %v4971_v52, 2 }
0x1e42   : > { %v4973_v54 = vadd.f32 %v4972_v53, %v4971_v52 }
0x1e44   : > { %v4974_v55 = vrot.slane %v4973_v54, 1 }
0x1e46   : > { %v4975_v56 = vadd.f32 %v4974_v55, %v4973_v54 }
0x1e48   : > { %7398 = vmatmul.msk.f32.vlgmr.msrb.gmra.mxu3 %vm2255_vm8, %v4975_v56 }
0x1e49   : > { %5247 = vmatpush.msrb.mxu3 %v9323_v18  ;;  %v5013_v18 = vperm.slane %v9440_v32, 2 }
0x1e4b   : > { %5248 = vmatpush.msrb.mxu3 %v9328_v19 }
0x1e4d   : > { %5249 = vmatpush.msrb.mxu3 %v9334_v20 }
0x1e4f   : > { %5250 = vmatpush.msrb.mxu3 %v9339_v24 }
0x1ecb   : > { %v4996_v58 = vpop.f32.mrf.mxu3 }
0x1ecc   : > { %v4997_v59 = vadd.f32 1e-05, %v4996_v58 }
0x1ece   : > { %8318 = vrsqrt.f32 %v4997_v59  ;;  %vm5005_vm12 = vweird.f32 %v4997_v59 }
0x1ed4   : > { %v8319_v2 = vpop.eup %8318 }
0x1ed5   : > { %v5000_v5 = vmul.f32 %v8319_v2, %v4997_v59  ;;  %vm5006_vm13 = vweird.f32 %v8319_v2 }
0x1ed6   : > { %vm5007_vm6 = vmor %vm5005_vm12, %vm5006_vm13 }
0x1ed7   : > { %v5001_v61 = vmul.f32 %v8319_v2, %v5000_v5 }
0x1ed9   : > { %v5002_v46 = vmul.f32 0.5, %v5001_v61 }
0x1edb   : > { %v5003_v11 = vsub.f32 1.5, %v5002_v46 }
0x1edd   : > { %v5004_v33 = vmul.f32 %v8319_v2, %v5003_v11 }
0x1edf   : > { %v5008_v12 = vsel %vm5007_vm6, %v8319_v2, %v5004_v33 }
0x1ee0   : > { %v5009_v8 = vperm.slane %v5008_v12, 0 }
0x1ee2   : > { %v5010_v1 = vmul.f32 %v5009_v8, %v4967_v25  ;;  %v7911_v25 = vld [vmem:[%s9922_s2 + $0x10] sm:$0xff]  ;;  %s9924_s2 = sld [smem:[#allocation36_spill]] }
0x1ee3   : > { %5171 = vmatpush.bf16.msrb.mxu1 %v7911_v25 }
0x1ee4   : > { %v5012_v57 = vmul.f32 %v5011_v43, %v5010_v1 }
0x1ee6   : > { %v5014_v19 = vadd.f32 %v5013_v18, %v5012_v57 }
0x1ee7   : > { %5172 = vmatpush.bf16.msrb.mxu1 %v7910_v50 }
0x1ee8   : > { %v5018_v6 = vand.u32 2147483647, %v5014_v19  ;;  %v5015_v27 = vmax.f32 %v5014_v19, 0.0  ;;  %vm5016_vm10 = vcmp.ne.f32.partialorder %v5014_v19, %v5014_v19 }
0x1eea   : > { %v5019_v62 = vsub.f32 0.0, %v5018_v6 }
0x1eeb   : > { %5173 = vmatpush.bf16.msrb.mxu1 %v7909_v51 }
0x1eec   : > { %v5020_v20 = vmul.f32 1.442695, %v5019_v62 }
0x1eee   : > { %8320 = vpow2.f32 %v5020_v20 }
0x1ef4   : > { %v8321_v13 = vpop.eup %8320 }
0x1ef5   : > { %v5022_v14 = vadd.f32 1.0, %v8321_v13  ;;  %v5025_v24 = vmul.f32 -0.5, %v8321_v13  ;;  %v5028_v17 = vand.u32 2147483647, %v8321_v13 }
0x1ef7   : > { %8322 = vlog2.f32 %v5022_v14  ;;  %v5026_v16 = vadd.f32 1.0, %v5025_v24  ;;  %vm5029_vm14 = vcmp.lt.f32.partialorder %v5028_v17, 0.0004427343 }
0x1ef9   : > { %v5027_v26 = vmul.f32 %v8321_v13, %v5026_v16 }
0x1efd   : > { %v8323_v42 = vpop.eup %8322 }
0x1efe   : > { %v5024_v4 = vmul.f32 0.6931472, %v8323_v42 }
0x1f00   : > { %v5030_v28 = vsel %vm5029_vm14, %v5027_v26, %v5024_v4 }
0x1f01   : > { %v5031_v22 = vadd.f32 %v5030_v28, %v5015_v27 }
0x1f03   : > { %v5032_v31 = vsel %vm5016_vm10, %v5014_v19, %v5031_v22 }
0x1f04   : > { %8324 = vtanh.f32 %v5032_v31 }
0x1f0a   : > { %v8325_v9 = vpop.eup %8324 }
0x1f0b   : > { %v5034_v35 = vmul.f32 %v8325_v9, %v5014_v19 }
0x1f0d   : > { %v5056_v36 = vadd.f32 %v5055_v34, %v5034_v35  ;;  %v5267_v34 = vperm.slane %v9440_v32, 4 }
0x1f0f   : > { %v5078_v3 = vrot.slane %v5056_v36, 6  ;;  %v5269_v36 = vperm.slane %v9440_v32, 5  ;;  %v7922_v32 = vld [vmem:[%s9923_s1 + $0x18] sm:$0xff] }
0x1f11   : > { %v5080_v37 = vsel %vm2301_vm0, 0.0, %v5078_v3 }
0x1f12   : > { %v5081_v38 = vsel %vm2324_vm1, %v5080_v37, 0.0 }
0x1f13   : > { %v5091_v40 = vrot.slane %v5081_v38, 3  ;;  %v5087_v63 = vrot.slane %v5081_v38, 2  ;;  %v5083_v44 = vrot.slane %v5081_v38, 1  ;;  %v5095_v47 = vrot.slane %v5081_v38, 4 }
0x1f15   : > { %5092 = vrot.lane.b32.xlu2 %v5091_v40, %s9919_s15  ;;  %5088 = vrot.lane.b32.xlu1 %v5087_v63, %s9911_s12  ;;  %v5101_v23 = vpack.c.bf16 %v5095_v47, %v5095_v47 }
0x1f16   : > { %5084 = vrot.lane.b32.xlu0 %v5083_v44, %s9920_s0 }
0x1f17   : > { %7440 = vmatmul.msk.bf16.vlgmr.msra.gmra.mxu3 %vm2255_vm8, %v5101_v23  ;;  %v7924_v23 = vld [vmem:[%s9923_s1 + $0x28] sm:$0xff] }
0x1f18   : > { %5367 = vmatpush.bf16.msra.mxu2 %v7924_v23 }
0x1f1c   : > { %5368 = vmatpush.bf16.msra.mxu2 %v7923_v48 }
0x1f20   : > { %5369 = vmatpush.bf16.msra.mxu2 %v7922_v32 }
0x1f6f   : > { %v5093_v54 = vpop.permute.xlu2 %5092 }
0x1f87   : > { %v5089_v10 = vpop.permute.xlu1 %5088 }
0x1f88   : > { %v5085_v52 = vpop.permute.xlu0 %5084 }
0x1f89   : > { %v5097_v53 = vsel %vm2255_vm8, %v5081_v38, %v5085_v52  ;;  %v7921_v52 = vld [vmem:[%s9923_s1 + $0x10] sm:$0xff] }
0x1f8a   : > { %v5098_v55 = vsel %vm3656_vm9, %v5097_v53, %v5089_v10  ;;  %5370 = vmatpush.bf16.msra.mxu2 %v7921_v52 }
0x1f8b   : > { %v5099_v56 = vsel %vm4580_vm11, %v5098_v55, %v5093_v54 }
0x1f8c   : > { %v5100_v58 = vpack.c.bf16 %v5099_v56, %v5099_v56  ;;  %v7920_v56 = vld [vmem:[%s9923_s1 + $0x8] sm:$0xff] }
0x1f8e   : > { %5174 = vmatmul.bf16.vlgmr.msrb.gmra.mxu1 %v5100_v58  ;;  %5371 = vmatpush.bf16.msra.mxu2 %v7920_v56 }
0x1f9a   : > { %v5188_v59 = vpop.f32.mrf.mxu3 }
0x1fa2   : > { %v5190_v60 = vpop.f32.mrf.mxu3 }
0x200b   : > { %v5175_v2 = vpop.f32.mrf.mxu1 }
0x200c   : > { %v5176_v5 = vadd.f32 %v5175_v2, %v5102_v0 }
0x200e   : > { %v5189_v61 = vadd.f32 %v5188_v59, %v5176_v5 }
0x2010   : > { %v5192_v46 = vsel %vm4416_vm2, %v5189_v61, 0.0 }
0x2011   : > { %v5193_v11 = vrot.slane %v5192_v46, 4 }
0x2013   : > { %v5194_v33 = vadd.f32 %v5193_v11, %v5192_v46  ;;  %v5177_v12 = vpop.f32.mrf.mxu1  ;;  %v7919_v11 = vld [vmem:[%s9923_s1] sm:$0xff]  ;;  %s9938_s1 = sld [smem:[#allocation49_spill]] }
0x2014   : > { %5372 = vmatpush.bf16.msra.mxu2 %v7919_v11 }
0x2015   : > { %v5195_v8 = vrot.slane %v5194_v33, 2 }
0x2017   : > { %v5196_v43 = vadd.f32 %v5195_v8, %v5194_v33 }
0x2019   : > { %v5197_v1 = vrot.slane %v5196_v43, 1 }
0x201b   : > { %v5198_v18 = vadd.f32 %v5197_v1, %v5196_v43  ;;  %v8200_v1 = vld [vmem:[%s9924_s2] ss:$0 sm:$0xff]  ;;  %s9931_s2 = sld [smem:[#allocation42_spill]] }
0x201d   : > { %7441 = vmatmul.msk.f32.vlgmr.msrb.gmra.mxu0 %vm2255_vm8, %v5198_v18 }
0x209a   : > { %v5219_v57 = vpop.f32.mrf.mxu0 }
0x209b   : > { %v5222_v19 = vperm.slane %v5219_v57, 0 }
0x209d   : > { %v5223_v6 = vsub.f32 %v5189_v61, %v5222_v19  ;;  %v5305_v19 = vld [vmem:[%s9925_s3] sm:$0x3]  ;;  %s9928_s3 = sld [smem:[#allocation38_spill]] }
0x209f   : > { %v5224_v62 = vmul.f32 %v5223_v6, %v5223_v6 }
0x20a1   : > { %v5225_v20 = vsel %vm4416_vm2, %v5224_v62, 0.0  ;;  %v7934_v62 = vld [vmem:[%s9926_s5 + $0x48] sm:$0xff] }
0x20a2   : > { %v5226_v13 = vrot.slane %v5225_v20, 4 }
0x20a3   : > { %v9533_v32 = vld [vmem:[%s9928_s3 + $0x30] sm:$0xff]  ;;  %v9563_v52 = vld [vmem:[%s9928_s3 + $0x8] sm:$0xff] }
0x20a4   : > { %v5227_v14 = vadd.f32 %v5226_v13, %v5225_v20  ;;  %v7933_v20 = vld [vmem:[%s9926_s5 + $0x40] sm:$0xff] }
0x20a5   : > { %v5648_v13 = vld [vmem:[%s9927_s6] sm:$0xf]  ;;  %s9929_s6 = sld [smem:[#allocation43_spill]] }
0x20a6   : > { %v5228_v24 = vrot.slane %v5227_v14, 2 }
0x20a8   : > { %v5229_v15 = vadd.f32 %v5228_v24, %v5227_v14  ;;  %v5653_v14 = vsel %vm2200_vm4, %v5648_v13, 0  ;;  %v7932_v24 = vld [vmem:[%s9926_s5 + $0x38] sm:$0xff] }
0x20a9   : > { %5522 = vmatpush.bf16.msra.mxu3 %v7932_v24 }
0x20aa   : > { %v5230_v16 = vrot.slane %v5229_v15, 1 }
0x20ac   : > { %v5231_v17 = vadd.f32 %v5230_v16, %v5229_v15 }
0x20ae   : > { %7442 = vmatmul.msk.f32.vlgmr.msrb.gmra.mxu3 %vm2255_vm8, %v5231_v17 }
0x2131   : > { %v5252_v42 = vpop.f32.mrf.mxu3 }
0x2132   : > { %v5253_v4 = vadd.f32 1e-05, %v5252_v42 }
0x2134   : > { %8326 = vrsqrt.f32 %v5253_v4  ;;  %vm5261_vm2 = vweird.f32 %v5253_v4 }
0x213a   : > { %v8327_v26 = vpop.eup %8326 }
0x213b   : > { %v5256_v27 = vmul.f32 %v8327_v26, %v5253_v4  ;;  %vm5262_vm1 = vweird.f32 %v8327_v26 }
0x213c   : > { %vm5263_vm13 = vmor %vm5261_vm2, %vm5262_vm1 }
0x213d   : > { %v5257_v28 = vmul.f32 %v8327_v26, %v5256_v27 }
0x213f   : > { %v5258_v22 = vmul.f32 0.5, %v5257_v28 }
0x2141   : > { %v5259_v29 = vsub.f32 1.5, %v5258_v22 }
0x2143   : > { %v5260_v31 = vmul.f32 %v8327_v26, %v5259_v29  ;;  %v7931_v29 = vld [vmem:[%s9926_s5 + $0x30] sm:$0xff] }
0x2144   : > { %5523 = vmatpush.bf16.msra.mxu3 %v7931_v29 }
0x2145   : > { %v5264_v7 = vsel %vm5263_vm13, %v8327_v26, %v5260_v31  ;;  %v7930_v31 = vld [vmem:[%s9926_s5 + $0x28] sm:$0xff] }
0x2146   : > { %v5265_v9 = vperm.slane %v5264_v7, 0  ;;  %v7929_v7 = vld [vmem:[%s9926_s5 + $0x20] sm:$0xff] }
0x2148   : > { %v5266_v35 = vmul.f32 %v5265_v9, %v5223_v6  ;;  %5524 = vmatpush.bf16.msra.mxu3 %v7930_v31  ;;  %v7928_v9 = vld [vmem:[%s9926_s5 + $0x18] sm:$0xff] }
0x214a   : > { %v5268_v3 = vmul.f32 %v5267_v34, %v5266_v35  ;;  %v7927_v34 = vld [vmem:[%s9926_s5 + $0x10] sm:$0xff]  ;;  %v7926_v35 = vld [vmem:[%s9926_s5 + $0x8] sm:$0xff] }
0x214c   : > { %v5270_v37 = vadd.f32 %v5269_v36, %v5268_v3  ;;  %5525 = vmatpush.bf16.msra.mxu3 %v7929_v7  ;;  %v7925_v36 = vld [vmem:[%s9926_s5] sm:$0xff] }
0x214e   : > { %v5274_v38 = vand.u32 2147483647, %v5270_v37  ;;  %v5271_v10 = vmax.f32 %v5270_v37, 0.0  ;;  %vm5272_vm6 = vcmp.ne.f32.partialorder %v5270_v37, %v5270_v37 }
0x2150   : > { %v5275_v40 = vsub.f32 0.0, %v5274_v38  ;;  %5526 = vmatpush.bf16.msra.mxu3 %v7928_v9 }
0x2152   : > { %v5276_v63 = vmul.f32 1.442695, %v5275_v40 }
0x2154   : > { %8328 = vpow2.f32 %v5276_v63  ;;  %5527 = vmatpush.bf16.msra.mxu3 %v7927_v34 }
0x2158   : > { %5528 = vmatpush.bf16.msra.mxu3 %v7926_v35 }
0x215a   : > { %v8329_v44 = vpop.eup %8328 }
0x215b   : > { %v5278_v47 = vadd.f32 1.0, %v8329_v44  ;;  %v5281_v30 = vmul.f32 -0.5, %v8329_v44  ;;  %v5284_v49 = vand.u32 2147483647, %v8329_v44 }
0x215c   : > { %5529 = vmatpush.bf16.msra.mxu3 %v7925_v36 }
0x215d   : > { %8330 = vlog2.f32 %v5278_v47  ;;  %v5282_v41 = vadd.f32 1.0, %v5281_v30  ;;  %vm5285_vm12 = vcmp.lt.f32.partialorder %v5284_v49, 0.0004427343  ;;  %v9528_v49 = vld [vmem:[%s9928_s3 + $0x38] sm:$0xff] }
0x215e   : > { %5567 = vmatpush.msra.mxu1 %v9528_v49  ;;  %5600 = vmatpush.msrb.mxu2 %v9528_v49 }
0x215f   : > { %v5283_v51 = vmul.f32 %v8329_v44, %v5282_v41 }
0x2160   : > { %5914 = vmatpush.msrb.mxu3 %v9528_v49  ;;  %5568 = vmatpush.msra.mxu1 %v9533_v32 }
0x2161   : > { %5601 = vmatpush.msrb.mxu2 %v9533_v32 }
0x2162   : > { %5915 = vmatpush.msrb.mxu3 %v9533_v32 }
0x2163   : > { %v8331_v25 = vpop.eup %8330 }
0x2164   : > { %v5280_v50 = vmul.f32 0.6931472, %v8331_v25  ;;  %v9539_v25 = vld [vmem:[%s9928_s3 + $0x28] sm:$0xff] }
0x2165   : > { %5569 = vmatpush.msra.mxu1 %v9539_v25  ;;  %5602 = vmatpush.msrb.mxu2 %v9539_v25 }
0x2166   : > { %v5286_v53 = vsel %vm5285_vm12, %v5283_v51, %v5280_v50  ;;  %v9545_v50 = vld [vmem:[%s9928_s3 + $0x20] sm:$0xff]  ;;  %5916 = vmatpush.msrb.mxu3 %v9539_v25  ;;  %v9551_v51 = vld [vmem:[%s9928_s3 + $0x18] sm:$0xff] }
0x2167   : > { %v5287_v54 = vadd.f32 %v5286_v53, %v5271_v10  ;;  %5570 = vmatpush.msra.mxu1 %v9545_v50  ;;  %5603 = vmatpush.msrb.mxu2 %v9545_v50  ;;  %v9557_v10 = vld [vmem:[%s9928_s3 + $0x10] sm:$0xff]  ;;  %v9568_v53 = vld [vmem:[%s9928_s3] sm:$0xff] }
0x2168   : > { %5917 = vmatpush.msrb.mxu3 %v9545_v50 }
0x2169   : > { %v5288_v55 = vsel %vm5272_vm6, %v5270_v37, %v5287_v54  ;;  %5571 = vmatpush.msra.mxu1 %v9551_v51  ;;  %5604 = vmatpush.msrb.mxu2 %v9551_v51  ;;  %v9576_v54 = vld [vmem:[%s9929_s6] sm:$0xff]  ;;  %s9933_s6 = sld [smem:[#allocation46_spill]] }
0x216a   : > { %8332 = vtanh.f32 %v5288_v55  ;;  %5918 = vmatpush.msrb.mxu3 %v9551_v51  ;;  %v5458_v55 = vperm.slane %v9576_v54, 0  ;;  %v5624_v9 = vperm.slane %v9576_v54, 1  ;;  %v5626_v35 = vperm.slane %v9576_v54, 2 }
0x216b   : > { %5572 = vmatpush.msra.mxu1 %v9557_v10  ;;  %5605 = vmatpush.msrb.mxu2 %v9557_v10 }
0x216c   : > { %5919 = vmatpush.msrb.mxu3 %v9557_v10 }
0x216d   : > { %5573 = vmatpush.msra.mxu1 %v9563_v52  ;;  %5606 = vmatpush.msrb.mxu2 %v9563_v52 }
0x216e   : > { %5920 = vmatpush.msrb.mxu3 %v9563_v52 }
0x216f   : > { %5574 = vmatpush.msra.mxu1 %v9568_v53  ;;  %5607 = vmatpush.msrb.mxu2 %v9568_v53 }
0x2170   : > { %v8333_v58 = vpop.eup %8332  ;;  %5921 = vmatpush.msrb.mxu3 %v9568_v53 }
0x2171   : > { %v5290_v59 = vmul.f32 %v8333_v58, %v5270_v37 }
0x2173   : > { %v5291_v60 = vadd.f32 %v5290_v59, %v9412_v45 }
0x2175   : > { %v5307_v0 = vrot.slane %v5291_v60, 7 }
0x2177   : > { %v5309_v2 = vsel %vm3318_vm15, 0.0, %v5307_v0 }
0x2178   : > { %v5310_v5 = vsel %vm2336_vm3, %v5309_v2, 0.0  ;;  %vm5548_vm3 = vcmask 517120  }
0x2179   : > { %v5316_v61 = vrot.slane %v5310_v5, 2  ;;  %v5312_v46 = vrot.slane %v5310_v5, 1 }
0x217b   : > { %5317 = vrot.lane.b32.xlu1 %v5316_v61, %s9911_s12  ;;  %5313 = vrot.lane.b32.xlu0 %v5312_v46, %s9920_s0 }
0x21ed   : > { %v5318_v33 = vpop.permute.xlu1 %5317  ;;  %v5314_v12 = vpop.permute.xlu0 %5313 }
0x21ee   : > { %v5320_v45 = vsel %vm2255_vm8, %v5310_v5, %v5314_v12 }
0x21ef   : > { %v5321_v8 = vsel %vm3656_vm9, %v5320_v45, %v5318_v33 }
0x21f0   : > { %v5322_v43 = vpack.c.bf16 %v5321_v8, %v5321_v8 }
0x21f2   : > { %7467 = vmatmul.msk.bf16.vlgmr.msra.gmra.mxu2 %vm4580_vm11, %v5322_v43 }
0x2275   : > { %v5374_v18 = vpop.f32.mrf.mxu2 }
0x2276   : > { %v5375_v57 = vadd.f32 %v8200_v1, %v5374_v18 }
0x2278   : > { %7468 = vmatpush.msk.msra.mxu0 %vm2200_vm4, %v5375_v57 }
0x2279   : > { %7469 = vmatmul.msk.f32.vlgmr.msra.gmra.mxu0 %vm2191_vm5, %v5305_v19 }
0x227a   : > { %5541 = vmatpush.bf16.msrb.mxu0 %v7934_v62 }
0x227d   : > { %v5376_v6 = vpop.f32.mrf.mxu2 }
0x227e   : > { %5542 = vmatpush.bf16.msrb.mxu0 %v7933_v20 }
0x2282   : > { %5662 = vmatpush.bf16.msra.mxu0 %v5653_v14 }
0x22f6   : > { %v9504_v15 = vpop.f32.mrf.mxu0 }
0x22f7   : > { %v5434_v16 = vrot.slane %v9504_v15, 6 }
0x22f9   : > { %v5436_v17 = vsel %vm2301_vm0, 0.0, %v5434_v16 }
0x22fa   : > { %v5437_v42 = vsel %vm2200_vm4, %v5436_v17, 0.0 }
0x22fb   : > { %v5451_v4 = vrot.slane %v5437_v42, 4  ;;  %v5443_v26 = vrot.slane %v5437_v42, 2  ;;  %v5439_v27 = vrot.slane %v5437_v42, 1  ;;  %v5447_v28 = vrot.slane %v5437_v42, 3 }
0x22fd   : > { %v5457_v22 = vpack.c.bf16 %v5451_v4, %v5451_v4  ;;  %5444 = vrot.lane.b32.xlu0 %v5443_v26, %s9911_s12  ;;  %5440 = vrot.lane.b32.xlu2 %v5439_v27, %s9920_s0  ;;  %s9930_s0 = sld [smem:[#allocation40_spill]] }
0x22fe   : > { %5448 = vrot.lane.b32.xlu1 %v5447_v28, %s9919_s15  ;;  %s9932_s15 = sld [smem:[#allocation44_spill]] }
0x22ff   : > { %7510 = vmatmul.msk.bf16.vlgmr.msrb.gmra.mxu0 %vm2255_vm8, %v5457_v22 }
0x2303   : > { %v7954_v24 = vld [vmem:[%s9930_s0 + $0x98] sm:$0xff]  ;;  %v7953_v16 = vld [vmem:[%s9930_s0 + $0x90] sm:$0xff]  ;;  %v7951_v27 = vld [vmem:[%s9930_s0 + $0x80] sm:$0xff] }
0x2304   : > { %5887 = vmatpush.bf16.msrb.mxu0 %v7954_v24 }
0x2308   : > { %5888 = vmatpush.bf16.msrb.mxu0 %v7953_v16  ;;  %v7941_v16 = vld [vmem:[%s9930_s0 + $0x30] sm:$0xff] }
0x230f   : > { %7513 = vmatmul.msk.bf16.vlgmr.msra.gmra.mxu0 %vm2196_vm7, %v8962_v39 }
0x2357   : > { %v5441_v3 = vpop.permute.xlu2 %5440 }
0x2358   : > { %v5453_v37 = vsel %vm2255_vm8, %v5437_v42, %v5441_v3  ;;  %v7952_v42 = vld [vmem:[%s9930_s0 + $0x88] sm:$0xff] }
0x2359   : > { %5889 = vmatpush.bf16.msrb.mxu0 %v7952_v42  ;;  %v7940_v42 = vld [vmem:[%s9930_s0 + $0x28] sm:$0xff] }
0x235d   : > { %5890 = vmatpush.bf16.msrb.mxu0 %v7951_v27  ;;  %v7937_v27 = vld [vmem:[%s9930_s0 + $0x10] sm:$0xff] }
0x2361   : > { %5947 = vmatpush.msra.mxu0 %v9528_v49 }
0x2363   : > { %5948 = vmatpush.msra.mxu0 %v9533_v32 }
0x2365   : > { %5949 = vmatpush.msra.mxu0 %v9539_v25 }
0x2367   : > { %5950 = vmatpush.msra.mxu0 %v9545_v50 }
0x2369   : > { %5951 = vmatpush.msra.mxu0 %v9551_v51 }
0x236b   : > { %5952 = vmatpush.msra.mxu0 %v9557_v10 }
0x236d   : > { %5953 = vmatpush.msra.mxu0 %v9563_v52 }
0x236f   : > { %v5445_v38 = vpop.permute.xlu0 %5444  ;;  %5954 = vmatpush.msra.mxu0 %v9568_v53 }
0x2370   : > { %v5454_v40 = vsel %vm3656_vm9, %v5453_v37, %v5445_v38  ;;  %v5449_v63 = vpop.permute.xlu1 %5448 }
0x2371   : > { %v5455_v44 = vsel %vm4580_vm11, %v5454_v40, %v5449_v63 }
0x2372   : > { %v5456_v47 = vpack.c.bf16 %v5455_v44, %v5455_v44 }
0x2374   : > { %5530 = vmatmul.bf16.vlgmr.msra.gmra.mxu3 %v5456_v47 }
0x237c   : > { %v5544_v23 = vpop.f32.mrf.mxu0 }
0x2384   : > { %v5546_v30 = vpop.f32.mrf.mxu0 }
0x2385   : > { %v7949_v30 = vld [vmem:[%s9930_s0 + $0x70] sm:$0xff] }
0x238c   : > { %v9525_v48 = vpop.f32.mrf.mxu0 }
0x2394   : > { %v5666_v41 = vpop.f32.mrf.mxu0 }
0x2395   : > { %v7942_v41 = vld [vmem:[%s9930_s0 + $0x38] sm:$0xff] }
0x2396   : > { %5857 = vmatpush.bf16.msrb.mxu1 %v7942_v41 }
0x239a   : > { %5858 = vmatpush.bf16.msrb.mxu1 %v7941_v16  ;;  %v7974_v16 = vld [vmem:[%s9932_s15 + $0x88] sm:$0xff] }
0x239e   : > { %5859 = vmatpush.bf16.msrb.mxu1 %v7940_v42 }
0x23f7   : > { %v5531_v56 = vpop.f32.mrf.mxu3 }
0x23f8   : > { %v5532_v58 = vadd.f32 %v5531_v56, %v5458_v55 }
0x23fa   : > { %v5545_v59 = vadd.f32 %v5544_v23, %v5532_v58  ;;  %v7950_v23 = vld [vmem:[%s9930_s0 + $0x78] sm:$0xff] }
0x23fb   : > { %5870 = vmatpush.bf16.msra.mxu2 %v7950_v23 }
0x23fc   : > { %v5549_v60 = vsel %vm5548_vm3, %v5545_v59, 0.0 }
0x23fd   : > { %v5550_v0 = vrot.slane %v5549_v60, 4 }
0x23ff   : > { %v5551_v2 = vadd.f32 %v5550_v0, %v5549_v60  ;;  %v5533_v5 = vpop.f32.mrf.mxu3  ;;  %5871 = vmatpush.bf16.msra.mxu2 %v7949_v30 }
0x2401   : > { %v5552_v61 = vrot.slane %v5551_v2, 2 }
0x2403   : > { %v5553_v46 = vadd.f32 %v5552_v61, %v5551_v2 }
0x2405   : > { %v5554_v11 = vrot.slane %v5553_v46, 1 }
0x2407   : > { %v5555_v33 = vadd.f32 %v5554_v11, %v5553_v46  ;;  %v7947_v46 = vld [vmem:[%s9930_s0 + $0x60] sm:$0xff]  ;;  %v5650_v11 = vrot.slane %v9576_v54, 6 }
0x2409   : > { %7511 = vmatmul.msk.f32.vlgmr.msra.gmra.mxu1 %vm3656_vm9, %v5555_v33 }
0x2486   : > { %v5576_v12 = vpop.f32.mrf.mxu1 }
0x2487   : > { %v5579_v45 = vperm.slane %v5576_v12, 0  ;;  %v7946_v12 = vld [vmem:[%s9930_s0 + $0x58] sm:$0xff] }
0x2489   : > { %v5580_v8 = vsub.f32 %v5545_v59, %v5579_v45  ;;  %v7948_v59 = vld [vmem:[%s9930_s0 + $0x68] sm:$0xff]  ;;  %v5665_v45 = vadd.f32 %v9525_v48, %v5650_v11 }
0x248a   : > { %5872 = vmatpush.bf16.msra.mxu2 %v7948_v59 }
0x248b   : > { %v5581_v43 = vmul.f32 %v5580_v8, %v5580_v8 }
0x248d   : > { %v5582_v1 = vsel %vm5548_vm3, %v5581_v43, 0.0 }
0x248e   : > { %v5583_v18 = vrot.slane %v5582_v1, 4  ;;  %5873 = vmatpush.bf16.msra.mxu2 %v7947_v46  ;;  %v5999_v46 = vpack.c.bf16 %v9504_v15, %v9504_v15 }
0x2490   : > { %v5584_v57 = vadd.f32 %v5583_v18, %v5582_v1  ;;  %v5668_v1 = vperm.slane %v5665_v45, 0 }
0x2492   : > { %v5585_v19 = vrot.slane %v5584_v57, 2  ;;  %5874 = vmatpush.bf16.msra.mxu2 %v7946_v12 }
0x2494   : > { %v5586_v6 = vadd.f32 %v5585_v19, %v5584_v57  ;;  %v7944_v19 = vld [vmem:[%s9930_s0 + $0x48] sm:$0xff] }
0x2496   : > { %v5587_v62 = vrot.slane %v5586_v6, 1 }
0x2498   : > { %v5588_v20 = vadd.f32 %v5587_v62, %v5586_v6 }
0x249a   : > { %7512 = vmatmul.msk.f32.vlgmr.msrb.gmra.mxu2 %vm3656_vm9, %v5588_v20 }
0x251d   : > { %v5609_v13 = vpop.f32.mrf.mxu2 }
0x251e   : > { %v5610_v14 = vadd.f32 1e-05, %v5609_v13 }
0x2520   : > { %8334 = vrsqrt.f32 %v5610_v14  ;;  %vm5618_vm11 = vweird.f32 %v5610_v14 }
0x2526   : > { %v8335_v17 = vpop.eup %8334 }
0x2527   : > { %v5613_v4 = vmul.f32 %v8335_v17, %v5610_v14  ;;  %vm5619_vm5 = vweird.f32 %v8335_v17 }
0x2528   : > { %vm5620_vm14 = vmor %vm5618_vm11, %vm5619_vm5 }
0x2529   : > { %v5614_v26 = vmul.f32 %v8335_v17, %v5613_v4  ;;  %v7939_v4 = vld [vmem:[%s9930_s0 + $0x20] sm:$0xff] }
0x252a   : > { %5860 = vmatpush.bf16.msrb.mxu1 %v7939_v4  ;;  %v7973_v4 = vld [vmem:[%s9932_s15 + $0x80] sm:$0xff] }
0x252b   : > { %v5615_v28 = vmul.f32 0.5, %v5614_v26  ;;  %v7938_v26 = vld [vmem:[%s9930_s0 + $0x18] sm:$0xff] }
0x252d   : > { %v5616_v22 = vsub.f32 1.5, %v5615_v28  ;;  %v7936_v28 = vld [vmem:[%s9930_s0 + $0x8] sm:$0xff] }
0x252e   : > { %5861 = vmatpush.bf16.msrb.mxu1 %v7938_v26 }
0x252f   : > { %v5617_v29 = vmul.f32 %v8335_v17, %v5616_v22  ;;  %v7935_v22 = vld [vmem:[%s9930_s0] sm:$0xff] }
0x2531   : > { %v5621_v31 = vsel %vm5620_vm14, %v8335_v17, %v5617_v29  ;;  %v7943_v17 = vld [vmem:[%s9930_s0 + $0x40] sm:$0xff] }
0x2532   : > { %v5622_v7 = vperm.slane %v5621_v31, 0  ;;  %5862 = vmatpush.bf16.msrb.mxu1 %v7937_v27 }
0x2534   : > { %v5623_v34 = vmul.f32 %v5622_v7, %v5580_v8  ;;  %v7945_v8 = vld [vmem:[%s9930_s0 + $0x50] sm:$0xff]  ;;  %s9934_s0 = sld [smem:[#allocation47_spill]] }
0x2535   : > { %5875 = vmatpush.bf16.msra.mxu2 %v7945_v8 }
0x2536   : > { %v5625_v36 = vmul.f32 %v5624_v9, %v5623_v34  ;;  %5863 = vmatpush.bf16.msrb.mxu1 %v7936_v28 }
0x2538   : > { %v5627_v3 = vadd.f32 %v5626_v35, %v5625_v36 }
0x2539   : > { %5876 = vmatpush.bf16.msra.mxu2 %v7944_v19 }
0x253a   : > { %v5631_v37 = vand.u32 2147483647, %v5627_v3  ;;  %v5628_v2 = vmax.f32 %v5627_v3, 0.0  ;;  %vm5629_vm1 = vcmp.ne.f32.partialorder %v5627_v3, %v5627_v3  ;;  %5864 = vmatpush.bf16.msrb.mxu1 %v7935_v22 }
0x253c   : > { %v5632_v38 = vsub.f32 0.0, %v5631_v37 }
0x253d   : > { %5877 = vmatpush.bf16.msra.mxu2 %v7943_v17 }
0x253e   : > { %v5633_v40 = vmul.f32 1.442695, %v5632_v38 }
0x2540   : > { %8336 = vpow2.f32 %v5633_v40  ;;  %v7956_v40 = vld [vmem:[%s9931_s2 + $0x8] sm:$0xff] }
0x2541   : > { %6022 = vmatpush.bf16.msra.mxu3 %v7956_v40 }
0x2546   : > { %v8337_v63 = vpop.eup %8336 }
0x2547   : > { %v5635_v44 = vadd.f32 1.0, %v8337_v63  ;;  %v5638_v47 = vmul.f32 -0.5, %v8337_v63  ;;  %v5641_v56 = vand.u32 2147483647, %v8337_v63 }
0x2549   : > { %8338 = vlog2.f32 %v5635_v44  ;;  %v5639_v55 = vadd.f32 1.0, %v5638_v47  ;;  %vm5642_vm10 = vcmp.lt.f32.partialorder %v5641_v56, 0.0004427343  ;;  %v7955_v44 = vld [vmem:[%s9931_s2] sm:$0xff]  ;;  %v5733_v47 = vperm.slane %v9576_v54, 3  ;;  %s9939_s2 = sld [smem:[#allocation50_spill]] }
0x254a   : > { %6023 = vmatpush.bf16.msra.mxu3 %v7955_v44 }
0x254b   : > { %v5640_v0 = vmul.f32 %v8337_v63, %v5639_v55 }
0x254f   : > { %v8339_v58 = vpop.eup %8338 }
0x2550   : > { %v5637_v60 = vmul.f32 0.6931472, %v8339_v58 }
0x2552   : > { %v5643_v5 = vsel %vm5642_vm10, %v5640_v0, %v5637_v60 }
0x2553   : > { %v5644_v61 = vadd.f32 %v5643_v5, %v5628_v2 }
0x2555   : > { %v5645_v33 = vsel %vm5629_vm1, %v5627_v3, %v5644_v61 }
0x2556   : > { %8340 = vtanh.f32 %v5645_v33 }
0x255c   : > { %v8341_v43 = vpop.eup %8340 }
0x255d   : > { %v5647_v18 = vmul.f32 %v8341_v43, %v5627_v3 }
0x255f   : > { %v5669_v57 = vadd.f32 %v5668_v1, %v5647_v18 }
0x2561   : > { %v5711_v6 = vrot.slane %v5669_v57, 6 }
0x2563   : > { %v5713_v62 = vsel %vm2301_vm0, 0.0, %v5711_v6 }
0x2564   : > { %v5714_v20 = vsel %vm2200_vm4, %v5713_v62, 0.0 }
0x2565   : > { %v5722_v13 = vrot.slane %v5714_v20, 3  ;;  %v5726_v14 = vrot.slane %v5714_v20, 4  ;;  %v5716_v24 = vrot.slane %v5714_v20, 1  ;;  %v5720_v29 = vrot.slane %v5714_v20, 2 }
0x2567   : > { %v5732_v48 = vpack.c.bf16 %v5726_v14, %v5726_v14  ;;  %5723 = vrot.lane.b32.xlu2 %v5722_v13, %s9911_s12  ;;  %5717 = vrot.lane.b32.xlu0 %v5716_v24, %s9911_s12  ;;  %v7976_v14 = vld [vmem:[%s9932_s15 + $0x98] sm:$0xff]  ;;  %v7975_v24 = vld [vmem:[%s9932_s15 + $0x90] sm:$0xff] }
0x2568   : > { %6248 = vmatpush.bf16.msrb.mxu2 %v7976_v14  ;;  %v7970_v14 = vld [vmem:[%s9932_s15 + $0x68] sm:$0xff] }
0x2569   : > { %7594 = vmatmul.msk.bf16.vlgmr.msrb.gmra.mxu0 %vm3656_vm9, %v5732_v48 }
0x256a   : > { %6275 = vmatpush.msrb.mxu0 %v9528_v49 }
0x256c   : > { %6276 = vmatpush.msrb.mxu0 %v9533_v32  ;;  %6249 = vmatpush.bf16.msrb.mxu2 %v7975_v24  ;;  %v7968_v24 = vld [vmem:[%s9932_s15 + $0x58] sm:$0xff] }
0x256e   : > { %6277 = vmatpush.msrb.mxu0 %v9539_v25 }
0x2570   : > { %6278 = vmatpush.msrb.mxu0 %v9545_v50  ;;  %6250 = vmatpush.bf16.msrb.mxu2 %v7974_v16  ;;  %v7966_v16 = vld [vmem:[%s9932_s15 + $0x48] sm:$0xff] }
0x2572   : > { %6279 = vmatpush.msrb.mxu0 %v9551_v51 }
0x2574   : > { %6280 = vmatpush.msrb.mxu0 %v9557_v10  ;;  %6251 = vmatpush.bf16.msrb.mxu2 %v7973_v4 }
0x2576   : > { %6281 = vmatpush.msrb.mxu0 %v9563_v52 }
0x2578   : > { %6282 = vmatpush.msrb.mxu0 %v9568_v53 }
0x25c1   : > { %v5724_v31 = vpop.permute.xlu2 %5723 }
0x25c2   : > { %v5729_v7 = vsel %vm3656_vm9, %v5720_v29, %v5724_v31  ;;  %v5971_v31 = vperm.slane %v9576_v54, 4 }
0x25c3   : > { %v5731_v9 = vpack.c.bf16 %v5729_v7, %v5729_v7 }
0x25c5   : > { %5878 = vmatmul.bf16.vlgmr.msra.gmra.mxu2 %v5731_v9  ;;  %v5973_v9 = vperm.slane %v9576_v54, 5 }
0x25c6   : > { %6308 = vmatpush.msra.mxu2 %v9528_v49 }
0x25c8   : > { %6309 = vmatpush.msra.mxu2 %v9533_v32 }
0x25ca   : > { %6310 = vmatpush.msra.mxu2 %v9539_v25 }
0x25cc   : > { %6311 = vmatpush.msra.mxu2 %v9545_v50 }
0x25ce   : > { %6312 = vmatpush.msra.mxu2 %v9551_v51 }
0x25d0   : > { %6313 = vmatpush.msra.mxu2 %v9557_v10 }
0x25d2   : > { %6314 = vmatpush.msra.mxu2 %v9563_v52 }
0x25d4   : > { %6315 = vmatpush.msra.mxu2 %v9568_v53 }
0x25d9   : > { %v5718_v34 = vpop.permute.xlu0 %5717 }
0x25da   : > { %v5728_v35 = vsel %vm3656_vm9, %v5714_v20, %v5718_v34 }
0x25db   : > { %v5730_v36 = vpack.c.bf16 %v5728_v35, %v5728_v35 }
0x25dd   : > { %5865 = vmatmul.bf16.vlgmr.msrb.gmra.mxu1 %v5730_v36 }
0x25e6   : > { %v5892_v3 = vpop.f32.mrf.mxu0 }
0x25ee   : > { %v5894_v37 = vpop.f32.mrf.mxu0 }
0x2648   : > { %v5879_v38 = vpop.f32.mrf.mxu2 }
0x2650   : > { %v5881_v63 = vpop.f32.mrf.mxu2 }
0x265a   : > { %v5866_v23 = vpop.f32.mrf.mxu1 }
0x265b   : > { %v5867_v30 = vadd.f32 %v5866_v23, %v5733_v47 }
0x265d   : > { %v5880_v41 = vadd.f32 %v5879_v38, %v5867_v30  ;;  %v7964_v30 = vld [vmem:[%s9932_s15 + $0x38] sm:$0xff] }
0x265e   : > { %6218 = vmatpush.bf16.msra.mxu1 %v7964_v30 }
0x265f   : > { %v5893_v55 = vadd.f32 %v5892_v3, %v5880_v41 }
0x2661   : > { %v5896_v56 = vsel %vm5548_vm3, %v5893_v55, 0.0 }
0x2662   : > { %v5897_v58 = vrot.slane %v5896_v56, 4  ;;  %v5868_v59 = vpop.f32.mrf.mxu1 }
0x2663   : > { %v7972_v59 = vld [vmem:[%s9932_s15 + $0x78] sm:$0xff] }
0x2664   : > { %v5898_v60 = vadd.f32 %v5897_v58, %v5896_v56  ;;  %v7963_v58 = vld [vmem:[%s9932_s15 + $0x30] sm:$0xff] }
0x2665   : > { %6219 = vmatpush.bf16.msra.mxu1 %v7963_v58 }
0x2666   : > { %v5899_v0 = vrot.slane %v5898_v60, 2 }
0x2668   : > { %v5900_v2 = vadd.f32 %v5899_v0, %v5898_v60 }
0x266a   : > { %v5901_v5 = vrot.slane %v5900_v2, 1 }
0x266c   : > { %v5902_v61 = vadd.f32 %v5901_v5, %v5900_v2  ;;  %v7962_v5 = vld [vmem:[%s9932_s15 + $0x28] sm:$0xff] }
0x266d   : > { %6220 = vmatpush.bf16.msra.mxu1 %v7962_v5 }
0x266e   : > { %7595 = vmatmul.msk.f32.vlgmr.msrb.gmra.mxu3 %vm3656_vm9, %v5902_v61  ;;  %v6000_v61 = vperm.slane %v9576_v54, 7 }
0x266f   : > { %6231 = vmatpush.bf16.msrb.mxu3 %v7972_v59 }
0x2676   : > { %7605 = vmatmul.msk.bf16.vlgmr.msra.gmra.mxu3 %vm2255_vm8, %v5999_v46  ;;  %v7961_v46 = vld [vmem:[%s9932_s15 + $0x20] sm:$0xff] }
0x2677   : > { %6221 = vmatpush.bf16.msra.mxu1 %v7961_v46 }
0x26f1   : > { %v5923_v11 = vpop.f32.mrf.mxu3 }
0x26f2   : > { %v5926_v33 = vperm.slane %v5923_v11, 0 }
0x26f4   : > { %v5927_v12 = vsub.f32 %v5893_v55, %v5926_v33 }
0x26f6   : > { %v5928_v45 = vmul.f32 %v5927_v12, %v5927_v12 }
0x26f8   : > { %v5929_v8 = vsel %vm5548_vm3, %v5928_v45, 0.0  ;;  %v7960_v45 = vld [vmem:[%s9932_s15 + $0x18] sm:$0xff] }
0x26f9   : > { %v5930_v43 = vrot.slane %v5929_v8, 4  ;;  %v9639_v1 = vpop.f32.mrf.mxu3  ;;  %6222 = vmatpush.bf16.msra.mxu1 %v7960_v45 }
0x26fa   : > { %v6026_v33 = vadd.f32 %v9639_v1, %v6000_v61 }
0x26fb   : > { %v5931_v18 = vadd.f32 %v5930_v43, %v5929_v8 }
0x26fd   : > { %v5932_v57 = vrot.slane %v5931_v18, 2 }
0x26ff   : > { %v5933_v19 = vadd.f32 %v5932_v57, %v5931_v18  ;;  %v7959_v18 = vld [vmem:[%s9932_s15 + $0x10] sm:$0xff] }
0x2700   : > { %6223 = vmatpush.bf16.msra.mxu1 %v7959_v18 }
0x2701   : > { %v5934_v6 = vrot.slane %v5933_v19, 1  ;;  %v6027_v15 = vpop.f32.mrf.mxu3 }
0x2703   : > { %v5935_v62 = vadd.f32 %v5934_v6, %v5933_v19 }
0x2705   : > { %7596 = vmatmul.msk.f32.vlgmr.msra.gmra.mxu0 %vm3656_vm9, %v5935_v62  ;;  %v7958_v62 = vld [vmem:[%s9932_s15 + $0x8] sm:$0xff] }
0x2706   : > { %6224 = vmatpush.bf16.msra.mxu1 %v7958_v62 }
0x2782   : > { %v5956_v20 = vpop.f32.mrf.mxu0 }
0x2783   : > { %v5957_v13 = vadd.f32 1e-05, %v5956_v20  ;;  %v7957_v20 = vld [vmem:[%s9932_s15] sm:$0xff] }
0x2784   : > { %6225 = vmatpush.bf16.msra.mxu1 %v7957_v20 }
0x2785   : > { %8342 = vrsqrt.f32 %v5957_v13  ;;  %vm5965_vm13 = vweird.f32 %v5957_v13 }
0x278b   : > { %v8343_v48 = vpop.eup %8342 }
0x278c   : > { %v5960_v17 = vmul.f32 %v8343_v48, %v5957_v13  ;;  %vm5966_vm2 = vweird.f32 %v8343_v48  ;;  %v7971_v13 = vld [vmem:[%s9932_s15 + $0x70] sm:$0xff] }
0x278d   : > { %vm5967_vm12 = vmor %vm5965_vm13, %vm5966_vm2  ;;  %6232 = vmatpush.bf16.msrb.mxu3 %v7971_v13 }
0x278e   : > { %v5961_v42 = vmul.f32 %v8343_v48, %v5960_v17  ;;  %v7965_v17 = vld [vmem:[%s9932_s15 + $0x40] sm:$0xff] }
0x2790   : > { %v5962_v26 = vmul.f32 0.5, %v5961_v42 }
0x2791   : > { %6233 = vmatpush.bf16.msrb.mxu3 %v7970_v14 }
0x2792   : > { %v5963_v27 = vsub.f32 1.5, %v5962_v26 }
0x2794   : > { %v5964_v28 = vmul.f32 %v8343_v48, %v5963_v27 }
0x2796   : > { %v5968_v22 = vsel %vm5967_vm12, %v8343_v48, %v5964_v28  ;;  %v7967_v48 = vld [vmem:[%s9932_s15 + $0x50] sm:$0xff] }
0x2797   : > { %v5969_v29 = vperm.slane %v5968_v22, 0 }
0x2799   : > { %v5970_v7 = vmul.f32 %v5969_v29, %v5927_v12 }
0x279b   : > { %v5972_v34 = vmul.f32 %v5971_v31, %v5970_v7 }
0x279d   : > { %v5974_v35 = vadd.f32 %v5973_v9, %v5972_v34 }
0x279f   : > { %v5978_v36 = vand.u32 2147483647, %v5974_v35  ;;  %v5975_v56 = vmax.f32 %v5974_v35, 0.0  ;;  %vm5976_vm5 = vcmp.ne.f32.partialorder %v5974_v35, %v5974_v35 }
0x27a1   : > { %v5979_v3 = vsub.f32 0.0, %v5978_v36 }
0x27a3   : > { %v5980_v37 = vmul.f32 1.442695, %v5979_v3  ;;  %v9697_v3 = vld [vmem:[%s9934_s0] sm:$0xff]  ;;  %s9935_s0 = sld [smem:[#allocation45_spill]] }
0x27a5   : > { %8344 = vpow2.f32 %v5980_v37  ;;  %v6094_v37 = vperm.slane %v9697_v3, 0 }
0x27ab   : > { %v8345_v38 = vpop.eup %8344 }
0x27ac   : > { %v5982_v40 = vadd.f32 1.0, %v8345_v38  ;;  %v5985_v63 = vmul.f32 -0.5, %v8345_v38  ;;  %v5988_v47 = vand.u32 2147483647, %v8345_v38 }
0x27ae   : > { %8346 = vlog2.f32 %v5982_v40  ;;  %v5986_v44 = vadd.f32 1.0, %v5985_v63  ;;  %vm5989_vm6 = vcmp.lt.f32.partialorder %v5988_v47, 0.0004427343 }
0x27b0   : > { %v5987_v55 = vmul.f32 %v8345_v38, %v5986_v44 }
0x27b4   : > { %v8347_v23 = vpop.eup %8346 }
0x27b5   : > { %v5984_v41 = vmul.f32 0.6931472, %v8347_v23 }
0x27b7   : > { %v5990_v60 = vsel %vm5989_vm6, %v5987_v55, %v5984_v41 }
0x27b8   : > { %v5991_v0 = vadd.f32 %v5990_v60, %v5975_v56 }
0x27ba   : > { %v5992_v2 = vsel %vm5976_vm5, %v5974_v35, %v5991_v0  ;;  %vm6734_vm5 = vcmask 1042432  }
0x27bb   : > { %8348 = vtanh.f32 %v5992_v2 }
0x27c1   : > { %v8349_v11 = vpop.eup %8348 }
0x27c2   : > { %v5994_v12 = vmul.f32 %v8349_v11, %v5974_v35  ;;  %v6356_v35 = vld [vmem:[%s9933_s6] sm:$0xf]  ;;  %s9936_s6 = sld [smem:[#allocation48_spill]] }
0x27c3   : > { %v6361_v36 = vsel %vm2200_vm4, %v6356_v35, 0  ;;  %v7992_v35 = vld [vmem:[%s9935_s0 + $0x78] sm:$0xff] }
0x27c4   : > { %v9664_v8 = vadd.f32 %v6026_v33, %v5994_v12  ;;  %6370 = vmatpush.bf16.msra.mxu0 %v6361_v36  ;;  %6578 = vmatpush.bf16.msrb.mxu1 %v7992_v35  ;;  %v7983_v36 = vld [vmem:[%s9935_s0 + $0x30] sm:$0xff] }
0x27c6   : > { %v6072_v43 = vrot.slane %v9664_v8, 6 }
0x27c8   : > { %v6074_v57 = vsel %vm2301_vm0, 0.0, %v6072_v43 }
0x27c9   : > { %v6075_v19 = vsel %vm2200_vm4, %v6074_v57, 0.0 }
0x27ca   : > { %v6083_v54 = vrot.slane %v6075_v19, 3  ;;  %v6087_v6 = vrot.slane %v6075_v19, 4  ;;  %v6077_v15 = vrot.slane %v6075_v19, 1  ;;  %v6081_v27 = vrot.slane %v6075_v19, 2 }
0x27cc   : > { %v6093_v1 = vpack.c.bf16 %v6087_v6, %v6087_v6  ;;  %6084 = vrot.lane.b32.xlu1 %v6083_v54, %s9911_s12  ;;  %6078 = vrot.lane.b32.xlu2 %v6077_v15, %s9911_s12 }
0x27ce   : > { %7686 = vmatmul.msk.bf16.vlgmr.msrb.gmra.mxu2 %vm3656_vm9, %v6093_v1 }
0x27cf   : > { %6622 = vmatpush.msrb.mxu2 %v9528_v49 }
0x27d1   : > { %6623 = vmatpush.msrb.mxu2 %v9533_v32 }
0x27d3   : > { %6624 = vmatpush.msrb.mxu2 %v9539_v25 }
0x27d4   : > { %6878 = vrot.lane.b32.xlu2 %v8952_v21, %s9911_s12  ;;  %v7969_v21 = vld [vmem:[%s9932_s15 + $0x60] sm:$0xff] }
0x27d5   : > { %6625 = vmatpush.msrb.mxu2 %v9545_v50  ;;  %6234 = vmatpush.bf16.msrb.mxu3 %v7969_v21  ;;  %v6332_v21 = vperm.slane %v9697_v3, 1 }
0x27d7   : > { %6626 = vmatpush.msrb.mxu2 %v9551_v51 }
0x27d9   : > { %6627 = vmatpush.msrb.mxu2 %v9557_v10  ;;  %6235 = vmatpush.bf16.msrb.mxu3 %v7968_v24 }
0x27db   : > { %6628 = vmatpush.msrb.mxu2 %v9563_v52 }
0x27dd   : > { %6629 = vmatpush.msrb.mxu2 %v9568_v53  ;;  %6236 = vmatpush.bf16.msrb.mxu3 %v7967_v48  ;;  %v6334_v48 = vperm.slane %v9697_v3, 2 }
0x27e1   : > { %6237 = vmatpush.bf16.msrb.mxu3 %v7966_v16 }
0x27e5   : > { %6238 = vmatpush.bf16.msrb.mxu3 %v7965_v17 }
0x2826   : > { %v6079_v42 = vpop.permute.xlu2 %6078 }
0x2827   : > { %v6089_v4 = vsel %vm3656_vm9, %v6075_v19, %v6079_v42  ;;  %v7996_v42 = vld [vmem:[%s9935_s0 + $0x98] sm:$0xff] }
0x2828   : > { %v6091_v26 = vpack.c.bf16 %v6089_v4, %v6089_v4  ;;  %6595 = vmatpush.bf16.msra.mxu3 %v7996_v42 }
0x282a   : > { %6226 = vmatmul.bf16.vlgmr.msra.gmra.mxu1 %v6091_v26 }
0x283e   : > { %v6085_v28 = vpop.permute.xlu1 %6084 }
0x283f   : > { %v6090_v22 = vsel %vm3656_vm9, %v6081_v27, %v6085_v28  ;;  %v7995_v27 = vld [vmem:[%s9935_s0 + $0x90] sm:$0xff] }
0x2840   : > { %v6092_v29 = vpack.c.bf16 %v6090_v22, %v6090_v22  ;;  %6596 = vmatpush.bf16.msra.mxu3 %v7995_v27  ;;  %v7994_v22 = vld [vmem:[%s9935_s0 + $0x88] sm:$0xff] }
0x2842   : > { %6239 = vmatmul.bf16.vlgmr.msrb.gmra.mxu3 %v6092_v29  ;;  %v7993_v29 = vld [vmem:[%s9935_s0 + $0x80] sm:$0xff] }
0x2844   : > { %6597 = vmatpush.bf16.msra.mxu3 %v7994_v22 }
0x2848   : > { %6598 = vmatpush.bf16.msra.mxu3 %v7993_v29 }
0x284c   : > { %6655 = vmatpush.msrb.mxu3 %v9528_v49  ;;  %v7982_v49 = vld [vmem:[%s9935_s0 + $0x28] sm:$0xff] }
0x284e   : > { %6656 = vmatpush.msrb.mxu3 %v9533_v32 }
0x2850   : > { %6657 = vmatpush.msrb.mxu3 %v9539_v25 }
0x2851   : > { %v6253_v31 = vpop.f32.mrf.mxu2 }
0x2852   : > { %6658 = vmatpush.msrb.mxu3 %v9545_v50  ;;  %v7981_v50 = vld [vmem:[%s9935_s0 + $0x20] sm:$0xff] }
0x2854   : > { %6659 = vmatpush.msrb.mxu3 %v9551_v51  ;;  %v6358_v51 = vrot.slane %v9697_v3, 6 }
0x2856   : > { %6660 = vmatpush.msrb.mxu3 %v9557_v10  ;;  %v7980_v10 = vld [vmem:[%s9935_s0 + $0x18] sm:$0xff] }
0x2858   : > { %6661 = vmatpush.msrb.mxu3 %v9563_v52 }
0x2859   : > { %v6255_v7 = vpop.f32.mrf.mxu2 }
0x285a   : > { %6662 = vmatpush.msrb.mxu3 %v9568_v53  ;;  %v7978_v53 = vld [vmem:[%s9935_s0 + $0x8] sm:$0xff] }
0x28a7   : > { %v6227_v9 = vpop.f32.mrf.mxu1 }
0x28a8   : > { %v6228_v38 = vadd.f32 %v6227_v9, %v6094_v37  ;;  %v7991_v37 = vld [vmem:[%s9935_s0 + $0x70] sm:$0xff] }
0x28a9   : > { %6579 = vmatpush.bf16.msrb.mxu1 %v7991_v37 }
0x28af   : > { %v6229_v34 = vpop.f32.mrf.mxu1 }
0x28b0   : > { %v7984_v34 = vld [vmem:[%s9935_s0 + $0x38] sm:$0xff] }
0x28c5   : > { %v6240_v40 = vpop.f32.mrf.mxu3 }
0x28c6   : > { %v6241_v63 = vadd.f32 %v6240_v40, %v6228_v38 }
0x28c8   : > { %v6254_v44 = vadd.f32 %v6253_v31, %v6241_v63 }
0x28ca   : > { %v6257_v47 = vsel %vm5548_vm3, %v6254_v44, 0.0 }
0x28cb   : > { %v6258_v23 = vrot.slane %v6257_v47, 4 }
0x28cd   : > { %v6259_v30 = vadd.f32 %v6258_v23, %v6257_v47  ;;  %v6242_v41 = vpop.f32.mrf.mxu3 }
0x28ce   : > { %v7989_v41 = vld [vmem:[%s9935_s0 + $0x60] sm:$0xff] }
0x28cf   : > { %v6260_v55 = vrot.slane %v6259_v30, 2 }
0x28d1   : > { %v6261_v56 = vadd.f32 %v6260_v55, %v6259_v30 }
0x28d3   : > { %v6262_v58 = vrot.slane %v6261_v56, 1 }
0x28d5   : > { %v6263_v59 = vadd.f32 %v6262_v58, %v6261_v56  ;;  %v7988_v56 = vld [vmem:[%s9935_s0 + $0x58] sm:$0xff] }
0x28d7   : > { %7687 = vmatmul.msk.f32.vlgmr.msrb.gmra.mxu0 %vm3656_vm9, %v6263_v59  ;;  %v7979_v59 = vld [vmem:[%s9935_s0 + $0x10] sm:$0xff] }
0x28d8   : > { %6565 = vmatpush.bf16.msrb.mxu0 %v7984_v34 }
0x28dc   : > { %6566 = vmatpush.bf16.msrb.mxu0 %v7983_v36 }
0x28df   : > { %7689 = vmatmul.msk.bf16.vlgmr.msra.gmra.mxu0 %vm2196_vm7, %v8962_v39 }
0x28e0   : > { %6567 = vmatpush.bf16.msrb.mxu0 %v7982_v49 }
0x28e4   : > { %6568 = vmatpush.bf16.msrb.mxu0 %v7981_v50 }
0x28e8   : > { %6569 = vmatpush.bf16.msrb.mxu0 %v7980_v10  ;;  %v8006_v10 = vld [vmem:[%s9936_s6 + $0x48] sm:$0xff] }
0x28ec   : > { %6570 = vmatpush.bf16.msrb.mxu0 %v7979_v59  ;;  %v8005_v59 = vld [vmem:[%s9936_s6 + $0x40] sm:$0xff] }
0x28f0   : > { %6571 = vmatpush.bf16.msrb.mxu0 %v7978_v53  ;;  %v6679_v53 = vperm.slane %v9697_v3, 4 }
0x2954   : > { %v6284_v60 = vpop.f32.mrf.mxu0 }
0x2955   : > { %v6287_v0 = vperm.slane %v6284_v60, 0  ;;  %v7987_v60 = vld [vmem:[%s9935_s0 + $0x50] sm:$0xff] }
0x2957   : > { %v6288_v2 = vsub.f32 %v6254_v44, %v6287_v0  ;;  %v7990_v44 = vld [vmem:[%s9935_s0 + $0x68] sm:$0xff] }
0x2958   : > { %6580 = vmatpush.bf16.msrb.mxu1 %v7990_v44 }
0x2959   : > { %v6289_v5 = vmul.f32 %v6288_v2, %v6288_v2 }
0x295b   : > { %v6290_v61 = vsel %vm5548_vm3, %v6289_v5, 0.0 }
0x295c   : > { %v6291_v46 = vrot.slane %v6290_v61, 4  ;;  %v9705_v11 = vpop.f32.mrf.mxu0  ;;  %6581 = vmatpush.bf16.msrb.mxu1 %v7989_v41  ;;  %v8008_v41 = vld [vmem:[%s9936_s6 + $0x58] sm:$0xff] }
0x295d   : > { %v6373_v58 = vadd.f32 %v9705_v11, %v6358_v51  ;;  %v8007_v51 = vld [vmem:[%s9936_s6 + $0x50] sm:$0xff] }
0x295e   : > { %v6292_v33 = vadd.f32 %v6291_v46, %v6290_v61  ;;  %v7986_v61 = vld [vmem:[%s9935_s0 + $0x48] sm:$0xff] }
0x295f   : > { %v6376_v0 = vperm.slane %v6373_v58, 0 }
0x2960   : > { %v6293_v12 = vrot.slane %v6292_v33, 2  ;;  %6582 = vmatpush.bf16.msrb.mxu1 %v7988_v56 }
0x2962   : > { %v6294_v45 = vadd.f32 %v6293_v12, %v6292_v33 }
0x2964   : > { %v6295_v43 = vrot.slane %v6294_v45, 1  ;;  %v6374_v18 = vpop.f32.mrf.mxu0  ;;  %6583 = vmatpush.bf16.msrb.mxu1 %v7987_v60 }
0x2966   : > { %v6296_v57 = vadd.f32 %v6295_v43, %v6294_v45 }
0x2968   : > { %7688 = vmatmul.msk.f32.vlgmr.msra.gmra.mxu2 %vm3656_vm9, %v6296_v57  ;;  %6584 = vmatpush.bf16.msrb.mxu1 %v7986_v61 }
0x29eb   : > { %v6317_v19 = vpop.f32.mrf.mxu2 }
0x29ec   : > { %v6318_v54 = vadd.f32 1e-05, %v6317_v19  ;;  %v7977_v19 = vld [vmem:[%s9935_s0] sm:$0xff] }
0x29ed   : > { %6572 = vmatpush.bf16.msrb.mxu0 %v7977_v19 }
0x29ee   : > { %8350 = vrsqrt.f32 %v6318_v54  ;;  %vm6326_vm11 = vweird.f32 %v6318_v54 }
0x29f1   : > { %6841 = vmatpush.bf16.msra.mxu0 %v8008_v41 }
0x29f4   : > { %v8351_v39 = vpop.eup %8350 }
0x29f5   : > { %v6321_v6 = vmul.f32 %v8351_v39, %v6318_v54  ;;  %vm6327_vm7 = vweird.f32 %v8351_v39  ;;  %v7985_v54 = vld [vmem:[%s9935_s0 + $0x40] sm:$0xff]  ;;  %6842 = vmatpush.bf16.msra.mxu0 %v8007_v51  ;;  %s9937_s0 = sld [smem:[#allocation51_spill]] }
0x29f6   : > { %vm6328_vm14 = vmor %vm6326_vm11, %vm6327_vm7  ;;  %6585 = vmatpush.bf16.msrb.mxu1 %v7985_v54  ;;  %v8004_v54 = vld [vmem:[%s9936_s6 + $0x38] sm:$0xff]  ;;  %v6729_v51 = vld [vmem:[%s9939_s2] sm:$0x1]  ;;  %vm6994_vm7 = vcmask 0  }
0x29f7   : > { %v6322_v15 = vmul.f32 %v8351_v39, %v6321_v6  ;;  %6824 = vmatpush.bf16.msra.mxu2 %v8004_v54 }
0x29f9   : > { %v6323_v62 = vmul.f32 0.5, %v6322_v15  ;;  %6843 = vmatpush.bf16.msra.mxu0 %v8006_v10 }
0x29fb   : > { %v6324_v1 = vsub.f32 1.5, %v6323_v62  ;;  %v8009_v10 = vld [vmem:[%s9937_s0] sm:$0xff] }
0x29fd   : > { %v6325_v20 = vmul.f32 %v8351_v39, %v6324_v1  ;;  %6844 = vmatpush.bf16.msra.mxu0 %v8005_v59 }
0x29ff   : > { %v6329_v13 = vsel %vm6328_vm14, %v8351_v39, %v6325_v20 }
0x2a00   : > { %v6330_v14 = vperm.slane %v6329_v13, 0 }
0x2a02   : > { %v6331_v24 = vmul.f32 %v6330_v14, %v6288_v2 }
0x2a04   : > { %v6333_v16 = vmul.f32 %v6332_v21, %v6331_v24 }
0x2a06   : > { %v9710_v17 = vadd.f32 %v6334_v48, %v6333_v16  ;;  %v6441_v48 = vperm.slane %v9697_v3, 3 }
0x2a08   : > { %v6339_v4 = vand.u32 2147483647, %v9710_v17  ;;  %v6336_v32 = vmax.f32 %v9710_v17, 0.0  ;;  %vm6337_vm1 = vcmp.ne.f32.partialorder %v9710_v17, %v9710_v17 }
0x2a0a   : > { %v6340_v26 = vsub.f32 0.0, %v6339_v4 }
0x2a0c   : > { %v6341_v28 = vmul.f32 1.442695, %v6340_v26 }
0x2a0e   : > { %8352 = vpow2.f32 %v6341_v28 }
0x2a14   : > { %v8353_v31 = vpop.eup %8352 }
0x2a15   : > { %v6343_v7 = vadd.f32 1.0, %v8353_v31  ;;  %v6346_v9 = vmul.f32 -0.5, %v8353_v31  ;;  %v6349_v40 = vand.u32 2147483647, %v8353_v31 }
0x2a17   : > { %8354 = vlog2.f32 %v6343_v7  ;;  %v6347_v38 = vadd.f32 1.0, %v6346_v9  ;;  %vm6350_vm10 = vcmp.lt.f32.partialorder %v6349_v40, 0.0004427343 }
0x2a19   : > { %v6348_v23 = vmul.f32 %v8353_v31, %v6347_v38 }
0x2a1d   : > { %v8355_v63 = vpop.eup %8354 }
0x2a1e   : > { %v6345_v47 = vmul.f32 0.6931472, %v8355_v63 }
0x2a20   : > { %v6351_v30 = vsel %vm6350_vm10, %v6348_v23, %v6345_v47 }
0x2a21   : > { %v6352_v25 = vadd.f32 %v6351_v30, %v6336_v32 }
0x2a23   : > { %v6353_v55 = vsel %vm6337_vm1, %v9710_v17, %v6352_v25 }
0x2a24   : > { %8356 = vtanh.f32 %v6353_v55 }
0x2a2a   : > { %v8357_v52 = vpop.eup %8356 }
0x2a2b   : > { %v6355_v2 = vmul.f32 %v8357_v52, %v9710_v17 }
0x2a2d   : > { %v6377_v5 = vadd.f32 %v6376_v0, %v6355_v2 }
0x2a2f   : > { %v6419_v46 = vrot.slane %v6377_v5, 6 }
0x2a31   : > { %v6421_v33 = vsel %vm2301_vm0, 0.0, %v6419_v46  ;;  %v6681_v46 = vperm.slane %v9697_v3, 5  ;;  %v8002_v3 = vld [vmem:[%s9936_s6 + $0x28] sm:$0xff] }
0x2a32   : > { %v6422_v11 = vsel %vm2200_vm4, %v6421_v33, 0.0 }
0x2a33   : > { %v6434_v12 = vrot.slane %v6422_v11, 4  ;;  %v6424_v45 = vrot.slane %v6422_v11, 1  ;;  %v6430_v43 = vrot.slane %v6422_v11, 3  ;;  %v6428_v6 = vrot.slane %v6422_v11, 2 }
0x2a35   : > { %v6440_v18 = vpack.c.bf16 %v6434_v12, %v6434_v12  ;;  %v8193_v57 = vpack.i.bf16 %v6430_v43, %v6424_v45 }
0x2a37   : > { %7770 = vmatmul.msk.bf16.vlgmr.msra.gmra.mxu3 %vm3656_vm9, %v6440_v18  ;;  %8194 = vrot.lane.b32.xlu0 %v8193_v57, %s9911_s12 }
0x2aa9   : > { %v8195_v39 = vpop.permute.xlu0 %8194 }
0x2aaa   : > { %v8197_v15 = vunpack.i.h.bf16 %v8195_v39  ;;  %v8196_v62 = vunpack.i.l.bf16 %v8195_v39  ;;  %v8003_v39 = vld [vmem:[%s9936_s6 + $0x30] sm:$0xff] }
0x2aab   : > { %6825 = vmatpush.bf16.msra.mxu2 %v8003_v39 }
0x2aac   : > { %v6437_v1 = vsel %vm3656_vm9, %v6428_v6, %v8197_v15  ;;  %v6436_v20 = vsel %vm3656_vm9, %v6422_v11, %v8196_v62 }
0x2aad   : > { %v6439_v13 = vpack.c.bf16 %v6437_v1, %v6437_v1  ;;  %v6438_v14 = vpack.c.bf16 %v6436_v20, %v6436_v20 }
0x2aaf   : > { %6573 = vmatmul.bf16.vlgmr.msrb.gmra.mxu0 %v6438_v14  ;;  %6586 = vmatmul.bf16.vlgmr.msrb.gmra.mxu1 %v6439_v13 }
0x2ab0   : > { %6826 = vmatpush.bf16.msra.mxu2 %v8002_v3 }
0x2aba   : > { %v6600_v21 = vpop.f32.mrf.mxu3 }
0x2ac2   : > { %v6602_v24 = vpop.f32.mrf.mxu3 }
0x2ac3   : > { %v8001_v24 = vld [vmem:[%s9936_s6 + $0x20] sm:$0xff] }
0x2ac4   : > { %6827 = vmatpush.bf16.msra.mxu2 %v8001_v24 }
0x2b2c   : > { %v6574_v16 = vpop.f32.mrf.mxu0  ;;  %v6587_v17 = vpop.f32.mrf.mxu1 }
0x2b2d   : > { %v6575_v42 = vadd.f32 %v6574_v16, %v6441_v48  ;;  %v8000_v16 = vld [vmem:[%s9936_s6 + $0x18] sm:$0xff] }
0x2b2e   : > { %6828 = vmatpush.bf16.msra.mxu2 %v8000_v16 }
0x2b2f   : > { %v6588_v4 = vadd.f32 %v6587_v17, %v6575_v42  ;;  %v7999_v17 = vld [vmem:[%s9936_s6 + $0x10] sm:$0xff] }
0x2b31   : > { %v6601_v26 = vadd.f32 %v6600_v21, %v6588_v4 }
0x2b32   : > { %6829 = vmatpush.bf16.msra.mxu2 %v7999_v17 }
0x2b33   : > { %v6604_v27 = vsel %vm5548_vm3, %v6601_v26, 0.0 }
0x2b34   : > { %v6605_v28 = vrot.slane %v6604_v27, 4  ;;  %v6576_v22 = vpop.f32.mrf.mxu0  ;;  %v6589_v29 = vpop.f32.mrf.mxu1 }
0x2b36   : > { %v6606_v31 = vadd.f32 %v6605_v28, %v6604_v27  ;;  %v7998_v27 = vld [vmem:[%s9936_s6 + $0x8] sm:$0xff] }
0x2b37   : > { %6830 = vmatpush.bf16.msra.mxu2 %v7998_v27 }
0x2b38   : > { %v6607_v7 = vrot.slane %v6606_v31, 2 }
0x2b3a   : > { %v6608_v9 = vadd.f32 %v6607_v7, %v6606_v31 }
0x2b3c   : > { %v6609_v34 = vrot.slane %v6608_v9, 1 }
0x2b3e   : > { %v6610_v35 = vadd.f32 %v6609_v34, %v6608_v9  ;;  %v7997_v34 = vld [vmem:[%s9936_s6] sm:$0xff] }
0x2b3f   : > { %6831 = vmatpush.bf16.msra.mxu2 %v7997_v34 }
0x2b40   : > { %7771 = vmatmul.msk.f32.vlgmr.msrb.gmra.mxu2 %vm3656_vm9, %v6610_v35 }
0x2bc3   : > { %v6631_v36 = vpop.f32.mrf.mxu2 }
0x2bc4   : > { %v6634_v37 = vperm.slane %v6631_v36, 0 }
0x2bc6   : > { %v6635_v38 = vsub.f32 %v6601_v26, %v6634_v37 }
0x2bc8   : > { %v6636_v40 = vmul.f32 %v6635_v38, %v6635_v38 }
0x2bca   : > { %v6637_v63 = vsel %vm5548_vm3, %v6636_v40, 0.0  ;;  %v6890_v40 = vld [vmem:[%s9937_s0 + $0x20] sm:$0xf] }
0x2bcb   : > { %v6638_v49 = vrot.slane %v6637_v63, 4 }
0x2bcd   : > { %v6639_v44 = vadd.f32 %v6638_v49, %v6637_v63  ;;  %v6910_v63 = vunpack.c.l.b16 %v6890_v40 }
0x2bcf   : > { %v6640_v47 = vrot.slane %v6639_v44, 2  ;;  %v6915_v49 = vpack.c.b16 %v6910_v63, %v6910_v63 }
0x2bd1   : > { %v6641_v23 = vadd.f32 %v6640_v47, %v6639_v44  ;;  %v6925_v44 = vsel %vm2200_vm4, %v6915_v49, 0  ;;  %v8012_v47 = vld [vmem:[%s9937_s0 + $0x18] sm:$0xff]  ;;  %vm6920_vm4 = vcmask 588800  }
0x2bd2   : > { %6930 = vmatpush.bf16.msra.mxu1 %v6925_v44 }
0x2bd3   : > { %v6642_v32 = vrot.slane %v6641_v23, 1 }
0x2bd5   : > { %v6643_v30 = vadd.f32 %v6642_v32, %v6641_v23  ;;  %v8011_v23 = vld [vmem:[%s9937_s0 + $0x10] sm:$0xff]  ;;  %v8010_v32 = vld [vmem:[%s9937_s0 + $0x8] sm:$0xff] }
0x2bd6   : > { %6931 = vmatpush.bf16.msra.mxu1 %v8012_v47 }
0x2bd7   : > { %7772 = vmatmul.msk.f32.vlgmr.msrb.gmra.mxu3 %vm3656_vm9, %v6643_v30  ;;  %v8201_v30 = vld [vmem:[%s9938_s1] ss:$0 sm:$0xff] }
0x2bda   : > { %6932 = vmatpush.bf16.msra.mxu1 %v8011_v23 }
0x2bde   : > { %6933 = vmatpush.bf16.msra.mxu1 %v8010_v32 }
0x2be2   : > { %6934 = vmatpush.bf16.msra.mxu1 %v8009_v10 }
0x2c5a   : > { %v6664_v25 = vpop.f32.mrf.mxu3 }
0x2c5b   : > { %v6665_v50 = vadd.f32 1e-05, %v6664_v25 }
0x2c5d   : > { %8358 = vrsqrt.f32 %v6665_v50  ;;  %vm6673_vm2 = vweird.f32 %v6665_v50 }
0x2c63   : > { %v8359_v55 = vpop.eup %8358 }
0x2c64   : > { %v6668_v56 = vmul.f32 %v8359_v55, %v6665_v50  ;;  %vm6674_vm3 = vweird.f32 %v8359_v55 }
0x2c65   : > { %vm6675_vm13 = vmor %vm6673_vm2, %vm6674_vm3 }
0x2c66   : > { %v6669_v58 = vmul.f32 %v8359_v55, %v6668_v56  ;;  %v6879_v56 = vpop.permute.xlu2 %6878 }
0x2c68   : > { %v6670_v60 = vmul.f32 0.5, %v6669_v58 }
0x2c6a   : > { %v6671_v52 = vsub.f32 1.5, %v6670_v60 }
0x2c6c   : > { %v6672_v0 = vmul.f32 %v8359_v55, %v6671_v52  ;;  %v6892_v52 = vld [vmem:[%s8769_s27] sm:$0x1] }
0x2c6e   : > { %v6676_v2 = vsel %vm6675_vm13, %v8359_v55, %v6672_v0 }
0x2c6f   : > { %v6677_v5 = vperm.slane %v6676_v2, 0 }
0x2c71   : > { %v6678_v61 = vmul.f32 %v6677_v5, %v6635_v38  ;;  %v8014_v5 = vld [vmem:[%s8774_s4 + $0x8] sm:$0xff] }
0x2c73   : > { %v6680_v33 = vmul.f32 %v6679_v53, %v6678_v61 }
0x2c75   : > { %v6682_v11 = vadd.f32 %v6681_v46, %v6680_v33  ;;  %v8013_v46 = vld [vmem:[%s8774_s4] sm:$0xff] }
0x2c77   : > { %v6686_v12 = vand.u32 2147483647, %v6682_v11  ;;  %v6683_v13 = vmax.f32 %v6682_v11, 0.0  ;;  %vm6684_vm6 = vcmp.ne.f32.partialorder %v6682_v11, %v6682_v11 }
0x2c79   : > { %v6687_v45 = vsub.f32 0.0, %v6686_v12 }
0x2c7b   : > { %v6688_v43 = vmul.f32 1.442695, %v6687_v45 }
0x2c7d   : > { %8360 = vpow2.f32 %v6688_v43 }
0x2c83   : > { %v8361_v18 = vpop.eup %8360 }
0x2c84   : > { %v6690_v57 = vadd.f32 1.0, %v8361_v18  ;;  %v6693_v19 = vmul.f32 -0.5, %v8361_v18  ;;  %v6696_v15 = vand.u32 2147483647, %v8361_v18 }
0x2c86   : > { %8362 = vlog2.f32 %v6690_v57  ;;  %v6694_v6 = vadd.f32 1.0, %v6693_v19  ;;  %vm6697_vm12 = vcmp.lt.f32.partialorder %v6696_v15, 0.0004427343 }
0x2c88   : > { %v6695_v20 = vmul.f32 %v8361_v18, %v6694_v6 }
0x2c8c   : > { %v8363_v62 = vpop.eup %8362 }
0x2c8d   : > { %v6692_v1 = vmul.f32 0.6931472, %v8363_v62 }
0x2c8f   : > { %v6698_v14 = vsel %vm6697_vm12, %v6695_v20, %v6692_v1 }
0x2c90   : > { %v6699_v21 = vadd.f32 %v6698_v14, %v6683_v13  ;;  %v6965_v14 = vld [vmem:[#allocation2] sm:$0x1] }
0x2c92   : > { %v6700_v48 = vsel %vm6684_vm6, %v6682_v11, %v6699_v21 }
0x2c93   : > { %8364 = vtanh.f32 %v6700_v48 }
0x2c99   : > { %v8365_v42 = vpop.eup %8364 }
0x2c9a   : > { %v6702_v4 = vmul.f32 %v8365_v42, %v6682_v11 }
0x2c9c   : > { %v6703_v26 = vadd.f32 %v6702_v4, %v9664_v8 }
0x2c9e   : > { %v6731_v28 = vrot.slane %v6703_v26, 7 }
0x2ca0   : > { %v6733_v22 = vsel %vm3318_vm15, 0.0, %v6731_v28  ;;  %vm6850_vm15 = vcmask 15360  }
0x2ca1   : > { %v6735_v29 = vsel %vm6734_vm5, %v6733_v22, 0.0 }
0x2ca2   : > { %v6737_v31 = vrot.slane %v6735_v29, 1  ;;  %v6741_v7 = vrot.slane %v6735_v29, 2 }
0x2ca4   : > { %v6745_v9 = vpack.c.bf16 %v6741_v7, %v6741_v7  ;;  %6738 = vrot.lane.b32.xlu1 %v6737_v31, %s9911_s12  ;;  %s1866_s12 = scalar_lea.vmem %s8782_s20, %s9941_s23 }
0x2ca6   : > { %7821 = vmatmul.msk.bf16.vlgmr.msra.gmra.mxu0 %vm3656_vm9, %v6745_v9 }
0x2d16   : > { %v6739_v8 = vpop.permute.xlu1 %6738 }
0x2d17   : > { %v6743_v35 = vsel %vm3656_vm9, %v6735_v29, %v6739_v8 }
0x2d18   : > { %v6744_v36 = vpack.c.bf16 %v6743_v35, %v6743_v35 }
0x2d1a   : > { %6832 = vmatmul.bf16.vlgmr.msra.gmra.mxu2 %v6744_v36 }
0x2d23   : > { %v6846_v37 = vpop.f32.mrf.mxu0 }
0x2d2b   : > { %v6848_v38 = vpop.f32.mrf.mxu0 }
0x2d9d   : > { %v6833_v25 = vpop.f32.mrf.mxu2 }
0x2d9e   : > { %v6834_v50 = vadd.f32 %v8201_v30, %v6833_v25 }
0x2da0   : > { %v6847_v41 = vadd.f32 %v6846_v37, %v6834_v50 }
0x2da2   : > { %7822 = vmatpush.msk.msra.mxu3 %vm2301_vm0, %v6847_v41 }
0x2da3   : > { %7823 = vmatmul.msk.f32.vlgmr.msra.gmra.mxu3 %vm6850_vm15, %v6729_v51 }
0x2da4   : > { %6987 = vmatpush.bf16.msrb.mxu3 %v8014_v5 }
0x2da5   : > { %v6835_v55 = vpop.f32.mrf.mxu2 }
0x2da8   : > { %6988 = vmatpush.bf16.msrb.mxu3 %v8013_v46 }
0x2e26   : > { %v6874_v58 = vpop.f32.mrf.mxu3 }
0x2e27   : > { %v6881_v59 = vsel %vm3656_vm9, %v6874_v58, %v6879_v56 }
0x2e28   : > { %v6891_v60 = vpack.c.bf16 %v6881_v59, %v6881_v59 }
0x2e2a   : > { %7840 = vmatmul.msk.bf16.vlgmr.msra.gmra.mxu1 %vm6920_vm4, %v6891_v60 }
0x2ea7   : > { %v6936_v0 = vpop.f32.mrf.mxu1 }
0x2ea8   : > { %v6937_v2 = vadd.f32 %v6936_v0, %v6892_v52 }
0x2eaa   : > { %v6943_v53 = vand.u32 2147483647, %v6937_v2  ;;  %v6940_v6 = vmax.f32 %v6937_v2, 0.0  ;;  %vm6941_vm9 = vcmp.ne.f32.partialorder %v6937_v2, %v6937_v2 }
0x2eac   : > { %v6944_v61 = vsub.f32 0.0, %v6943_v53 }
0x2eae   : > { %v6945_v33 = vmul.f32 1.442695, %v6944_v61 }
0x2eaf   : > { %v6938_v11 = vpop.f32.mrf.mxu1 }
0x2eb0   : > { %8366 = vpow2.f32 %v6945_v33 }
0x2eb6   : > { %v8367_v12 = vpop.eup %8366 }
0x2eb7   : > { %v6947_v45 = vadd.f32 1.0, %v8367_v12  ;;  %v6950_v43 = vmul.f32 -0.5, %v8367_v12  ;;  %v6953_v57 = vand.u32 2147483647, %v8367_v12 }
0x2eb9   : > { %8368 = vlog2.f32 %v6947_v45  ;;  %v6951_v18 = vadd.f32 1.0, %v6950_v43  ;;  %vm6954_vm0 = vcmp.lt.f32.partialorder %v6953_v57, 0.0004427343 }
0x2ebb   : > { %v6952_v39 = vmul.f32 %v8367_v12, %v6951_v18 }
0x2ebf   : > { %v8369_v19 = vpop.eup %8368 }
0x2ec0   : > { %v6949_v54 = vmul.f32 0.6931472, %v8369_v19 }
0x2ec2   : > { %v6955_v15 = vsel %vm6954_vm0, %v6952_v39, %v6949_v54 }
0x2ec3   : > { %v6956_v62 = vadd.f32 %v6955_v15, %v6940_v6 }
0x2ec5   : > { %v6957_v3 = vsel %vm6941_vm9, %v6937_v2, %v6956_v62 }
0x2ec6   : > { %8370 = vtanh.f32 %v6957_v3 }
0x2ecc   : > { %v8371_v1 = vpop.eup %8370 }
0x2ecd   : > { %v6959_v20 = vmul.f32 %v8371_v1, %v6937_v2 }
0x2ecf   : > { %v6964_v13 = vpack.c.bf16 %v6959_v20, %v6959_v20 }
0x2ed1   : > { %7849 = vmatmul.msk.bf16.vlgmr.msrb.gmra.mxu3 %vm2255_vm8, %v6964_v13 }
0x2f54   : > { %v6990_v21 = vpop.f32.mrf.mxu3 }
0x2f55   : > { %v6991_v24 = vadd.f32 %v6990_v21, %v6965_v14 }
0x2f57   : > { %6995 = vst.msk [vmem:[%s1866_s12] sm:$0x1] %vm6994_vm7, %v6991_v24 }
0x2f5c   : > { %v6992_v48 = vpop.f32.mrf.mxu3 }
0x2f5d PF: > { %s139_s22 = sadd.s32 1, %s8380_s22  }
0x2f5e   : > { %p136_p4 = scmp.ge.s32.totalorder %s139_s22, 4  }
0x2f60   :  { %138 = sbr.rel (!%p136_p4) target bundleno = 143 (0x8f), region = 368 }

</bundles_post_ra>
